<compile_context>
chip_gen: v7x
topology: tpu7x:2x2x1
jax: 0.10.0
libtpu: 0.0.40
codegen_flags: <defaults>
</compile_context>

<pallas_src>
import functools
import math

import jax
import jax.numpy as jnp
import numpy as np
from jax.experimental import pallas as pl
from jax.experimental.pallas import tpu as pltpu

LN_EPS = 1e-12  # RobertaConfig.layer_norm_eps default


def _layer_norm(x, gamma, beta):
    mean = jnp.mean(x, axis=-1, keepdims=True)
    var = jnp.mean(jnp.square(x - mean), axis=-1, keepdims=True)
    return (x - mean) * jax.lax.rsqrt(var + LN_EPS) * gamma + beta


def _gelu_exact(x):
    # hidden_act='gelu' in HF is the exact erf-based GELU.
    return 0.5 * x * (1.0 + jax.lax.erf(x * 0.7071067811865476))


def _encoder_layer(x, wqkv, wao, wi, wfo, sm, bi, *, num_heads, Bc, S):
    """One Roberta encoder layer on a (Bt, H) f32 hidden state.

    wqkv (H,3H), wao (H,H), wi (H,I), wfo (I,H) are bf16; sm (9,H) packs the
    small per-layer f32 vectors; bi is (1,I) f32.
    """
    Bt, H = x.shape
    hd = H // num_heads
    scale = 1.0 / math.sqrt(hd)

    bq, bk, bv, bao = sm[0:1], sm[1:2], sm[2:3], sm[3:4]
    g1, b1, bfo = sm[4:5], sm[5:6], sm[6:7]
    g2, b2 = sm[7:8], sm[8:9]

    xb = x.astype(jnp.bfloat16)

    # --- self attention: fused QKV projection (bf16 in, f32 accumulate) -----
    qkv = jnp.dot(xb, wqkv, preferred_element_type=jnp.float32)          # (Bt, 3H)
    q3 = ((qkv[:, 0:H] + bq) * scale).reshape(Bc, S, H).astype(jnp.bfloat16)
    k3 = (qkv[:, H:2 * H] + bk).reshape(Bc, S, H).astype(jnp.bfloat16)
    v3 = (qkv[:, 2 * H:3 * H] + bv).reshape(Bc, S, H).astype(jnp.bfloat16)

    # Stack heads along the (major) batch axis: the score / context matmuls
    # become ONE batched dot_general each and the softmax runs once for all
    # heads (no unrolled per-head loop / per-head MXU pushes).
    qh = jnp.concatenate(
        [q3[:, :, h * hd:(h + 1) * hd] for h in range(num_heads)], axis=0)
    kh = jnp.concatenate(
        [k3[:, :, h * hd:(h + 1) * hd] for h in range(num_heads)], axis=0)
    vh = jnp.concatenate(
        [v3[:, :, h * hd:(h + 1) * hd] for h in range(num_heads)], axis=0)

    s = jnp.einsum('nqd,nkd->nqk', qh, kh,
                   preferred_element_type=jnp.float32)                    # (NH*Bc, S, S)
    m = jnp.max(s, axis=-1, keepdims=True)
    e = jnp.exp(s - m)
    p = e * pl.reciprocal(jnp.sum(e, axis=-1, keepdims=True), approx=True)
    ctx = jnp.einsum('nqk,nkd->nqd', p.astype(jnp.bfloat16), vh,
                     preferred_element_type=jnp.float32)                  # (NH*Bc, S, hd)

    # Re-assemble heads along the lane axis and do ONE output projection.
    ctx = jnp.concatenate(
        [ctx[h * Bc:(h + 1) * Bc] for h in range(num_heads)], axis=-1)    # (Bc, S, H)
    attn = jnp.dot(ctx.reshape(Bt, H).astype(jnp.bfloat16), wao,
                   preferred_element_type=jnp.float32) + bao

    x1 = _layer_norm(attn + x, g1, b1)                                    # (Bt, H)

    # --- feed forward (bf16 weights, f32 accumulation, exact erf GELU) ------
    # GELU kept in f32 (v5e has no bf16 VPU/EUP; accuracy headroom elsewhere).
    inter = _gelu_exact(
        jnp.dot(x1.astype(jnp.bfloat16), wi,
                preferred_element_type=jnp.float32) + bi)                 # (Bt, I)
    ffn = jnp.dot(inter.astype(jnp.bfloat16), wfo,
                  preferred_element_type=jnp.float32) + bfo
    return _layer_norm(ffn + x1, g2, b2)


def _roberta_fused_kernel(h_ref, wqkv_ref, wao_ref, wi_ref, wfo_ref,
                          smh_ref, bi_ref, out_ref, *, num_heads, num_layers):
    """All weights resident in VMEM; layers looped inside one grid step."""
    Bc, S, H = h_ref.shape
    x = h_ref[...].reshape(Bc * S, H)
    # Static unroll: the fused path is only selected when the whole weight set
    # fits VMEM, which implies a small layer count.
    for l in range(num_layers):
        x = _encoder_layer(x, wqkv_ref[l], wao_ref[l], wi_ref[l], wfo_ref[l],
                           smh_ref[l], bi_ref[l],
                           num_heads=num_heads, Bc=Bc, S=S)
    out_ref[...] = x.reshape(Bc, S, H)


def _roberta_streamed_kernel(h_ref, wqkv_ref, wao_ref, wi_ref, wfo_ref,
                             smh_ref, bi_ref, out_ref, *, num_heads):
    """Per-layer weight streaming; hidden state carried in the resident out block."""
    Bc, S, H = out_ref.shape

    @pl.when(pl.program_id(1) == 0)
    def _init():
        out_ref[...] = h_ref[...]

    x = _encoder_layer(out_ref[...].reshape(Bc * S, H),
                       wqkv_ref[0], wao_ref[0], wi_ref[0], wfo_ref[0],
                       smh_ref[0], bi_ref[0], num_heads=num_heads, Bc=Bc, S=S)
    out_ref[...] = x.reshape(Bc, S, H)


def simple_roberta_forward(inputs_embeds, params, num_heads, *,
                           batch_chunks=1, max_fused_weight_bytes=24 << 20):
    """RobertaModel(inputs_embeds=...).last_hidden_state.

    batch_chunks=1 streams each layer's weights from HBM exactly once.
    batch_chunks=2 may be used on v7x to occupy both TensorCores, but note
    plain "parallel" semantics may not shard across cores and each core then
    streams the full weight set — only worthwhile when per-chunk compute
    exceeds the doubled weight DMA.
    """
    B, S, H = inputs_embeds.shape
    L = params["wq"].shape[0]
    I = params["wi"].shape[-1]
    assert B % batch_chunks == 0
    Bc = B // batch_chunks

    # --- embeddings hoisted out of the hot kernel (read once) ---------------
    # Positions start at padding_idx + 1 = 1; token_type_ids == 0.
    pos_tok = params["pos_emb"][1:S + 1] + params["tok_emb"][0:1]         # (S, H)
    h0 = _layer_norm(inputs_embeds + pos_tok[None],
                     params["ln_emb_g"], params["ln_emb_b"]).astype(jnp.float32)

    # --- pack per-layer params ----------------------------------------------
    bf16 = jnp.bfloat16
    wqkv = jnp.concatenate([params["wq"], params["wk"], params["wv"]],
                           axis=-1).astype(bf16)                          # (L, H, 3H)
    wao = params["wao"].astype(bf16)                                      # (L, H, H)
    wi = params["wi"].astype(bf16)                                        # (L, H, I)
    wfo = params["wfo"].astype(bf16)                                      # (L, I, H)
    small_h = jnp.concatenate(
        [params["bq"], params["bk"], params["bv"], params["bao"],
         params["ln1_g"], params["ln1_b"], params["bfo"],
         params["ln2_g"], params["ln2_b"]], axis=1).astype(jnp.float32)   # (L, 9, H)
    bi = params["bi"].astype(jnp.float32)                                 # (L, 1, I)

    weight_bytes = 2 * L * (H * 3 * H + H * H + 2 * H * I)                # bf16 total
    act_bytes = 4 * Bc * S * (3 * H + 2 * I)                              # rough f32 live acts
    out_shape = jax.ShapeDtypeStruct((B, S, H), jnp.float32)

    def _vmem_limit(nbytes):
        # Generation-safe clamp: <= 48 MiB keeps headroom under v7x's 64 MiB.
        return int(min(max(2 * nbytes, 16 << 20), 48 << 20))

    if weight_bytes <= max_fused_weight_bytes:
        # Small model (the shipped SimpleRoberta config): all weights fit in
        # VMEM -> one grid step per batch chunk, no per-layer grid overhead.
        kernel = functools.partial(_roberta_fused_kernel,
                                   num_heads=num_heads, num_layers=L)
        grid_spec = pltpu.PrefetchScalarGridSpec(
            num_scalar_prefetch=0,
            grid=(batch_chunks,),
            in_specs=[
                pl.BlockSpec((Bc, S, H), lambda c: (c, 0, 0)),            # h0
                pl.BlockSpec((L, H, 3 * H), lambda c: (0, 0, 0)),         # Wqkv (bf16)
                pl.BlockSpec((L, H, H), lambda c: (0, 0, 0)),             # attn out (bf16)
                pl.BlockSpec((L, H, I), lambda c: (0, 0, 0)),             # FFN in (bf16)
                pl.BlockSpec((L, I, H), lambda c: (0, 0, 0)),             # FFN out (bf16)
                pl.BlockSpec((L, 9, H), lambda c: (0, 0, 0)),             # packed small params
                pl.BlockSpec((L, 1, I), lambda c: (0, 0, 0)),             # FFN in bias
            ],
            out_specs=pl.BlockSpec((Bc, S, H), lambda c: (c, 0, 0)),
        )
        dims = ("parallel",)
        limit = _vmem_limit(2 * weight_bytes + act_bytes)
    else:
        # Large model: stream one layer's weights per grid step.  Default
        # double buffering (safe on v7x); on v5e (~0.8 TB/s HBM) deepen with
        # pipeline_mode=pl.Buffered(3) on wqkv/wi/wfo if the DMA is exposed.
        # TODO(synk): tile the FFN along I (chunk wi columns / wfo rows) when
        # Bc*S grows large enough that the (Bt, I) f32 intermediate threatens
        # v7x's 64 MiB VMEM.
        kernel = functools.partial(_roberta_streamed_kernel, num_heads=num_heads)

        def per_layer(shape):
            return pl.BlockSpec(shape, lambda c, l: (l, 0, 0))

        grid_spec = pltpu.PrefetchScalarGridSpec(
            num_scalar_prefetch=0,
            grid=(batch_chunks, L),              # layer axis innermost (carry)
            in_specs=[
                pl.BlockSpec((Bc, S, H), lambda c, l: (c, 0, 0)),         # h0
                per_layer((1, H, 3 * H)),
                per_layer((1, H, H)),
                per_layer((1, H, I)),
                per_layer((1, I, H)),
                per_layer((1, 9, H)),
                per_layer((1, 1, I)),
            ],
            out_specs=pl.BlockSpec((Bc, S, H), lambda c, l: (c, 0, 0)),
        )
        dims = ("parallel", "arbitrary")
        limit = _vmem_limit(2 * (weight_bytes // L) + act_bytes)

    return pl.pallas_call(
        kernel,
        out_shape=out_shape,
        grid_spec=grid_spec,
        compiler_params=pltpu.CompilerParams(
            dimension_semantics=dims,
            vmem_limit_bytes=limit),
    )(h0, wqkv, wao, wi, wfo, small_h, bi)


def init_params(key, L, H, I, max_pos=64, type_vocab=2):
    ks = jax.random.split(key, 14)
    nrm = lambda k, s: 0.02 * jax.random.normal(k, s, jnp.float32)
    nrm_w = lambda k, s: nrm(k, s).astype(jnp.bfloat16)    # streamed weights in bf16
    return {
        "pos_emb": nrm(ks[0], (max_pos, H)),
        "tok_emb": nrm(ks[1], (type_vocab, H)),
        "ln_emb_g": jnp.ones((1, H), jnp.float32),
        "ln_emb_b": jnp.zeros((1, H), jnp.float32),
        "wq": nrm_w(ks[2], (L, H, H)), "bq": nrm(ks[3], (L, 1, H)),
        "wk": nrm_w(ks[4], (L, H, H)), "bk": nrm(ks[5], (L, 1, H)),
        "wv": nrm_w(ks[6], (L, H, H)), "bv": nrm(ks[7], (L, 1, H)),
        "wao": nrm_w(ks[8], (L, H, H)), "bao": nrm(ks[9], (L, 1, H)),
        "ln1_g": jnp.ones((L, 1, H), jnp.float32),
        "ln1_b": jnp.zeros((L, 1, H), jnp.float32),
        "wi": nrm_w(ks[10], (L, H, I)), "bi": nrm(ks[11], (L, 1, I)),
        "wfo": nrm_w(ks[12], (L, I, H)), "bfo": nrm(ks[13], (L, 1, H)),
        "ln2_g": jnp.ones((L, 1, H), jnp.float32),
        "ln2_b": jnp.zeros((L, 1, H), jnp.float32),
    }


def roberta_reference(x, params, num_heads):
    """Pure-JAX (f32 math, same bf16 weight values) reference for checking."""
    B, S, H = x.shape
    hd = H // num_heads
    scale = 1.0 / math.sqrt(hd)
    h = _layer_norm(
        x + params["pos_emb"][1:S + 1][None] + params["tok_emb"][0:1][None],
        params["ln_emb_g"], params["ln_emb_b"])
    L = params["wq"].shape[0]
    for l in range(L):
        q = (h @ params["wq"][l].astype(jnp.float32) + params["bq"][l]).reshape(B, S, num_heads, hd)
        k = (h @ params["wk"][l].astype(jnp.float32) + params["bk"][l]).reshape(B, S, num_heads, hd)
        v = (h @ params["wv"][l].astype(jnp.float32) + params["bv"][l]).reshape(B, S, num_heads, hd)
        scores = jnp.einsum("bqnd,bknd->bnqk", q, k) * scale
        probs = jax.nn.softmax(scores, axis=-1)
        ctx = jnp.einsum("bnqk,bknd->bqnd", probs, v).reshape(B, S, H)
        attn = ctx @ params["wao"][l].astype(jnp.float32) + params["bao"][l]
        x1 = _layer_norm(attn + h, params["ln1_g"][l], params["ln1_b"][l])
        inter = _gelu_exact(x1 @ params["wi"][l].astype(jnp.float32) + params["bi"][l])
        ffn = inter @ params["wfo"][l].astype(jnp.float32) + params["bfo"][l]
        h = _layer_norm(ffn + x1, params["ln2_g"][l], params["ln2_b"][l])
    return h


if __name__ == "__main__":
    # SimpleRoberta(num_hidden_layers=2, hidden_size=32, num_attention_heads=8,
    #               hidden_act='gelu'); intermediate_size stays at the
    #               RobertaConfig default of 3072.
    B, S, H, L, NH = 2, 8, 32, 2, 8
    I = 3072

    key = jax.random.PRNGKey(0)
    kp, kx = jax.random.split(key)
    params = init_params(kp, L, H, I)
    inputs_embeds = jax.random.normal(kx, (B, S, H), jnp.float32)

    out = simple_roberta_forward(inputs_embeds, params, NH)
    out = jax.block_until_ready(out)

    assert out.shape == (B, S, H), out.shape
    ref = roberta_reference(inputs_embeds, params, NH)
    np.testing.assert_allclose(np.asarray(out), np.asarray(ref),
                               rtol=2e-2, atol=2e-2)

    # TODO(synk): dropout layers are treated as inference-mode identities
    # (training-time stochastic dropout is not modeled); no attention mask
    # (equivalent to attention_mask=None) and the pooler head is unused.
    print("KERNEL_OK")
</pallas_src>

<mosaic_0001>
module attributes {stable_mosaic.version = 11 : i64} {
  func.func @_roberta_fused_kernel(%arg0: i32, %arg1: memref<2x8x32xf32, #tpu.memory_space<vmem>>, %arg2: memref<2x32x96xbf16, #tpu.memory_space<vmem>>, %arg3: memref<2x32x32xbf16, #tpu.memory_space<vmem>>, %arg4: memref<2x32x3072xbf16, #tpu.memory_space<vmem>>, %arg5: memref<2x3072x32xbf16, #tpu.memory_space<vmem>>, %arg6: memref<2x9x32xf32, #tpu.memory_space<vmem>>, %arg7: memref<2x1x3072xf32, #tpu.memory_space<vmem>>, %arg8: memref<2x8x32xf32, #tpu.memory_space<vmem>>) attributes {dimension_semantics = [#tpu.dimension_semantics<parallel>], iteration_bounds = array<i64: 1>, scalar_prefetch = 0 : i64, scratch_operands = 0 : i64, tpu.core_type = #tpu.core_type<tc>, window_params = [{transform_indices = @transform_0, window_bounds = array<i64: 2, 8, 32>}, {pipeline_mode = #tpu.pipeline_mode<synchronous>, transform_indices = @transform_1, window_bounds = array<i64: 2, 32, 96>}, {pipeline_mode = #tpu.pipeline_mode<synchronous>, transform_indices = @transform_2, window_bounds = array<i64: 2, 32, 32>}, {pipeline_mode = #tpu.pipeline_mode<synchronous>, transform_indices = @transform_3, window_bounds = array<i64: 2, 32, 3072>}, {pipeline_mode = #tpu.pipeline_mode<synchronous>, transform_indices = @transform_4, window_bounds = array<i64: 2, 3072, 32>}, {pipeline_mode = #tpu.pipeline_mode<synchronous>, transform_indices = @transform_5, window_bounds = array<i64: 2, 9, 32>}, {pipeline_mode = #tpu.pipeline_mode<synchronous>, transform_indices = @transform_6, window_bounds = array<i64: 2, 1, 3072>}, {transform_indices = @transform_7, window_bounds = array<i64: 2, 8, 32>}]} {
    %c0 = arith.constant 0 : index
    %c0_0 = arith.constant 0 : index
    %c0_1 = arith.constant 0 : index
    %0 = vector.load %arg1[%c0, %c0_0, %c0_1] : memref<2x8x32xf32, #tpu.memory_space<vmem>>, vector<2x8x32xf32>
    %1 = vector.shape_cast %0 : vector<2x8x32xf32> to vector<16x32xf32>
    %c0_2 = arith.constant 0 : index
    %c0_3 = arith.constant 0 : index
    %c0_4 = arith.constant 0 : index
    %2 = vector.load %arg2[%c0_2, %c0_3, %c0_4] : memref<2x32x96xbf16, #tpu.memory_space<vmem>>, vector<1x32x96xbf16>
    %3 = vector.shape_cast %2 : vector<1x32x96xbf16> to vector<32x96xbf16>
    %c0_5 = arith.constant 0 : index
    %c0_6 = arith.constant 0 : index
    %c0_7 = arith.constant 0 : index
    %4 = vector.load %arg3[%c0_5, %c0_6, %c0_7] : memref<2x32x32xbf16, #tpu.memory_space<vmem>>, vector<1x32x32xbf16>
    %5 = vector.shape_cast %4 : vector<1x32x32xbf16> to vector<32x32xbf16>
    %c0_8 = arith.constant 0 : index
    %c0_9 = arith.constant 0 : index
    %c0_10 = arith.constant 0 : index
    %6 = vector.load %arg4[%c0_8, %c0_9, %c0_10] : memref<2x32x3072xbf16, #tpu.memory_space<vmem>>, vector<1x32x3072xbf16>
    %7 = vector.shape_cast %6 : vector<1x32x3072xbf16> to vector<32x3072xbf16>
    %c0_11 = arith.constant 0 : index
    %c0_12 = arith.constant 0 : index
    %c0_13 = arith.constant 0 : index
    %8 = vector.load %arg5[%c0_11, %c0_12, %c0_13] : memref<2x3072x32xbf16, #tpu.memory_space<vmem>>, vector<1x3072x32xbf16>
    %9 = vector.shape_cast %8 : vector<1x3072x32xbf16> to vector<3072x32xbf16>
    %c0_14 = arith.constant 0 : index
    %c0_15 = arith.constant 0 : index
    %c0_16 = arith.constant 0 : index
    %10 = vector.load %arg6[%c0_14, %c0_15, %c0_16] : memref<2x9x32xf32, #tpu.memory_space<vmem>>, vector<1x9x32xf32>
    %11 = vector.shape_cast %10 : vector<1x9x32xf32> to vector<9x32xf32>
    %c0_17 = arith.constant 0 : index
    %c0_18 = arith.constant 0 : index
    %c0_19 = arith.constant 0 : index
    %12 = vector.load %arg7[%c0_17, %c0_18, %c0_19] : memref<2x1x3072xf32, #tpu.memory_space<vmem>>, vector<1x1x3072xf32>
    %13 = vector.shape_cast %12 : vector<1x1x3072xf32> to vector<1x3072xf32>
    %14 = vector.extract_strided_slice %11 {offsets = [0, 0], sizes = [1, 32], strides = [1, 1]} : vector<9x32xf32> to vector<1x32xf32>
    %15 = vector.extract_strided_slice %11 {offsets = [1, 0], sizes = [1, 32], strides = [1, 1]} : vector<9x32xf32> to vector<1x32xf32>
    %16 = vector.extract_strided_slice %11 {offsets = [2, 0], sizes = [1, 32], strides = [1, 1]} : vector<9x32xf32> to vector<1x32xf32>
    %17 = vector.extract_strided_slice %11 {offsets = [3, 0], sizes = [1, 32], strides = [1, 1]} : vector<9x32xf32> to vector<1x32xf32>
    %18 = vector.extract_strided_slice %11 {offsets = [4, 0], sizes = [1, 32], strides = [1, 1]} : vector<9x32xf32> to vector<1x32xf32>
    %19 = vector.extract_strided_slice %11 {offsets = [5, 0], sizes = [1, 32], strides = [1, 1]} : vector<9x32xf32> to vector<1x32xf32>
    %20 = vector.extract_strided_slice %11 {offsets = [6, 0], sizes = [1, 32], strides = [1, 1]} : vector<9x32xf32> to vector<1x32xf32>
    %21 = vector.extract_strided_slice %11 {offsets = [7, 0], sizes = [1, 32], strides = [1, 1]} : vector<9x32xf32> to vector<1x32xf32>
    %22 = vector.extract_strided_slice %11 {offsets = [8, 0], sizes = [1, 32], strides = [1, 1]} : vector<9x32xf32> to vector<1x32xf32>
    %23 = arith.truncf %1 : vector<16x32xf32> to vector<16x32xbf16>
    %cst = arith.constant dense<0.000000e+00> : vector<16x96xf32>
    %24 = tpu.matmul %23, %3, %cst {dimension_numbers = #tpu.dot_dimension_numbers<[1], [0], [0], [1], [0, 0, 1, 1], [], []>} : vector<16x32xbf16>, vector<32x96xbf16>, vector<16x96xf32> -> vector<16x96xf32>
    %25 = vector.extract_strided_slice %24 {offsets = [0, 0], sizes = [16, 32], strides = [1, 1]} : vector<16x96xf32> to vector<16x32xf32>
    %26 = vector.broadcast %14 : vector<1x32xf32> to vector<16x32xf32>
    %27 = arith.addf %25, %26 : vector<16x32xf32>
    %cst_20 = arith.constant 5.000000e-01 : f32
    %28 = vector.broadcast %cst_20 : f32 to vector<16x32xf32>
    %29 = arith.mulf %27, %28 : vector<16x32xf32>
    %30 = vector.shape_cast %29 : vector<16x32xf32> to vector<2x8x32xf32>
    %31 = arith.truncf %30 : vector<2x8x32xf32> to vector<2x8x32xbf16>
    %32 = vector.extract_strided_slice %24 {offsets = [0, 32], sizes = [16, 32], strides = [1, 1]} : vector<16x96xf32> to vector<16x32xf32>
    %33 = vector.broadcast %15 : vector<1x32xf32> to vector<16x32xf32>
    %34 = arith.addf %32, %33 : vector<16x32xf32>
    %35 = vector.shape_cast %34 : vector<16x32xf32> to vector<2x8x32xf32>
    %36 = arith.truncf %35 : vector<2x8x32xf32> to vector<2x8x32xbf16>
    %37 = vector.extract_strided_slice %24 {offsets = [0, 64], sizes = [16, 32], strides = [1, 1]} : vector<16x96xf32> to vector<16x32xf32>
    %38 = vector.broadcast %16 : vector<1x32xf32> to vector<16x32xf32>
    %39 = arith.addf %37, %38 : vector<16x32xf32>
    %40 = vector.shape_cast %39 : vector<16x32xf32> to vector<2x8x32xf32>
    %41 = arith.truncf %40 : vector<2x8x32xf32> to vector<2x8x32xbf16>
    %42 = vector.extract_strided_slice %31 {offsets = [0, 0, 0], sizes = [2, 8, 4], strides = [1, 1, 1]} : vector<2x8x32xbf16> to vector<2x8x4xbf16>
    %43 = vector.extract_strided_slice %31 {offsets = [0, 0, 4], sizes = [2, 8, 4], strides = [1, 1, 1]} : vector<2x8x32xbf16> to vector<2x8x4xbf16>
    %44 = vector.extract_strided_slice %31 {offsets = [0, 0, 8], sizes = [2, 8, 4], strides = [1, 1, 1]} : vector<2x8x32xbf16> to vector<2x8x4xbf16>
    %45 = vector.extract_strided_slice %31 {offsets = [0, 0, 12], sizes = [2, 8, 4], strides = [1, 1, 1]} : vector<2x8x32xbf16> to vector<2x8x4xbf16>
    %46 = vector.extract_strided_slice %31 {offsets = [0, 0, 16], sizes = [2, 8, 4], strides = [1, 1, 1]} : vector<2x8x32xbf16> to vector<2x8x4xbf16>
    %47 = vector.extract_strided_slice %31 {offsets = [0, 0, 20], sizes = [2, 8, 4], strides = [1, 1, 1]} : vector<2x8x32xbf16> to vector<2x8x4xbf16>
    %48 = vector.extract_strided_slice %31 {offsets = [0, 0, 24], sizes = [2, 8, 4], strides = [1, 1, 1]} : vector<2x8x32xbf16> to vector<2x8x4xbf16>
    %49 = vector.extract_strided_slice %31 {offsets = [0, 0, 28], sizes = [2, 8, 4], strides = [1, 1, 1]} : vector<2x8x32xbf16> to vector<2x8x4xbf16>
    %50 = tpu.concatenate %42, %43, %44, %45, %46, %47, %48, %49 in 0 : vector<2x8x4xbf16>, vector<2x8x4xbf16>, vector<2x8x4xbf16>, vector<2x8x4xbf16>, vector<2x8x4xbf16>, vector<2x8x4xbf16>, vector<2x8x4xbf16>, vector<2x8x4xbf16> -> vector<16x8x4xbf16>
    %51 = vector.extract_strided_slice %36 {offsets = [0, 0, 0], sizes = [2, 8, 4], strides = [1, 1, 1]} : vector<2x8x32xbf16> to vector<2x8x4xbf16>
    %52 = vector.extract_strided_slice %36 {offsets = [0, 0, 4], sizes = [2, 8, 4], strides = [1, 1, 1]} : vector<2x8x32xbf16> to vector<2x8x4xbf16>
    %53 = vector.extract_strided_slice %36 {offsets = [0, 0, 8], sizes = [2, 8, 4], strides = [1, 1, 1]} : vector<2x8x32xbf16> to vector<2x8x4xbf16>
    %54 = vector.extract_strided_slice %36 {offsets = [0, 0, 12], sizes = [2, 8, 4], strides = [1, 1, 1]} : vector<2x8x32xbf16> to vector<2x8x4xbf16>
    %55 = vector.extract_strided_slice %36 {offsets = [0, 0, 16], sizes = [2, 8, 4], strides = [1, 1, 1]} : vector<2x8x32xbf16> to vector<2x8x4xbf16>
    %56 = vector.extract_strided_slice %36 {offsets = [0, 0, 20], sizes = [2, 8, 4], strides = [1, 1, 1]} : vector<2x8x32xbf16> to vector<2x8x4xbf16>
    %57 = vector.extract_strided_slice %36 {offsets = [0, 0, 24], sizes = [2, 8, 4], strides = [1, 1, 1]} : vector<2x8x32xbf16> to vector<2x8x4xbf16>
    %58 = vector.extract_strided_slice %36 {offsets = [0, 0, 28], sizes = [2, 8, 4], strides = [1, 1, 1]} : vector<2x8x32xbf16> to vector<2x8x4xbf16>
    %59 = tpu.concatenate %51, %52, %53, %54, %55, %56, %57, %58 in 0 : vector<2x8x4xbf16>, vector<2x8x4xbf16>, vector<2x8x4xbf16>, vector<2x8x4xbf16>, vector<2x8x4xbf16>, vector<2x8x4xbf16>, vector<2x8x4xbf16>, vector<2x8x4xbf16> -> vector<16x8x4xbf16>
    %60 = vector.extract_strided_slice %41 {offsets = [0, 0, 0], sizes = [2, 8, 4], strides = [1, 1, 1]} : vector<2x8x32xbf16> to vector<2x8x4xbf16>
    %61 = vector.extract_strided_slice %41 {offsets = [0, 0, 4], sizes = [2, 8, 4], strides = [1, 1, 1]} : vector<2x8x32xbf16> to vector<2x8x4xbf16>
    %62 = vector.extract_strided_slice %41 {offsets = [0, 0, 8], sizes = [2, 8, 4], strides = [1, 1, 1]} : vector<2x8x32xbf16> to vector<2x8x4xbf16>
    %63 = vector.extract_strided_slice %41 {offsets = [0, 0, 12], sizes = [2, 8, 4], strides = [1, 1, 1]} : vector<2x8x32xbf16> to vector<2x8x4xbf16>
    %64 = vector.extract_strided_slice %41 {offsets = [0, 0, 16], sizes = [2, 8, 4], strides = [1, 1, 1]} : vector<2x8x32xbf16> to vector<2x8x4xbf16>
    %65 = vector.extract_strided_slice %41 {offsets = [0, 0, 20], sizes = [2, 8, 4], strides = [1, 1, 1]} : vector<2x8x32xbf16> to vector<2x8x4xbf16>
    %66 = vector.extract_strided_slice %41 {offsets = [0, 0, 24], sizes = [2, 8, 4], strides = [1, 1, 1]} : vector<2x8x32xbf16> to vector<2x8x4xbf16>
    %67 = vector.extract_strided_slice %41 {offsets = [0, 0, 28], sizes = [2, 8, 4], strides = [1, 1, 1]} : vector<2x8x32xbf16> to vector<2x8x4xbf16>
    %68 = tpu.concatenate %60, %61, %62, %63, %64, %65, %66, %67 in 0 : vector<2x8x4xbf16>, vector<2x8x4xbf16>, vector<2x8x4xbf16>, vector<2x8x4xbf16>, vector<2x8x4xbf16>, vector<2x8x4xbf16>, vector<2x8x4xbf16>, vector<2x8x4xbf16> -> vector<16x8x4xbf16>
    "tpu.trace_start"() <{level = 10 : i32, message = "nqd,nkd->nqk"}> : () -> ()
    %cst_21 = arith.constant dense<0.000000e+00> : vector<16x8x8xf32>
    %69 = tpu.matmul %50, %59, %cst_21 {dimension_numbers = #tpu.dot_dimension_numbers<[2], [2], [1], [1], [0, 0, 0, 1, 1, 1], [0], [0]>} : vector<16x8x4xbf16>, vector<16x8x4xbf16>, vector<16x8x8xf32> -> vector<16x8x8xf32>
    "tpu.trace_stop"() : () -> ()
    %cst_22 = arith.constant dense<0xFF800000> : vector<16x8xf32>
    %70 = vector.multi_reduction <maximumf>, %69, %cst_22 [2] : vector<16x8x8xf32> to vector<16x8xf32>
    %71 = vector.shape_cast %70 : vector<16x8xf32> to vector<16x8x1xf32>
    %72 = vector.broadcast %71 : vector<16x8x1xf32> to vector<16x8x8xf32>
    %73 = arith.subf %69, %72 : vector<16x8x8xf32>
    %74 = math.exp %73 : vector<16x8x8xf32>
    %cst_23 = arith.constant dense<0.000000e+00> : vector<16x8xf32>
    %75 = vector.multi_reduction <add>, %74, %cst_23 [2] : vector<16x8x8xf32> to vector<16x8xf32>
    %76 = vector.shape_cast %75 : vector<16x8xf32> to vector<16x8x1xf32>
    %77 = tpu.reciprocal %76 {approx = true} : vector<16x8x1xf32> -> vector<16x8x1xf32>
    %78 = vector.broadcast %77 : vector<16x8x1xf32> to vector<16x8x8xf32>
    %79 = arith.mulf %74, %78 : vector<16x8x8xf32>
    %80 = arith.truncf %79 : vector<16x8x8xf32> to vector<16x8x8xbf16>
    "tpu.trace_start"() <{level = 10 : i32, message = "nqk,nkd->nqd"}> : () -> ()
    %cst_24 = arith.constant dense<0.000000e+00> : vector<16x8x4xf32>
    %81 = tpu.matmul %80, %68, %cst_24 {dimension_numbers = #tpu.dot_dimension_numbers<[2], [1], [1], [2], [0, 0, 0, 1, 1, 2], [0], [0]>} : vector<16x8x8xbf16>, vector<16x8x4xbf16>, vector<16x8x4xf32> -> vector<16x8x4xf32>
    "tpu.trace_stop"() : () -> ()
    %82 = vector.extract_strided_slice %81 {offsets = [0, 0, 0], sizes = [2, 8, 4], strides = [1, 1, 1]} : vector<16x8x4xf32> to vector<2x8x4xf32>
    %83 = vector.extract_strided_slice %81 {offsets = [2, 0, 0], sizes = [2, 8, 4], strides = [1, 1, 1]} : vector<16x8x4xf32> to vector<2x8x4xf32>
    %84 = vector.extract_strided_slice %81 {offsets = [4, 0, 0], sizes = [2, 8, 4], strides = [1, 1, 1]} : vector<16x8x4xf32> to vector<2x8x4xf32>
    %85 = vector.extract_strided_slice %81 {offsets = [6, 0, 0], sizes = [2, 8, 4], strides = [1, 1, 1]} : vector<16x8x4xf32> to vector<2x8x4xf32>
    %86 = vector.extract_strided_slice %81 {offsets = [8, 0, 0], sizes = [2, 8, 4], strides = [1, 1, 1]} : vector<16x8x4xf32> to vector<2x8x4xf32>
    %87 = vector.extract_strided_slice %81 {offsets = [10, 0, 0], sizes = [2, 8, 4], strides = [1, 1, 1]} : vector<16x8x4xf32> to vector<2x8x4xf32>
    %88 = vector.extract_strided_slice %81 {offsets = [12, 0, 0], sizes = [2, 8, 4], strides = [1, 1, 1]} : vector<16x8x4xf32> to vector<2x8x4xf32>
    %89 = vector.extract_strided_slice %81 {offsets = [14, 0, 0], sizes = [2, 8, 4], strides = [1, 1, 1]} : vector<16x8x4xf32> to vector<2x8x4xf32>
    %90 = tpu.concatenate %82, %83, %84, %85, %86, %87, %88, %89 in 2 : vector<2x8x4xf32>, vector<2x8x4xf32>, vector<2x8x4xf32>, vector<2x8x4xf32>, vector<2x8x4xf32>, vector<2x8x4xf32>, vector<2x8x4xf32>, vector<2x8x4xf32> -> vector<2x8x32xf32>
    %91 = vector.shape_cast %90 : vector<2x8x32xf32> to vector<16x32xf32>
    %92 = arith.truncf %91 : vector<16x32xf32> to vector<16x32xbf16>
    %cst_25 = arith.constant dense<0.000000e+00> : vector<16x32xf32>
    %93 = tpu.matmul %92, %5, %cst_25 {dimension_numbers = #tpu.dot_dimension_numbers<[1], [0], [0], [1], [0, 0, 1, 1], [], []>} : vector<16x32xbf16>, vector<32x32xbf16>, vector<16x32xf32> -> vector<16x32xf32>
    %94 = vector.broadcast %17 : vector<1x32xf32> to vector<16x32xf32>
    %95 = arith.addf %93, %94 : vector<16x32xf32>
    %96 = arith.addf %95, %1 : vector<16x32xf32>
    %cst_26 = arith.constant dense<0.000000e+00> : vector<16xf32>
    %97 = vector.multi_reduction <add>, %96, %cst_26 [1] : vector<16x32xf32> to vector<16xf32>
    %98 = vector.shape_cast %97 : vector<16xf32> to vector<16x1xf32>
    %cst_27 = arith.constant 3.200000e+01 : f32
    %99 = vector.broadcast %cst_27 : f32 to vector<16x1xf32>
    %100 = arith.divf %98, %99 : vector<16x1xf32>
    %101 = vector.broadcast %100 : vector<16x1xf32> to vector<16x32xf32>
    %102 = arith.subf %96, %101 : vector<16x32xf32>
    %103 = arith.mulf %102, %102 : vector<16x32xf32>
    %cst_28 = arith.constant dense<0.000000e+00> : vector<16xf32>
    %104 = vector.multi_reduction <add>, %103, %cst_28 [1] : vector<16x32xf32> to vector<16xf32>
    %105 = vector.shape_cast %104 : vector<16xf32> to vector<16x1xf32>
    %cst_29 = arith.constant 3.200000e+01 : f32
    %106 = vector.broadcast %cst_29 : f32 to vector<16x1xf32>
    %107 = arith.divf %105, %106 : vector<16x1xf32>
    %108 = vector.broadcast %100 : vector<16x1xf32> to vector<16x32xf32>
    %109 = arith.subf %96, %108 : vector<16x32xf32>
    %cst_30 = arith.constant 9.99999996E-13 : f32
    %110 = vector.broadcast %cst_30 : f32 to vector<16x1xf32>
    %111 = arith.addf %107, %110 : vector<16x1xf32>
    %112 = math.rsqrt %111 : vector<16x1xf32>
    %113 = vector.broadcast %112 : vector<16x1xf32> to vector<16x32xf32>
    %114 = arith.mulf %109, %113 : vector<16x32xf32>
    %115 = vector.broadcast %18 : vector<1x32xf32> to vector<16x32xf32>
    %116 = arith.mulf %114, %115 : vector<16x32xf32>
    %117 = vector.broadcast %19 : vector<1x32xf32> to vector<16x32xf32>
    %118 = arith.addf %116, %117 : vector<16x32xf32>
    %119 = arith.truncf %118 : vector<16x32xf32> to vector<16x32xbf16>
    %cst_31 = arith.constant dense<0.000000e+00> : vector<16x3072xf32>
    %120 = tpu.matmul %119, %7, %cst_31 {dimension_numbers = #tpu.dot_dimension_numbers<[1], [0], [0], [1], [0, 0, 1, 1], [], []>} : vector<16x32xbf16>, vector<32x3072xbf16>, vector<16x3072xf32> -> vector<16x3072xf32>
    %121 = vector.broadcast %13 : vector<1x3072xf32> to vector<16x3072xf32>
    %122 = arith.addf %120, %121 : vector<16x3072xf32>
    %cst_32 = arith.constant 5.000000e-01 : f32
    %123 = vector.broadcast %cst_32 : f32 to vector<16x3072xf32>
    %124 = arith.mulf %123, %122 : vector<16x3072xf32>
    %cst_33 = arith.constant 0.707106769 : f32
    %125 = vector.broadcast %cst_33 : f32 to vector<16x3072xf32>
    %126 = arith.mulf %122, %125 : vector<16x3072xf32>
    %127 = math.erf %126 : vector<16x3072xf32>
    %cst_34 = arith.constant 1.000000e+00 : f32
    %128 = vector.broadcast %cst_34 : f32 to vector<16x3072xf32>
    %129 = arith.addf %128, %127 : vector<16x3072xf32>
    %130 = arith.mulf %124, %129 : vector<16x3072xf32>
    %131 = arith.truncf %130 : vector<16x3072xf32> to vector<16x3072xbf16>
    %cst_35 = arith.constant dense<0.000000e+00> : vector<16x32xf32>
    %132 = tpu.matmul %131, %9, %cst_35 {dimension_numbers = #tpu.dot_dimension_numbers<[1], [0], [0], [1], [0, 0, 1, 1], [], []>} : vector<16x3072xbf16>, vector<3072x32xbf16>, vector<16x32xf32> -> vector<16x32xf32>
    %133 = vector.broadcast %20 : vector<1x32xf32> to vector<16x32xf32>
    %134 = arith.addf %132, %133 : vector<16x32xf32>
    %135 = arith.addf %134, %118 : vector<16x32xf32>
    %cst_36 = arith.constant dense<0.000000e+00> : vector<16xf32>
    %136 = vector.multi_reduction <add>, %135, %cst_36 [1] : vector<16x32xf32> to vector<16xf32>
    %137 = vector.shape_cast %136 : vector<16xf32> to vector<16x1xf32>
    %cst_37 = arith.constant 3.200000e+01 : f32
    %138 = vector.broadcast %cst_37 : f32 to vector<16x1xf32>
    %139 = arith.divf %137, %138 : vector<16x1xf32>
    %140 = vector.broadcast %139 : vector<16x1xf32> to vector<16x32xf32>
    %141 = arith.subf %135, %140 : vector<16x32xf32>
    %142 = arith.mulf %141, %141 : vector<16x32xf32>
    %cst_38 = arith.constant dense<0.000000e+00> : vector<16xf32>
    %143 = vector.multi_reduction <add>, %142, %cst_38 [1] : vector<16x32xf32> to vector<16xf32>
    %144 = vector.shape_cast %143 : vector<16xf32> to vector<16x1xf32>
    %cst_39 = arith.constant 3.200000e+01 : f32
    %145 = vector.broadcast %cst_39 : f32 to vector<16x1xf32>
    %146 = arith.divf %144, %145 : vector<16x1xf32>
    %147 = vector.broadcast %139 : vector<16x1xf32> to vector<16x32xf32>
    %148 = arith.subf %135, %147 : vector<16x32xf32>
    %cst_40 = arith.constant 9.99999996E-13 : f32
    %149 = vector.broadcast %cst_40 : f32 to vector<16x1xf32>
    %150 = arith.addf %146, %149 : vector<16x1xf32>
    %151 = math.rsqrt %150 : vector<16x1xf32>
    %152 = vector.broadcast %151 : vector<16x1xf32> to vector<16x32xf32>
    %153 = arith.mulf %148, %152 : vector<16x32xf32>
    %154 = vector.broadcast %21 : vector<1x32xf32> to vector<16x32xf32>
    %155 = arith.mulf %153, %154 : vector<16x32xf32>
    %156 = vector.broadcast %22 : vector<1x32xf32> to vector<16x32xf32>
    %157 = arith.addf %155, %156 : vector<16x32xf32>
    %c1 = arith.constant 1 : index
    %c0_41 = arith.constant 0 : index
    %c0_42 = arith.constant 0 : index
    %158 = vector.load %arg2[%c1, %c0_41, %c0_42] : memref<2x32x96xbf16, #tpu.memory_space<vmem>>, vector<1x32x96xbf16>
    %159 = vector.shape_cast %158 : vector<1x32x96xbf16> to vector<32x96xbf16>
    %c1_43 = arith.constant 1 : index
    %c0_44 = arith.constant 0 : index
    %c0_45 = arith.constant 0 : index
    %160 = vector.load %arg3[%c1_43, %c0_44, %c0_45] : memref<2x32x32xbf16, #tpu.memory_space<vmem>>, vector<1x32x32xbf16>
    %161 = vector.shape_cast %160 : vector<1x32x32xbf16> to vector<32x32xbf16>
    %c1_46 = arith.constant 1 : index
    %c0_47 = arith.constant 0 : index
    %c0_48 = arith.constant 0 : index
    %162 = vector.load %arg4[%c1_46, %c0_47, %c0_48] : memref<2x32x3072xbf16, #tpu.memory_space<vmem>>, vector<1x32x3072xbf16>
    %163 = vector.shape_cast %162 : vector<1x32x3072xbf16> to vector<32x3072xbf16>
    %c1_49 = arith.constant 1 : index
    %c0_50 = arith.constant 0 : index
    %c0_51 = arith.constant 0 : index
    %164 = vector.load %arg5[%c1_49, %c0_50, %c0_51] : memref<2x3072x32xbf16, #tpu.memory_space<vmem>>, vector<1x3072x32xbf16>
    %165 = vector.shape_cast %164 : vector<1x3072x32xbf16> to vector<3072x32xbf16>
    %c1_52 = arith.constant 1 : index
    %c0_53 = arith.constant 0 : index
    %c0_54 = arith.constant 0 : index
    %166 = vector.load %arg6[%c1_52, %c0_53, %c0_54] : memref<2x9x32xf32, #tpu.memory_space<vmem>>, vector<1x9x32xf32>
    %167 = vector.shape_cast %166 : vector<1x9x32xf32> to vector<9x32xf32>
    %c1_55 = arith.constant 1 : index
    %c0_56 = arith.constant 0 : index
    %c0_57 = arith.constant 0 : index
    %168 = vector.load %arg7[%c1_55, %c0_56, %c0_57] : memref<2x1x3072xf32, #tpu.memory_space<vmem>>, vector<1x1x3072xf32>
    %169 = vector.shape_cast %168 : vector<1x1x3072xf32> to vector<1x3072xf32>
    %170 = vector.extract_strided_slice %167 {offsets = [0, 0], sizes = [1, 32], strides = [1, 1]} : vector<9x32xf32> to vector<1x32xf32>
    %171 = vector.extract_strided_slice %167 {offsets = [1, 0], sizes = [1, 32], strides = [1, 1]} : vector<9x32xf32> to vector<1x32xf32>
    %172 = vector.extract_strided_slice %167 {offsets = [2, 0], sizes = [1, 32], strides = [1, 1]} : vector<9x32xf32> to vector<1x32xf32>
    %173 = vector.extract_strided_slice %167 {offsets = [3, 0], sizes = [1, 32], strides = [1, 1]} : vector<9x32xf32> to vector<1x32xf32>
    %174 = vector.extract_strided_slice %167 {offsets = [4, 0], sizes = [1, 32], strides = [1, 1]} : vector<9x32xf32> to vector<1x32xf32>
    %175 = vector.extract_strided_slice %167 {offsets = [5, 0], sizes = [1, 32], strides = [1, 1]} : vector<9x32xf32> to vector<1x32xf32>
    %176 = vector.extract_strided_slice %167 {offsets = [6, 0], sizes = [1, 32], strides = [1, 1]} : vector<9x32xf32> to vector<1x32xf32>
    %177 = vector.extract_strided_slice %167 {offsets = [7, 0], sizes = [1, 32], strides = [1, 1]} : vector<9x32xf32> to vector<1x32xf32>
    %178 = vector.extract_strided_slice %167 {offsets = [8, 0], sizes = [1, 32], strides = [1, 1]} : vector<9x32xf32> to vector<1x32xf32>
    %179 = arith.truncf %157 : vector<16x32xf32> to vector<16x32xbf16>
    %cst_58 = arith.constant dense<0.000000e+00> : vector<16x96xf32>
    %180 = tpu.matmul %179, %159, %cst_58 {dimension_numbers = #tpu.dot_dimension_numbers<[1], [0], [0], [1], [0, 0, 1, 1], [], []>} : vector<16x32xbf16>, vector<32x96xbf16>, vector<16x96xf32> -> vector<16x96xf32>
    %181 = vector.extract_strided_slice %180 {offsets = [0, 0], sizes = [16, 32], strides = [1, 1]} : vector<16x96xf32> to vector<16x32xf32>
    %182 = vector.broadcast %170 : vector<1x32xf32> to vector<16x32xf32>
    %183 = arith.addf %181, %182 : vector<16x32xf32>
    %cst_59 = arith.constant 5.000000e-01 : f32
    %184 = vector.broadcast %cst_59 : f32 to vector<16x32xf32>
    %185 = arith.mulf %183, %184 : vector<16x32xf32>
    %186 = vector.shape_cast %185 : vector<16x32xf32> to vector<2x8x32xf32>
    %187 = arith.truncf %186 : vector<2x8x32xf32> to vector<2x8x32xbf16>
    %188 = vector.extract_strided_slice %180 {offsets = [0, 32], sizes = [16, 32], strides = [1, 1]} : vector<16x96xf32> to vector<16x32xf32>
    %189 = vector.broadcast %171 : vector<1x32xf32> to vector<16x32xf32>
    %190 = arith.addf %188, %189 : vector<16x32xf32>
    %191 = vector.shape_cast %190 : vector<16x32xf32> to vector<2x8x32xf32>
    %192 = arith.truncf %191 : vector<2x8x32xf32> to vector<2x8x32xbf16>
    %193 = vector.extract_strided_slice %180 {offsets = [0, 64], sizes = [16, 32], strides = [1, 1]} : vector<16x96xf32> to vector<16x32xf32>
    %194 = vector.broadcast %172 : vector<1x32xf32> to vector<16x32xf32>
    %195 = arith.addf %193, %194 : vector<16x32xf32>
    %196 = vector.shape_cast %195 : vector<16x32xf32> to vector<2x8x32xf32>
    %197 = arith.truncf %196 : vector<2x8x32xf32> to vector<2x8x32xbf16>
    %198 = vector.extract_strided_slice %187 {offsets = [0, 0, 0], sizes = [2, 8, 4], strides = [1, 1, 1]} : vector<2x8x32xbf16> to vector<2x8x4xbf16>
    %199 = vector.extract_strided_slice %187 {offsets = [0, 0, 4], sizes = [2, 8, 4], strides = [1, 1, 1]} : vector<2x8x32xbf16> to vector<2x8x4xbf16>
    %200 = vector.extract_strided_slice %187 {offsets = [0, 0, 8], sizes = [2, 8, 4], strides = [1, 1, 1]} : vector<2x8x32xbf16> to vector<2x8x4xbf16>
    %201 = vector.extract_strided_slice %187 {offsets = [0, 0, 12], sizes = [2, 8, 4], strides = [1, 1, 1]} : vector<2x8x32xbf16> to vector<2x8x4xbf16>
    %202 = vector.extract_strided_slice %187 {offsets = [0, 0, 16], sizes = [2, 8, 4], strides = [1, 1, 1]} : vector<2x8x32xbf16> to vector<2x8x4xbf16>
    %203 = vector.extract_strided_slice %187 {offsets = [0, 0, 20], sizes = [2, 8, 4], strides = [1, 1, 1]} : vector<2x8x32xbf16> to vector<2x8x4xbf16>
    %204 = vector.extract_strided_slice %187 {offsets = [0, 0, 24], sizes = [2, 8, 4], strides = [1, 1, 1]} : vector<2x8x32xbf16> to vector<2x8x4xbf16>
    %205 = vector.extract_strided_slice %187 {offsets = [0, 0, 28], sizes = [2, 8, 4], strides = [1, 1, 1]} : vector<2x8x32xbf16> to vector<2x8x4xbf16>
    %206 = tpu.concatenate %198, %199, %200, %201, %202, %203, %204, %205 in 0 : vector<2x8x4xbf16>, vector<2x8x4xbf16>, vector<2x8x4xbf16>, vector<2x8x4xbf16>, vector<2x8x4xbf16>, vector<2x8x4xbf16>, vector<2x8x4xbf16>, vector<2x8x4xbf16> -> vector<16x8x4xbf16>
    %207 = vector.extract_strided_slice %192 {offsets = [0, 0, 0], sizes = [2, 8, 4], strides = [1, 1, 1]} : vector<2x8x32xbf16> to vector<2x8x4xbf16>
    %208 = vector.extract_strided_slice %192 {offsets = [0, 0, 4], sizes = [2, 8, 4], strides = [1, 1, 1]} : vector<2x8x32xbf16> to vector<2x8x4xbf16>
    %209 = vector.extract_strided_slice %192 {offsets = [0, 0, 8], sizes = [2, 8, 4], strides = [1, 1, 1]} : vector<2x8x32xbf16> to vector<2x8x4xbf16>
    %210 = vector.extract_strided_slice %192 {offsets = [0, 0, 12], sizes = [2, 8, 4], strides = [1, 1, 1]} : vector<2x8x32xbf16> to vector<2x8x4xbf16>
    %211 = vector.extract_strided_slice %192 {offsets = [0, 0, 16], sizes = [2, 8, 4], strides = [1, 1, 1]} : vector<2x8x32xbf16> to vector<2x8x4xbf16>
    %212 = vector.extract_strided_slice %192 {offsets = [0, 0, 20], sizes = [2, 8, 4], strides = [1, 1, 1]} : vector<2x8x32xbf16> to vector<2x8x4xbf16>
    %213 = vector.extract_strided_slice %192 {offsets = [0, 0, 24], sizes = [2, 8, 4], strides = [1, 1, 1]} : vector<2x8x32xbf16> to vector<2x8x4xbf16>
    %214 = vector.extract_strided_slice %192 {offsets = [0, 0, 28], sizes = [2, 8, 4], strides = [1, 1, 1]} : vector<2x8x32xbf16> to vector<2x8x4xbf16>
    %215 = tpu.concatenate %207, %208, %209, %210, %211, %212, %213, %214 in 0 : vector<2x8x4xbf16>, vector<2x8x4xbf16>, vector<2x8x4xbf16>, vector<2x8x4xbf16>, vector<2x8x4xbf16>, vector<2x8x4xbf16>, vector<2x8x4xbf16>, vector<2x8x4xbf16> -> vector<16x8x4xbf16>
    %216 = vector.extract_strided_slice %197 {offsets = [0, 0, 0], sizes = [2, 8, 4], strides = [1, 1, 1]} : vector<2x8x32xbf16> to vector<2x8x4xbf16>
    %217 = vector.extract_strided_slice %197 {offsets = [0, 0, 4], sizes = [2, 8, 4], strides = [1, 1, 1]} : vector<2x8x32xbf16> to vector<2x8x4xbf16>
    %218 = vector.extract_strided_slice %197 {offsets = [0, 0, 8], sizes = [2, 8, 4], strides = [1, 1, 1]} : vector<2x8x32xbf16> to vector<2x8x4xbf16>
    %219 = vector.extract_strided_slice %197 {offsets = [0, 0, 12], sizes = [2, 8, 4], strides = [1, 1, 1]} : vector<2x8x32xbf16> to vector<2x8x4xbf16>
    %220 = vector.extract_strided_slice %197 {offsets = [0, 0, 16], sizes = [2, 8, 4], strides = [1, 1, 1]} : vector<2x8x32xbf16> to vector<2x8x4xbf16>
    %221 = vector.extract_strided_slice %197 {offsets = [0, 0, 20], sizes = [2, 8, 4], strides = [1, 1, 1]} : vector<2x8x32xbf16> to vector<2x8x4xbf16>
    %222 = vector.extract_strided_slice %197 {offsets = [0, 0, 24], sizes = [2, 8, 4], strides = [1, 1, 1]} : vector<2x8x32xbf16> to vector<2x8x4xbf16>
    %223 = vector.extract_strided_slice %197 {offsets = [0, 0, 28], sizes = [2, 8, 4], strides = [1, 1, 1]} : vector<2x8x32xbf16> to vector<2x8x4xbf16>
    %224 = tpu.concatenate %216, %217, %218, %219, %220, %221, %222, %223 in 0 : vector<2x8x4xbf16>, vector<2x8x4xbf16>, vector<2x8x4xbf16>, vector<2x8x4xbf16>, vector<2x8x4xbf16>, vector<2x8x4xbf16>, vector<2x8x4xbf16>, vector<2x8x4xbf16> -> vector<16x8x4xbf16>
    "tpu.trace_start"() <{level = 10 : i32, message = "nqd,nkd->nqk"}> : () -> ()
    %cst_60 = arith.constant dense<0.000000e+00> : vector<16x8x8xf32>
    %225 = tpu.matmul %206, %215, %cst_60 {dimension_numbers = #tpu.dot_dimension_numbers<[2], [2], [1], [1], [0, 0, 0, 1, 1, 1], [0], [0]>} : vector<16x8x4xbf16>, vector<16x8x4xbf16>, vector<16x8x8xf32> -> vector<16x8x8xf32>
    "tpu.trace_stop"() : () -> ()
    %cst_61 = arith.constant dense<0xFF800000> : vector<16x8xf32>
    %226 = vector.multi_reduction <maximumf>, %225, %cst_61 [2] : vector<16x8x8xf32> to vector<16x8xf32>
    %227 = vector.shape_cast %226 : vector<16x8xf32> to vector<16x8x1xf32>
    %228 = vector.broadcast %227 : vector<16x8x1xf32> to vector<16x8x8xf32>
    %229 = arith.subf %225, %228 : vector<16x8x8xf32>
    %230 = math.exp %229 : vector<16x8x8xf32>
    %cst_62 = arith.constant dense<0.000000e+00> : vector<16x8xf32>
    %231 = vector.multi_reduction <add>, %230, %cst_62 [2] : vector<16x8x8xf32> to vector<16x8xf32>
    %232 = vector.shape_cast %231 : vector<16x8xf32> to vector<16x8x1xf32>
    %233 = tpu.reciprocal %232 {approx = true} : vector<16x8x1xf32> -> vector<16x8x1xf32>
    %234 = vector.broadcast %233 : vector<16x8x1xf32> to vector<16x8x8xf32>
    %235 = arith.mulf %230, %234 : vector<16x8x8xf32>
    %236 = arith.truncf %235 : vector<16x8x8xf32> to vector<16x8x8xbf16>
    "tpu.trace_start"() <{level = 10 : i32, message = "nqk,nkd->nqd"}> : () -> ()
    %cst_63 = arith.constant dense<0.000000e+00> : vector<16x8x4xf32>
    %237 = tpu.matmul %236, %224, %cst_63 {dimension_numbers = #tpu.dot_dimension_numbers<[2], [1], [1], [2], [0, 0, 0, 1, 1, 2], [0], [0]>} : vector<16x8x8xbf16>, vector<16x8x4xbf16>, vector<16x8x4xf32> -> vector<16x8x4xf32>
    "tpu.trace_stop"() : () -> ()
    %238 = vector.extract_strided_slice %237 {offsets = [0, 0, 0], sizes = [2, 8, 4], strides = [1, 1, 1]} : vector<16x8x4xf32> to vector<2x8x4xf32>
    %239 = vector.extract_strided_slice %237 {offsets = [2, 0, 0], sizes = [2, 8, 4], strides = [1, 1, 1]} : vector<16x8x4xf32> to vector<2x8x4xf32>
    %240 = vector.extract_strided_slice %237 {offsets = [4, 0, 0], sizes = [2, 8, 4], strides = [1, 1, 1]} : vector<16x8x4xf32> to vector<2x8x4xf32>
    %241 = vector.extract_strided_slice %237 {offsets = [6, 0, 0], sizes = [2, 8, 4], strides = [1, 1, 1]} : vector<16x8x4xf32> to vector<2x8x4xf32>
    %242 = vector.extract_strided_slice %237 {offsets = [8, 0, 0], sizes = [2, 8, 4], strides = [1, 1, 1]} : vector<16x8x4xf32> to vector<2x8x4xf32>
    %243 = vector.extract_strided_slice %237 {offsets = [10, 0, 0], sizes = [2, 8, 4], strides = [1, 1, 1]} : vector<16x8x4xf32> to vector<2x8x4xf32>
    %244 = vector.extract_strided_slice %237 {offsets = [12, 0, 0], sizes = [2, 8, 4], strides = [1, 1, 1]} : vector<16x8x4xf32> to vector<2x8x4xf32>
    %245 = vector.extract_strided_slice %237 {offsets = [14, 0, 0], sizes = [2, 8, 4], strides = [1, 1, 1]} : vector<16x8x4xf32> to vector<2x8x4xf32>
    %246 = tpu.concatenate %238, %239, %240, %241, %242, %243, %244, %245 in 2 : vector<2x8x4xf32>, vector<2x8x4xf32>, vector<2x8x4xf32>, vector<2x8x4xf32>, vector<2x8x4xf32>, vector<2x8x4xf32>, vector<2x8x4xf32>, vector<2x8x4xf32> -> vector<2x8x32xf32>
    %247 = vector.shape_cast %246 : vector<2x8x32xf32> to vector<16x32xf32>
    %248 = arith.truncf %247 : vector<16x32xf32> to vector<16x32xbf16>
    %cst_64 = arith.constant dense<0.000000e+00> : vector<16x32xf32>
    %249 = tpu.matmul %248, %161, %cst_64 {dimension_numbers = #tpu.dot_dimension_numbers<[1], [0], [0], [1], [0, 0, 1, 1], [], []>} : vector<16x32xbf16>, vector<32x32xbf16>, vector<16x32xf32> -> vector<16x32xf32>
    %250 = vector.broadcast %173 : vector<1x32xf32> to vector<16x32xf32>
    %251 = arith.addf %249, %250 : vector<16x32xf32>
    %252 = arith.addf %251, %157 : vector<16x32xf32>
    %cst_65 = arith.constant dense<0.000000e+00> : vector<16xf32>
    %253 = vector.multi_reduction <add>, %252, %cst_65 [1] : vector<16x32xf32> to vector<16xf32>
    %254 = vector.shape_cast %253 : vector<16xf32> to vector<16x1xf32>
    %cst_66 = arith.constant 3.200000e+01 : f32
    %255 = vector.broadcast %cst_66 : f32 to vector<16x1xf32>
    %256 = arith.divf %254, %255 : vector<16x1xf32>
    %257 = vector.broadcast %256 : vector<16x1xf32> to vector<16x32xf32>
    %258 = arith.subf %252, %257 : vector<16x32xf32>
    %259 = arith.mulf %258, %258 : vector<16x32xf32>
    %cst_67 = arith.constant dense<0.000000e+00> : vector<16xf32>
    %260 = vector.multi_reduction <add>, %259, %cst_67 [1] : vector<16x32xf32> to vector<16xf32>
    %261 = vector.shape_cast %260 : vector<16xf32> to vector<16x1xf32>
    %cst_68 = arith.constant 3.200000e+01 : f32
    %262 = vector.broadcast %cst_68 : f32 to vector<16x1xf32>
    %263 = arith.divf %261, %262 : vector<16x1xf32>
    %264 = vector.broadcast %256 : vector<16x1xf32> to vector<16x32xf32>
    %265 = arith.subf %252, %264 : vector<16x32xf32>
    %cst_69 = arith.constant 9.99999996E-13 : f32
    %266 = vector.broadcast %cst_69 : f32 to vector<16x1xf32>
    %267 = arith.addf %263, %266 : vector<16x1xf32>
    %268 = math.rsqrt %267 : vector<16x1xf32>
    %269 = vector.broadcast %268 : vector<16x1xf32> to vector<16x32xf32>
    %270 = arith.mulf %265, %269 : vector<16x32xf32>
    %271 = vector.broadcast %174 : vector<1x32xf32> to vector<16x32xf32>
    %272 = arith.mulf %270, %271 : vector<16x32xf32>
    %273 = vector.broadcast %175 : vector<1x32xf32> to vector<16x32xf32>
    %274 = arith.addf %272, %273 : vector<16x32xf32>
    %275 = arith.truncf %274 : vector<16x32xf32> to vector<16x32xbf16>
    %cst_70 = arith.constant dense<0.000000e+00> : vector<16x3072xf32>
    %276 = tpu.matmul %275, %163, %cst_70 {dimension_numbers = #tpu.dot_dimension_numbers<[1], [0], [0], [1], [0, 0, 1, 1], [], []>} : vector<16x32xbf16>, vector<32x3072xbf16>, vector<16x3072xf32> -> vector<16x3072xf32>
    %277 = vector.broadcast %169 : vector<1x3072xf32> to vector<16x3072xf32>
    %278 = arith.addf %276, %277 : vector<16x3072xf32>
    %cst_71 = arith.constant 5.000000e-01 : f32
    %279 = vector.broadcast %cst_71 : f32 to vector<16x3072xf32>
    %280 = arith.mulf %279, %278 : vector<16x3072xf32>
    %cst_72 = arith.constant 0.707106769 : f32
    %281 = vector.broadcast %cst_72 : f32 to vector<16x3072xf32>
    %282 = arith.mulf %278, %281 : vector<16x3072xf32>
    %283 = math.erf %282 : vector<16x3072xf32>
    %cst_73 = arith.constant 1.000000e+00 : f32
    %284 = vector.broadcast %cst_73 : f32 to vector<16x3072xf32>
    %285 = arith.addf %284, %283 : vector<16x3072xf32>
    %286 = arith.mulf %280, %285 : vector<16x3072xf32>
    %287 = arith.truncf %286 : vector<16x3072xf32> to vector<16x3072xbf16>
    %cst_74 = arith.constant dense<0.000000e+00> : vector<16x32xf32>
    %288 = tpu.matmul %287, %165, %cst_74 {dimension_numbers = #tpu.dot_dimension_numbers<[1], [0], [0], [1], [0, 0, 1, 1], [], []>} : vector<16x3072xbf16>, vector<3072x32xbf16>, vector<16x32xf32> -> vector<16x32xf32>
    %289 = vector.broadcast %176 : vector<1x32xf32> to vector<16x32xf32>
    %290 = arith.addf %288, %289 : vector<16x32xf32>
    %291 = arith.addf %290, %274 : vector<16x32xf32>
    %cst_75 = arith.constant dense<0.000000e+00> : vector<16xf32>
    %292 = vector.multi_reduction <add>, %291, %cst_75 [1] : vector<16x32xf32> to vector<16xf32>
    %293 = vector.shape_cast %292 : vector<16xf32> to vector<16x1xf32>
    %cst_76 = arith.constant 3.200000e+01 : f32
    %294 = vector.broadcast %cst_76 : f32 to vector<16x1xf32>
    %295 = arith.divf %293, %294 : vector<16x1xf32>
    %296 = vector.broadcast %295 : vector<16x1xf32> to vector<16x32xf32>
    %297 = arith.subf %291, %296 : vector<16x32xf32>
    %298 = arith.mulf %297, %297 : vector<16x32xf32>
    %cst_77 = arith.constant dense<0.000000e+00> : vector<16xf32>
    %299 = vector.multi_reduction <add>, %298, %cst_77 [1] : vector<16x32xf32> to vector<16xf32>
    %300 = vector.shape_cast %299 : vector<16xf32> to vector<16x1xf32>
    %cst_78 = arith.constant 3.200000e+01 : f32
    %301 = vector.broadcast %cst_78 : f32 to vector<16x1xf32>
    %302 = arith.divf %300, %301 : vector<16x1xf32>
    %303 = vector.broadcast %295 : vector<16x1xf32> to vector<16x32xf32>
    %304 = arith.subf %291, %303 : vector<16x32xf32>
    %cst_79 = arith.constant 9.99999996E-13 : f32
    %305 = vector.broadcast %cst_79 : f32 to vector<16x1xf32>
    %306 = arith.addf %302, %305 : vector<16x1xf32>
    %307 = math.rsqrt %306 : vector<16x1xf32>
    %308 = vector.broadcast %307 : vector<16x1xf32> to vector<16x32xf32>
    %309 = arith.mulf %304, %308 : vector<16x32xf32>
    %310 = vector.broadcast %177 : vector<1x32xf32> to vector<16x32xf32>
    %311 = arith.mulf %309, %310 : vector<16x32xf32>
    %312 = vector.broadcast %178 : vector<1x32xf32> to vector<16x32xf32>
    %313 = arith.addf %311, %312 : vector<16x32xf32>
    %314 = vector.shape_cast %313 : vector<16x32xf32> to vector<2x8x32xf32>
    %c0_80 = arith.constant 0 : index
    %c0_81 = arith.constant 0 : index
    %c0_82 = arith.constant 0 : index
    %315 = vector.load %arg8[%c0_80, %c0_81, %c0_82] : memref<2x8x32xf32, #tpu.memory_space<vmem>>, vector<2x8x32xf32>
    tpu.vector_store %arg8[%c0_80, %c0_81, %c0_82], %314 {strides = array<i32>} : memref<2x8x32xf32, #tpu.memory_space<vmem>>, vector<2x8x32xf32>,
    return
  }
  func.func @transform_0(%arg0: i32) -> (i32, i32, i32) {
    %c0_i32 = arith.constant 0 : i32
    %c0_i32_0 = arith.constant 0 : i32
    %c0_i32_1 = arith.constant 0 : i32
    return %arg0, %c0_i32, %c0_i32_0 : i32, i32, i32
  }
  func.func @transform_1(%arg0: i32) -> (i32, i32, i32) {
    %c0_i32 = arith.constant 0 : i32
    %c0_i32_0 = arith.constant 0 : i32
    %c0_i32_1 = arith.constant 0 : i32
    %c0_i32_2 = arith.constant 0 : i32
    return %c0_i32, %c0_i32_0, %c0_i32_1 : i32, i32, i32
  }
  func.func @transform_2(%arg0: i32) -> (i32, i32, i32) {
    %c0_i32 = arith.constant 0 : i32
    %c0_i32_0 = arith.constant 0 : i32
    %c0_i32_1 = arith.constant 0 : i32
    %c0_i32_2 = arith.constant 0 : i32
    return %c0_i32, %c0_i32_0, %c0_i32_1 : i32, i32, i32
  }
  func.func @transform_3(%arg0: i32) -> (i32, i32, i32) {
    %c0_i32 = arith.constant 0 : i32
    %c0_i32_0 = arith.constant 0 : i32
    %c0_i32_1 = arith.constant 0 : i32
    %c0_i32_2 = arith.constant 0 : i32
    return %c0_i32, %c0_i32_0, %c0_i32_1 : i32, i32, i32
  }
  func.func @transform_4(%arg0: i32) -> (i32, i32, i32) {
    %c0_i32 = arith.constant 0 : i32
    %c0_i32_0 = arith.constant 0 : i32
    %c0_i32_1 = arith.constant 0 : i32
    %c0_i32_2 = arith.constant 0 : i32
    return %c0_i32, %c0_i32_0, %c0_i32_1 : i32, i32, i32
  }
  func.func @transform_5(%arg0: i32) -> (i32, i32, i32) {
    %c0_i32 = arith.constant 0 : i32
    %c0_i32_0 = arith.constant 0 : i32
    %c0_i32_1 = arith.constant 0 : i32
    %c0_i32_2 = arith.constant 0 : i32
    return %c0_i32, %c0_i32_0, %c0_i32_1 : i32, i32, i32
  }
  func.func @transform_6(%arg0: i32) -> (i32, i32, i32) {
    %c0_i32 = arith.constant 0 : i32
    %c0_i32_0 = arith.constant 0 : i32
    %c0_i32_1 = arith.constant 0 : i32
    %c0_i32_2 = arith.constant 0 : i32
    return %c0_i32, %c0_i32_0, %c0_i32_1 : i32, i32, i32
  }
  func.func @transform_7(%arg0: i32) -> (i32, i32, i32) {
    %c0_i32 = arith.constant 0 : i32
    %c0_i32_0 = arith.constant 0 : i32
    %c0_i32_1 = arith.constant 0 : i32
    return %arg0, %c0_i32, %c0_i32_0 : i32, i32, i32
  }
}

</mosaic_0001>

<bundles_post_ra>
// kernel: tpu_custom_call.1
= control target key start
LH: loop header
LB: loop body
LE: loop exit
PB: predicated region body
PF: predicated region fallthrough
CT: control target
= control target key end

     0   :  { %v533_v1 = vlaneseq  ;;  %v17560_v2 = vmov 0.0   ;;  %vm13747_vm0 = vmmov 0   ;;  %vm488_vm1 = vcmask 261120   ;;  %s13748_s11 = smov 32   ;;  %s13749_s12 = smov 124   ;;  %s17547_s0 = inlined_call_operand.vmem [shape: f32[2,8,32], index: 0, kind: input, shape index: {}]   ;;  %s17548_s1 = inlined_call_operand.vmem [shape: bf16[2,32,96], index: 1, kind: input, shape index: {}]   ;;  %s17549_s2 = inlined_call_operand.vmem [shape: bf16[2,32,32], index: 2, kind: input, shape index: {}]   ;;  %s17550_s3 = inlined_call_operand.vmem [shape: bf16[2,32,3072], index: 3, kind: input, shape index: {}]   ;;  %s17551_s4 = inlined_call_operand.vmem [shape: bf16[2,3072,32], index: 4, kind: input, shape index: {}]   ;;  %s17552_s5 = inlined_call_operand.vmem [shape: f32[2,9,32], index: 5, kind: input, shape index: {}]   ;;  %s17553_s6 = inlined_call_operand.vmem [shape: f32[2,1,3072], index: 6, kind: input, shape index: {}]   ;;  %s17554_s7 = inlined_call_operand.hbm [shape: f32[2,8,32], index: 7, kind: output, shape index: {}]  }
   0x1   :  { %v12987_v0 = vld [vmem:[%s17548_s1] sm:$0xff]   ;;  %12479 = vmatprep.subr.bf16.mxu0 %v17560_v2  ;;  %v12988_v3 = vld [vmem:[%s17548_s1 + $0x8] sm:$0xff]   ;;  %12487 = vmatprep.subr.bf16.mxu1 %v17560_v2  ;;  %s13750_s13 = smov 120   ;;  %s13751_s14 = smov 116  }
   0x2   :  { %12480 = vmatpush3.bf16.msra.mxu0 %v12987_v0  ;;  %12483 = vmatprep.mubr.msk.bf16.mxu0 %vm13747_vm0, %v17560_v2  ;;  %v28_v4 = vld [vmem:[%s17547_s0] sm:$0xff]  ;;  %v29_v5 = vld [vmem:[%s17547_s0 + $0x8] sm:$0xff]  ;;  %v13827_v7 = vshrl.u32 %v533_v1, 7  ;;  %s13752_s15 = smov 112   ;;  %s13753_s16 = smov 108  }
   0x3   :  { %v470_v6 = vld [vmem:[%s17552_s5] sm:$0xff]  ;;  %12481 = vmatprep.subr.bf16.mxu0 %v17560_v2  ;;  %12489 = vmatprep.mubr.msk.bf16.mxu1 %vm13747_vm0, %v17560_v2  ;;  %v475_v9 = vpack.c.bf16 %v29_v5, %v28_v4  ;;  %s13754_s17 = smov 104   ;;  %s13755_s18 = smov 100  }
   0x4   :  { %v13833_v8 = vsub.s32 1, %v13827_v7  ;;  %s13756_s19 = smov 96  }
   0x6   :  { %17596 = vst [vmem:[#allocation5_spill] sm:$0xff] %v13833_v8  ;;  %12482 = vmatpush3.bf16.msra.mxu0 %v12988_v3  ;;  %v546_v10 = vrot.slane %v470_v6, %v13833_v8 }
   0x7   :  { %12493 = vmatprep.subr.bf16.mxu0 %v17560_v2 }
   0x8   :  { %548 = vrot.lane.b32.xlu0 %v546_v10, %s13748_s11 }
   0x9   :  { %12484 = vmatmul.mubr.msk.bf16.vlgmr.msra.gmra.mrb[0].mxu0 %vm488_vm1, %v475_v9 }
   0xa   :  { %12495 = vmatprep.mubr.msk.bf16.mxu0 %vm13747_vm0, %v17560_v2 }
  0x7a   :  { %v549_v11 = vpop.permute.xlu0 %548 }
  0xdc   :  { %v13841_v12 = vpop.f32.mrb[0].mxu0 }
  0xdd   :  { %v551_v13 = vadd.f32 %v549_v11, %v13841_v12  ;;  %v12485_v14 = vpop.f32.mrb[1].mxu0 }
  0xde   :  { %v13844_v15 = vpop.f32.mrb[2].mxu0 }
  0xdf   :  { %v553_v16 = vpack.c.bf16 %v551_v13, %v551_v13  ;;  %v552_v17 = vadd.f32 %v549_v11, %v13844_v15  ;;  %v12486_v18 = vpop.f32.mrb[3].mxu0 }
  0xe1   :  { %v554_v19 = vpack.c.bf16 %v552_v17, %v552_v17  ;;  %599 = vrot.lane.b32.xlu0 %v553_v16, %s13749_s12 }
  0xe3   :  { %601 = vrot.lane.b32.xlu1 %v554_v19, %s13749_s12 }
  0xe5   :  { %605 = vrot.lane.b32.xlu0 %v554_v19, %s13750_s13 }
  0xe7   :  { %603 = vrot.lane.b32.xlu1 %v553_v16, %s13750_s13 }
  0xe9   :  { %609 = vrot.lane.b32.xlu0 %v554_v19, %s13751_s14 }
  0xeb   :  { %607 = vrot.lane.b32.xlu1 %v553_v16, %s13751_s14 }
  0xed   :  { %613 = vrot.lane.b32.xlu0 %v554_v19, %s13752_s15 }
  0xef   :  { %611 = vrot.lane.b32.xlu1 %v553_v16, %s13752_s15 }
  0xf1   :  { %617 = vrot.lane.b32.xlu0 %v554_v19, %s13753_s16 }
  0xf3   :  { %615 = vrot.lane.b32.xlu1 %v553_v16, %s13753_s16 }
  0xf5   :  { %621 = vrot.lane.b32.xlu0 %v554_v19, %s13754_s17 }
  0xf7   :  { %619 = vrot.lane.b32.xlu1 %v553_v16, %s13754_s17 }
  0xf9   :  { %625 = vrot.lane.b32.xlu0 %v554_v19, %s13755_s18 }
  0xfb   :  { %623 = vrot.lane.b32.xlu1 %v553_v16, %s13755_s18 }
  0xfd   :  { %706 = vrot.lane.b32.xlu0 %v554_v19, %s13756_s19 }
  0xff   :  { %657 = vrot.lane.b32.xlu1 %v553_v16, %s13756_s19 }
 0x100   :  { %12 = vsyncpa [#allocation3], 0  ;;  %v13864_v20 = vsub.s32 0, %v13827_v7  ;;  %v13869_v21 = vld [vmem:[%s17552_s5] sm:$0xff]  ;;  %vm659_vm2 = vcmask 31744   ;;  %v13912_v47 = vsub.s32 2, %v13827_v7 }
 0x101   :  { %s13757_s22 = smov 64   ;;  %vm1624_vm3 = vcmask 1043456   ;;  %vm1426_vm4 = vcmask 64512   ;;  %s13758_s23 = smov 4   ;;  %vm2448_vm5 = vcmask 97280   ;;  %vm2451_vm6 = vcmask 130048  }
 0x102   :  { %17597 = vst [vmem:[#allocation6_spill] sm:$0xff] %v13864_v20  ;;  %v536_v22 = vrot.slane %v13869_v21, %v13864_v20  ;;  %17598 = vst [vmem:[#allocation7_spill] sm:$0xff] %v13912_v47  ;;  %v558_v48 = vrot.slane %v13869_v21, %v13912_v47  ;;  %s13759_s24 = smov 8   ;;  %s13760_s25 = smov 12   ;;  %vm2454_vm7 = vcmask 162816   ;;  %vm2457_vm8 = vcmask 195584  }
 0x103   :  { %s13761_s26 = smov 16   ;;  %s17557_s29 = smov 20   ;;  %vm2460_vm9 = vcmask 228352  }
 0x104   :  { %v537_v23 = vadd.f32 %v536_v22, %v13841_v12  ;;  %v538_v24 = vadd.f32 %v536_v22, %v13844_v15  ;;  %s17556_s9 = smov 24   ;;  %s17555_s10 = smov 28  }
 0x106   :  { %v539_v25 = vmul.f32 0.5, %v537_v23  ;;  %v540_v27 = vmul.f32 0.5, %v538_v24 }
 0x108   :  { %v541_v29 = vpack.c.bf16 %v539_v25, %v539_v25  ;;  %v542_v31 = vpack.c.bf16 %v540_v27, %v540_v27 }
 0x153   :  { %v600_v26 = vpop.permute.xlu0 %599 }
 0x154   :  { %754 = vrot.lane.b32.xlu1 %v600_v26, %s13756_s19 }
 0x155   :  { %v602_v28 = vpop.permute.xlu1 %601 }
 0x156   :  { %802 = vrot.lane.b32.xlu0 %v602_v28, %s13756_s19 }
 0x157   :  { %v606_v30 = vpop.permute.xlu0 %605 }
 0x158   :  { %569 = vrot.lane.b32.xlu1 %v541_v29, %s13749_s12 }
 0x159   :  { %v604_v32 = vpop.permute.xlu1 %603 }
 0x15a   :  { %571 = vrot.lane.b32.xlu0 %v542_v31, %s13749_s12 }
 0x15b   :  { %v610_v33 = vpop.permute.xlu0 %609 }
 0x15c   :  { %850 = vrot.lane.b32.xlu1 %v604_v32, %s13756_s19 }
 0x15d   :  { %v608_v34 = vpop.permute.xlu1 %607 }
 0x15e   :  { %898 = vrot.lane.b32.xlu0 %v606_v30, %s13756_s19 }
 0x15f   :  { %v614_v35 = vpop.permute.xlu0 %613 }
 0x160   :  { %573 = vrot.lane.b32.xlu1 %v541_v29, %s13750_s13 }
 0x161   :  { %v612_v36 = vpop.permute.xlu1 %611 }
 0x162   :  { %575 = vrot.lane.b32.xlu0 %v542_v31, %s13750_s13 }
 0x163   :  { %v618_v37 = vpop.permute.xlu0 %617 }
 0x164   :  { %946 = vrot.lane.b32.xlu1 %v608_v34, %s13756_s19 }
 0x165   :  { %v616_v38 = vpop.permute.xlu1 %615 }
 0x166   :  { %994 = vrot.lane.b32.xlu0 %v610_v33, %s13756_s19 }
 0x167   :  { %v622_v39 = vpop.permute.xlu0 %621 }
 0x168   :  { %577 = vrot.lane.b32.xlu1 %v541_v29, %s13751_s14 }
 0x169   :  { %v620_v40 = vpop.permute.xlu1 %619 }
 0x16a   :  { %579 = vrot.lane.b32.xlu0 %v542_v31, %s13751_s14 }
 0x16b   :  { %v626_v41 = vpop.permute.xlu0 %625 }
 0x16c   :  { %1042 = vrot.lane.b32.xlu1 %v612_v36, %s13756_s19 }
 0x16d   :  { %v624_v42 = vpop.permute.xlu1 %623 }
 0x16e   :  { %1090 = vrot.lane.b32.xlu0 %v614_v35, %s13756_s19 }
 0x16f   :  { %v707_v43 = vpop.permute.xlu0 %706 }
 0x170   :  { %v712_v44 = vsel %vm659_vm2, %v707_v43, 0  ;;  %581 = vrot.lane.b32.xlu1 %v541_v29, %s13752_s15 }
 0x171   :  { %12494 = vmatpush3.bf16.xpose.msra.mxu0 %v712_v44  ;;  %v658_v45 = vpop.permute.xlu1 %657 }
 0x172   :  { %583 = vrot.lane.b32.xlu0 %v542_v31, %s13752_s15  ;;  %v664_v46 = vsel %vm659_vm2, %v658_v45, 0  ;;  %12505 = vmatprep.subr.bf16.mxu0 %v17560_v2 }
 0x173   :  { %12488 = vmatpush3.bf16.xpose.msra.mxu1 %v664_v46 }
 0x174   :  { %1138 = vrot.lane.b32.xlu1 %v616_v38, %s13756_s19  ;;  %12499 = vmatprep.subr.bf16.mxu1 %v17560_v2 }
 0x176   :  { %1186 = vrot.lane.b32.xlu0 %v618_v37, %s13756_s19 }
 0x178   :  { %585 = vrot.lane.b32.xlu1 %v541_v29, %s13753_s16  ;;  %12496 = vmatmul.mubr.msk.bf16.vlgmr.msra.gmra.mrb[4].mxu0 %vm659_vm2, %v542_v31 }
 0x179   :  { %12507 = vmatprep.mubr.msk.bf16.mxu0 %vm13747_vm0, %v17560_v2 }
 0x17a   :  { %12490 = vmatmul.mubr.msk.bf16.vlgmr.msra.gmra.mrb[0].mxu1 %vm659_vm2, %v541_v29  ;;  %587 = vrot.lane.b32.xlu0 %v542_v31, %s13753_s16 }
 0x17b   :  { %12501 = vmatprep.mubr.msk.bf16.mxu1 %vm13747_vm0, %v17560_v2 }
 0x17c   :  { %1234 = vrot.lane.b32.xlu1 %v620_v40, %s13756_s19 }
 0x17e   :  { %1282 = vrot.lane.b32.xlu0 %v622_v39, %s13756_s19 }
 0x180   :  { %589 = vrot.lane.b32.xlu1 %v541_v29, %s13754_s17 }
 0x182   :  { %591 = vrot.lane.b32.xlu0 %v542_v31, %s13754_s17 }
 0x184   :  { %1330 = vrot.lane.b32.xlu1 %v624_v42, %s13756_s19 }
 0x186   :  { %1378 = vrot.lane.b32.xlu0 %v626_v41, %s13756_s19 }
 0x188   :  { %593 = vrot.lane.b32.xlu1 %v541_v29, %s13755_s18 }
 0x18a   :  { %595 = vrot.lane.b32.xlu0 %v542_v31, %s13755_s18 }
 0x18e   :  { %560 = vrot.lane.b32.xlu0 %v558_v48, %s13757_s22 }
 0x1c6   :  { %v755_v49 = vpop.permute.xlu1 %754 }
 0x1c7   :  { %v760_v50 = vsel %vm659_vm2, %v755_v49, 0 }
 0x1c8   :  { %v803_v51 = vpop.permute.xlu0 %802  ;;  %12500 = vmatpush3.bf16.xpose.msra.mxu1 %v760_v50 }
 0x1c9   :  { %v808_v52 = vsel %vm659_vm2, %v803_v51, 0  ;;  %12511 = vmatprep.subr.bf16.mxu1 %v17560_v2 }
 0x1ca   :  { %v570_v53 = vpop.permute.xlu1 %569  ;;  %12506 = vmatpush3.bf16.xpose.msra.mxu0 %v808_v52 }
 0x1cb   :  { %12517 = vmatprep.subr.bf16.mxu0 %v17560_v2 }
 0x1cc   :  { %v572_v54 = vpop.permute.xlu0 %571 }
 0x1ce   :  { %v851_v55 = vpop.permute.xlu1 %850 }
 0x1cf   :  { %v856_v56 = vsel %vm659_vm2, %v851_v55, 0  ;;  %12502 = vmatmul.mubr.msk.bf16.vlgmr.msra.gmra.mrb[4].mxu1 %vm659_vm2, %v570_v53 }
 0x1d0   :  { %12512 = vmatpush3.bf16.xpose.msra.mxu1 %v856_v56  ;;  %v899_v57 = vpop.permute.xlu0 %898  ;;  %12513 = vmatprep.mubr.msk.bf16.mxu1 %vm13747_vm0, %v17560_v2 }
 0x1d1   :  { %v904_v58 = vsel %vm659_vm2, %v899_v57, 0  ;;  %12508 = vmatmul.mubr.msk.bf16.vlgmr.msra.gmra.mrb[8].mxu0 %vm659_vm2, %v572_v54  ;;  %12523 = vmatprep.subr.bf16.mxu1 %v17560_v2 }
 0x1d2   :  { %v574_v59 = vpop.permute.xlu1 %573  ;;  %12518 = vmatpush3.bf16.xpose.msra.mxu0 %v904_v58  ;;  %12519 = vmatprep.mubr.msk.bf16.mxu0 %vm13747_vm0, %v17560_v2 }
 0x1d3   :  { %12529 = vmatprep.subr.bf16.mxu0 %v17560_v2 }
 0x1d4   :  { %v576_v60 = vpop.permute.xlu0 %575 }
 0x1d6   :  { %v947_v61 = vpop.permute.xlu1 %946 }
 0x1d7   :  { %v952_v62 = vsel %vm659_vm2, %v947_v61, 0  ;;  %12514 = vmatmul.mubr.msk.bf16.vlgmr.msra.gmra.mrb[8].mxu1 %vm659_vm2, %v574_v59 }
 0x1d8   :  { %12524 = vmatpush3.bf16.xpose.msra.mxu1 %v952_v62  ;;  %v995_v63 = vpop.permute.xlu0 %994  ;;  %12525 = vmatprep.mubr.msk.bf16.mxu1 %vm13747_vm0, %v17560_v2 }
 0x1d9   :  { %v1000_v0 = vsel %vm659_vm2, %v995_v63, 0  ;;  %12520 = vmatmul.mubr.msk.bf16.vlgmr.msra.gmra.mrb[12].mxu0 %vm659_vm2, %v576_v60  ;;  %12535 = vmatprep.subr.bf16.mxu1 %v17560_v2 }
 0x1da   :  { %v578_v1 = vpop.permute.xlu1 %577  ;;  %12530 = vmatpush3.bf16.xpose.msra.mxu0 %v1000_v0  ;;  %12531 = vmatprep.mubr.msk.bf16.mxu0 %vm13747_vm0, %v17560_v2 }
 0x1db   :  { %12541 = vmatprep.subr.bf16.mxu0 %v17560_v2 }
 0x1dc   :  { %v580_v3 = vpop.permute.xlu0 %579 }
 0x1de   :  { %v1043_v4 = vpop.permute.xlu1 %1042 }
 0x1df   :  { %v1048_v5 = vsel %vm659_vm2, %v1043_v4, 0  ;;  %12526 = vmatmul.mubr.msk.bf16.vlgmr.msra.gmra.mrb[12].mxu1 %vm659_vm2, %v578_v1 }
 0x1e0   :  { %12536 = vmatpush3.bf16.xpose.msra.mxu1 %v1048_v5  ;;  %v1091_v6 = vpop.permute.xlu0 %1090  ;;  %12537 = vmatprep.mubr.msk.bf16.mxu1 %vm13747_vm0, %v17560_v2 }
 0x1e1   :  { %v1096_v9 = vsel %vm659_vm2, %v1091_v6, 0  ;;  %12532 = vmatmul.mubr.msk.bf16.vlgmr.msra.gmra.mrb[16].mxu0 %vm659_vm2, %v580_v3  ;;  %12547 = vmatprep.subr.bf16.mxu1 %v17560_v2 }
 0x1e2   :  { %v582_v10 = vpop.permute.xlu1 %581  ;;  %12542 = vmatpush3.bf16.xpose.msra.mxu0 %v1096_v9  ;;  %12543 = vmatprep.mubr.msk.bf16.mxu0 %vm13747_vm0, %v17560_v2 }
 0x1e3   :  { %12553 = vmatprep.subr.bf16.mxu0 %v17560_v2 }
 0x1e4   :  { %v584_v11 = vpop.permute.xlu0 %583 }
 0x1e6   :  { %v1139_v13 = vpop.permute.xlu1 %1138 }
 0x1e7   :  { %v1144_v14 = vsel %vm659_vm2, %v1139_v13, 0  ;;  %12538 = vmatmul.mubr.msk.bf16.vlgmr.msra.gmra.mrb[16].mxu1 %vm659_vm2, %v582_v10 }
 0x1e8   :  { %12548 = vmatpush3.bf16.xpose.msra.mxu1 %v1144_v14  ;;  %v1187_v16 = vpop.permute.xlu0 %1186  ;;  %12549 = vmatprep.mubr.msk.bf16.mxu1 %vm13747_vm0, %v17560_v2 }
 0x1e9   :  { %v1192_v17 = vsel %vm659_vm2, %v1187_v16, 0  ;;  %12544 = vmatmul.mubr.msk.bf16.vlgmr.msra.gmra.mrb[20].mxu0 %vm659_vm2, %v584_v11  ;;  %12559 = vmatprep.subr.bf16.mxu1 %v17560_v2 }
 0x1ea   :  { %v586_v18 = vpop.permute.xlu1 %585  ;;  %12554 = vmatpush3.bf16.xpose.msra.mxu0 %v1192_v17  ;;  %12555 = vmatprep.mubr.msk.bf16.mxu0 %vm13747_vm0, %v17560_v2 }
 0x1eb   :  { %12565 = vmatprep.subr.bf16.mxu0 %v17560_v2 }
 0x1ec   :  { %v588_v19 = vpop.permute.xlu0 %587 }
 0x1ee   :  { %v1235_v21 = vpop.permute.xlu1 %1234 }
 0x1ef   :  { %v1240_v22 = vsel %vm659_vm2, %v1235_v21, 0  ;;  %12550 = vmatmul.mubr.msk.bf16.vlgmr.msra.gmra.mrb[20].mxu1 %vm659_vm2, %v586_v18 }
 0x1f0   :  { %12560 = vmatpush3.bf16.xpose.msra.mxu1 %v1240_v22  ;;  %v1283_v23 = vpop.permute.xlu0 %1282  ;;  %12561 = vmatprep.mubr.msk.bf16.mxu1 %vm13747_vm0, %v17560_v2 }
 0x1f1   :  { %v1288_v24 = vsel %vm659_vm2, %v1283_v23, 0  ;;  %12556 = vmatmul.mubr.msk.bf16.vlgmr.msra.gmra.mrb[24].mxu0 %vm659_vm2, %v588_v19  ;;  %12571 = vmatprep.subr.bf16.mxu1 %v17560_v2 }
 0x1f2   :  { %v590_v25 = vpop.permute.xlu1 %589  ;;  %12566 = vmatpush3.bf16.xpose.msra.mxu0 %v1288_v24  ;;  %12567 = vmatprep.mubr.msk.bf16.mxu0 %vm13747_vm0, %v17560_v2 }
 0x1f3   :  { %12577 = vmatprep.subr.bf16.mxu0 %v17560_v2 }
 0x1f4   :  { %v592_v26 = vpop.permute.xlu0 %591 }
 0x1f6   :  { %v1331_v27 = vpop.permute.xlu1 %1330 }
 0x1f7   :  { %v1336_v28 = vsel %vm659_vm2, %v1331_v27, 0  ;;  %12562 = vmatmul.mubr.msk.bf16.vlgmr.msra.gmra.mrb[24].mxu1 %vm659_vm2, %v590_v25 }
 0x1f8   :  { %12572 = vmatpush3.bf16.xpose.msra.mxu1 %v1336_v28  ;;  %v1379_v29 = vpop.permute.xlu0 %1378  ;;  %12573 = vmatprep.mubr.msk.bf16.mxu1 %vm13747_vm0, %v17560_v2 }
 0x1f9   :  { %v1384_v30 = vsel %vm659_vm2, %v1379_v29, 0  ;;  %12568 = vmatmul.mubr.msk.bf16.vlgmr.msra.gmra.mrb[28].mxu0 %vm659_vm2, %v592_v26  ;;  %12583 = vmatprep.subr.bf16.mxu1 %v17560_v2 }
 0x1fa   :  { %12578 = vmatpush3.bf16.xpose.msra.mxu0 %v1384_v30  ;;  %12579 = vmatprep.mubr.msk.bf16.mxu0 %vm13747_vm0, %v17560_v2  ;;  %v594_v32 = vpop.permute.xlu1 %593 }
 0x1fb   :  { %12589 = vmatprep.subr.bf16.mxu0 %v17560_v2 }
 0x1fc   :  { %v596_v31 = vpop.permute.xlu0 %595 }
 0x1ff   :  { %12574 = vmatmul.mubr.msk.bf16.vlgmr.msra.gmra.mrb[28].mxu1 %vm659_vm2, %v594_v32 }
 0x200   :  { %v561_v33 = vpop.permute.xlu0 %560  ;;  %12585 = vmatprep.mubr.msk.bf16.mxu1 %vm13747_vm0, %v17560_v2 }
 0x201   :  { %v563_v34 = vadd.f32 %v561_v33, %v13841_v12  ;;  %v564_v35 = vadd.f32 %v561_v33, %v13844_v15  ;;  %12580 = vmatmul.mubr.msk.bf16.vlgmr.msra.gmra.mrb[32].mxu0 %vm659_vm2, %v596_v31 }
 0x202   :  { %12591 = vmatprep.mubr.msk.bf16.mxu0 %vm13747_vm0, %v17560_v2 }
 0x203   :  { %v565_v36 = vpack.c.bf16 %v563_v34, %v563_v34  ;;  %v566_v37 = vpack.c.bf16 %v564_v35, %v564_v35 }
 0x205   :  { %631 = vrot.lane.b32.xlu1 %v566_v37, %s13749_s12  ;;  %629 = vrot.lane.b32.xlu0 %v565_v36, %s13749_s12 }
 0x209   :  { %633 = vrot.lane.b32.xlu1 %v565_v36, %s13750_s13  ;;  %637 = vrot.lane.b32.xlu0 %v565_v36, %s13751_s14 }
 0x20d   :  { %635 = vrot.lane.b32.xlu1 %v566_v37, %s13750_s13  ;;  %641 = vrot.lane.b32.xlu0 %v565_v36, %s13752_s15 }
 0x211   :  { %639 = vrot.lane.b32.xlu1 %v566_v37, %s13751_s14  ;;  %645 = vrot.lane.b32.xlu0 %v565_v36, %s13753_s16 }
 0x215   :  { %643 = vrot.lane.b32.xlu1 %v566_v37, %s13752_s15  ;;  %649 = vrot.lane.b32.xlu0 %v565_v36, %s13754_s17 }
 0x219   :  { %647 = vrot.lane.b32.xlu1 %v566_v37, %s13753_s16  ;;  %653 = vrot.lane.b32.xlu0 %v565_v36, %s13755_s18 }
 0x21d   :  { %651 = vrot.lane.b32.xlu1 %v566_v37, %s13754_s17  ;;  %1619 = vrot.lane.b32.xlu0 %v565_v36, %s13757_s22 }
 0x221   :  { %655 = vrot.lane.b32.xlu1 %v566_v37, %s13755_s18 }
 0x225   :  { %1668 = vrot.lane.b32.xlu1 %v566_v37, %s13757_s22 }
 0x24b   :  { %v14007_v12 = vpop.f32.mrb[4].mxu0 }
 0x24c   :  { %v12497_v15 = vpop.f32.mrb[5].mxu0  ;;  %v1430_v63 = vsel %vm1426_vm4, %v14007_v12, -inf }
 0x24d   :  { %v14009_v38 = vpop.f32.mrb[0].mxu1  ;;  %v751_v39 = vpop.f32.mrb[6].mxu0 }
 0x24e   :  { %v12491_v40 = vpop.f32.mrb[1].mxu1  ;;  %v12498_v41 = vpop.f32.mrb[7].mxu0  ;;  %v1427_v11 = vsel %vm1426_vm4, %v14009_v38, -inf }
 0x24f   :  { %v703_v42 = vpop.f32.mrb[2].mxu1 }
 0x250   :  { %v12492_v43 = vpop.f32.mrb[3].mxu1 }
 0x277   :  { %v632_v44 = vpop.permute.xlu1 %631  ;;  %v630_v45 = vpop.permute.xlu0 %629 }
 0x278   :  { %1764 = vrot.lane.b32.xlu1 %v632_v44, %s13757_s22  ;;  %1716 = vrot.lane.b32.xlu0 %v630_v45, %s13757_s22 }
 0x27b   :  { %v634_v46 = vpop.permute.xlu1 %633  ;;  %v638_v48 = vpop.permute.xlu0 %637 }
 0x27c   :  { %1812 = vrot.lane.b32.xlu0 %v634_v46, %s13757_s22 }
 0x27f   :  { %v636_v49 = vpop.permute.xlu1 %635  ;;  %v642_v50 = vpop.permute.xlu0 %641 }
 0x280   :  { %1860 = vrot.lane.b32.xlu1 %v636_v49, %s13757_s22  ;;  %1908 = vrot.lane.b32.xlu0 %v638_v48, %s13757_s22 }
 0x283   :  { %v640_v51 = vpop.permute.xlu1 %639  ;;  %v14016_v52 = vpop.permute.xlu0 %645 }
 0x284   :  { %1956 = vrot.lane.b32.xlu1 %v640_v51, %s13757_s22 }
 0x287   :  { %v644_v53 = vpop.permute.xlu1 %643  ;;  %v14019_v54 = vpop.permute.xlu0 %649 }
 0x28b   :  { %v14021_v55 = vpop.permute.xlu1 %647  ;;  %v14023_v56 = vpop.permute.xlu0 %653 }
 0x28f   :  { %v14025_v57 = vpop.permute.xlu1 %651  ;;  %v1620_v58 = vpop.permute.xlu0 %1619 }
 0x290   :  { %v1626_v59 = vsel %vm1624_vm3, %v1620_v58, 0 }
 0x291   :  { %12584 = vmatpush3.bf16.msra.mxu1 %v1626_v59 }
 0x292   :  { %12595 = vmatprep.subr.bf16.mxu1 %v17560_v2 }
 0x293   :  { %v14029_v60 = vpop.permute.xlu1 %655 }
 0x297   :  { %v1669_v61 = vpop.permute.xlu1 %1668 }
 0x298   :  { %v1674_v62 = vsel %vm1624_vm3, %v1669_v61, 0 }
 0x299   :  { %12590 = vmatpush3.bf16.msra.mxu0 %v1674_v62 }
 0x29a   :  { %12601 = vmatprep.subr.bf16.mxu0 %v17560_v2 }
 0x29f   :  { %1431 = vmax.xlane.f32.xlu0 %v1430_v63 }
 0x2a2   :  { %v14035_v0 = vpop.f32.mrb[4].mxu1 }
 0x2a3   :  { %v12503_v1 = vpop.f32.mrb[5].mxu1 }
 0x2a4   :  { %v799_v3 = vpop.f32.mrb[6].mxu1  ;;  %v14037_v4 = vpop.f32.mrb[8].mxu0 }
 0x2a5   :  { %v12504_v5 = vpop.f32.mrb[7].mxu1  ;;  %v12509_v6 = vpop.f32.mrb[9].mxu0 }
 0x2a6   :  { %v847_v9 = vpop.f32.mrb[10].mxu0 }
 0x2a7   :  { %v12510_v10 = vpop.f32.mrb[11].mxu0 }
 0x2a8   :  { %1428 = vmax.xlane.f32.xlu1 %v1427_v11 }
 0x2aa   :  { %v14041_v13 = vpop.f32.mrb[8].mxu1 }
 0x2ab   :  { %v12515_v14 = vpop.f32.mrb[9].mxu1 }
 0x2ac   :  { %v895_v16 = vpop.f32.mrb[10].mxu1  ;;  %v14043_v17 = vpop.f32.mrb[12].mxu0  ;;  %v1433_v14 = vsel %vm1426_vm4, %v14035_v0, -inf }
 0x2ad   :  { %v12516_v18 = vpop.f32.mrb[11].mxu1  ;;  %v12521_v19 = vpop.f32.mrb[13].mxu0  ;;  %v1436_v16 = vsel %vm1426_vm4, %v14037_v4, -inf }
 0x2ae   :  { %v943_v21 = vpop.f32.mrb[14].mxu0  ;;  %v1439_v18 = vsel %vm1426_vm4, %v14041_v13, -inf  ;;  %v1442_v19 = vsel %vm1426_vm4, %v14043_v17, -inf }
 0x2af   :  { %v12522_v22 = vpop.f32.mrb[15].mxu0 }
 0x2b2   :  { %v14045_v23 = vpop.f32.mrb[12].mxu1 }
 0x2b3   :  { %v12527_v24 = vpop.f32.mrb[13].mxu1  ;;  %v1445_v21 = vsel %vm1426_vm4, %v14045_v23, -inf }
 0x2b4   :  { %v991_v25 = vpop.f32.mrb[14].mxu1  ;;  %v14047_v26 = vpop.f32.mrb[16].mxu0 }
 0x2b5   :  { %v12528_v27 = vpop.f32.mrb[15].mxu1  ;;  %2004 = vrot.lane.b32.xlu0 %v642_v50, %s13757_s22  ;;  %v12533_v28 = vpop.f32.mrb[17].mxu0  ;;  %v1448_v22 = vsel %vm1426_vm4, %v14047_v26, -inf }
 0x2b6   :  { %v1039_v29 = vpop.f32.mrb[18].mxu0 }
 0x2b7   :  { %v12534_v30 = vpop.f32.mrb[19].mxu0 }
 0x2b9   :  { %2052 = vrot.lane.b32.xlu1 %v644_v53, %s13757_s22 }
 0x2ba   :  { %v14051_v31 = vpop.f32.mrb[16].mxu1 }
 0x2bb   :  { %v12539_v32 = vpop.f32.mrb[17].mxu1  ;;  %v1451_v1 = vsel %vm1426_vm4, %v14051_v31, -inf }
 0x2bc   :  { %v1087_v33 = vpop.f32.mrb[18].mxu1  ;;  %v14053_v34 = vpop.f32.mrb[20].mxu0 }
 0x2bd   :  { %v12540_v35 = vpop.f32.mrb[19].mxu1  ;;  %v12545_v36 = vpop.f32.mrb[21].mxu0  ;;  %v1454_v27 = vsel %vm1426_vm4, %v14053_v34, -inf }
 0x2be   :  { %v1135_v37 = vpop.f32.mrb[22].mxu0 }
 0x2bf   :  { %v12546_v15 = vpop.f32.mrb[23].mxu0 }
 0x2c2   :  { %v14055_v39 = vpop.f32.mrb[20].mxu1 }
 0x2c3   :  { %v12551_v40 = vpop.f32.mrb[21].mxu1  ;;  %v1457_v29 = vsel %vm1426_vm4, %v14055_v39, -inf }
 0x2c4   :  { %v1183_v41 = vpop.f32.mrb[22].mxu1  ;;  %v14057_v42 = vpop.f32.mrb[24].mxu0 }
 0x2c5   :  { %v12552_v43 = vpop.f32.mrb[23].mxu1  ;;  %v12557_v44 = vpop.f32.mrb[25].mxu0  ;;  %v1460_v33 = vsel %vm1426_vm4, %v14057_v42, -inf }
 0x2c6   :  { %v1231_v45 = vpop.f32.mrb[26].mxu0 }
 0x2c7   :  { %v12558_v46 = vpop.f32.mrb[27].mxu0 }
 0x2ca   :  { %v14059_v48 = vpop.f32.mrb[24].mxu1 }
 0x2cb   :  { %v12563_v49 = vpop.f32.mrb[25].mxu1  ;;  %v1463_v37 = vsel %vm1426_vm4, %v14059_v48, -inf }
 0x2cc   :  { %v1279_v50 = vpop.f32.mrb[26].mxu1  ;;  %v14061_v51 = vpop.f32.mrb[28].mxu0 }
 0x2cd   :  { %v12564_v53 = vpop.f32.mrb[27].mxu1  ;;  %v12569_v58 = vpop.f32.mrb[29].mxu0  ;;  %v1466_v40 = vsel %vm1426_vm4, %v14061_v51, -inf }
 0x2ce   :  { %v1327_v59 = vpop.f32.mrb[30].mxu0 }
 0x2cf   :  { %v12570_v61 = vpop.f32.mrb[31].mxu0 }
 0x2d2   :  { %v14063_v62 = vpop.f32.mrb[28].mxu1 }
 0x2d3   :  { %v12575_v63 = vpop.f32.mrb[29].mxu1  ;;  %v1469_v45 = vsel %vm1426_vm4, %v14063_v62, -inf }
 0x2d4   :  { %v1375_v3 = vpop.f32.mrb[30].mxu1  ;;  %1452 = vmax.xlane.f32.xlu0 %v1451_v1  ;;  %v14067_v5 = vpop.f32.mrb[32].mxu0 }
 0x2d5   :  { %v12576_v6 = vpop.f32.mrb[31].mxu1  ;;  %v12581_v9 = vpop.f32.mrb[33].mxu0  ;;  %v1472_v49 = vsel %vm1426_vm4, %v14067_v5, -inf }
 0x2d6   :  { %v1423_v10 = vpop.f32.mrb[34].mxu0 }
 0x2d7   :  { %v12582_v11 = vpop.f32.mrb[35].mxu0 }
 0x2dd   :  { %1434 = vmax.xlane.f32.xlu1 %v1433_v14 }
 0x2e1   :  { %1437 = vmax.xlane.f32.xlu1 %v1436_v16 }
 0x2e5   :  { %1440 = vmax.xlane.f32.xlu1 %v1439_v18 }
 0x2e9   :  { %1443 = vmax.xlane.f32.xlu1 %v1442_v19 }
 0x2ea   :  { %2100 = vrot.lane.b32.xlu0 %v14016_v52, %s13757_s22  ;;  %v14085_v24 = vpop.permute.xlu0 %1716  ;;  %v14091_v52 = vpop.permute.xlu1 %1764 }
 0x2ed   :  { %1446 = vmax.xlane.f32.xlu1 %v1445_v21 }
 0x2ee   :  { %v14087_v25 = vpop.permute.xlu0 %1812 }
 0x2f1   :  { %1449 = vmax.xlane.f32.xlu1 %v1448_v22 }
 0x2f2   :  { %v14093_v28 = vpop.permute.xlu0 %1908  ;;  %v14097_v30 = vpop.permute.xlu1 %1860 }
 0x2f6   :  { %v14102_v36 = vpop.permute.xlu1 %1956 }
 0x302   :  { %2148 = vrot.lane.b32.xlu1 %v14021_v55, %s13757_s22 }
 0x326   :  { %1455 = vmax.xlane.f32.xlu1 %v1454_v27 }
 0x32a   :  { %1458 = vmax.xlane.f32.xlu1 %v1457_v29 }
 0x32c   :  { %v1432_v32 = vpop.xlane.xlu0 %1431 }
 0x32d   :  { %v1476_v55 = vsub.f32 %v14007_v12, %v1432_v32 }
 0x32e   :  { %1461 = vmax.xlane.f32.xlu1 %v1460_v33 }
 0x32f   :  { %v1493_v35 = vmul.f32 1.442695, %v1476_v55 }
 0x330   :  { %v14125_v3 = vpop.permute.xlu0 %2004 }
 0x331   :  { %13379 = vpow2.f32 %v1493_v35 }
 0x332   :  { %1464 = vmax.xlane.f32.xlu1 %v1463_v37 }
 0x335   :  { %v1429_v15 = vpop.xlane.xlu1 %1428 }
 0x336   :  { %v1475_v41 = vsub.f32 %v14009_v38, %v1429_v15  ;;  %1467 = vmax.xlane.f32.xlu1 %v1466_v40 }
 0x338   :  { %v1491_v12 = vmul.f32 1.442695, %v1475_v41 }
 0x339   :  { %v14121_v50 = vpop.permute.xlu1 %2052 }
 0x33a   :  { %13381 = vpow2.f32 %v1491_v12 }
 0x33b   :  { %v14109_v43 = vpop.eup %13379 }
 0x33c   :  { %v1526_v44 = vsel %vm1426_vm4, %v14109_v43, 0.0 }
 0x33d   :  { %1527 = vadd.xlane.f32.xlu1 %v1526_v44 }
 0x341   :  { %1470 = vmax.xlane.f32.xlu1 %v1469_v45 }
 0x344   :  { %v14115_v46 = vpop.eup %13381 }
 0x345   :  { %1473 = vmax.xlane.f32.xlu1 %v1472_v49  ;;  %v1523_v38 = vsel %vm1426_vm4, %v14115_v46, 0.0 }
 0x346   :  { %1524 = vadd.xlane.f32.xlu0 %v1523_v38 }
 0x361   :  { %v1453_v11 = vpop.xlane.xlu0 %1452 }
 0x36a   :  { %v1435_v53 = vpop.xlane.xlu1 %1434 }
 0x36b   :  { %v1477_v58 = vsub.f32 %v14035_v0, %v1435_v53  ;;  %v1483_v0 = vsub.f32 %v14051_v31, %v1453_v11 }
 0x36d   :  { %v1495_v59 = vmul.f32 1.442695, %v1477_v58  ;;  %v1507_v27 = vmul.f32 1.442695, %v1483_v0 }
 0x36e   :  { %v1438_v61 = vpop.xlane.xlu1 %1437 }
 0x36f   :  { %13383 = vpow2.f32 %v1495_v59  ;;  %v1478_v63 = vsub.f32 %v14037_v4, %v1438_v61 }
 0x371   :  { %v1497_v1 = vmul.f32 1.442695, %v1478_v63 }
 0x372   :  { %v1441_v6 = vpop.xlane.xlu1 %1440 }
 0x373   :  { %13385 = vpow2.f32 %v1497_v1  ;;  %v1479_v9 = vsub.f32 %v14041_v13, %v1441_v6 }
 0x375   :  { %v1499_v10 = vmul.f32 1.442695, %v1479_v9 }
 0x376   :  { %v1444_v14 = vpop.xlane.xlu1 %1443 }
 0x377   :  { %13387 = vpow2.f32 %v1499_v10  ;;  %v1480_v16 = vsub.f32 %v14043_v17, %v1444_v14 }
 0x379   :  { %v14129_v18 = vpop.eup %13383  ;;  %v1501_v19 = vmul.f32 1.442695, %v1480_v16 }
 0x37a   :  { %v1447_v21 = vpop.xlane.xlu1 %1446  ;;  %v1529_v4 = vsel %vm1426_vm4, %v14129_v18, 0.0 }
 0x37b   :  { %13389 = vpow2.f32 %v1501_v19  ;;  %v1481_v22 = vsub.f32 %v14045_v23, %v1447_v21  ;;  %1530 = vadd.xlane.f32.xlu0 %v1529_v4  ;;  %v1770_v4 = vsel %vm1624_vm3, %v14091_v52, 0 }
 0x37d   :  { %v14135_v13 = vpop.eup %13385  ;;  %v1503_v29 = vmul.f32 1.442695, %v1481_v22 }
 0x37e   :  { %v1450_v32 = vpop.xlane.xlu1 %1449  ;;  %v1532_v17 = vsel %vm1426_vm4, %v14135_v13, 0.0 }
 0x37f   :  { %13391 = vpow2.f32 %v1503_v29  ;;  %v1482_v31 = vsub.f32 %v14047_v26, %v1450_v32  ;;  %1533 = vadd.xlane.f32.xlu1 %v1532_v17  ;;  %v1722_v29 = vsel %vm1624_vm3, %v14085_v24, 0 }
 0x380   :  { %13393 = vpow2.f32 %v1507_v27 }
 0x381   :  { %v14140_v55 = vpop.eup %13387  ;;  %v1505_v33 = vmul.f32 1.442695, %v1482_v31 }
 0x382   :  { %v1535_v23 = vsel %vm1426_vm4, %v14140_v55, 0.0  ;;  %v14160_v45 = vpop.permute.xlu1 %2148 }
 0x383   :  { %13395 = vpow2.f32 %v1505_v33  ;;  %1536 = vadd.xlane.f32.xlu0 %v1535_v23 }
 0x385   :  { %v14144_v35 = vpop.eup %13389 }
 0x386   :  { %v1538_v37 = vsel %vm1426_vm4, %v14144_v35, 0.0 }
 0x387   :  { %1539 = vadd.xlane.f32.xlu1 %v1538_v37 }
 0x389   :  { %v14148_v15 = vpop.eup %13391 }
 0x38a   :  { %v1541_v26 = vsel %vm1426_vm4, %v14148_v15, 0.0  ;;  %v14152_v40 = vpop.eup %13393 }
 0x38b   :  { %1542 = vadd.xlane.f32.xlu0 %v1541_v26  ;;  %v1547_v12 = vsel %vm1426_vm4, %v14152_v40, 0.0 }
 0x38d   :  { %v14154_v41 = vpop.eup %13395 }
 0x38e   :  { %v1544_v44 = vsel %vm1426_vm4, %v14154_v41, 0.0 }
 0x38f   :  { %1548 = vadd.xlane.f32.xlu0 %v1547_v12  ;;  %1545 = vadd.xlane.f32.xlu1 %v1544_v44 }
 0x3b3   :  { %v1456_v49 = vpop.xlane.xlu1 %1455 }
 0x3b4   :  { %v1484_v38 = vsub.f32 %v14053_v34, %v1456_v49 }
 0x3b6   :  { %v1509_v53 = vmul.f32 1.442695, %v1484_v38 }
 0x3b7   :  { %v1459_v58 = vpop.xlane.xlu1 %1458 }
 0x3b8   :  { %13397 = vpow2.f32 %v1509_v53  ;;  %v1485_v59 = vsub.f32 %v14055_v39, %v1459_v58  ;;  %v14172_v39 = vpop.permute.xlu0 %2100 }
 0x3ba   :  { %v1511_v61 = vmul.f32 1.442695, %v1485_v59 }
 0x3bb   :  { %v1462_v63 = vpop.xlane.xlu1 %1461 }
 0x3bc   :  { %13399 = vpow2.f32 %v1511_v61  ;;  %v1486_v52 = vsub.f32 %v14057_v42, %v1462_v63 }
 0x3bf   :  { %v1465_v1 = vpop.xlane.xlu1 %1464 }
 0x3c0   :  { %v1487_v32 = vsub.f32 %v14059_v48, %v1465_v1 }
 0x3c2   :  { %v14164_v6 = vpop.eup %13397  ;;  %v1515_v31 = vmul.f32 1.442695, %v1487_v32 }
 0x3c3   :  { %v1550_v9 = vsel %vm1426_vm4, %v14164_v6, 0.0  ;;  %v1468_v11 = vpop.xlane.xlu1 %1467 }
 0x3c4   :  { %1551 = vadd.xlane.f32.xlu1 %v1550_v9 }
 0x3c6   :  { %v14168_v10 = vpop.eup %13399 }
 0x3c7   :  { %v1553_v34 = vsel %vm1426_vm4, %v14168_v10, 0.0 }
 0x3c8   :  { %1554 = vadd.xlane.f32.xlu0 %v1553_v34 }
 0x3ca   :  { %v1528_v14 = vpop.xlane.xlu1 %1527 }
 0x3cb   :  { %13401 = vrcp.f32 %v1528_v14  ;;  %v1818_v14 = vsel %vm1624_vm3, %v14087_v25, 0 }
 0x3d3   :  { %v1525_v16 = vpop.xlane.xlu0 %1524 }
 0x3d4   :  { %13403 = vrcp.f32 %v1525_v16 }
 0x3d5   :  { %v13402_v0 = vpop.eup %13401  ;;  %2244 = vrot.lane.b32.xlu1 %v14025_v57, %s13757_s22 }
 0x3d6   :  { %v1588_v19 = vmul.f32 %v13402_v0, %v14109_v43  ;;  %v1471_v43 = vpop.xlane.xlu1 %1470 }
 0x3d7   :  { %v1489_v33 = vsub.f32 %v14063_v62, %v1471_v43 }
 0x3d8   :  { %v1604_v21 = vpack.c.bf16 %v1588_v19, %v1588_v19 }
 0x3d9   :  { %v1519_v23 = vmul.f32 1.442695, %v1489_v33 }
 0x3da   :  { %12592 = vmatmul.mubr.msk.bf16.vlgmr.msra.gmra.mrb[36].mxu0 %vm1426_vm4, %v1604_v21  ;;  %v1474_v17 = vpop.xlane.xlu1 %1473 }
 0x3db   :  { %12602 = vmatpush3.bf16.msra.mxu0 %v1770_v4  ;;  %12603 = vmatprep.mubr.msk.bf16.mxu0 %vm13747_vm0, %v17560_v2  ;;  %v1490_v42 = vsub.f32 %v14067_v5, %v1474_v17 }
 0x3dc   :  { %12613 = vmatprep.subr.bf16.mxu0 %v17560_v2 }
 0x3dd   :  { %v1521_v37 = vmul.f32 1.442695, %v1490_v42 }
 0x3de   :  { %v13404_v22 = vpop.eup %13403  ;;  %2196 = vrot.lane.b32.xlu0 %v14019_v54, %s13757_s22  ;;  %v1513_v54 = vmul.f32 1.442695, %v1486_v52  ;;  %v2010_v52 = vsel %vm1624_vm3, %v14125_v3, 0 }
 0x3df   :  { %v1587_v57 = vmul.f32 %v13404_v22, %v14115_v46  ;;  %v1488_v46 = vsub.f32 %v14061_v51, %v1468_v11  ;;  %v1914_v22 = vsel %vm1624_vm3, %v14093_v28, 0 }
 0x3e0   :  { %13405 = vpow2.f32 %v1513_v54  ;;  %v2058_v54 = vsel %vm1624_vm3, %v14121_v50, 0 }
 0x3e1   :  { %v1603_v27 = vpack.c.bf16 %v1587_v57, %v1587_v57  ;;  %v1517_v24 = vmul.f32 1.442695, %v1488_v46  ;;  %13407 = vpow2.f32 %v1515_v31 }
 0x3e3   :  { %12586 = vmatmul.mubr.msk.bf16.vlgmr.msra.gmra.mrb[32].mxu1 %vm1426_vm4, %v1603_v27  ;;  %13409 = vpow2.f32 %v1517_v24  ;;  %v1962_v27 = vsel %vm1624_vm3, %v14102_v36, 0 }
 0x3e4   :  { %12596 = vmatpush3.bf16.msra.mxu1 %v1722_v29  ;;  %12597 = vmatprep.mubr.msk.bf16.mxu1 %vm13747_vm0, %v17560_v2  ;;  %13411 = vpow2.f32 %v1519_v23 }
 0x3e5   :  { %12607 = vmatprep.subr.bf16.mxu1 %v17560_v2  ;;  %13413 = vpow2.f32 %v1521_v37 }
 0x3ea   :  { %v14197_v26 = vpop.eup %13405 }
 0x3eb   :  { %v14199_v48 = vpop.eup %13407  ;;  %v1556_v51 = vsel %vm1426_vm4, %v14197_v26, 0.0 }
 0x3ec   :  { %v1559_v5 = vsel %vm1426_vm4, %v14199_v48, 0.0 }
 0x3ed   :  { %v14203_v12 = vpop.eup %13409 }
 0x3ee   :  { %v14205_v62 = vpop.eup %13411  ;;  %v1562_v44 = vsel %vm1426_vm4, %v14203_v12, 0.0 }
 0x3ef   :  { %v14211_v49 = vpop.eup %13413  ;;  %v1565_v38 = vsel %vm1426_vm4, %v14205_v62, 0.0 }
 0x3f0   :  { %v1568_v53 = vsel %vm1426_vm4, %v14211_v49, 0.0 }
 0x3f9   :  { %1557 = vadd.xlane.f32.xlu1 %v1556_v51 }
 0x3fd   :  { %1560 = vadd.xlane.f32.xlu0 %v1559_v5  ;;  %1563 = vadd.xlane.f32.xlu1 %v1562_v44 }
 0x401   :  { %1566 = vadd.xlane.f32.xlu0 %v1565_v38  ;;  %1569 = vadd.xlane.f32.xlu1 %v1568_v53 }
 0x408   :  { %v1531_v58 = vpop.xlane.xlu0 %1530 }
 0x409   :  { %13415 = vrcp.f32 %v1531_v58 }
 0x40c   :  { %v1534_v59 = vpop.xlane.xlu1 %1533 }
 0x40d   :  { %13417 = vrcp.f32 %v1534_v59 }
 0x410   :  { %v1537_v61 = vpop.xlane.xlu0 %1536 }
 0x411   :  { %13419 = vrcp.f32 %v1537_v61 }
 0x412   :  { %2340 = vrot.lane.b32.xlu1 %v14029_v60, %s13757_s22 }
 0x413   :  { %v13416_v63 = vpop.eup %13415 }
 0x414   :  { %v1540_v1 = vpop.xlane.xlu1 %1539  ;;  %v1589_v9 = vmul.f32 %v13416_v63, %v14129_v18 }
 0x415   :  { %13421 = vrcp.f32 %v1540_v1 }
 0x416   :  { %v1605_v11 = vpack.c.bf16 %v1589_v9, %v1589_v9 }
 0x417   :  { %v13418_v34 = vpop.eup %13417  ;;  %2292 = vrot.lane.b32.xlu0 %v14023_v56, %s13757_s22  ;;  %v1866_v56 = vsel %vm1624_vm3, %v14097_v30, 0 }
 0x418   :  { %12598 = vmatmul.mubr.msk.bf16.vlgmr.msra.gmra.mrb[36].mxu1 %vm1426_vm4, %v1605_v11  ;;  %v1543_v16 = vpop.xlane.xlu0 %1542  ;;  %v1590_v0 = vmul.f32 %v13418_v34, %v14135_v13 }
 0x419   :  { %12608 = vmatpush3.bf16.msra.mxu1 %v1818_v14  ;;  %13423 = vrcp.f32 %v1543_v16  ;;  %12609 = vmatprep.mubr.msk.bf16.mxu1 %vm13747_vm0, %v17560_v2 }
 0x41a   :  { %v1606_v60 = vpack.c.bf16 %v1590_v0, %v1590_v0  ;;  %12619 = vmatprep.subr.bf16.mxu1 %v17560_v2 }
 0x41b   :  { %v13420_v18 = vpop.eup %13419 }
 0x41c   :  { %v1549_v19 = vpop.xlane.xlu0 %1548  ;;  %12604 = vmatmul.mubr.msk.bf16.vlgmr.msra.gmra.mrb[40].mxu0 %vm1426_vm4, %v1606_v60  ;;  %v1546_v25 = vpop.xlane.xlu1 %1545  ;;  %v1591_v21 = vmul.f32 %v13420_v18, %v14140_v55 }
 0x41d   :  { %13425 = vrcp.f32 %v1549_v19  ;;  %12614 = vmatpush3.bf16.msra.mxu0 %v1866_v56  ;;  %12615 = vmatprep.mubr.msk.bf16.mxu0 %vm13747_vm0, %v17560_v2 }
 0x41e   :  { %13427 = vrcp.f32 %v1546_v25  ;;  %v1607_v13 = vpack.c.bf16 %v1591_v21, %v1591_v21  ;;  %12625 = vmatprep.subr.bf16.mxu0 %v17560_v2 }
 0x41f   :  { %v13422_v4 = vpop.eup %13421 }
 0x420   :  { %12610 = vmatmul.mubr.msk.bf16.vlgmr.msra.gmra.mrb[40].mxu1 %vm1426_vm4, %v1607_v13  ;;  %v1592_v30 = vmul.f32 %v13422_v4, %v14144_v35 }
 0x421   :  { %12620 = vmatpush3.bf16.msra.mxu1 %v1914_v22  ;;  %12621 = vmatprep.mubr.msk.bf16.mxu1 %vm13747_vm0, %v17560_v2 }
 0x422   :  { %v1608_v55 = vpack.c.bf16 %v1592_v30, %v1592_v30  ;;  %12631 = vmatprep.subr.bf16.mxu1 %v17560_v2 }
 0x423   :  { %v13424_v57 = vpop.eup %13423 }
 0x424   :  { %12616 = vmatmul.mubr.msk.bf16.vlgmr.msra.gmra.mrb[44].mxu0 %vm1426_vm4, %v1608_v55  ;;  %v1593_v43 = vmul.f32 %v13424_v57, %v14148_v15 }
 0x425   :  { %12626 = vmatpush3.bf16.msra.mxu0 %v1962_v27  ;;  %12627 = vmatprep.mubr.msk.bf16.mxu0 %vm13747_vm0, %v17560_v2 }
 0x426   :  { %v1609_v28 = vpack.c.bf16 %v1593_v43, %v1593_v43  ;;  %12637 = vmatprep.subr.bf16.mxu0 %v17560_v2 }
 0x427   :  { %v13426_v35 = vpop.eup %13425 }
 0x428   :  { %v13428_v29 = vpop.eup %13427  ;;  %12622 = vmatmul.mubr.msk.bf16.vlgmr.msra.gmra.mrb[44].mxu1 %vm1426_vm4, %v1609_v28  ;;  %v1595_v15 = vmul.f32 %v13426_v35, %v14152_v40 }
 0x429   :  { %12632 = vmatpush3.bf16.msra.mxu1 %v2010_v52  ;;  %v1594_v36 = vmul.f32 %v13428_v29, %v14154_v41  ;;  %12633 = vmatprep.mubr.msk.bf16.mxu1 %vm13747_vm0, %v17560_v2  ;;  %v2106_v41 = vsel %vm1624_vm3, %v14172_v39, 0  ;;  %v2154_v39 = vsel %vm1624_vm3, %v14160_v45, 0 }
 0x42a   :  { %12643 = vmatprep.subr.bf16.mxu1 %v17560_v2  ;;  %v1611_v3 = vpack.c.bf16 %v1595_v15, %v1595_v15 }
 0x42b   :  { %v1610_v32 = vpack.c.bf16 %v1594_v36, %v1594_v36 }
 0x42d   :  { %12628 = vmatmul.mubr.msk.bf16.vlgmr.msra.gmra.mrb[48].mxu0 %vm1426_vm4, %v1610_v32 }
 0x42e   :  { %12638 = vmatpush3.bf16.msra.mxu0 %v2058_v54  ;;  %12639 = vmatprep.mubr.msk.bf16.mxu0 %vm13747_vm0, %v17560_v2 }
 0x42f   :  { %12649 = vmatprep.subr.bf16.mxu0 %v17560_v2 }
 0x430   :  { %12634 = vmatmul.mubr.msk.bf16.vlgmr.msra.gmra.mrb[48].mxu1 %vm1426_vm4, %v1611_v3 }
 0x431   :  { %12644 = vmatpush3.bf16.msra.mxu1 %v2106_v41  ;;  %12645 = vmatprep.mubr.msk.bf16.mxu1 %vm13747_vm0, %v17560_v2 }
 0x432   :  { %12655 = vmatprep.subr.bf16.mxu1 %v17560_v2 }
 0x451   :  { %v1552_v50 = vpop.xlane.xlu1 %1551 }
 0x452   :  { %13429 = vrcp.f32 %v1552_v50 }
 0x455   :  { %v1555_v40 = vpop.xlane.xlu0 %1554  ;;  %v2245_v45 = vpop.permute.xlu1 %2244 }
 0x456   :  { %13431 = vrcp.f32 %v1555_v40  ;;  %v2250_v63 = vsel %vm1624_vm3, %v2245_v45, 0 }
 0x459   :  { %v2197_v42 = vpop.permute.xlu0 %2196 }
 0x45a   :  { %v2202_v37 = vsel %vm1624_vm3, %v2197_v42, 0 }
 0x45c   :  { %v13430_v46 = vpop.eup %13429 }
 0x45d   :  { %v1596_v17 = vmul.f32 %v13430_v46, %v14164_v6 }
 0x45f   :  { %v1612_v31 = vpack.c.bf16 %v1596_v17, %v1596_v17 }
 0x460   :  { %v13432_v33 = vpop.eup %13431 }
 0x461   :  { %12640 = vmatmul.mubr.msk.bf16.vlgmr.msra.gmra.mrb[52].mxu0 %vm1426_vm4, %v1612_v31  ;;  %v1597_v24 = vmul.f32 %v13432_v33, %v14168_v10 }
 0x462   :  { %12650 = vmatpush3.bf16.msra.mxu0 %v2154_v39  ;;  %12651 = vmatprep.mubr.msk.bf16.mxu0 %vm13747_vm0, %v17560_v2 }
 0x463   :  { %v1613_v23 = vpack.c.bf16 %v1597_v24, %v1597_v24  ;;  %12661 = vmatprep.subr.bf16.mxu0 %v17560_v2 }
 0x465   :  { %12646 = vmatmul.mubr.msk.bf16.vlgmr.msra.gmra.mrb[52].mxu1 %vm1426_vm4, %v1613_v23 }
 0x466   :  { %12656 = vmatpush3.bf16.msra.mxu1 %v2202_v37  ;;  %12657 = vmatprep.mubr.msk.bf16.mxu1 %vm13747_vm0, %v17560_v2 }
 0x467   :  { %12667 = vmatprep.subr.bf16.mxu1 %v17560_v2 }
 0x486   :  { %v1558_v6 = vpop.xlane.xlu1 %1557 }
 0x487   :  { %13433 = vrcp.f32 %v1558_v6 }
 0x48a   :  { %v1561_v10 = vpop.xlane.xlu0 %1560  ;;  %v1564_v51 = vpop.xlane.xlu1 %1563 }
 0x48b   :  { %13435 = vrcp.f32 %v1561_v10 }
 0x48c   :  { %13437 = vrcp.f32 %v1564_v51 }
 0x48e   :  { %v1567_v5 = vpop.xlane.xlu0 %1566  ;;  %v1570_v44 = vpop.xlane.xlu1 %1569 }
 0x48f   :  { %13439 = vrcp.f32 %v1567_v5 }
 0x490   :  { %13441 = vrcp.f32 %v1570_v44 }
 0x491   :  { %v13434_v38 = vpop.eup %13433 }
 0x492   :  { %v1598_v53 = vmul.f32 %v13434_v38, %v14197_v26  ;;  %v2293_v9 = vpop.permute.xlu0 %2292  ;;  %v2341_v16 = vpop.permute.xlu1 %2340 }
 0x493   :  { %v2298_v14 = vsel %vm1624_vm3, %v2293_v9, 0  ;;  %v2346_v18 = vsel %vm1624_vm3, %v2341_v16, 0 }
 0x494   :  { %v1614_v58 = vpack.c.bf16 %v1598_v53, %v1598_v53 }
 0x495   :  { %v13436_v59 = vpop.eup %13435 }
 0x496   :  { %v13438_v61 = vpop.eup %13437  ;;  %12652 = vmatmul.mubr.msk.bf16.vlgmr.msra.gmra.mrb[56].mxu0 %vm1426_vm4, %v1614_v58  ;;  %v1599_v1 = vmul.f32 %v13436_v59, %v14199_v48 }
 0x497   :  { %12662 = vmatpush3.bf16.msra.mxu0 %v2250_v63  ;;  %12663 = vmatprep.mubr.msk.bf16.mxu0 %vm13747_vm0, %v17560_v2  ;;  %v1600_v26 = vmul.f32 %v13438_v61, %v14203_v12 }
 0x498   :  { %v1615_v11 = vpack.c.bf16 %v1599_v1, %v1599_v1  ;;  %12673 = vmatprep.subr.bf16.mxu0 %v17560_v2 }
 0x499   :  { %v13440_v34 = vpop.eup %13439  ;;  %v1616_v48 = vpack.c.bf16 %v1600_v26, %v1600_v26 }
 0x49a   :  { %12658 = vmatmul.mubr.msk.bf16.vlgmr.msra.gmra.mrb[56].mxu1 %vm1426_vm4, %v1615_v11  ;;  %v1601_v0 = vmul.f32 %v13440_v34, %v14205_v62  ;;  %v13442_v60 = vpop.eup %13441  ;;  %v12989_v34 = vld [vmem:[%s17549_s2] sm:$0xff]  }
 0x49b   :  { %12668 = vmatpush3.bf16.msra.mxu1 %v2298_v14  ;;  %12669 = vmatprep.mubr.msk.bf16.mxu1 %vm13747_vm0, %v17560_v2  ;;  %v1602_v56 = vmul.f32 %v13442_v60, %v14211_v49 }
 0x49c   :  { %12679 = vmatprep.subr.bf16.mxu1 %v17560_v2  ;;  %v1617_v12 = vpack.c.bf16 %v1601_v0, %v1601_v0 }
 0x49d   :  { %v1618_v62 = vpack.c.bf16 %v1602_v56, %v1602_v56 }
 0x49e   :  { %12664 = vmatmul.mubr.msk.bf16.vlgmr.msra.gmra.mrb[60].mxu0 %vm1426_vm4, %v1616_v48 }
 0x49f   :  { %12674 = vmatpush3.bf16.msra.mxu0 %v2346_v18  ;;  %12675 = vmatprep.mubr.msk.bf16.mxu0 %vm13747_vm0, %v17560_v2 }
 0x4a2   :  { %12670 = vmatmul.mubr.msk.bf16.vlgmr.msra.gmra.mrb[60].mxu1 %vm1426_vm4, %v1617_v12 }
 0x4a3   :  { %12683 = vmatprep.mubr.msk.bf16.mxu1 %vm13747_vm0, %v17560_v2  ;;  %12680 = vmatpush3.bf16.msra.mxu1 %v12989_v34 }
 0x4a4   :  { %12681 = vmatprep.subr.bf16.mxu1 %v17560_v2 }
 0x4a6   :  { %12676 = vmatmul.mubr.msk.bf16.vlgmr.msra.gmra.mrb[64].mxu0 %vm1426_vm4, %v1618_v62 }
 0x4ad   :  { %v14306_v19 = vpop.f32.mrb[36].mxu0 }
 0x4ae   :  { %v12593_v25 = vpop.f32.mrb[37].mxu0 }
 0x4af   :  { %v1713_v21 = vpop.f32.mrb[38].mxu0  ;;  %v12990_v25 = vld [vmem:[%s17549_s2 + $0x8] sm:$0xff]  }
 0x4b0   :  { %v12594_v13 = vpop.f32.mrb[39].mxu0  ;;  %12682 = vmatpush3.bf16.msra.mxu1 %v12990_v25 }
 0x4b6   :  { %v14308_v4 = vpop.f32.mrb[32].mxu1 }
 0x4b7   :  { %v12587_v22 = vpop.f32.mrb[33].mxu1 }
 0x4b8   :  { %v1665_v30 = vpop.f32.mrb[34].mxu1 }
 0x4b9   :  { %v12588_v55 = vpop.f32.mrb[35].mxu1 }
 0x4eb   :  { %v1758_v57 = vpop.f32.mrb[36].mxu1 }
 0x4ec   :  { %v12599_v49 = vpop.f32.mrb[37].mxu1 }
 0x4ed   :  { %v1761_v27 = vpop.f32.mrb[38].mxu1 }
 0x4ee   :  { %v12600_v43 = vpop.f32.mrb[39].mxu1 }
 0x4ef   :  { %v1806_v28 = vpop.f32.mrb[40].mxu0 }
 0x4f0   :  { %v12917_v35 = vpack.i.bf16 %v1806_v28, %v1758_v57  ;;  %v12605_v29 = vpop.f32.mrb[41].mxu0 }
 0x4f1   :  { %v1809_v52 = vpop.f32.mrb[42].mxu0 }
 0x4f2   :  { %12918 = vrot.lane.b32.xlu0 %v12917_v35, %s13758_s23  ;;  %v12606_v36 = vpop.f32.mrb[43].mxu0 }
 0x4f3   :  { %v1854_v15 = vpop.f32.mrb[40].mxu1 }
 0x4f4   :  { %v12611_v32 = vpop.f32.mrb[41].mxu1 }
 0x4f5   :  { %v1857_v54 = vpop.f32.mrb[42].mxu1 }
 0x4f6   :  { %v12612_v3 = vpop.f32.mrb[43].mxu1 }
 0x4f7   :  { %v1902_v41 = vpop.f32.mrb[44].mxu0 }
 0x4f8   :  { %v12922_v50 = vpack.i.bf16 %v1902_v41, %v1854_v15  ;;  %v12617_v40 = vpop.f32.mrb[45].mxu0 }
 0x4f9   :  { %v1905_v46 = vpop.f32.mrb[46].mxu0 }
 0x4fa   :  { %12923 = vrot.lane.b32.xlu1 %v12922_v50, %s13759_s24  ;;  %v12618_v17 = vpop.f32.mrb[47].mxu0 }
 0x4fb   :  { %v1950_v31 = vpop.f32.mrb[44].mxu1 }
 0x4fc   :  { %v12623_v33 = vpop.f32.mrb[45].mxu1 }
 0x4fd   :  { %v1953_v39 = vpop.f32.mrb[46].mxu1 }
 0x4fe   :  { %v12624_v24 = vpop.f32.mrb[47].mxu1 }
 0x500   :  { %v1998_v42 = vpop.f32.mrb[48].mxu0 }
 0x501   :  { %v12927_v23 = vpack.i.bf16 %v1998_v42, %v1950_v31  ;;  %v12629_v37 = vpop.f32.mrb[49].mxu0 }
 0x502   :  { %v2001_v45 = vpop.f32.mrb[50].mxu0 }
 0x503   :  { %12928 = vrot.lane.b32.xlu0 %v12927_v23, %s13760_s25  ;;  %v12630_v6 = vpop.f32.mrb[51].mxu0  ;;  %v2046_v10 = vpop.f32.mrb[48].mxu1 }
 0x504   :  { %v12635_v51 = vpop.f32.mrb[49].mxu1 }
 0x505   :  { %v2049_v5 = vpop.f32.mrb[50].mxu1 }
 0x506   :  { %v12636_v44 = vpop.f32.mrb[51].mxu1 }
 0x534   :  { %v2094_v38 = vpop.f32.mrb[52].mxu0 }
 0x535   :  { %v12932_v53 = vpack.i.bf16 %v2094_v38, %v2046_v10  ;;  %v12641_v58 = vpop.f32.mrb[53].mxu0 }
 0x536   :  { %v2097_v59 = vpop.f32.mrb[54].mxu0 }
 0x537   :  { %12933 = vrot.lane.b32.xlu1 %v12932_v53, %s13761_s26  ;;  %v12642_v61 = vpop.f32.mrb[55].mxu0 }
 0x538   :  { %v2142_v63 = vpop.f32.mrb[52].mxu1 }
 0x539   :  { %v12647_v1 = vpop.f32.mrb[53].mxu1 }
 0x53a   :  { %v2145_v9 = vpop.f32.mrb[54].mxu1 }
 0x53b   :  { %v12648_v11 = vpop.f32.mrb[55].mxu1 }
 0x564   :  { %v12919_v36 = vpop.permute.xlu0 %12918 }
 0x565   :  { %v12921_v3 = vunpack.i.h.bf16 %v12919_v36  ;;  %v12920_v41 = vunpack.i.l.bf16 %v12919_v36 }
 0x567   :  { %v2445_v42 = vsel %vm659_vm2, %v14306_v19, %v12921_v3  ;;  %v2444_v23 = vsel %vm659_vm2, %v14308_v4, %v12920_v41  ;;  %v39_v3 = vld [vmem:[%s17550_s3 + $0x8] sm:$0xff] }
 0x569   :  { %v2190_v26 = vpop.f32.mrb[56].mxu0 }
 0x56a   :  { %v12937_v14 = vpack.i.bf16 %v2190_v26, %v2142_v63  ;;  %v12653_v16 = vpop.f32.mrb[57].mxu0 }
 0x56b   :  { %v2193_v48 = vpop.f32.mrb[58].mxu0  ;;  %v14347_v16 = vld [vmem:[%s17552_s5] sm:$0xff] }
 0x56c   :  { %12938 = vrot.lane.b32.xlu0 %v12937_v14, %s17557_s29  ;;  %v12654_v0 = vpop.f32.mrb[59].mxu0  ;;  %v12924_v15 = vpop.permute.xlu1 %12923  ;;  %v14342_v14 = vsub.s32 3, %v13827_v7 }
 0x56d   :  { %v2238_v60 = vpop.f32.mrb[56].mxu1  ;;  %v12926_v50 = vunpack.i.h.bf16 %v12924_v15  ;;  %v12925_v40 = vunpack.i.l.bf16 %v12924_v15 }
 0x56e   :  { %v12659_v18 = vpop.f32.mrb[57].mxu1  ;;  %17599 = vst [vmem:[#allocation8_spill] sm:$0xff] %v14342_v14  ;;  %v2467_v48 = vrot.slane %v14347_v16, %v14342_v14 }
 0x56f   :  { %v2241_v12 = vpop.f32.mrb[58].mxu1  ;;  %v2447_v6 = vsel %vm1426_vm4, %v2445_v42, %v12926_v50  ;;  %v2446_v10 = vsel %vm1426_vm4, %v2444_v23, %v12925_v40  ;;  %v51_v50 = vld [vmem:[%s17550_s3 + $0x68] sm:$0xff] }
 0x570   :  { %v12660_v56 = vpop.f32.mrb[59].mxu1  ;;  %v75_v42 = vld [vmem:[%s17550_s3 + $0x128] sm:$0xff] }
 0x571   :  { %v2286_v62 = vpop.f32.mrb[60].mxu0  ;;  %v13717_v56 = vld [vmem:[%s17547_s0] sm:$0xff] }
 0x572   :  { %v12942_v21 = vpack.i.bf16 %v2286_v62, %v2238_v60  ;;  %v12665_v13 = vpop.f32.mrb[61].mxu0 }
 0x573   :  { %v2289_v22 = vpop.f32.mrb[62].mxu0  ;;  %v13718_v13 = vld [vmem:[%s17547_s0 + $0x8] sm:$0xff]  ;;  %s13766_s0 = smov [#allocation2]  }
 0x574   :  { %12943 = vrot.lane.b32.xlu1 %v12942_v21, %s17556_s9  ;;  %v12666_v30 = vpop.f32.mrb[63].mxu0  ;;  %s10773_s20 = sshll.u32 %s13766_s0, 4  ;;  %s10774_s20 = int_to_ptr.vmem [resolvable:$true] %s10773_s20 }
 0x575   :  { %v2334_v55 = vpop.f32.mrb[60].mxu1  ;;  %v12929_v32 = vpop.permute.xlu0 %12928  ;;  %p13727_p1 = scmp.lt.s32.totalorder %s10774_s20, %s10774_s20 }
 0x576   :  { %v12671_v57 = vpop.f32.mrb[61].mxu1  ;;  %v12931_v17 = vunpack.i.h.bf16 %v12929_v32  ;;  %v12930_v31 = vunpack.i.l.bf16 %v12929_v32  ;;  %v38_v32 = vld [vmem:[%s17550_s3] sm:$0xff] }
 0x577   :  { %v2337_v49 = vpop.f32.mrb[62].mxu1 }
 0x578   :  { %v12672_v27 = vpop.f32.mrb[63].mxu1  ;;  %v2450_v44 = vsel %vm2448_vm5, %v2447_v6, %v12931_v17  ;;  %v2449_v38 = vsel %vm2448_vm5, %v2446_v10, %v12930_v31  ;;  %v10825_v17 = vcombine.high %v39_v3, %v51_v50  ;;  %v62_v31 = vld [vmem:[%s17550_s3 + $0xc0] sm:$0xff]  ;;  %v40_v6 = vld [vmem:[%s17550_s3 + $0x10] sm:$0xff] }
 0x579   :  { %v2382_v43 = vpop.f32.mrb[64].mxu0  ;;  %v52_v10 = vld [vmem:[%s17550_s3 + $0x70] sm:$0xff] }
 0x57a   :  { %v12947_v28 = vpack.i.bf16 %v2382_v43, %v2334_v55  ;;  %v12677_v35 = vpop.f32.mrb[65].mxu0  ;;  %2975 = vmatprep.subr.bf16.mxu1 %v10825_v17 }
 0x57b   :  { %v2385_v29 = vpop.f32.mrb[66].mxu0 }
 0x57c   :  { %12948 = vrot.lane.b32.xlu0 %v12947_v28, %s17555_s10  ;;  %v12678_v52 = vpop.f32.mrb[67].mxu0 }
 0x5a9   :  { %v12934_v54 = vpop.permute.xlu1 %12933 }
 0x5aa   :  { %v12936_v39 = vunpack.i.h.bf16 %v12934_v54  ;;  %v12935_v24 = vunpack.i.l.bf16 %v12934_v54  ;;  %v50_v54 = vld [vmem:[%s17550_s3 + $0x60] sm:$0xff] }
 0x5ab   :  { %v10823_v41 = vcombine.high %v38_v32, %v50_v54  ;;  %v10822_v40 = vcombine.low %v38_v32, %v50_v54  ;;  %v66_v32 = vld [vmem:[%s17550_s3 + $0xe0] sm:$0xff] }
 0x5ac   :  { %v2453_v53 = vsel %vm2451_vm6, %v2450_v44, %v12936_v39  ;;  %v2452_v19 = vsel %vm2451_vm6, %v2449_v38, %v12935_v24  ;;  %v63_v39 = vld [vmem:[%s17550_s3 + $0xc8] sm:$0xff]  ;;  %v10826_v44 = vcombine.low %v40_v6, %v52_v10  ;;  %v10827_v38 = vcombine.high %v40_v6, %v52_v10  ;;  %v78_v54 = vld [vmem:[%s17550_s3 + $0x140] sm:$0xff]  ;;  %v68_v6 = vld [vmem:[%s17550_s3 + $0xf0] sm:$0xff] }
 0x5ad   :  { %2932 = vmatprep.subr.bf16.mxu0 %v10823_v41  ;;  %v79_v41 = vld [vmem:[%s17550_s3 + $0x148] sm:$0xff]  ;;  %v80_v10 = vld [vmem:[%s17550_s3 + $0x150] sm:$0xff] }
 0x5ae   :  { %2933 = vmatpush1.bf16.msra.mxu0 %v10822_v40 }
 0x5de   :  { %v12939_v46 = vpop.permute.xlu0 %12938 }
 0x5df   :  { %v12941_v37 = vunpack.i.h.bf16 %v12939_v46  ;;  %v12940_v45 = vunpack.i.l.bf16 %v12939_v46  ;;  %v10824_v46 = vcombine.low %v39_v3, %v51_v50  ;;  %v67_v3 = vld [vmem:[%s17550_s3 + $0xe8] sm:$0xff] }
 0x5e0   :  { %v10857_v17 = vcombine.high %v67_v3, %v79_v41 }
 0x5e1   :  { %v2456_v4 = vsel %vm2454_vm7, %v2453_v53, %v12941_v37  ;;  %v2455_v59 = vsel %vm2454_vm7, %v2452_v19, %v12940_v45  ;;  %v10848_v37 = vcombine.low %v63_v39, %v75_v42  ;;  %v10849_v45 = vcombine.high %v63_v39, %v75_v42  ;;  %v53_v53 = vld [vmem:[%s17550_s3 + $0x78] sm:$0xff] }
 0x5e2   :  { %v45_v39 = vld [vmem:[%s17550_s3 + $0x38] sm:$0xff]  ;;  %v10854_v42 = vcombine.low %v66_v32, %v78_v54 }
 0x5e6   :  { %v12944_v33 = vpop.permute.xlu1 %12943 }
 0x5e7   :  { %v12946_v51 = vunpack.i.h.bf16 %v12944_v33  ;;  %v12945_v5 = vunpack.i.l.bf16 %v12944_v33  ;;  %v74_v33 = vld [vmem:[%s17550_s3 + $0x120] sm:$0xff] }
 0x5e8   :  { %v10847_v24 = vcombine.high %v62_v31, %v74_v33  ;;  %v10846_v23 = vcombine.low %v62_v31, %v74_v33  ;;  %v44_v31 = vld [vmem:[%s17550_s3 + $0x30] sm:$0xff] }
 0x5e9   :  { %v2459_v1 = vsel %vm2457_vm8, %v2456_v4, %v12946_v51  ;;  %v2458_v9 = vsel %vm2457_vm8, %v2455_v59, %v12945_v5  ;;  %v41_v51 = vld [vmem:[%s17550_s3 + $0x18] sm:$0xff]  ;;  %v17558_v5 = vmov 0   ;;  %v56_v33 = vld [vmem:[%s17550_s3 + $0x90] sm:$0xff] }
 0x5ea   :  { %2934 = vmatprep.subr.bf16.mxu0 %v10847_v24  ;;  %2964 = vmatprep.mubr.bf16.mxu0 %v17558_v5  ;;  %v10828_v19 = vcombine.low %v41_v51, %v53_v53  ;;  %v57_v24 = vld [vmem:[%s17550_s3 + $0x98] sm:$0xff] }
 0x5eb   :  { %2935 = vmatpush1.bf16.msra.mxu0 %v10846_v23  ;;  %v10856_v23 = vcombine.low %v67_v3, %v79_v41 }
 0x5ec   :  { %3018 = vmatprep.subr.bf16.mxu0 %v10827_v38  ;;  %v10834_v38 = vcombine.low %v44_v31, %v56_v33 }
 0x5ee   :  { %v12949_v58 = vpop.permute.xlu0 %12948 }
 0x5ef   :  { %v12951_v61 = vunpack.i.h.bf16 %v12949_v58  ;;  %v12950_v63 = vunpack.i.l.bf16 %v12949_v58  ;;  %v10829_v58 = vcombine.high %v41_v51, %v53_v53  ;;  %v69_v51 = vld [vmem:[%s17550_s3 + $0xf8] sm:$0xff]  ;;  %v10836_v53 = vcombine.low %v45_v39, %v57_v24 }
 0x5f1   :  { %v2462_v11 = vsel %vm2460_vm9, %v2459_v1, %v12951_v61  ;;  %v2461_v26 = vsel %vm2460_vm9, %v2458_v9, %v12950_v63 }
 0x5f2   :  { %v2463_v34 = vpack.c.bf16 %v2462_v11, %v2461_v26  ;;  %v14400_v11 = vsub.s32 4, %v13827_v7 }
 0x5f4   :  { %12684 = vmatmul.mubr.msk.bf16.vlgmr.msra.gmra.mrb[64].mxu1 %vm488_vm1, %v2463_v34  ;;  %17600 = vst [vmem:[#allocation9_spill] sm:$0xff] %v14400_v11  ;;  %v2556_v34 = vrot.slane %v14347_v16, %v14400_v11 }
 0x5f5   :  { %2976 = vmatpush1.bf16.msra.mxu1 %v10824_v46  ;;  %3007 = vmatprep.mubr.bf16.mxu1 %v17558_v5  ;;  %v10855_v46 = vcombine.high %v66_v32, %v78_v54 }
 0x5f6   :  { %2977 = vmatprep.subr.bf16.mxu1 %v10849_v45  ;;  %v10837_v45 = vcombine.high %v45_v39, %v57_v24  ;;  %v12995_v39 = vld [vmem:[%s17551_s4 + $0x48] sm:$0xff]  }
 0x5f7   :  { %v12996_v24 = vld [vmem:[%s17551_s4 + $0xc8] sm:$0xff]  }
 0x5f9   :  { %2978 = vmatpush1.bf16.msra.mxu1 %v10848_v37  ;;  %v10835_v37 = vcombine.high %v44_v31, %v56_v33  ;;  %v12993_v31 = vld [vmem:[%s17551_s4] sm:$0xff]  }
 0x5fa   :  { %3061 = vmatprep.subr.bf16.mxu1 %v10829_v58  ;;  %v12994_v33 = vld [vmem:[%s17551_s4 + $0x80] sm:$0xff]  }
 0x6c7   :  { %v2517_v0 = vpop.f32.mrb[64].mxu1 }
 0x6c8   :  { %v2518_v60 = vadd.f32 %v2517_v0, %v2467_v48  ;;  %v12685_v18 = vpop.f32.mrb[65].mxu1 }
 0x6c9   :  { %v2520_v12 = vpop.f32.mrb[66].mxu1 }
 0x6ca   :  { %v2524_v62 = vadd.f32 %v13717_v56, %v2518_v60  ;;  %v2521_v25 = vadd.f32 %v2520_v12, %v2467_v48  ;;  %v12686_v21 = vpop.f32.mrb[67].mxu1  ;;  %v14405_v48 = vsub.s32 5, %v13827_v7 }
 0x6cb   :  { %v76_v21 = vld [vmem:[%s17550_s3 + $0x130] sm:$0xff] }
 0x6cc   :  { %v2525_v22 = vadd.f32 %v13718_v13, %v2521_v25  ;;  %v2526_v30 = vsel %vm488_vm1, %v2524_v62, 0.0  ;;  %17601 = vst [vmem:[#allocation10_spill] sm:$0xff] %v14405_v48  ;;  %v2562_v18 = vrot.slane %v14347_v16, %v14405_v48  ;;  %v64_v25 = vld [vmem:[%s17550_s3 + $0xd0] sm:$0xff]  ;;  %v65_v13 = vld [vmem:[%s17550_s3 + $0xd8] sm:$0xff] }
 0x6cd   :  { %2527 = vadd.xlane.f32.xlu1 %v2526_v30 }
 0x6ce   :  { %v2529_v55 = vsel %vm488_vm1, %v2525_v22, 0.0 }
 0x6cf   :  { %2530 = vadd.xlane.f32.xlu0 %v2529_v55 }
 0x75a   :  { %v2528_v57 = vpop.xlane.xlu1 %2527 }
 0x75b   :  { %v2533_v49 = vmul.f32 0.03125, %v2528_v57  ;;  %v10851_v57 = vcombine.high %v64_v25, %v76_v21 }
 0x75c   :  { %v2531_v27 = vpop.xlane.xlu0 %2530 }
 0x75d   :  { %v2535_v43 = vsub.f32 %v2524_v62, %v2533_v49  ;;  %v2534_v28 = vmul.f32 0.03125, %v2531_v27  ;;  %v42_v27 = vld [vmem:[%s17550_s3 + $0x20] sm:$0xff] }
 0x75f   :  { %v2536_v35 = vsub.f32 %v2525_v22, %v2534_v28  ;;  %v2537_v29 = vmul.f32 %v2535_v43, %v2535_v43  ;;  %v77_v22 = vld [vmem:[%s17550_s3 + $0x138] sm:$0xff]  ;;  %v43_v28 = vld [vmem:[%s17550_s3 + $0x28] sm:$0xff] }
 0x760   :  { %v10853_v49 = vcombine.high %v65_v13, %v77_v22 }
 0x761   :  { %v2539_v52 = vsel %vm488_vm1, %v2537_v29, 0.0  ;;  %v2538_v36 = vmul.f32 %v2536_v35, %v2536_v35  ;;  %v10850_v29 = vcombine.low %v64_v25, %v76_v21 }
 0x762   :  { %2540 = vadd.xlane.f32.xlu0 %v2539_v52  ;;  %v10852_v52 = vcombine.low %v65_v13, %v77_v22  ;;  %v48_v13 = vld [vmem:[%s17550_s3 + $0x50] sm:$0xff] }
 0x763   :  { %v2542_v15 = vsel %vm488_vm1, %v2538_v36, 0.0  ;;  %v60_v22 = vld [vmem:[%s17550_s3 + $0xb0] sm:$0xff] }
 0x764   :  { %v10842_v32 = vcombine.low %v48_v13, %v60_v22 }
 0x766   :  { %2543 = vadd.xlane.f32.xlu0 %v2542_v15 }
 0x7ef   :  { %v2541_v4 = vpop.xlane.xlu0 %2540 }
 0x7f0   :  { %v2545_v59 = vmul.f32 0.03125, %v2541_v4  ;;  %v46_v4 = vld [vmem:[%s17550_s3 + $0x40] sm:$0xff] }
 0x7f2   :  { %v2547_v61 = vadd.f32 1e-12, %v2545_v59  ;;  %v58_v59 = vld [vmem:[%s17550_s3 + $0xa0] sm:$0xff] }
 0x7f3   :  { %v2544_v63 = vpop.xlane.xlu0 %2543 }
 0x7f4   :  { %13443 = vrsqrt.f32 %v2547_v61  ;;  %v2546_v1 = vmul.f32 0.03125, %v2544_v63  ;;  %v47_v61 = vld [vmem:[%s17550_s3 + $0x48] sm:$0xff] }
 0x7f5   :  { %v59_v63 = vld [vmem:[%s17550_s3 + $0xa8] sm:$0xff] }
 0x7f6   :  { %v2548_v9 = vadd.f32 1e-12, %v2546_v1  ;;  %v10858_v1 = vcombine.low %v68_v6, %v80_v10 }
 0x7f8   :  { %13445 = vrsqrt.f32 %v2548_v9 }
 0x7fe   :  { %v13444_v26 = vpop.eup %13443 }
 0x7ff   :  { %v2551_v0 = vmul.f32 %v13444_v26, %v2535_v43  ;;  %v54_v43 = vld [vmem:[%s17550_s3 + $0x80] sm:$0xff]  ;;  %v10839_v26 = vcombine.high %v46_v4, %v58_v59 }
 0x800   :  { %v10831_v36 = vcombine.high %v42_v27, %v54_v43  ;;  %v10830_v50 = vcombine.low %v42_v27, %v54_v43 }
 0x801   :  { %v2557_v12 = vmul.f32 %v2556_v34, %v2551_v0  ;;  %v70_v0 = vld [vmem:[%s17550_s3 + $0x100] sm:$0xff] }
 0x802   :  { %v13446_v60 = vpop.eup %13445 }
 0x803   :  { %v2552_v56 = vmul.f32 %v13446_v60, %v2536_v35  ;;  %v14421_v16 = vadd.f32 %v2562_v18, %v2557_v12  ;;  %v55_v35 = vld [vmem:[%s17550_s3 + $0x88] sm:$0xff]  ;;  %v82_v60 = vld [vmem:[%s17550_s3 + $0x160] sm:$0xff] }
 0x804   :  { %v10833_v15 = vcombine.high %v43_v28, %v55_v35  ;;  %v10832_v40 = vcombine.low %v43_v28, %v55_v35  ;;  %v83_v12 = vld [vmem:[%s17550_s3 + $0x168] sm:$0xff]  ;;  %v10863_v25 = vcombine.high %v70_v0, %v82_v60  ;;  %v10862_v27 = vcombine.low %v70_v0, %v82_v60  ;;  %v13018_v0 = vld [vmem:[%s17551_s4 + $0xb0] sm:$0xff]   ;;  %v13019_v60 = vld [vmem:[%s17551_s4 + $0x78] sm:$0xff]  }
 0x805   :  { %v2558_v62 = vmul.f32 %v2556_v34, %v2552_v56  ;;  %17602 = vst [vmem:[#allocation11_spill] sm:$0xff] %v14421_v16  ;;  %v10841_v34 = vcombine.high %v47_v61, %v59_v63  ;;  %v10838_v56 = vcombine.low %v46_v4, %v58_v59  ;;  %v10843_v28 = vcombine.high %v48_v13, %v60_v22  ;;  %v13010_v4 = vld [vmem:[%s17551_s4 + $0xa0] sm:$0xff]   ;;  %v13011_v59 = vld [vmem:[%s17551_s4 + $0x68] sm:$0xff]  }
 0x806   :  { %v14665_v13 = vsub.s32 6, %v13827_v7 }
 0x807   :  { %v14423_v30 = vadd.f32 %v2562_v18, %v2558_v62  ;;  %v71_v18 = vld [vmem:[%s17550_s3 + $0x108] sm:$0xff]  ;;  %v10840_v62 = vcombine.low %v47_v61, %v59_v63 }
 0x808   :  { %v10865_v21 = vcombine.high %v71_v18, %v83_v12  ;;  %v10864_v43 = vcombine.low %v71_v18, %v83_v12  ;;  %v13012_v61 = vld [vmem:[%s17551_s4 + $0xe8] sm:$0xff]   ;;  %v13020_v18 = vld [vmem:[%s17551_s4 + $0xf8] sm:$0xff]   ;;  %17604 = vst [vmem:[#allocation13_spill] sm:$0xff] %v14665_v13 }
 0x809   :  { %17603 = vst [vmem:[#allocation12_spill] sm:$0xff] %v14423_v30  ;;  %v14427_v55 = vpack.c.bf16 %v14423_v30, %v14421_v16  ;;  %v13013_v63 = vld [vmem:[%s17551_s4 + $0x28] sm:$0xff]   ;;  %v13021_v12 = vld [vmem:[%s17551_s4 + $0x38] sm:$0xff]  }
 0x80b   :  { %10870 = vmatmul.mubr.msk.bf16.vlgmr.msra.gmra.mrb[68].mxu0 %vm488_vm1, %v14427_v55  ;;  %10871 = vmatmul.mubr.msk.bf16.vlgmr.msra.gmra.mrb[68].mxu1 %vm488_vm1, %v14427_v55 }
 0x80c   :  { %3019 = vmatpush1.bf16.msra.mxu0 %v10826_v44  ;;  %3062 = vmatpush1.bf16.msra.mxu1 %v10828_v19  ;;  %v81_v44 = vld [vmem:[%s17550_s3 + $0x158] sm:$0xff]  ;;  %v10859_v19 = vcombine.high %v68_v6, %v80_v10  ;;  %v13002_v6 = vld [vmem:[%s17551_s4 + $0x90] sm:$0xff]  }
 0x80d   :  { %3020 = vmatprep.subr.bf16.mxu0 %v10851_v57  ;;  %3063 = vmatprep.subr.bf16.mxu1 %v10853_v49  ;;  %v10861_v58 = vcombine.high %v69_v51, %v81_v44  ;;  %v10860_v9 = vcombine.low %v69_v51, %v81_v44  ;;  %v49_v57 = vld [vmem:[%s17550_s3 + $0x58] sm:$0xff] }
 0x80e   :  { %3050 = vmatprep.mubr.bf16.mxu0 %v17558_v5  ;;  %3093 = vmatprep.mubr.bf16.mxu1 %v17558_v5  ;;  %v61_v49 = vld [vmem:[%s17550_s3 + $0xb8] sm:$0xff] }
 0x80f   :  { %v10845_v35 = vcombine.high %v49_v57, %v61_v49  ;;  %v10844_v54 = vcombine.low %v49_v57, %v61_v49  ;;  %v13003_v10 = vld [vmem:[%s17551_s4 + $0x58] sm:$0xff]   ;;  %v14670_v49 = vsub.s32 7, %v13827_v7 }
 0x810   :  { %3021 = vmatpush1.bf16.msra.mxu0 %v10850_v29  ;;  %3064 = vmatpush1.bf16.msra.mxu1 %v10852_v52  ;;  %v72_v29 = vld [vmem:[%s17550_s3 + $0x110] sm:$0xff]  ;;  %v13004_v51 = vld [vmem:[%s17551_s4 + $0xd8] sm:$0xff]  }
 0x811   :  { %3104 = vmatprep.subr.bf16.mxu0 %v10831_v36  ;;  %3147 = vmatprep.subr.bf16.mxu1 %v10833_v15  ;;  %v84_v52 = vld [vmem:[%s17550_s3 + $0x170] sm:$0xff]  ;;  %v73_v36 = vld [vmem:[%s17550_s3 + $0x118] sm:$0xff]  ;;  %17605 = vst [vmem:[#allocation14_spill] sm:$0xff] %v14670_v49 }
 0x812   :  { %v85_v15 = vld [vmem:[%s17550_s3 + $0x178] sm:$0xff]  ;;  %v10867_v3 = vcombine.high %v72_v29, %v84_v52 }
 0x813   :  { %10872 = vmatmul.mubr.msk.bf16.vlgmr.msra.gmra.mrb[72].mxu0 %vm488_vm1, %v14427_v55  ;;  %10873 = vmatmul.mubr.msk.bf16.vlgmr.msra.gmra.mrb[72].mxu1 %vm488_vm1, %v14427_v55  ;;  %v10869_v41 = vcombine.high %v73_v36, %v85_v15  ;;  %v13005_v44 = vld [vmem:[%s17551_s4 + $0x18] sm:$0xff]  }
 0x814   :  { %3105 = vmatpush1.bf16.msra.mxu0 %v10830_v50  ;;  %3148 = vmatpush1.bf16.msra.mxu1 %v10832_v40  ;;  %v10866_v50 = vcombine.low %v72_v29, %v84_v52  ;;  %v10868_v40 = vcombine.low %v73_v36, %v85_v15 }
 0x815   :  { %3106 = vmatprep.subr.bf16.mxu0 %v10855_v46  ;;  %3149 = vmatprep.subr.bf16.mxu1 %v10857_v17  ;;  %v12991_v46 = vld [vmem:[%s17551_s4 + $0x40] sm:$0xff]  }
 0x816   :  { %3136 = vmatprep.mubr.bf16.mxu0 %v17558_v5  ;;  %3179 = vmatprep.mubr.bf16.mxu1 %v17558_v5  ;;  %v12992_v17 = vld [vmem:[%s17551_s4 + $0xc0] sm:$0xff]  }
 0x818   :  { %3107 = vmatpush1.bf16.msra.mxu0 %v10854_v42  ;;  %3150 = vmatpush1.bf16.msra.mxu1 %v10856_v23  ;;  %v12997_v42 = vld [vmem:[%s17551_s4 + $0x8] sm:$0xff]  }
 0x819   :  { %3190 = vmatprep.subr.bf16.mxu0 %v10835_v37  ;;  %3233 = vmatprep.subr.bf16.mxu1 %v10837_v45  ;;  %v12998_v23 = vld [vmem:[%s17551_s4 + $0x88] sm:$0xff]   ;;  %v12999_v37 = vld [vmem:[%s17551_s4 + $0x50] sm:$0xff]  }
 0x81a   :  { %v13001_v45 = vld [vmem:[%s17551_s4 + $0x10] sm:$0xff]  }
 0x81b   :  { %10874 = vmatmul.mubr.msk.bf16.vlgmr.msra.gmra.mrb[76].mxu0 %vm488_vm1, %v14427_v55  ;;  %10875 = vmatmul.mubr.msk.bf16.vlgmr.msra.gmra.mrb[76].mxu1 %vm488_vm1, %v14427_v55 }
 0x81c   :  { %3191 = vmatpush1.bf16.msra.mxu0 %v10834_v38  ;;  %3234 = vmatpush1.bf16.msra.mxu1 %v10836_v53  ;;  %v13006_v38 = vld [vmem:[%s17551_s4 + $0x98] sm:$0xff]   ;;  %v13007_v53 = vld [vmem:[%s17551_s4 + $0x60] sm:$0xff]  }
 0x81d   :  { %3192 = vmatprep.subr.bf16.mxu0 %v10859_v19  ;;  %3235 = vmatprep.subr.bf16.mxu1 %v10861_v58  ;;  %v13008_v19 = vld [vmem:[%s17551_s4 + $0xe0] sm:$0xff]  }
 0x81e   :  { %3222 = vmatprep.mubr.bf16.mxu0 %v17558_v5  ;;  %3265 = vmatprep.mubr.bf16.mxu1 %v17558_v5  ;;  %v13009_v58 = vld [vmem:[%s17551_s4 + $0x20] sm:$0xff]  }
 0x820   :  { %3193 = vmatpush1.bf16.msra.mxu0 %v10858_v1  ;;  %3236 = vmatpush1.bf16.msra.mxu1 %v10860_v9  ;;  %v13014_v1 = vld [vmem:[%s17551_s4 + $0xa8] sm:$0xff]   ;;  %v13015_v9 = vld [vmem:[%s17551_s4 + $0x70] sm:$0xff]  }
 0x821   :  { %3276 = vmatprep.subr.bf16.mxu0 %v10839_v26  ;;  %3319 = vmatprep.subr.bf16.mxu1 %v10841_v34  ;;  %v13016_v26 = vld [vmem:[%s17551_s4 + $0xf0] sm:$0xff]  }
 0x822   :  { %v13017_v34 = vld [vmem:[%s17551_s4 + $0x30] sm:$0xff]  }
 0x823   :  { %10876 = vmatmul.mubr.msk.bf16.vlgmr.msra.gmra.mrb[80].mxu0 %vm488_vm1, %v14427_v55  ;;  %10877 = vmatmul.mubr.msk.bf16.vlgmr.msra.gmra.mrb[80].mxu1 %vm488_vm1, %v14427_v55 }
 0x824   :  { %3277 = vmatpush1.bf16.msra.mxu0 %v10838_v56  ;;  %3320 = vmatpush1.bf16.msra.mxu1 %v10840_v62  ;;  %v13022_v56 = vld [vmem:[%s17551_s4 + $0xb8] sm:$0xff]   ;;  %v13023_v62 = vld [vmem:[%s17551_s4 + $0x140] sm:$0xff]  }
 0x825   :  { %3278 = vmatprep.subr.bf16.mxu0 %v10863_v25  ;;  %3321 = vmatprep.subr.bf16.mxu1 %v10865_v21  ;;  %v13024_v25 = vld [vmem:[%s17551_s4 + $0x1c0] sm:$0xff]  }
 0x826   :  { %3308 = vmatprep.mubr.bf16.mxu0 %v17558_v5  ;;  %3351 = vmatprep.mubr.bf16.mxu1 %v17558_v5  ;;  %v472_v21 = vld [vmem:[%s17553_s6] sm:$0xff] }
 0x827   :  { %v2572_v22 = vrot.slane %v472_v21, %v13864_v20  ;;  %v2580_v57 = vrot.slane %v472_v21, %v13912_v47  ;;  %v14678_v52 = vrot.slane %v472_v21, %v14400_v11  ;;  %v14681_v36 = vrot.slane %v472_v21, %v14665_v13 }
 0x828   :  { %3279 = vmatpush1.bf16.msra.mxu0 %v10862_v27  ;;  %3322 = vmatpush1.bf16.msra.mxu1 %v10864_v43  ;;  %v2576_v27 = vrot.slane %v472_v21, %v13833_v8  ;;  %v2584_v43 = vrot.slane %v472_v21, %v14342_v14 }
 0x829   :  { %3362 = vmatprep.subr.bf16.mxu0 %v10843_v28  ;;  %3405 = vmatprep.subr.bf16.mxu1 %v10845_v35  ;;  %v473_v28 = vld [vmem:[%s17553_s6 + $0x8] sm:$0xff] }
 0x82b   :  { %10878 = vmatmul.mubr.msk.bf16.vlgmr.msra.gmra.mrb[84].mxu0 %vm488_vm1, %v14427_v55  ;;  %10879 = vmatmul.mubr.msk.bf16.vlgmr.msra.gmra.mrb[84].mxu1 %vm488_vm1, %v14427_v55 }
 0x82c   :  { %3363 = vmatpush1.bf16.msra.mxu0 %v10842_v32  ;;  %3406 = vmatpush1.bf16.msra.mxu1 %v10844_v54 }
 0x82d   :  { %3364 = vmatprep.subr.bf16.mxu0 %v10867_v3  ;;  %3407 = vmatprep.subr.bf16.mxu1 %v10869_v41  ;;  %v14686_v3 = vrot.slane %v472_v21, %v14405_v48  ;;  %v14689_v41 = vrot.slane %v472_v21, %v14670_v49 }
 0x82e   :  { %3394 = vmatprep.mubr.bf16.mxu0 %v17558_v5  ;;  %3437 = vmatprep.mubr.bf16.mxu1 %v17558_v5 }
 0x830   :  { %3365 = vmatpush1.bf16.msra.mxu0 %v10866_v50  ;;  %3408 = vmatpush1.bf16.msra.mxu1 %v10868_v40 }
 0x831   :  { %11881 = vmatprep.subr.bf16.mxu0 %v12991_v46  ;;  %11903 = vmatprep.subr.bf16.mxu1 %v12992_v17 }
 0x833   :  { %10880 = vmatmul.mubr.msk.bf16.vlgmr.msra.gmra.mrb[88].mxu0 %vm488_vm1, %v14427_v55  ;;  %10881 = vmatmul.mubr.msk.bf16.vlgmr.msra.gmra.mrb[88].mxu1 %vm488_vm1, %v14427_v55  ;;  %v13000_v55 = vld [vmem:[%s17551_s4 + $0xd0] sm:$0xff]  }
 0x834   :  { %11882 = vmatpush3.bf16.msra.mxu0 %v12993_v31  ;;  %11904 = vmatpush3.bf16.msra.mxu1 %v12994_v33  ;;  %v14694_v31 = vrot.slane %v473_v28, %v13864_v20  ;;  %v14697_v33 = vrot.slane %v473_v28, %v13912_v47 }
 0x835   :  { %11883 = vmatprep.subr.bf16.mxu0 %v12995_v39  ;;  %11905 = vmatprep.subr.bf16.mxu1 %v12996_v24 }
 0x838   :  { %11884 = vmatpush3.bf16.msra.mxu0 %v12997_v42  ;;  %11906 = vmatpush3.bf16.msra.mxu1 %v12998_v23  ;;  %v14701_v42 = vrot.slane %v473_v28, %v13833_v8  ;;  %v14704_v23 = vrot.slane %v473_v28, %v14342_v14 }
 0x839   :  { %11885 = vmatprep.subr.bf16.mxu0 %v12999_v37  ;;  %11907 = vmatprep.subr.bf16.mxu1 %v13000_v55 }
 0x83c   :  { %11886 = vmatpush3.bf16.msra.mxu0 %v13001_v45  ;;  %11908 = vmatpush3.bf16.msra.mxu1 %v13002_v6  ;;  %v14708_v45 = vrot.slane %v473_v28, %v14400_v11  ;;  %v14711_v6 = vrot.slane %v473_v28, %v14665_v13 }
 0x83d   :  { %11887 = vmatprep.subr.bf16.mxu0 %v13003_v10  ;;  %11909 = vmatprep.subr.bf16.mxu1 %v13004_v51  ;;  %v474_v10 = vld [vmem:[%s17553_s6 + $0x10] sm:$0xff] }
 0x840   :  { %11888 = vmatpush3.bf16.msra.mxu0 %v13005_v44  ;;  %11910 = vmatpush3.bf16.msra.mxu1 %v13006_v38 }
 0x841   :  { %11889 = vmatprep.subr.bf16.mxu0 %v13007_v53  ;;  %11911 = vmatprep.subr.bf16.mxu1 %v13008_v19  ;;  %v14717_v19 = vrot.slane %v473_v28, %v14405_v48 }
 0x844   :  { %11890 = vmatpush3.bf16.msra.mxu0 %v13009_v58  ;;  %11912 = vmatpush3.bf16.msra.mxu1 %v13010_v4 }
 0x845   :  { %11891 = vmatprep.subr.bf16.mxu0 %v13011_v59  ;;  %11913 = vmatprep.subr.bf16.mxu1 %v13012_v61  ;;  %v14720_v59 = vrot.slane %v473_v28, %v14670_v49 }
 0x848   :  { %11892 = vmatpush3.bf16.msra.mxu0 %v13013_v63  ;;  %11914 = vmatpush3.bf16.msra.mxu1 %v13014_v1  ;;  %v14723_v63 = vrot.slane %v474_v10, %v13864_v20  ;;  %v14726_v1 = vrot.slane %v474_v10, %v13912_v47 }
 0x849   :  { %11893 = vmatprep.subr.bf16.mxu0 %v13015_v9  ;;  %11915 = vmatprep.subr.bf16.mxu1 %v13016_v26 }
 0x84c   :  { %11894 = vmatpush3.bf16.msra.mxu0 %v13017_v34  ;;  %11916 = vmatpush3.bf16.msra.mxu1 %v13018_v0  ;;  %v14729_v0 = vrot.slane %v474_v10, %v13833_v8 }
 0x84d   :  { %11895 = vmatprep.subr.bf16.mxu0 %v13019_v60  ;;  %11917 = vmatprep.subr.bf16.mxu1 %v13020_v18 }
 0x850   :  { %11896 = vmatpush3.bf16.msra.mxu0 %v13021_v12  ;;  %11918 = vmatpush3.bf16.msra.mxu1 %v13022_v56 }
 0x851   :  { %11925 = vmatprep.subr.bf16.mxu0 %v13023_v62  ;;  %11947 = vmatprep.subr.bf16.mxu1 %v13024_v25  ;;  %v14733_v62 = vrot.slane %v474_v10, %v14342_v14 }
 0x8de   :  { %v2966_v35 = vpop.f32.mrb[68].mxu0  ;;  %v3009_v29 = vpop.f32.mrb[68].mxu1 }
 0x8df   :  { %v14683_v15 = vadd.f32 %v2966_v35, %v2572_v22  ;;  %v3010_v7 = vadd.f32 %v3009_v29, %v2580_v57  ;;  %v2968_v32 = vpop.f32.mrb[69].mxu0  ;;  %v3011_v54 = vpop.f32.mrb[69].mxu1 }
 0x8e0   :  { %v2969_v50 = vadd.f32 %v2968_v32, %v2576_v27  ;;  %v14691_v40 = vadd.f32 %v3011_v54, %v2584_v43  ;;  %v2970_v46 = vpop.f32.mrb[70].mxu0  ;;  %v3013_v17 = vpop.f32.mrb[70].mxu1  ;;  %v14742_v32 = vrot.slane %v474_v10, %v14665_v13 }
 0x8e1   :  { %v3496_v39 = vmul.f32 0.70710677, %v14683_v15  ;;  %v3498_v24 = vmul.f32 0.70710677, %v3010_v7  ;;  %v2971_v51 = vadd.f32 %v2970_v46, %v2572_v22  ;;  %v3014_v44 = vadd.f32 %v3013_v17, %v2580_v57  ;;  %v2972_v38 = vpop.f32.mrb[71].mxu0  ;;  %v3015_v53 = vpop.f32.mrb[71].mxu1 }
 0x8e2   :  { %v3497_v37 = vmul.f32 0.70710677, %v2969_v50  ;;  %v3499_v55 = vmul.f32 0.70710677, %v14691_v40  ;;  %v2973_v58 = vadd.f32 %v2972_v38, %v2576_v27  ;;  %v3016_v4 = vadd.f32 %v3015_v53, %v2584_v43  ;;  %17607 = vst [vmem:[#allocation16_spill] sm:$0xff] %v14742_v32 }
 0x8e3   :  { %13447 = verf.f32 %v3496_v39  ;;  %v3520_v61 = vmul.f32 0.70710677, %v2971_v51  ;;  %v3522_v9 = vmul.f32 0.70710677, %v3014_v44  ;;  %v14738_v27 = vrot.slane %v474_v10, %v14400_v11 }
 0x8e4   :  { %13449 = verf.f32 %v3498_v24  ;;  %v3521_v26 = vmul.f32 0.70710677, %v2973_v58  ;;  %v3523_v60 = vmul.f32 0.70710677, %v3016_v4  ;;  %v14745_v17 = vrot.slane %v474_v10, %v14405_v48 }
 0x8e5   :  { %13451 = verf.f32 %v3497_v37  ;;  %17606 = vst [vmem:[#allocation15_spill] sm:$0xff] %v14738_v27  ;;  %v14748_v39 = vrot.slane %v474_v10, %v14670_v49  ;;  %v3448_v24 = vmul.f32 0.5, %v14683_v15  ;;  %v3450_v37 = vmul.f32 0.5, %v3010_v7 }
 0x8e6   :  { %13453 = verf.f32 %v3499_v55  ;;  %v3052_v34 = vpop.f32.mrb[72].mxu0  ;;  %v3095_v12 = vpop.f32.mrb[72].mxu1  ;;  %17608 = vst [vmem:[#allocation17_spill] sm:$0xff] %v14745_v17  ;;  %v14751_v38 = vmul.f32 0.5, %v2969_v50  ;;  %v3472_v10 = vmul.f32 0.5, %v2971_v51 }
 0x8e7   :  { %13455 = verf.f32 %v3520_v61  ;;  %v3053_v18 = vadd.f32 %v3052_v34, %v14678_v52  ;;  %v3054_v56 = vpop.f32.mrb[73].mxu0  ;;  %v3096_v25 = vadd.f32 %v3095_v12, %v14681_v36  ;;  %v3097_v22 = vpop.f32.mrb[73].mxu1  ;;  %17609 = vst [vmem:[#allocation18_spill] sm:$0xff] %v14748_v39  ;;  %v14759_v34 = vmul.f32 0.5, %v14691_v40 }
 0x8e8   :  { %13457 = verf.f32 %v3522_v9  ;;  %v3055_v21 = vadd.f32 %v3054_v56, %v14686_v3  ;;  %v3056_v57 = vpop.f32.mrb[74].mxu0  ;;  %v3098_v28 = vadd.f32 %v3097_v22, %v14689_v41  ;;  %v3099_v35 = vpop.f32.mrb[74].mxu1  ;;  %v3474_v12 = vmul.f32 0.5, %v3014_v44 }
 0x8e9   :  { %13459 = verf.f32 %v3521_v26  ;;  %v3500_v43 = vmul.f32 0.70710677, %v3053_v18  ;;  %v3058_v29 = vpop.f32.mrb[75].mxu0  ;;  %v3502_v54 = vmul.f32 0.70710677, %v3096_v25  ;;  %v3101_v46 = vpop.f32.mrb[75].mxu1  ;;  %v3057_v53 = vadd.f32 %v3056_v57, %v14678_v52 }
 0x8ea   :  { %13461 = verf.f32 %v3523_v60  ;;  %v3501_v55 = vmul.f32 0.70710677, %v3055_v21  ;;  %v3100_v61 = vadd.f32 %v3099_v35, %v14681_v36  ;;  %v14756_v9 = vadd.f32 %v3058_v29, %v14686_v3 }
 0x8eb   :  { %13463 = verf.f32 %v3500_v43  ;;  %v3503_v60 = vmul.f32 0.70710677, %v3098_v28  ;;  %v3524_v56 = vmul.f32 0.70710677, %v3057_v53  ;;  %v3102_v50 = vadd.f32 %v3101_v46, %v14689_v41 }
 0x8ec   :  { %13465 = verf.f32 %v3502_v54  ;;  %v14762_v43 = vmul.f32 0.5, %v2973_v58  ;;  %v3526_v3 = vmul.f32 0.70710677, %v3100_v61  ;;  %v14764_v29 = vmul.f32 0.5, %v3016_v4 }
 0x8ed   :  { %v13448_v26 = vpop.eup %13447  ;;  %13467 = verf.f32 %v3501_v55  ;;  %v14766_v51 = vmul.f32 0.5, %v3053_v18  ;;  %v3525_v44 = vmul.f32 0.70710677, %v14756_v9  ;;  %v14769_v46 = vmul.f32 0.5, %v3096_v25 }
 0x8ee   :  { %v13450_v15 = vpop.eup %13449  ;;  %v3592_v7 = vadd.f32 1.0, %v13448_v26  ;;  %v3138_v22 = vpop.f32.mrb[76].mxu0  ;;  %13469 = verf.f32 %v3524_v56  ;;  %v14771_v5 = vmul.f32 0.5, %v3055_v21  ;;  %v14773_v58 = vmul.f32 0.5, %v3098_v28 }
 0x8ef   :  { %v3181_v52 = vpop.f32.mrb[76].mxu1  ;;  %v13452_v57 = vpop.eup %13451  ;;  %v3594_v36 = vadd.f32 1.0, %v13450_v15  ;;  %13471 = verf.f32 %v3526_v3  ;;  %v3527_v56 = vmul.f32 0.70710677, %v3102_v50  ;;  %v3139_v28 = vadd.f32 %v3138_v22, %v14694_v31 }
 0x8f0   :  { %v3140_v35 = vpop.f32.mrb[77].mxu0  ;;  %v13454_v40 = vpop.eup %13453  ;;  %v14777_v2 = vmul.f32 %v3592_v7, %v3448_v24  ;;  %13473 = verf.f32 %v3503_v60  ;;  %v3593_v25 = vadd.f32 1.0, %v13452_v57  ;;  %v3182_v24 = vadd.f32 %v3181_v52, %v14697_v33 }
 0x8f1   :  { %v3183_v54 = vpop.f32.mrb[77].mxu1  ;;  %v3142_v26 = vpop.f32.mrb[78].mxu0  ;;  %v14781_v14 = vmul.f32 %v3594_v36, %v3450_v37  ;;  %v3595_v3 = vadd.f32 1.0, %v13454_v40  ;;  %13475 = verf.f32 %v3525_v44  ;;  %v3504_v60 = vmul.f32 0.70710677, %v3139_v28 }
 0x8f2   :  { %v13456_v41 = vpop.eup %13455  ;;  %v3185_v55 = vpop.f32.mrb[78].mxu1  ;;  %13477 = verf.f32 %v3527_v56  ;;  %v3141_v49 = vadd.f32 %v3140_v35, %v14701_v42  ;;  %v3476_v36 = vmul.f32 0.5, %v3057_v53  ;;  %v3478_v22 = vmul.f32 0.5, %v3100_v61 }
 0x8f3   :  { %v14775_v15 = vpop.f32.mrb[79].mxu0  ;;  %v13458_v4 = vpop.eup %13457  ;;  %v3616_v18 = vadd.f32 1.0, %v13456_v41  ;;  %13479 = verf.f32 %v3504_v60  ;;  %v14803_v56 = vmul.f32 %v3593_v25, %v14751_v38  ;;  %v14808_v53 = vmul.f32 0.5, %v3102_v50 }
 0x8f4   :  { %v14779_v48 = vpop.f32.mrb[79].mxu1  ;;  %v13460_v11 = vpop.eup %13459  ;;  %v3618_v21 = vadd.f32 1.0, %v13458_v4  ;;  %v3506_v61 = vmul.f32 0.70710677, %v3182_v24  ;;  %v14817_v60 = vmul.f32 0.5, %v3139_v28  ;;  %v3184_v38 = vadd.f32 %v3183_v54, %v14704_v23 }
 0x8f5   :  { %v13462_v47 = vpop.eup %13461  ;;  %v14784_v20 = vmul.f32 %v3616_v18, %v3472_v10  ;;  %v3617_v57 = vadd.f32 1.0, %v13460_v11  ;;  %v14806_v11 = vmul.f32 0.5, %v14756_v9  ;;  %v3505_v52 = vmul.f32 0.70710677, %v3141_v49 }
 0x8f6   :  { %v13464_v7 = vpop.eup %13463  ;;  %v14787_v41 = vmul.f32 %v3618_v21, %v3474_v12  ;;  %v14792_v4 = vpop.f32.mrb[80].mxu0  ;;  %v3619_v12 = vadd.f32 1.0, %v13462_v47  ;;  %v3143_v16 = vadd.f32 %v3142_v26, %v14694_v31  ;;  %v3186_v13 = vadd.f32 %v3185_v55, %v14697_v33 }
 0x8f7   :  { %v14794_v10 = vpop.f32.mrb[80].mxu1  ;;  %v13466_v40 = vpop.eup %13465  ;;  %v3596_v44 = vadd.f32 1.0, %v13464_v7  ;;  %v14815_v7 = vmul.f32 %v3595_v3, %v14759_v34  ;;  %v14825_v8 = vmul.f32 %v3617_v57, %v14762_v43  ;;  %v14835_v39 = vmul.f32 0.5, %v3182_v24 }
 0x8f8   :  { %v14798_v18 = vpop.f32.mrb[81].mxu0  ;;  %v14800_v35 = vpop.f32.mrb[81].mxu1  ;;  %v3598_v30 = vadd.f32 1.0, %v13466_v40  ;;  %v14830_v28 = vmul.f32 %v3619_v12, %v14764_v29  ;;  %13481 = verf.f32 %v3506_v61  ;;  %v3528_v43 = vmul.f32 0.70710677, %v3143_v16 }
 0x8f9   :  { %v14810_v21 = vpop.f32.mrb[82].mxu0  ;;  %v14812_v37 = vpop.f32.mrb[82].mxu1  ;;  %v14833_v3 = vmul.f32 %v3596_v44, %v14766_v51  ;;  %13483 = verf.f32 %v3505_v52  ;;  %v3507_v31 = vmul.f32 0.70710677, %v3184_v38  ;;  %v3530_v33 = vmul.f32 0.70710677, %v3186_v13 }
 0x8fa   :  { %v13468_v47 = vpop.eup %13467  ;;  %v14820_v25 = vpop.f32.mrb[83].mxu0  ;;  %v14840_v29 = vmul.f32 %v3598_v30, %v14769_v46  ;;  %v3145_v51 = vadd.f32 %v14775_v15, %v14701_v42  ;;  %v3188_v24 = vadd.f32 %v14779_v48, %v14704_v23  ;;  %v14854_v61 = vmul.f32 0.5, %v3141_v49 }
 0x8fb   :  { %v14822_v9 = vpop.f32.mrb[83].mxu1  ;;  %v13470_v50 = vpop.eup %13469  ;;  %v3597_v32 = vadd.f32 1.0, %v13468_v47  ;;  %13485 = verf.f32 %v3528_v43  ;;  %v3225_v47 = vadd.f32 %v14792_v4, %v14708_v45  ;;  %v3270_v4 = vadd.f32 %v14800_v35, %v14720_v59 }
 0x8fc   :  { %v13472_v34 = vpop.eup %13471  ;;  %v3620_v54 = vadd.f32 1.0, %v13470_v50  ;;  %17610 = vst [vmem:[#allocation19_spill] sm:$0xff] %v14840_v29  ;;  %13487 = verf.f32 %v3530_v33  ;;  %v3529_v23 = vmul.f32 0.70710677, %v3145_v51  ;;  %v3480_v48 = vmul.f32 0.5, %v3143_v16  ;;  %v13025_v16 = vld [vmem:[%s17551_s4 + $0x100] sm:$0xff]  }
 0x8fd   :  { %v13474_v17 = vpop.eup %13473  ;;  %v3622_v27 = vadd.f32 1.0, %v13472_v34  ;;  %v14861_v42 = vmul.f32 %v3597_v32, %v14771_v5  ;;  %13489 = verf.f32 %v3507_v31  ;;  %v3268_v34 = vadd.f32 %v14794_v10, %v14711_v6 }
 0x8fe   :  { %v14837_v57 = vmul.f32 %v3620_v54, %v3476_v36  ;;  %v13476_v26 = vpop.eup %13475  ;;  %v14848_v40 = vpop.f32.mrb[84].mxu0  ;;  %v3599_v52 = vadd.f32 1.0, %v13474_v17  ;;  %13491 = verf.f32 %v3529_v23  ;;  %v14879_v54 = vadd.f32 %v14798_v18, %v14717_v19 }
 0x8ff   :  { %v14842_v55 = vmul.f32 %v3622_v27, %v3478_v22  ;;  %v14850_v12 = vpop.f32.mrb[84].mxu1  ;;  %v13478_v36 = vpop.eup %13477  ;;  %v3621_v49 = vadd.f32 1.0, %v13476_v26  ;;  %v3531_v22 = vmul.f32 0.70710677, %v3188_v24  ;;  %v14884_v31 = vmul.f32 0.5, %v3184_v38 }
 0x900   :  { %v14856_v30 = vpop.f32.mrb[85].mxu0  ;;  %v14858_v27 = vpop.f32.mrb[85].mxu1  ;;  %v3623_v32 = vadd.f32 1.0, %v13478_v36  ;;  %v14882_v43 = vmul.f32 %v3599_v52, %v14773_v58  ;;  %v3508_v33 = vmul.f32 0.70710677, %v3225_v47  ;;  %v3482_v10 = vmul.f32 0.5, %v3186_v13 }
 0x901   :  { %17611 = vst [vmem:[#allocation20_spill] sm:$0xff] %v14842_v55  ;;  %v14865_v46 = vpop.f32.mrb[86].mxu0  ;;  %v14867_v17 = vpop.f32.mrb[86].mxu1  ;;  %13493 = verf.f32 %v3531_v22  ;;  %v3510_v36 = vmul.f32 0.70710677, %v3268_v34  ;;  %v14889_v23 = vmul.f32 %v3621_v49, %v14806_v11  ;;  %v14891_v44 = vmul.f32 0.5, %v3145_v51 }
 0x902   :  { %v13480_v15 = vpop.eup %13479  ;;  %v14871_v50 = vpop.f32.mrb[87].mxu0  ;;  %v3509_v18 = vmul.f32 0.70710677, %v14879_v54  ;;  %v14895_v38 = vmul.f32 %v3623_v32, %v14808_v53  ;;  %13495 = verf.f32 %v3508_v33  ;;  %v3511_v52 = vmul.f32 0.70710677, %v3270_v4 }
 0x903   :  { %v14873_v5 = vpop.f32.mrb[87].mxu1  ;;  %v3600_v26 = vadd.f32 1.0, %v13480_v15  ;;  %v13482_v58 = vpop.eup %13481  ;;  %v3689_v35 = vpack.c.bf16 %v14825_v8, %v14803_v56  ;;  %v14906_v15 = vmul.f32 0.5, %v3188_v24  ;;  %13497 = verf.f32 %v3510_v36  ;;  %v13026_v8 = vld [vmem:[%s17551_s4 + $0x180] sm:$0xff]   ;;  %v13027_v56 = vld [vmem:[%s17551_s4 + $0x148] sm:$0xff]  }
 0x904   :  { %v13484_v51 = vpop.eup %13483  ;;  %v3691_v53 = vpack.c.bf16 %v14830_v28, %v14815_v7  ;;  %v14912_v49 = vadd.f32 %v14810_v21, %v14708_v45  ;;  %v14927_v7 = vmul.f32 0.5, %v3225_v47  ;;  %v3272_v45 = vadd.f32 %v14812_v37, %v14711_v6  ;;  %v13028_v28 = vld [vmem:[%s17551_s4 + $0x1c8] sm:$0xff]  }
 0x905   :  { %v14925_v32 = vmul.f32 %v3600_v26, %v14817_v60  ;;  %4900 = vmatprep.mubr.bf16.mxu0 %v3689_v35  ;;  %v3231_v21 = vadd.f32 %v14820_v25, %v14717_v19  ;;  %v13486_v29 = vpop.eup %13485  ;;  %v3602_v60 = vadd.f32 1.0, %v13482_v58  ;;  %13499 = verf.f32 %v3509_v18 }
 0x906   :  { %v14902_v11 = vpop.f32.mrb[88].mxu0  ;;  %v14904_v13 = vpop.f32.mrb[88].mxu1  ;;  %4941 = vmatprep.mubr.bf16.mxu1 %v3691_v53  ;;  %v3532_v47 = vmul.f32 0.70710677, %v14912_v49  ;;  %v17612_v6 = vpack.c.bf16 %v14784_v20, %v14777_v2  ;;  %v3274_v19 = vadd.f32 %v14822_v9, %v14720_v59  ;;  %v3601_v35 = vadd.f32 1.0, %v13484_v51  ;;  %v13029_v2 = vld [vmem:[%s17551_s4 + $0x108] sm:$0xff]  }
 0x907   :  { %v14920_v22 = vpop.f32.mrb[89].mxu0  ;;  %v14922_v24 = vpop.f32.mrb[89].mxu1  ;;  %v3624_v55 = vadd.f32 1.0, %v13486_v29  ;;  %13501 = verf.f32 %v3511_v52  ;;  %v3534_v58 = vmul.f32 0.70710677, %v3272_v45  ;;  %v17613_v18 = vpack.c.bf16 %v14787_v41, %v14781_v14  ;;  %v13030_v29 = vld [vmem:[%s17551_s4 + $0x188] sm:$0xff]  }
 0x908   :  { %v14936_v33 = vpop.f32.mrb[90].mxu0  ;;  %v14938_v36 = vpop.f32.mrb[90].mxu1  ;;  %4901 = vmatmul.mubr.bf16.vlgmr.msra.gmra.mrb[92].mxu0 %v17612_v6  ;;  %v14956_v9 = vmul.f32 0.5, %v3268_v34  ;;  %13503 = verf.f32 %v3532_v47  ;;  %v3533_v53 = vmul.f32 0.70710677, %v3231_v21  ;;  %v13031_v14 = vld [vmem:[%s17551_s4 + $0x150] sm:$0xff]   ;;  %v3354_v6 = vadd.f32 %v14850_v12, %v14726_v1 }
 0x909   :  { %v14946_v37 = vpop.f32.mrb[91].mxu0  ;;  %v14948_v25 = vpop.f32.mrb[91].mxu1  ;;  %4942 = vmatmul.mubr.bf16.vlgmr.msra.gmra.mrb[92].mxu1 %v17613_v18  ;;  %11926 = vmatpush3.bf16.msra.mxu0 %v13025_v16  ;;  %v14964_v52 = vmul.f32 %v3624_v55, %v3480_v48  ;;  %v14967_v16 = vmul.f32 0.5, %v14879_v54  ;;  %v14969_v34 = vmul.f32 0.5, %v3270_v4  ;;  %13505 = verf.f32 %v3534_v58  ;;  %v13032_v51 = vld [vmem:[%s17551_s4 + $0x1d0] sm:$0xff]   ;;  %v13035_v12 = vld [vmem:[%s17551_s4 + $0x158] sm:$0xff]  }
 0x90a   :  { %v13488_v26 = vpop.eup %13487  ;;  %11948 = vmatpush3.bf16.msra.mxu1 %v13026_v8  ;;  %11927 = vmatprep.subr.bf16.mxu0 %v13027_v56  ;;  %v14975_v8 = vmul.f32 %v3602_v60, %v14835_v39  ;;  %v3535_v47 = vmul.f32 0.70710677, %v3274_v19  ;;  %v3311_v55 = vadd.f32 %v14848_v40, %v14723_v63  ;;  %v14982_v54 = vmul.f32 %v3601_v35, %v14854_v61  ;;  %v13033_v39 = vld [vmem:[%s17551_s4 + $0x110] sm:$0xff]  }
 0x90b   :  { %v13490_v20 = vpop.eup %13489  ;;  %v3626_v59 = vadd.f32 1.0, %v13488_v26  ;;  %11949 = vmatprep.subr.bf16.mxu1 %v13028_v28  ;;  %v3696_v28 = vpack.c.bf16 %v14964_v52, %v14925_v32  ;;  %13507 = verf.f32 %v3533_v53  ;;  %v13034_v60 = vld [vmem:[%s17551_s4 + $0x190] sm:$0xff]   ;;  %v3484_v35 = vmul.f32 0.5, %v14912_v49  ;;  %v13094_v32 = vld [vmem:[%s17551_s4 + $0x388] sm:$0xff]  }
 0x90c   :  { %v13492_v41 = vpop.eup %13491  ;;  %v3603_v4 = vadd.f32 1.0, %v13490_v20  ;;  %v3512_v61 = vmul.f32 0.70710677, %v3311_v55  ;;  %v3486_v58 = vmul.f32 0.5, %v3272_v45  ;;  %v15000_v18 = vmul.f32 0.5, %v3231_v21  ;;  %v13036_v20 = vld [vmem:[%s17551_s4 + $0x1d8] sm:$0xff]  }
 0x90d   :  { %v14977_v56 = vmul.f32 %v3626_v59, %v3482_v10  ;;  %v13494_v48 = vpop.eup %13493  ;;  %11928 = vmatpush3.bf16.msra.mxu0 %v13029_v2  ;;  %v3625_v40 = vadd.f32 1.0, %v13492_v41  ;;  %v3514_v2 = vmul.f32 0.70710677, %v3354_v6  ;;  %13509 = verf.f32 %v3535_v47  ;;  %v13037_v41 = vld [vmem:[%s17551_s4 + $0x118] sm:$0xff]   ;;  %v13095_v52 = vld [vmem:[%s17551_s4 + $0x350] sm:$0xff]  }
 0x90e   :  { %11950 = vmatpush3.bf16.msra.mxu1 %v13030_v29  ;;  %11929 = vmatprep.subr.bf16.mxu0 %v13031_v14  ;;  %v13496_v26 = vpop.eup %13495  ;;  %v3627_v53 = vadd.f32 1.0, %v13494_v48  ;;  %v3313_v29 = vadd.f32 %v14856_v30, %v14729_v0  ;;  %v15009_v14 = vadd.f32 %v14858_v27, %v14733_v62  ;;  %v15012_v49 = vmul.f32 %v3603_v4, %v14884_v31  ;;  %v13038_v31 = vld [vmem:[%s17551_s4 + $0x198] sm:$0xff]  }
 0x90f   :  { %v3698_v10 = vpack.c.bf16 %v14977_v56, %v14975_v8  ;;  %11951 = vmatprep.subr.bf16.mxu1 %v13032_v51  ;;  %v13498_v59 = vpop.eup %13497  ;;  %v15014_v45 = vmul.f32 0.5, %v3274_v19  ;;  %13511 = verf.f32 %v3512_v61  ;;  %v3693_v21 = vpack.c.bf16 %v14889_v23, %v14861_v42  ;;  %v13039_v42 = vld [vmem:[%s17551_s4 + $0x160] sm:$0xff]   ;;  %v13096_v8 = vld [vmem:[%s17551_s4 + $0x3d0] sm:$0xff]  }
 0x910   :  { %v13500_v51 = vpop.eup %13499  ;;  %v15022_v30 = vmul.f32 %v3625_v40, %v14891_v44  ;;  %v3604_v27 = vadd.f32 1.0, %v13496_v26  ;;  %13513 = verf.f32 %v3514_v2  ;;  %v3513_v47 = vmul.f32 0.70710677, %v3313_v29  ;;  %v13097_v56 = vld [vmem:[%s17551_s4 + $0x310] sm:$0xff]  }
 0x911   :  { %11930 = vmatpush3.bf16.msra.mxu0 %v13033_v39  ;;  %v13502_v23 = vpop.eup %13501  ;;  %v3606_v19 = vadd.f32 1.0, %v13498_v59  ;;  %v15030_v48 = vmul.f32 0.5, %v3311_v55  ;;  %v3515_v44 = vmul.f32 0.70710677, %v15009_v14  ;;  %4982 = vmatprep.mubr.bf16.mxu0 %v3693_v21  ;;  %v3695_v4 = vpack.c.bf16 %v14895_v38, %v14882_v43  ;;  %v13040_v39 = vld [vmem:[%s17551_s4 + $0x1e0] sm:$0xff]  }
 0x912   :  { %11952 = vmatpush3.bf16.msra.mxu1 %v13034_v60  ;;  %11931 = vmatprep.subr.bf16.mxu0 %v13035_v12  ;;  %v13504_v40 = vpop.eup %13503  ;;  %v15039_v61 = vmul.f32 %v3627_v53, %v14906_v15  ;;  %13515 = verf.f32 %v3513_v47  ;;  %v3315_v55 = vadd.f32 %v14865_v46, %v14723_v63  ;;  %v3358_v60 = vadd.f32 %v14867_v17, %v14726_v1  ;;  %v13041_v15 = vld [vmem:[%s17551_s4 + $0x120] sm:$0xff]   ;;  %v13043_v17 = vld [vmem:[%s17551_s4 + $0x168] sm:$0xff]  }
 0x913   :  { %11953 = vmatprep.subr.bf16.mxu1 %v13036_v20  ;;  %v13506_v12 = vpop.eup %13505  ;;  %v3605_v26 = vadd.f32 1.0, %v13500_v51  ;;  %v3628_v2 = vadd.f32 1.0, %v13504_v40  ;;  %v15045_v43 = vmul.f32 0.5, %v3354_v6  ;;  %5023 = vmatprep.mubr.bf16.mxu1 %v3695_v4  ;;  %v3317_v38 = vadd.f32 %v14871_v50, %v14729_v0  ;;  %v13042_v0 = vld [vmem:[%s17551_s4 + $0x1a0] sm:$0xff]   ;;  %v13045_v51 = vld [vmem:[%s17551_s4 + $0x128] sm:$0xff]  }
 0x914   :  { %v15053_v20 = vmul.f32 %v3604_v27, %v14927_v7  ;;  %v3630_v63 = vadd.f32 1.0, %v13506_v12  ;;  %v3536_v46 = vmul.f32 0.70710677, %v3315_v55  ;;  %v15057_v1 = vadd.f32 %v14873_v5, %v14733_v62  ;;  %v13044_v62 = vld [vmem:[%s17551_s4 + $0x1e8] sm:$0xff]   ;;  %v13048_v12 = vld [vmem:[%s17551_s4 + $0x1f0] sm:$0xff]  }
 0x915   :  { %11932 = vmatpush3.bf16.msra.mxu0 %v13037_v41  ;;  %v15066_v50 = vmul.f32 %v3606_v19, %v14956_v9  ;;  %v15068_v7 = vmul.f32 %v3628_v2, %v3484_v35  ;;  %13517 = verf.f32 %v3515_v44  ;;  %v3538_v6 = vmul.f32 0.70710677, %v3358_v60  ;;  %v13508_v5 = vpop.eup %13507  ;;  %v17614_v19 = vld [vmem:[#allocation15_spill] sm:$0xff] }
 0x916   :  { %11954 = vmatpush3.bf16.msra.mxu1 %v13038_v31  ;;  %11933 = vmatprep.subr.bf16.mxu0 %v13039_v42  ;;  %v3607_v59 = vadd.f32 1.0, %v13502_v23  ;;  %v15073_v53 = vmul.f32 %v3630_v63, %v3486_v58  ;;  %13519 = verf.f32 %v3536_v46  ;;  %v3537_v21 = vmul.f32 0.70710677, %v3317_v38  ;;  %v13047_v31 = vld [vmem:[%s17551_s4 + $0x170] sm:$0xff]  }
 0x917   :  { %11955 = vmatprep.subr.bf16.mxu1 %v13040_v39  ;;  %v15076_v41 = vmul.f32 %v3605_v26, %v14967_v16  ;;  %v3700_v9 = vpack.c.bf16 %v15068_v7, %v15053_v20  ;;  %v15080_v35 = vmul.f32 0.5, %v3313_v29  ;;  %13521 = verf.f32 %v3538_v6  ;;  %v13510_v27 = vpop.eup %13509  ;;  %v13046_v29 = vld [vmem:[%s17551_s4 + $0x1a8] sm:$0xff]   ;;  %v17616_v39 = vld [vmem:[#allocation17_spill] sm:$0xff] }
 0x918   :  { %v3702_v58 = vpack.c.bf16 %v15073_v53, %v15066_v50  ;;  %v15088_v47 = vmul.f32 0.5, %v15009_v14  ;;  %13523 = verf.f32 %v3537_v21  ;;  %v3539_v16 = vmul.f32 0.70710677, %v15057_v1  ;;  %v17615_v14 = vld [vmem:[#allocation16_spill] sm:$0xff]  ;;  %v13050_v63 = vld [vmem:[%s17551_s4 + $0x1b0] sm:$0xff]  }
 0x919   :  { %11934 = vmatpush3.bf16.msra.mxu0 %v13041_v15  ;;  %v13512_v42 = vpop.eup %13511  ;;  %v3629_v23 = vadd.f32 1.0, %v13508_v5  ;;  %v15099_v44 = vadd.f32 %v14902_v11, %v17614_v19  ;;  %v15103_v4 = vadd.f32 %v14904_v13, %v17615_v14  ;;  %v15107_v40 = vadd.f32 %v14920_v22, %v17616_v39  ;;  %v17617_v11 = vld [vmem:[#allocation18_spill] sm:$0xff]  ;;  %v13049_v22 = vld [vmem:[%s17551_s4 + $0x130] sm:$0xff]   ;;  %v13126_v20 = vld [vmem:[%s17551_s4 + $0x488] sm:$0xff]  }
 0x91a   :  { %11956 = vmatpush3.bf16.msra.mxu1 %v13042_v0  ;;  %11935 = vmatprep.subr.bf16.mxu0 %v13043_v17  ;;  %v13514_v26 = vpop.eup %13513  ;;  %v15113_v2 = vmul.f32 %v3607_v59, %v14969_v34  ;;  %13525 = verf.f32 %v3539_v16  ;;  %v15117_v15 = vadd.f32 %v14922_v24, %v17617_v11  ;;  %v15121_v13 = vadd.f32 %v14936_v33, %v17614_v19  ;;  %v13051_v24 = vld [vmem:[%s17551_s4 + $0x178] sm:$0xff]   ;;  %v13127_v7 = vld [vmem:[%s17551_s4 + $0x450] sm:$0xff]  }
 0x91b   :  { %11957 = vmatprep.subr.bf16.mxu1 %v13044_v62  ;;  %v3631_v46 = vadd.f32 1.0, %v13510_v27  ;;  %v3488_v34 = vmul.f32 0.5, %v3315_v55  ;;  %v3490_v0 = vmul.f32 0.5, %v3358_v60  ;;  %v3516_v17 = vmul.f32 0.70710677, %v15099_v44  ;;  %v13128_v50 = vld [vmem:[%s17551_s4 + $0x4d0] sm:$0xff]  }
 0x91c   :  { %v13516_v33 = vpop.eup %13515  ;;  %v3608_v6 = vadd.f32 1.0, %v13512_v42  ;;  %v3489_v62 = vmul.f32 0.5, %v3317_v38  ;;  %v3518_v5 = vmul.f32 0.70710677, %v15103_v4  ;;  %v3517_v59 = vmul.f32 0.70710677, %v15107_v40 }
 0x91d   :  { %11936 = vmatpush3.bf16.msra.mxu0 %v13045_v51  ;;  %v15136_v21 = vmul.f32 %v3629_v23, %v15000_v18  ;;  %v3610_v55 = vadd.f32 1.0, %v13514_v26  ;;  %13527 = verf.f32 %v3516_v17  ;;  %v3519_v60 = vmul.f32 0.70710677, %v15117_v15  ;;  %v13052_v51 = vld [vmem:[%s17551_s4 + $0x1f8] sm:$0xff]   ;;  %v13056_v26 = vld [vmem:[%s17551_s4 + $0x2c0] sm:$0xff]   ;;  %v13129_v53 = vld [vmem:[%s17551_s4 + $0x410] sm:$0xff]  }
 0x91e   :  { %11958 = vmatpush3.bf16.msra.mxu1 %v13046_v29  ;;  %11937 = vmatprep.subr.bf16.mxu0 %v13047_v31  ;;  %v3609_v27 = vadd.f32 1.0, %v13516_v33  ;;  %v3491_v38 = vmul.f32 0.5, %v15057_v1  ;;  %13529 = verf.f32 %v3518_v5  ;;  %v3540_v16 = vmul.f32 0.70710677, %v15121_v13  ;;  %v13053_v1 = vld [vmem:[%s17551_s4 + $0x138] sm:$0xff]  }
 0x91f   :  { %11959 = vmatprep.subr.bf16.mxu1 %v13048_v12  ;;  %v13518_v29 = vpop.eup %13517  ;;  %v15145_v31 = vmul.f32 %v3631_v46, %v15014_v45  ;;  %13531 = verf.f32 %v3517_v59  ;;  %v15149_v18 = vadd.f32 %v14938_v36, %v17615_v14  ;;  %v15153_v42 = vadd.f32 %v14946_v37, %v17616_v39  ;;  %v13054_v36 = vld [vmem:[%s17551_s4 + $0x1b8] sm:$0xff]   ;;  %v13055_v37 = vld [vmem:[%s17551_s4 + $0x240] sm:$0xff]  }
 0x920   :  { %v13520_v23 = vpop.eup %13519  ;;  %v15159_v19 = vmul.f32 %v3608_v6, %v15030_v48  ;;  %13533 = verf.f32 %v3519_v60  ;;  %v15163_v45 = vadd.f32 %v14948_v25, %v17617_v11  ;;  %v3697_v14 = vpack.c.bf16 %v15022_v30, %v14982_v54  ;;  %v13059_v60 = vld [vmem:[%s17551_s4 + $0x248] sm:$0xff]  }
 0x921   :  { %11938 = vmatpush3.bf16.msra.mxu0 %v13049_v22  ;;  %v13522_v48 = vpop.eup %13521  ;;  %v15174_v39 = vmul.f32 %v3610_v55, %v15045_v43  ;;  %v3632_v12 = vadd.f32 1.0, %v13520_v23  ;;  %13535 = verf.f32 %v3540_v16  ;;  %v3542_v25 = vmul.f32 0.70710677, %v15149_v18  ;;  %v17620_v23 = vld [vmem:[#allocation19_spill] sm:$0xff] }
 0x922   :  { %11960 = vmatpush3.bf16.msra.mxu1 %v13050_v63  ;;  %11939 = vmatprep.subr.bf16.mxu0 %v13051_v24  ;;  %v13524_v11 = vpop.eup %13523  ;;  %v15181_v22 = vmul.f32 %v3609_v27, %v15080_v35  ;;  %v3611_v63 = vadd.f32 1.0, %v13518_v29  ;;  %v3634_v46 = vadd.f32 1.0, %v13522_v48  ;;  %v3541_v54 = vmul.f32 0.70710677, %v15153_v42  ;;  %v13057_v24 = vld [vmem:[%s17551_s4 + $0x200] sm:$0xff]  }
 0x923   :  { %11961 = vmatprep.subr.bf16.mxu1 %v13052_v51  ;;  %v15184_v30 = vmul.f32 %v3632_v12, %v3488_v34  ;;  %v3633_v43 = vadd.f32 1.0, %v13524_v11  ;;  %13537 = verf.f32 %v3542_v25  ;;  %v3543_v17 = vmul.f32 0.70710677, %v15163_v45  ;;  %v13058_v35 = vld [vmem:[%s17551_s4 + $0x280] sm:$0xff]   ;;  %v13064_v12 = vld [vmem:[%s17551_s4 + $0x2d0] sm:$0xff]  }
 0x924   :  { %v13526_v33 = vpop.eup %13525  ;;  %v15190_v6 = vmul.f32 %v3634_v46, %v3490_v0  ;;  %13539 = verf.f32 %v3541_v54  ;;  %v3699_v34 = vpack.c.bf16 %v15039_v61, %v15012_v49  ;;  %v3701_v5 = vpack.c.bf16 %v15136_v21, %v15076_v41  ;;  %v13060_v61 = vld [vmem:[%s17551_s4 + $0x2c8] sm:$0xff]   ;;  %v13100_v41 = vld [vmem:[%s17551_s4 + $0x3d8] sm:$0xff]  }
 0x925   :  { %11940 = vmatpush3.bf16.msra.mxu0 %v13053_v1  ;;  %v3704_v59 = vpack.c.bf16 %v15184_v30, %v15159_v19  ;;  %v15201_v55 = vmul.f32 %v3633_v43, %v3489_v62  ;;  %v3635_v0 = vadd.f32 1.0, %v13526_v33  ;;  %13541 = verf.f32 %v3543_v17  ;;  %v17619_v1 = vld [vmem:[#allocation20_spill] sm:$0xff]  ;;  %v13067_v33 = vld [vmem:[%s17551_s4 + $0x258] sm:$0xff]   ;;  %v13159_v30 = vld [vmem:[%s17551_s4 + $0x550] sm:$0xff]  }
 0x926   :  { %11962 = vmatpush3.bf16.msra.mxu1 %v13054_v36  ;;  %11969 = vmatprep.subr.bf16.mxu0 %v13055_v37  ;;  %v3706_v51 = vpack.c.bf16 %v15190_v6, %v15174_v39  ;;  %v17618_v49 = vpack.c.bf16 %v14837_v57, %v14833_v3  ;;  %v3703_v62 = vpack.c.bf16 %v15145_v31, %v15113_v2  ;;  %v13061_v3 = vld [vmem:[%s17551_s4 + $0x208] sm:$0xff]   ;;  %v3468_v46 = vmul.f32 0.5, %v15099_v44  ;;  %v13101_v2 = vld [vmem:[%s17551_s4 + $0x318] sm:$0xff]   ;;  %v13103_v31 = vld [vmem:[%s17551_s4 + $0x360] sm:$0xff]  }
 0x927   :  { %11991 = vmatprep.subr.bf16.mxu1 %v13056_v26  ;;  %v13528_v27 = vpop.eup %13527  ;;  %v15217_v16 = vmul.f32 %v3611_v63, %v15088_v47  ;;  %v15219_v29 = vmul.f32 %v3635_v0, %v3491_v38  ;;  %v17621_v36 = vpack.c.bf16 %v17619_v1, %v17620_v23  ;;  %v3705_v57 = vpack.c.bf16 %v15201_v55, %v15181_v22  ;;  %v13062_v47 = vld [vmem:[%s17551_s4 + $0x288] sm:$0xff]   ;;  %v13063_v38 = vld [vmem:[%s17551_s4 + $0x250] sm:$0xff]   ;;  %v13102_v21 = vld [vmem:[%s17551_s4 + $0x398] sm:$0xff]  }
 0x928   :  { %4983 = vmatmul.mubr.bf16.vlgmr.msra.gmra.mrb[96].mxu0 %v17618_v49  ;;  %v13530_v37 = vpop.eup %13529  ;;  %v3612_v26 = vadd.f32 1.0, %v13528_v27  ;;  %v13065_v63 = vld [vmem:[%s17551_s4 + $0x210] sm:$0xff]   ;;  %v3492_v43 = vmul.f32 0.5, %v15121_v13  ;;  %v3469_v0 = vmul.f32 0.5, %v15107_v40  ;;  %v13068_v13 = vld [vmem:[%s17551_s4 + $0x2d8] sm:$0xff]   ;;  %v3493_v40 = vmul.f32 0.5, %v15153_v42 }
 0x929   :  { %5024 = vmatmul.mubr.bf16.vlgmr.msra.gmra.mrb[96].mxu1 %v17621_v36  ;;  %11970 = vmatpush3.bf16.msra.mxu0 %v13057_v24  ;;  %v13532_v48 = vpop.eup %13531  ;;  %v3707_v25 = vpack.c.bf16 %v15219_v29, %v15217_v16  ;;  %v3614_v54 = vadd.f32 1.0, %v13530_v37  ;;  %v13066_v24 = vld [vmem:[%s17551_s4 + $0x290] sm:$0xff]   ;;  %v13069_v37 = vld [vmem:[%s17551_s4 + $0x218] sm:$0xff]   ;;  %v13071_v42 = vld [vmem:[%s17551_s4 + $0x260] sm:$0xff]  }
 0x92a   :  { %5064 = vmatprep.mubr.bf16.mxu0 %v3697_v14  ;;  %11992 = vmatpush3.bf16.msra.mxu1 %v13058_v35  ;;  %v13534_v14 = vpop.eup %13533  ;;  %v3613_v44 = vadd.f32 1.0, %v13532_v48  ;;  %v13132_v22 = vld [vmem:[%s17551_s4 + $0x4d8] sm:$0xff]   ;;  %v13135_v29 = vld [vmem:[%s17551_s4 + $0x460] sm:$0xff]   ;;  %v13158_v19 = vld [vmem:[%s17551_s4 + $0x588] sm:$0xff]  }
 0x92b   :  { %5105 = vmatprep.mubr.bf16.mxu1 %v3699_v34  ;;  %11971 = vmatprep.subr.bf16.mxu0 %v13059_v60  ;;  %v13536_v11 = vpop.eup %13535  ;;  %v3470_v34 = vmul.f32 0.5, %v15103_v4  ;;  %v3494_v60 = vmul.f32 0.5, %v15149_v18  ;;  %v3615_v27 = vadd.f32 1.0, %v13534_v14  ;;  %v3471_v4 = vmul.f32 0.5, %v15117_v15  ;;  %v13070_v15 = vld [vmem:[%s17551_s4 + $0x298] sm:$0xff]   ;;  %v13160_v39 = vld [vmem:[%s17551_s4 + $0x5d0] sm:$0xff]  }
 0x92c   :  { %11993 = vmatprep.subr.bf16.mxu1 %v13060_v61  ;;  %v3636_v17 = vadd.f32 1.0, %v13536_v11  ;;  %v15257_v61 = vmul.f32 %v3612_v26, %v3468_v46  ;;  %v3495_v18 = vmul.f32 0.5, %v15163_v45  ;;  %v15279_v45 = vmul.f32 %v3613_v44, %v3469_v0  ;;  %v13072_v26 = vld [vmem:[%s17551_s4 + $0x2e0] sm:$0xff]   ;;  %v13078_v0 = vld [vmem:[%s17551_s4 + $0x2a8] sm:$0xff]   ;;  %v13079_v44 = vld [vmem:[%s17551_s4 + $0x270] sm:$0xff]  }
 0x92d   :  { %11972 = vmatpush3.bf16.msra.mxu0 %v13061_v3  ;;  %v13538_v35 = vpop.eup %13537  ;;  %v15286_v11 = vmul.f32 %v3615_v27, %v3471_v4  ;;  %v13083_v27 = vld [vmem:[%s17551_s4 + $0x278] sm:$0xff]   ;;  %v13161_v6 = vld [vmem:[%s17551_s4 + $0x510] sm:$0xff]  }
 0x92e   :  { %11994 = vmatpush3.bf16.msra.mxu1 %v13062_v47  ;;  %11973 = vmatprep.subr.bf16.mxu0 %v13063_v38  ;;  %v13540_v49 = vpop.eup %13539  ;;  %v15259_v1 = vmul.f32 %v3636_v17, %v3492_v43  ;;  %v3638_v23 = vadd.f32 1.0, %v13538_v35  ;;  %v15267_v47 = vmul.f32 %v3614_v54, %v3470_v34  ;;  %v13073_v54 = vld [vmem:[%s17551_s4 + $0x220] sm:$0xff]   ;;  %v13076_v35 = vld [vmem:[%s17551_s4 + $0x2e8] sm:$0xff]   ;;  %v13086_v4 = vld [vmem:[%s17551_s4 + $0x2b8] sm:$0xff]  }
 0x92f   :  { %11995 = vmatprep.subr.bf16.mxu1 %v13064_v12  ;;  %v13542_v36 = vpop.eup %13541  ;;  %v3637_v3 = vadd.f32 1.0, %v13540_v49  ;;  %v13074_v17 = vld [vmem:[%s17551_s4 + $0x2a0] sm:$0xff]   ;;  %v13077_v34 = vld [vmem:[%s17551_s4 + $0x228] sm:$0xff]   ;;  %v13082_v49 = vld [vmem:[%s17551_s4 + $0x2b0] sm:$0xff]  }
 0x930   :  { %v3708_v38 = vpack.c.bf16 %v15259_v1, %v15257_v61  ;;  %v15271_v48 = vmul.f32 %v3638_v23, %v3494_v60  ;;  %v3639_v12 = vadd.f32 1.0, %v13542_v36  ;;  %v13080_v60 = vld [vmem:[%s17551_s4 + $0x2f0] sm:$0xff]   ;;  %v13084_v23 = vld [vmem:[%s17551_s4 + $0x2f8] sm:$0xff]  }
 0x931   :  { %11974 = vmatpush3.bf16.msra.mxu0 %v13065_v63  ;;  %v15281_v14 = vmul.f32 %v3637_v3, %v3493_v40  ;;  %v13085_v36 = vld [vmem:[%s17551_s4 + $0x238] sm:$0xff]   ;;  %v13087_v40 = vld [vmem:[%s17551_s4 + $0x340] sm:$0xff]  }
 0x932   :  { %11996 = vmatpush3.bf16.msra.mxu1 %v13066_v24  ;;  %11975 = vmatprep.subr.bf16.mxu0 %v13067_v33  ;;  %v3710_v63 = vpack.c.bf16 %v15271_v48, %v15267_v47  ;;  %v15290_v46 = vmul.f32 %v3639_v12, %v3495_v18  ;;  %v13075_v24 = vld [vmem:[%s17551_s4 + $0x268] sm:$0xff]   ;;  %v13088_v3 = vld [vmem:[%s17551_s4 + $0x3c0] sm:$0xff]   ;;  %v13133_v55 = vld [vmem:[%s17551_s4 + $0x418] sm:$0xff]  }
 0x933   :  { %11997 = vmatprep.subr.bf16.mxu1 %v13068_v13  ;;  %v3709_v43 = vpack.c.bf16 %v15281_v14, %v15279_v45  ;;  %v13081_v13 = vld [vmem:[%s17551_s4 + $0x230] sm:$0xff]   ;;  %v13089_v18 = vld [vmem:[%s17551_s4 + $0x300] sm:$0xff]   ;;  %v13091_v12 = vld [vmem:[%s17551_s4 + $0x348] sm:$0xff]  }
 0x934   :  { %v3711_v33 = vpack.c.bf16 %v15290_v46, %v15286_v11  ;;  %v13134_v16 = vld [vmem:[%s17551_s4 + $0x498] sm:$0xff]   ;;  %v13167_v46 = vld [vmem:[%s17551_s4 + $0x560] sm:$0xff]  }
 0x935   :  { %11976 = vmatpush3.bf16.msra.mxu0 %v13069_v37  ;;  %v13090_v37 = vld [vmem:[%s17551_s4 + $0x380] sm:$0xff]   ;;  %v13164_v45 = vld [vmem:[%s17551_s4 + $0x5d8] sm:$0xff]  }
 0x936   :  { %11998 = vmatpush3.bf16.msra.mxu1 %v13070_v15  ;;  %11977 = vmatprep.subr.bf16.mxu0 %v13071_v42  ;;  %v13092_v15 = vld [vmem:[%s17551_s4 + $0x3c8] sm:$0xff]   ;;  %v13165_v14 = vld [vmem:[%s17551_s4 + $0x518] sm:$0xff]  }
 0x937   :  { %11999 = vmatprep.subr.bf16.mxu1 %v13072_v26  ;;  %v13093_v42 = vld [vmem:[%s17551_s4 + $0x308] sm:$0xff]   ;;  %v13106_v26 = vld [vmem:[%s17551_s4 + $0x3a0] sm:$0xff]   ;;  %v13166_v11 = vld [vmem:[%s17551_s4 + $0x598] sm:$0xff]  }
 0x939   :  { %11978 = vmatpush3.bf16.msra.mxu0 %v13073_v54  ;;  %v13107_v54 = vld [vmem:[%s17551_s4 + $0x368] sm:$0xff]  }
 0x93a   :  { %12000 = vmatpush3.bf16.msra.mxu1 %v13074_v17  ;;  %11979 = vmatprep.subr.bf16.mxu0 %v13075_v24  ;;  %v13108_v17 = vld [vmem:[%s17551_s4 + $0x3e8] sm:$0xff]  }
 0x93b   :  { %12001 = vmatprep.subr.bf16.mxu1 %v13076_v35  ;;  %v13109_v24 = vld [vmem:[%s17551_s4 + $0x328] sm:$0xff]  }
 0x93c   :  { %v13110_v35 = vld [vmem:[%s17551_s4 + $0x3a8] sm:$0xff]  }
 0x93d   :  { %11980 = vmatpush3.bf16.msra.mxu0 %v13077_v34  ;;  %v13111_v34 = vld [vmem:[%s17551_s4 + $0x370] sm:$0xff]  }
 0x93e   :  { %12002 = vmatpush3.bf16.msra.mxu1 %v13078_v0  ;;  %11981 = vmatprep.subr.bf16.mxu0 %v13079_v44  ;;  %v13112_v0 = vld [vmem:[%s17551_s4 + $0x3f0] sm:$0xff]  }
 0x93f   :  { %12003 = vmatprep.subr.bf16.mxu1 %v13080_v60  ;;  %v13113_v44 = vld [vmem:[%s17551_s4 + $0x330] sm:$0xff]  }
 0x940   :  { %v13114_v60 = vld [vmem:[%s17551_s4 + $0x3b0] sm:$0xff]  }
 0x941   :  { %11982 = vmatpush3.bf16.msra.mxu0 %v13081_v13  ;;  %v13115_v13 = vld [vmem:[%s17551_s4 + $0x378] sm:$0xff]  }
 0x942   :  { %12004 = vmatpush3.bf16.msra.mxu1 %v13082_v49  ;;  %11983 = vmatprep.subr.bf16.mxu0 %v13083_v27  ;;  %v13116_v49 = vld [vmem:[%s17551_s4 + $0x3f8] sm:$0xff]  }
 0x943   :  { %12005 = vmatprep.subr.bf16.mxu1 %v13084_v23  ;;  %v13117_v27 = vld [vmem:[%s17551_s4 + $0x338] sm:$0xff]  }
 0x944   :  { %v13118_v23 = vld [vmem:[%s17551_s4 + $0x3b8] sm:$0xff]  }
 0x945   :  { %11984 = vmatpush3.bf16.msra.mxu0 %v13085_v36  ;;  %v13119_v36 = vld [vmem:[%s17551_s4 + $0x440] sm:$0xff]  }
 0x946   :  { %12006 = vmatpush3.bf16.msra.mxu1 %v13086_v4  ;;  %12013 = vmatprep.subr.bf16.mxu0 %v13087_v40  ;;  %v13120_v4 = vld [vmem:[%s17551_s4 + $0x4c0] sm:$0xff]  }
 0x947   :  { %12035 = vmatprep.subr.bf16.mxu1 %v13088_v3  ;;  %v13121_v40 = vld [vmem:[%s17551_s4 + $0x400] sm:$0xff]  }
 0x948   :  { %5065 = vmatmul.mubr.bf16.vlgmr.msra.gmra.mrb[100].mxu0 %v3696_v28  ;;  %v13098_v28 = vld [vmem:[%s17551_s4 + $0x390] sm:$0xff]   ;;  %v13122_v3 = vld [vmem:[%s17551_s4 + $0x480] sm:$0xff]  }
 0x949   :  { %5106 = vmatmul.mubr.bf16.vlgmr.msra.gmra.mrb[100].mxu1 %v3698_v10  ;;  %12014 = vmatpush3.bf16.msra.mxu0 %v13089_v18  ;;  %v13099_v10 = vld [vmem:[%s17551_s4 + $0x358] sm:$0xff]   ;;  %v13123_v18 = vld [vmem:[%s17551_s4 + $0x448] sm:$0xff]  }
 0x94a   :  { %5146 = vmatprep.mubr.bf16.mxu0 %v3701_v5  ;;  %12036 = vmatpush3.bf16.msra.mxu1 %v13090_v37  ;;  %v13104_v5 = vld [vmem:[%s17551_s4 + $0x3e0] sm:$0xff]   ;;  %v13124_v37 = vld [vmem:[%s17551_s4 + $0x4c8] sm:$0xff]  }
 0x94b   :  { %5187 = vmatprep.mubr.bf16.mxu1 %v3703_v62  ;;  %12015 = vmatprep.subr.bf16.mxu0 %v13091_v12  ;;  %v13105_v62 = vld [vmem:[%s17551_s4 + $0x320] sm:$0xff]   ;;  %v13125_v12 = vld [vmem:[%s17551_s4 + $0x408] sm:$0xff]  }
 0x94c   :  { %12037 = vmatprep.subr.bf16.mxu1 %v13092_v15  ;;  %v13138_v15 = vld [vmem:[%s17551_s4 + $0x4a0] sm:$0xff]  }
 0x94d   :  { %12016 = vmatpush3.bf16.msra.mxu0 %v13093_v42  ;;  %v13139_v42 = vld [vmem:[%s17551_s4 + $0x468] sm:$0xff]  }
 0x94e   :  { %12038 = vmatpush3.bf16.msra.mxu1 %v13094_v32  ;;  %12017 = vmatprep.subr.bf16.mxu0 %v13095_v52  ;;  %v13140_v32 = vld [vmem:[%s17551_s4 + $0x4e8] sm:$0xff]  }
 0x94f   :  { %12039 = vmatprep.subr.bf16.mxu1 %v13096_v8  ;;  %v13141_v52 = vld [vmem:[%s17551_s4 + $0x428] sm:$0xff]  }
 0x950   :  { %v13142_v8 = vld [vmem:[%s17551_s4 + $0x4a8] sm:$0xff]  }
 0x951   :  { %12018 = vmatpush3.bf16.msra.mxu0 %v13097_v56  ;;  %v13143_v56 = vld [vmem:[%s17551_s4 + $0x470] sm:$0xff]  }
 0x952   :  { %12040 = vmatpush3.bf16.msra.mxu1 %v13098_v28  ;;  %12019 = vmatprep.subr.bf16.mxu0 %v13099_v10  ;;  %v13144_v28 = vld [vmem:[%s17551_s4 + $0x4f0] sm:$0xff]  }
 0x953   :  { %12041 = vmatprep.subr.bf16.mxu1 %v13100_v41  ;;  %v13145_v10 = vld [vmem:[%s17551_s4 + $0x430] sm:$0xff]  }
 0x954   :  { %v13146_v41 = vld [vmem:[%s17551_s4 + $0x4b0] sm:$0xff]  }
 0x955   :  { %12020 = vmatpush3.bf16.msra.mxu0 %v13101_v2  ;;  %v13147_v2 = vld [vmem:[%s17551_s4 + $0x478] sm:$0xff]  }
 0x956   :  { %12042 = vmatpush3.bf16.msra.mxu1 %v13102_v21  ;;  %12021 = vmatprep.subr.bf16.mxu0 %v13103_v31  ;;  %v13148_v21 = vld [vmem:[%s17551_s4 + $0x4f8] sm:$0xff]  }
 0x957   :  { %12043 = vmatprep.subr.bf16.mxu1 %v13104_v5  ;;  %v13149_v31 = vld [vmem:[%s17551_s4 + $0x438] sm:$0xff]  }
 0x958   :  { %v13150_v5 = vld [vmem:[%s17551_s4 + $0x4b8] sm:$0xff]  }
 0x959   :  { %12022 = vmatpush3.bf16.msra.mxu0 %v13105_v62  ;;  %v13151_v62 = vld [vmem:[%s17551_s4 + $0x540] sm:$0xff]  }
 0x95a   :  { %12044 = vmatpush3.bf16.msra.mxu1 %v13106_v26  ;;  %12023 = vmatprep.subr.bf16.mxu0 %v13107_v54  ;;  %v13152_v26 = vld [vmem:[%s17551_s4 + $0x5c0] sm:$0xff]  }
 0x95b   :  { %12045 = vmatprep.subr.bf16.mxu1 %v13108_v17  ;;  %v13153_v54 = vld [vmem:[%s17551_s4 + $0x500] sm:$0xff]  }
 0x95c   :  { %v13154_v17 = vld [vmem:[%s17551_s4 + $0x580] sm:$0xff]  }
 0x95d   :  { %12024 = vmatpush3.bf16.msra.mxu0 %v13109_v24  ;;  %v13155_v24 = vld [vmem:[%s17551_s4 + $0x548] sm:$0xff]  }
 0x95e   :  { %12046 = vmatpush3.bf16.msra.mxu1 %v13110_v35  ;;  %12025 = vmatprep.subr.bf16.mxu0 %v13111_v34  ;;  %v13156_v35 = vld [vmem:[%s17551_s4 + $0x5c8] sm:$0xff]  }
 0x95f   :  { %12047 = vmatprep.subr.bf16.mxu1 %v13112_v0  ;;  %v13157_v34 = vld [vmem:[%s17551_s4 + $0x508] sm:$0xff]   ;;  %v13170_v0 = vld [vmem:[%s17551_s4 + $0x5a0] sm:$0xff]  }
 0x961   :  { %12026 = vmatpush3.bf16.msra.mxu0 %v13113_v44  ;;  %v13171_v44 = vld [vmem:[%s17551_s4 + $0x568] sm:$0xff]  }
 0x962   :  { %12048 = vmatpush3.bf16.msra.mxu1 %v13114_v60  ;;  %12027 = vmatprep.subr.bf16.mxu0 %v13115_v13  ;;  %v13172_v60 = vld [vmem:[%s17551_s4 + $0x5e8] sm:$0xff]  }
 0x963   :  { %12049 = vmatprep.subr.bf16.mxu1 %v13116_v49  ;;  %v13173_v13 = vld [vmem:[%s17551_s4 + $0x528] sm:$0xff]  }
 0x964   :  { %v13174_v49 = vld [vmem:[%s17551_s4 + $0x5a8] sm:$0xff]  }
 0x965   :  { %12028 = vmatpush3.bf16.msra.mxu0 %v13117_v27  ;;  %v13175_v27 = vld [vmem:[%s17551_s4 + $0x570] sm:$0xff]  }
 0x966   :  { %12050 = vmatpush3.bf16.msra.mxu1 %v13118_v23  ;;  %12057 = vmatprep.subr.bf16.mxu0 %v13119_v36  ;;  %v13176_v23 = vld [vmem:[%s17551_s4 + $0x5f0] sm:$0xff]  }
 0x967   :  { %12079 = vmatprep.subr.bf16.mxu1 %v13120_v4  ;;  %v13177_v36 = vld [vmem:[%s17551_s4 + $0x530] sm:$0xff]  }
 0x968   :  { %5147 = vmatmul.mubr.bf16.vlgmr.msra.gmra.mrb[104].mxu0 %v3700_v9  ;;  %v13130_v9 = vld [vmem:[%s17551_s4 + $0x490] sm:$0xff]  }
 0x969   :  { %5188 = vmatmul.mubr.bf16.vlgmr.msra.gmra.mrb[104].mxu1 %v3702_v58  ;;  %12058 = vmatpush3.bf16.msra.mxu0 %v13121_v40  ;;  %v13131_v58 = vld [vmem:[%s17551_s4 + $0x458] sm:$0xff]   ;;  %v13178_v4 = vld [vmem:[%s17551_s4 + $0x5b0] sm:$0xff]  }
 0x96a   :  { %5228 = vmatprep.mubr.bf16.mxu0 %v3705_v57  ;;  %12080 = vmatpush3.bf16.msra.mxu1 %v13122_v3  ;;  %v13136_v57 = vld [vmem:[%s17551_s4 + $0x4e0] sm:$0xff]   ;;  %v13179_v40 = vld [vmem:[%s17551_s4 + $0x578] sm:$0xff]  }
 0x96b   :  { %5269 = vmatprep.mubr.bf16.mxu1 %v3707_v25  ;;  %12059 = vmatprep.subr.bf16.mxu0 %v13123_v18  ;;  %v13137_v25 = vld [vmem:[%s17551_s4 + $0x420] sm:$0xff]   ;;  %v13180_v3 = vld [vmem:[%s17551_s4 + $0x5f8] sm:$0xff]  }
 0x96c   :  { %12081 = vmatprep.subr.bf16.mxu1 %v13124_v37  ;;  %v13181_v18 = vld [vmem:[%s17551_s4 + $0x538] sm:$0xff]  }
 0x96d   :  { %12060 = vmatpush3.bf16.msra.mxu0 %v13125_v12  ;;  %v13182_v37 = vld [vmem:[%s17551_s4 + $0x5b8] sm:$0xff]   ;;  %v17622_v12 = vmov 0.0  }
 0x96e   :  { %12082 = vmatpush3.bf16.msra.mxu1 %v13126_v20  ;;  %12061 = vmatprep.subr.bf16.mxu0 %v13127_v7  ;;  %v15677_v7 = vld [vmem:[%s17552_s5] sm:$0xff] }
 0x96f   :  { %12083 = vmatprep.subr.bf16.mxu1 %v13128_v50  ;;  %v17623_v50 = vld [vmem:[#allocation13_spill] sm:$0xff] }
 0x970   :  { %v3715_v61 = vrot.slane %v15677_v7, %v17623_v50 }
 0x971   :  { %12062 = vmatpush3.bf16.msra.mxu0 %v13129_v53 }
 0x972   :  { %12084 = vmatpush3.bf16.msra.mxu1 %v13130_v9  ;;  %12063 = vmatprep.subr.bf16.mxu0 %v13131_v58 }
 0x973   :  { %12085 = vmatprep.subr.bf16.mxu1 %v13132_v22 }
 0x975   :  { %12064 = vmatpush3.bf16.msra.mxu0 %v13133_v55 }
 0x976   :  { %12086 = vmatpush3.bf16.msra.mxu1 %v13134_v16  ;;  %12065 = vmatprep.subr.bf16.mxu0 %v13135_v29 }
 0x977   :  { %12087 = vmatprep.subr.bf16.mxu1 %v13136_v57 }
 0x979   :  { %12066 = vmatpush3.bf16.msra.mxu0 %v13137_v25 }
 0x97a   :  { %12088 = vmatpush3.bf16.msra.mxu1 %v13138_v15  ;;  %12067 = vmatprep.subr.bf16.mxu0 %v13139_v42 }
 0x97b   :  { %12089 = vmatprep.subr.bf16.mxu1 %v13140_v32 }
 0x97d   :  { %12068 = vmatpush3.bf16.msra.mxu0 %v13141_v52 }
 0x97e   :  { %12090 = vmatpush3.bf16.msra.mxu1 %v13142_v8  ;;  %12069 = vmatprep.subr.bf16.mxu0 %v13143_v56 }
 0x97f   :  { %12091 = vmatprep.subr.bf16.mxu1 %v13144_v28 }
 0x981   :  { %12070 = vmatpush3.bf16.msra.mxu0 %v13145_v10 }
 0x982   :  { %12092 = vmatpush3.bf16.msra.mxu1 %v13146_v41  ;;  %12071 = vmatprep.subr.bf16.mxu0 %v13147_v2 }
 0x983   :  { %12093 = vmatprep.subr.bf16.mxu1 %v13148_v21 }
 0x985   :  { %12072 = vmatpush3.bf16.msra.mxu0 %v13149_v31 }
 0x986   :  { %12094 = vmatpush3.bf16.msra.mxu1 %v13150_v5  ;;  %12101 = vmatprep.subr.bf16.mxu0 %v13151_v62 }
 0x987   :  { %12123 = vmatprep.subr.bf16.mxu1 %v13152_v26 }
 0x988   :  { %5229 = vmatmul.mubr.bf16.vlgmr.msra.gmra.mrb[108].mxu0 %v3704_v59  ;;  %v13162_v59 = vld [vmem:[%s17551_s4 + $0x590] sm:$0xff]  }
 0x989   :  { %5270 = vmatmul.mubr.bf16.vlgmr.msra.gmra.mrb[108].mxu1 %v3706_v51  ;;  %12102 = vmatpush3.bf16.msra.mxu0 %v13153_v54  ;;  %v13163_v51 = vld [vmem:[%s17551_s4 + $0x558] sm:$0xff]  }
 0x98a   :  { %5310 = vmatprep.mubr.bf16.mxu0 %v3709_v43  ;;  %12124 = vmatpush3.bf16.msra.mxu1 %v13154_v17  ;;  %v13168_v43 = vld [vmem:[%s17551_s4 + $0x5e0] sm:$0xff]  }
 0x98b   :  { %5351 = vmatprep.mubr.bf16.mxu1 %v3711_v33  ;;  %12103 = vmatprep.subr.bf16.mxu0 %v13155_v24  ;;  %v13169_v33 = vld [vmem:[%s17551_s4 + $0x520] sm:$0xff]  }
 0x98c   :  { %12125 = vmatprep.subr.bf16.mxu1 %v13156_v35 }
 0x98d   :  { %12104 = vmatpush3.bf16.msra.mxu0 %v13157_v34 }
 0x98e   :  { %12126 = vmatpush3.bf16.msra.mxu1 %v13158_v19  ;;  %12105 = vmatprep.subr.bf16.mxu0 %v13159_v30 }
 0x98f   :  { %12127 = vmatprep.subr.bf16.mxu1 %v13160_v39 }
 0x991   :  { %12106 = vmatpush3.bf16.msra.mxu0 %v13161_v6 }
 0x992   :  { %12128 = vmatpush3.bf16.msra.mxu1 %v13162_v59  ;;  %12107 = vmatprep.subr.bf16.mxu0 %v13163_v51 }
 0x993   :  { %12129 = vmatprep.subr.bf16.mxu1 %v13164_v45 }
 0x995   :  { %12108 = vmatpush3.bf16.msra.mxu0 %v13165_v14 }
 0x996   :  { %12130 = vmatpush3.bf16.msra.mxu1 %v13166_v11  ;;  %12109 = vmatprep.subr.bf16.mxu0 %v13167_v46 }
 0x997   :  { %12131 = vmatprep.subr.bf16.mxu1 %v13168_v43 }
 0x999   :  { %12110 = vmatpush3.bf16.msra.mxu0 %v13169_v33 }
 0x99a   :  { %12132 = vmatpush3.bf16.msra.mxu1 %v13170_v0  ;;  %12111 = vmatprep.subr.bf16.mxu0 %v13171_v44 }
 0x99b   :  { %12133 = vmatprep.subr.bf16.mxu1 %v13172_v60 }
 0x99d   :  { %12112 = vmatpush3.bf16.msra.mxu0 %v13173_v13 }
 0x99e   :  { %12134 = vmatpush3.bf16.msra.mxu1 %v13174_v49  ;;  %12113 = vmatprep.subr.bf16.mxu0 %v13175_v27 }
 0x99f   :  { %12135 = vmatprep.subr.bf16.mxu1 %v13176_v23 }
 0x9a1   :  { %12114 = vmatpush3.bf16.msra.mxu0 %v13177_v36 }
 0x9a2   :  { %12136 = vmatpush3.bf16.msra.mxu1 %v13178_v4  ;;  %12115 = vmatprep.subr.bf16.mxu0 %v13179_v40 }
 0x9a3   :  { %12137 = vmatprep.subr.bf16.mxu1 %v13180_v3 }
 0x9a5   :  { %12116 = vmatpush3.bf16.msra.mxu0 %v13181_v18 }
 0x9a6   :  { %12138 = vmatpush3.bf16.msra.mxu1 %v13182_v37  ;;  %12687 = vmatprep.subr.bf16.mxu0 %v17622_v12 }
 0x9a7   :  { %12695 = vmatprep.subr.bf16.mxu1 %v17622_v12 }
 0x9a8   :  { %5311 = vmatmul.mubr.bf16.vlgmr.msra.gmra.mrb[112].mxu0 %v3708_v38 }
 0x9a9   :  { %5352 = vmatmul.mubr.bf16.vlgmr.msra.gmra.mrb[112].mxu1 %v3710_v63  ;;  %12691 = vmatprep.mubr.msk.bf16.mxu0 %vm13747_vm0, %v17622_v12 }
 0x9aa   :  { %12697 = vmatprep.mubr.msk.bf16.mxu1 %vm13747_vm0, %v17622_v12 }
 0x9db   :  { %v11897_v20 = vpop.f32.mrb[92].mxu0 }
 0x9dc   :  { %v11919_v1 = vpop.f32.mrb[92].mxu1  ;;  %v11898_v38 = vpop.f32.mrb[93].mxu0 }
 0x9dd   :  { %v11899_v53 = vadd.f32 %v11898_v38, %v11897_v20  ;;  %v11920_v47 = vpop.f32.mrb[93].mxu1  ;;  %v11900_v48 = vpop.f32.mrb[94].mxu0 }
 0x9de   :  { %v11921_v63 = vadd.f32 %v11920_v47, %v11919_v1  ;;  %v11922_v9 = vpop.f32.mrb[94].mxu1  ;;  %v11901_v58 = vpop.f32.mrb[95].mxu0 }
 0x9df   :  { %v4903_v22 = vadd.f32 %v11899_v53, %v3715_v61  ;;  %v11902_v55 = vadd.f32 %v11901_v58, %v11900_v48  ;;  %v11923_v16 = vpop.f32.mrb[95].mxu1 }
 0x9e0   :  { %v11924_v29 = vadd.f32 %v11923_v16, %v11922_v9 }
 0x9e1   :  { %v4944_v57 = vadd.f32 %v11921_v63, %v4903_v22  ;;  %v4906_v25 = vadd.f32 %v11902_v55, %v3715_v61 }
 0x9e3   :  { %v4947_v15 = vadd.f32 %v11924_v29, %v4906_v25 }
 0x9fb   :  { %v11941_v42 = vpop.f32.mrb[96].mxu0 }
 0x9fc   :  { %v11963_v32 = vpop.f32.mrb[96].mxu1  ;;  %v11942_v52 = vpop.f32.mrb[97].mxu0 }
 0x9fd   :  { %v11943_v8 = vadd.f32 %v11942_v52, %v11941_v42  ;;  %v11964_v56 = vpop.f32.mrb[97].mxu1  ;;  %v11944_v28 = vpop.f32.mrb[98].mxu0 }
 0x9fe   :  { %v11965_v10 = vadd.f32 %v11964_v56, %v11963_v32  ;;  %v11966_v41 = vpop.f32.mrb[98].mxu1  ;;  %v11945_v2 = vpop.f32.mrb[99].mxu0 }
 0x9ff   :  { %v4985_v21 = vadd.f32 %v11943_v8, %v4944_v57  ;;  %v11946_v31 = vadd.f32 %v11945_v2, %v11944_v28  ;;  %v11967_v5 = vpop.f32.mrb[99].mxu1 }
 0xa00   :  { %v11968_v62 = vadd.f32 %v11967_v5, %v11966_v41 }
 0xa01   :  { %v5026_v26 = vadd.f32 %v11965_v10, %v4985_v21  ;;  %v4988_v54 = vadd.f32 %v11946_v31, %v4947_v15 }
 0xa03   :  { %v5029_v17 = vadd.f32 %v11968_v62, %v4988_v54 }
 0xa1b   :  { %v11985_v24 = vpop.f32.mrb[100].mxu0 }
 0xa1c   :  { %v12007_v35 = vpop.f32.mrb[100].mxu1  ;;  %v11986_v34 = vpop.f32.mrb[101].mxu0 }
 0xa1d   :  { %v11987_v19 = vadd.f32 %v11986_v34, %v11985_v24  ;;  %v12008_v30 = vpop.f32.mrb[101].mxu1  ;;  %v11988_v39 = vpop.f32.mrb[102].mxu0 }
 0xa1e   :  { %v12009_v6 = vadd.f32 %v12008_v30, %v12007_v35  ;;  %v12010_v59 = vpop.f32.mrb[102].mxu1  ;;  %v11989_v51 = vpop.f32.mrb[103].mxu0 }
 0xa1f   :  { %v5067_v45 = vadd.f32 %v11987_v19, %v5026_v26  ;;  %v11990_v14 = vadd.f32 %v11989_v51, %v11988_v39  ;;  %v12011_v11 = vpop.f32.mrb[103].mxu1  ;;  %v17624_v19 = vld [vmem:[#allocation11_spill] sm:$0xff] }
 0xa20   :  { %v12012_v46 = vadd.f32 %v12011_v11, %v12010_v59 }
 0xa21   :  { %v5108_v43 = vadd.f32 %v12009_v6, %v5067_v45  ;;  %v5070_v33 = vadd.f32 %v11990_v14, %v5029_v17  ;;  %v17625_v6 = vld [vmem:[#allocation12_spill] sm:$0xff] }
 0xa23   :  { %v5111_v0 = vadd.f32 %v12012_v46, %v5070_v33 }
 0xa3b   :  { %v12029_v44 = vpop.f32.mrb[104].mxu0 }
 0xa3c   :  { %v12051_v60 = vpop.f32.mrb[104].mxu1  ;;  %v12030_v13 = vpop.f32.mrb[105].mxu0 }
 0xa3d   :  { %v12031_v49 = vadd.f32 %v12030_v13, %v12029_v44  ;;  %v12052_v27 = vpop.f32.mrb[105].mxu1  ;;  %v12032_v23 = vpop.f32.mrb[106].mxu0 }
 0xa3e   :  { %v12053_v36 = vadd.f32 %v12052_v27, %v12051_v60  ;;  %v12054_v4 = vpop.f32.mrb[106].mxu1  ;;  %v12033_v40 = vpop.f32.mrb[107].mxu0  ;;  %v13184_v27 = vld [vmem:[%s17548_s1 + $0x18] sm:$0xff]  }
 0xa3f   :  { %v5149_v3 = vadd.f32 %v12031_v49, %v5108_v43  ;;  %v12034_v18 = vadd.f32 %v12033_v40, %v12032_v23  ;;  %v12055_v37 = vpop.f32.mrb[107].mxu1  ;;  %v13183_v49 = vld [vmem:[%s17548_s1 + $0x10] sm:$0xff]   ;;  %s13722_s1 = scalar_lea.vmem %s10774_s20, 256 }
 0xa40   :  { %v12056_v20 = vadd.f32 %v12055_v37, %v12054_v4  ;;  %12688 = vmatpush3.bf16.msra.mxu0 %v13183_v49  ;;  %v15697_v23 = vld [vmem:[%s17552_s5 + $0x10] sm:$0xff]  ;;  %p13723_p0 = scmp.ne.s32.totalorder %s10774_s20, %s13722_s1  ;;  %p13728_p2 = scmp.lt.s32.totalorder %s13722_s1, %s13722_s1 }
 0xa41   :  { %v5190_v61 = vadd.f32 %v12053_v36, %v5149_v3  ;;  %v5152_v1 = vadd.f32 %v12034_v18, %v5111_v0  ;;  %12689 = vmatprep.subr.bf16.mxu0 %v17622_v12  ;;  %v17626_v36 = vld [vmem:[#allocation5_spill] sm:$0xff] }
 0xa42   :  { %v5921_v4 = vrot.slane %v15697_v23, %v17626_v36  ;;  %p13729_p3 = por %p13728_p2, %p13727_p1 }
 0xa43   :  { %v5193_v38 = vadd.f32 %v12056_v20, %v5152_v1  ;;  %v17627_v1 = vld [vmem:[#allocation14_spill] sm:$0xff] }
 0xa44   :  { %12690 = vmatpush3.bf16.msra.mxu0 %v13184_v27  ;;  %p13730_p4 = pnand %p13729_p3, %p13723_p0 }
 0xa45   :  { %12701 = vmatprep.subr.bf16.mxu0 %v17622_v12 }
 0xa5b   :  { %v12073_v53 = vpop.f32.mrb[108].mxu0 }
 0xa5c   :  { %v12095_v47 = vpop.f32.mrb[108].mxu1  ;;  %v12074_v48 = vpop.f32.mrb[109].mxu0 }
 0xa5d   :  { %v12075_v63 = vadd.f32 %v12074_v48, %v12073_v53  ;;  %v12096_v9 = vpop.f32.mrb[109].mxu1  ;;  %v12076_v58 = vpop.f32.mrb[110].mxu0 }
 0xa5e   :  { %v12097_v22 = vadd.f32 %v12096_v9, %v12095_v47  ;;  %v12098_v55 = vpop.f32.mrb[110].mxu1  ;;  %v12077_v16 = vpop.f32.mrb[111].mxu0 }
 0xa5f   :  { %v5231_v29 = vadd.f32 %v12075_v63, %v5190_v61  ;;  %v12078_v57 = vadd.f32 %v12077_v16, %v12076_v58  ;;  %v12099_v25 = vpop.f32.mrb[111].mxu1  ;;  %v11074_v58 = vld [vmem:[%s17552_s5 + $0x8] ss:$0 sm:$0xff] }
 0xa60   :  { %v12100_v15 = vadd.f32 %v12099_v25, %v12098_v55 }
 0xa61   :  { %v5272_v42 = vadd.f32 %v12097_v22, %v5231_v29  ;;  %v5234_v32 = vadd.f32 %v12078_v57, %v5193_v38  ;;  %v5391_v38 = vrot.slane %v15677_v7, %v17627_v1 }
 0xa63   :  { %v5275_v52 = vadd.f32 %v12100_v15, %v5234_v32 }
 0xa7b   :  { %v12117_v8 = vpop.f32.mrb[112].mxu0 }
 0xa7c   :  { %v12139_v56 = vpop.f32.mrb[112].mxu1  ;;  %v12118_v28 = vpop.f32.mrb[113].mxu0 }
 0xa7d   :  { %v12119_v10 = vadd.f32 %v12118_v28, %v12117_v8  ;;  %v12140_v41 = vpop.f32.mrb[113].mxu1  ;;  %v12120_v2 = vpop.f32.mrb[114].mxu0  ;;  %v17628_v28 = vld [vmem:[#allocation6_spill] sm:$0xff] }
 0xa7e   :  { %v12141_v21 = vadd.f32 %v12140_v41, %v12139_v56  ;;  %v12142_v31 = vpop.f32.mrb[114].mxu1  ;;  %v12121_v5 = vpop.f32.mrb[115].mxu0 }
 0xa7f   :  { %v5313_v62 = vadd.f32 %v12119_v10, %v5272_v42  ;;  %v12122_v26 = vadd.f32 %v12121_v5, %v12120_v2  ;;  %v12143_v54 = vpop.f32.mrb[115].mxu1  ;;  %v5911_v10 = vrot.slane %v15697_v23, %v17628_v28 }
 0xa80   :  { %v12144_v17 = vadd.f32 %v12143_v54, %v12142_v31 }
 0xa81   :  { %v5354_v24 = vadd.f32 %v12141_v21, %v5313_v62  ;;  %v5316_v35 = vadd.f32 %v12122_v26, %v5275_v52 }
 0xa83   :  { %v5357_v34 = vadd.f32 %v12144_v17, %v5316_v35  ;;  %v5360_v30 = vadd.f32 %v5354_v24, %v17624_v19 }
 0xa85   :  { %v5362_v39 = vsel %vm488_vm1, %v5360_v30, 0.0  ;;  %v5361_v59 = vadd.f32 %v5357_v34, %v17625_v6 }
 0xa86   :  { %5363 = vadd.xlane.f32.xlu1 %v5362_v39 }
 0xa87   :  { %v5365_v51 = vsel %vm488_vm1, %v5361_v59, 0.0 }
 0xa88   :  { %5366 = vadd.xlane.f32.xlu0 %v5365_v51 }
 0xb13   :  { %v5364_v45 = vpop.xlane.xlu1 %5363 }
 0xb14   :  { %v5368_v14 = vmul.f32 0.03125, %v5364_v45 }
 0xb15   :  { %v5367_v11 = vpop.xlane.xlu0 %5366 }
 0xb16   :  { %v5370_v46 = vsub.f32 %v5360_v30, %v5368_v14  ;;  %v5369_v43 = vmul.f32 0.03125, %v5367_v11 }
 0xb18   :  { %v5371_v33 = vsub.f32 %v5361_v59, %v5369_v43  ;;  %v5372_v0 = vmul.f32 %v5370_v46, %v5370_v46 }
 0xb1a   :  { %v5374_v44 = vsel %vm488_vm1, %v5372_v0, 0.0  ;;  %v5373_v60 = vmul.f32 %v5371_v33, %v5371_v33  ;;  %v17629_v0 = vld [vmem:[#allocation7_spill] sm:$0xff] }
 0xb1b   :  { %5375 = vadd.xlane.f32.xlu1 %v5374_v44  ;;  %v5933_v44 = vrot.slane %v15697_v23, %v17629_v0 }
 0xb1c   :  { %v5377_v13 = vsel %vm488_vm1, %v5373_v60, 0.0 }
 0xb1d   :  { %5378 = vadd.xlane.f32.xlu0 %v5377_v13 }
 0xb2c   :  { %5923 = vrot.lane.b32.xlu1 %v5921_v4, %s13748_s11 }
 0xba8   :  { %v5376_v40 = vpop.xlane.xlu1 %5375 }
 0xba9   :  { %v5380_v3 = vmul.f32 0.03125, %v5376_v40 }
 0xbaa   :  { %v5379_v18 = vpop.xlane.xlu0 %5378 }
 0xbab   :  { %v5382_v37 = vadd.f32 1e-12, %v5380_v3  ;;  %v5381_v20 = vmul.f32 0.03125, %v5379_v18 }
 0xbac   :  { %v5924_v7 = vpop.permute.xlu1 %5923 }
 0xbad   :  { %13543 = vrsqrt.f32 %v5382_v37  ;;  %v5383_v61 = vadd.f32 1e-12, %v5381_v20 }
 0xbaf   :  { %13545 = vrsqrt.f32 %v5383_v61 }
 0xbb7   :  { %v13544_v53 = vpop.eup %13543 }
 0xbb8   :  { %v5386_v47 = vmul.f32 %v13544_v53, %v5370_v46 }
 0xbb9   :  { %v13546_v48 = vpop.eup %13545 }
 0xbba   :  { %v5392_v63 = vmul.f32 %v5391_v38, %v5386_v47  ;;  %v5387_v9 = vmul.f32 %v13546_v48, %v5371_v33 }
 0xbbc   :  { %v5393_v22 = vmul.f32 %v5391_v38, %v5387_v9  ;;  %v15708_v55 = vadd.f32 %v11074_v58, %v5392_v63 }
 0xbbe   :  { %v15710_v16 = vadd.f32 %v11074_v58, %v5393_v22 }
 0xbc0   :  { %v5851_v29 = vpack.c.bf16 %v15710_v16, %v15708_v55 }
 0xbc2   :  { %12692 = vmatmul.mubr.msk.bf16.vlgmr.msra.gmra.mrb[116].mxu0 %vm488_vm1, %v5851_v29 }
 0xbc3   :  { %12703 = vmatprep.mubr.msk.bf16.mxu0 %vm13747_vm0, %v17622_v12 }
 0xc95   :  { %v15717_v57 = vpop.f32.mrb[116].mxu0 }
 0xc96   :  { %v5926_v25 = vadd.f32 %v5924_v7, %v15717_v57  ;;  %v12693_v15 = vpop.f32.mrb[117].mxu0  ;;  %v5912_v41 = vadd.f32 %v5911_v10, %v15717_v57 }
 0xc97   :  { %v15720_v42 = vpop.f32.mrb[118].mxu0 }
 0xc98   :  { %v5928_v32 = vpack.c.bf16 %v5926_v25, %v5926_v25  ;;  %v5927_v52 = vadd.f32 %v5924_v7, %v15720_v42  ;;  %v12694_v8 = vpop.f32.mrb[119].mxu0  ;;  %v5913_v2 = vadd.f32 %v5911_v10, %v15720_v42  ;;  %v5914_v21 = vmul.f32 0.5, %v5912_v41 }
 0xc9a   :  { %v5929_v56 = vpack.c.bf16 %v5927_v52, %v5927_v52  ;;  %5974 = vrot.lane.b32.xlu0 %v5928_v32, %s13749_s12  ;;  %v5915_v5 = vmul.f32 0.5, %v5913_v2  ;;  %v5916_v26 = vpack.c.bf16 %v5914_v21, %v5914_v21 }
 0xc9c   :  { %5976 = vrot.lane.b32.xlu1 %v5929_v56, %s13749_s12  ;;  %v5917_v17 = vpack.c.bf16 %v5915_v5, %v5915_v5 }
 0xc9e   :  { %5982 = vrot.lane.b32.xlu0 %v5928_v32, %s13751_s14 }
 0xca0   :  { %5978 = vrot.lane.b32.xlu1 %v5928_v32, %s13750_s13 }
 0xca2   :  { %5986 = vrot.lane.b32.xlu0 %v5928_v32, %s13752_s15 }
 0xca4   :  { %5980 = vrot.lane.b32.xlu1 %v5929_v56, %s13750_s13 }
 0xca6   :  { %5990 = vrot.lane.b32.xlu0 %v5928_v32, %s13753_s16 }
 0xca8   :  { %5984 = vrot.lane.b32.xlu1 %v5929_v56, %s13751_s14 }
 0xcaa   :  { %5994 = vrot.lane.b32.xlu0 %v5928_v32, %s13754_s17 }
 0xcac   :  { %5988 = vrot.lane.b32.xlu1 %v5929_v56, %s13752_s15 }
 0xcae   :  { %5998 = vrot.lane.b32.xlu0 %v5928_v32, %s13755_s18 }
 0xcb0   :  { %5992 = vrot.lane.b32.xlu1 %v5929_v56, %s13753_s16 }
 0xcb2   :  { %6032 = vrot.lane.b32.xlu0 %v5928_v32, %s13756_s19 }
 0xcb4   :  { %5996 = vrot.lane.b32.xlu1 %v5929_v56, %s13754_s17 }
 0xcb8   :  { %6000 = vrot.lane.b32.xlu1 %v5929_v56, %s13755_s18 }
 0xcbc   :  { %6080 = vrot.lane.b32.xlu1 %v5929_v56, %s13756_s19 }
 0xd0c   :  { %v5975_v31 = vpop.permute.xlu0 %5974 }
 0xd0d   :  { %6128 = vrot.lane.b32.xlu0 %v5975_v31, %s13756_s19 }
 0xd0e   :  { %v5977_v62 = vpop.permute.xlu1 %5976 }
 0xd0f   :  { %6176 = vrot.lane.b32.xlu1 %v5977_v62, %s13756_s19 }
 0xd10   :  { %v5983_v54 = vpop.permute.xlu0 %5982 }
 0xd11   :  { %5944 = vrot.lane.b32.xlu0 %v5916_v26, %s13749_s12 }
 0xd12   :  { %v5979_v24 = vpop.permute.xlu1 %5978 }
 0xd13   :  { %5946 = vrot.lane.b32.xlu1 %v5917_v17, %s13749_s12 }
 0xd14   :  { %v5987_v35 = vpop.permute.xlu0 %5986 }
 0xd15   :  { %6224 = vrot.lane.b32.xlu0 %v5979_v24, %s13756_s19 }
 0xd16   :  { %v5981_v34 = vpop.permute.xlu1 %5980 }
 0xd17   :  { %6272 = vrot.lane.b32.xlu1 %v5981_v34, %s13756_s19 }
 0xd18   :  { %v5991_v19 = vpop.permute.xlu0 %5990 }
 0xd19   :  { %5948 = vrot.lane.b32.xlu0 %v5916_v26, %s13750_s13 }
 0xd1a   :  { %v5985_v30 = vpop.permute.xlu1 %5984 }
 0xd1b   :  { %5950 = vrot.lane.b32.xlu1 %v5917_v17, %s13750_s13 }
 0xd1c   :  { %v5995_v39 = vpop.permute.xlu0 %5994 }
 0xd1d   :  { %6320 = vrot.lane.b32.xlu0 %v5983_v54, %s13756_s19 }
 0xd1e   :  { %v5989_v6 = vpop.permute.xlu1 %5988 }
 0xd1f   :  { %6368 = vrot.lane.b32.xlu1 %v5985_v30, %s13756_s19 }
 0xd20   :  { %v5999_v59 = vpop.permute.xlu0 %5998 }
 0xd21   :  { %5952 = vrot.lane.b32.xlu0 %v5916_v26, %s13751_s14 }
 0xd22   :  { %v5993_v51 = vpop.permute.xlu1 %5992 }
 0xd23   :  { %5954 = vrot.lane.b32.xlu1 %v5917_v17, %s13751_s14 }
 0xd24   :  { %v6033_v45 = vpop.permute.xlu0 %6032 }
 0xd25   :  { %v6038_v14 = vsel %vm659_vm2, %v6033_v45, 0  ;;  %6416 = vrot.lane.b32.xlu0 %v5987_v35, %s13756_s19 }
 0xd26   :  { %v5997_v11 = vpop.permute.xlu1 %5996  ;;  %12696 = vmatpush3.bf16.xpose.msra.mxu1 %v6038_v14 }
 0xd27   :  { %6464 = vrot.lane.b32.xlu1 %v5989_v6, %s13756_s19  ;;  %12707 = vmatprep.subr.bf16.mxu1 %v17622_v12 }
 0xd29   :  { %5956 = vrot.lane.b32.xlu0 %v5916_v26, %s13752_s15 }
 0xd2a   :  { %v6001_v46 = vpop.permute.xlu1 %6000 }
 0xd2b   :  { %5958 = vrot.lane.b32.xlu1 %v5917_v17, %s13752_s15 }
 0xd2d   :  { %6512 = vrot.lane.b32.xlu0 %v5991_v19, %s13756_s19  ;;  %12698 = vmatmul.mubr.msk.bf16.vlgmr.msra.gmra.mrb[116].mxu1 %vm659_vm2, %v5916_v26 }
 0xd2e   :  { %v6081_v43 = vpop.permute.xlu1 %6080  ;;  %12709 = vmatprep.mubr.msk.bf16.mxu1 %vm13747_vm0, %v17622_v12 }
 0xd2f   :  { %v6086_v33 = vsel %vm659_vm2, %v6081_v43, 0  ;;  %6560 = vrot.lane.b32.xlu1 %v5993_v51, %s13756_s19 }
 0xd30   :  { %12702 = vmatpush3.bf16.xpose.msra.mxu0 %v6086_v33 }
 0xd31   :  { %5960 = vrot.lane.b32.xlu0 %v5916_v26, %s13753_s16  ;;  %12713 = vmatprep.subr.bf16.mxu0 %v17622_v12 }
 0xd33   :  { %5962 = vrot.lane.b32.xlu1 %v5917_v17, %s13753_s16 }
 0xd35   :  { %6608 = vrot.lane.b32.xlu0 %v5995_v39, %s13756_s19 }
 0xd37   :  { %6656 = vrot.lane.b32.xlu1 %v5997_v11, %s13756_s19  ;;  %12704 = vmatmul.mubr.msk.bf16.vlgmr.msra.gmra.mrb[120].mxu0 %vm659_vm2, %v5917_v17 }
 0xd38   :  { %12715 = vmatprep.mubr.msk.bf16.mxu0 %vm13747_vm0, %v17622_v12 }
 0xd39   :  { %5964 = vrot.lane.b32.xlu0 %v5916_v26, %s13754_s17 }
 0xd3b   :  { %5966 = vrot.lane.b32.xlu1 %v5917_v17, %s13754_s17 }
 0xd3d   :  { %6704 = vrot.lane.b32.xlu0 %v5999_v59, %s13756_s19 }
 0xd3f   :  { %6752 = vrot.lane.b32.xlu1 %v6001_v46, %s13756_s19 }
 0xd41   :  { %5968 = vrot.lane.b32.xlu0 %v5916_v26, %s13755_s18 }
 0xd43   :  { %5970 = vrot.lane.b32.xlu1 %v5917_v17, %s13755_s18 }
 0xd45   :  { %5935 = vrot.lane.b32.xlu0 %v5933_v44, %s13757_s22 }
 0xd7f   :  { %v6129_v60 = vpop.permute.xlu0 %6128 }
 0xd80   :  { %v6134_v13 = vsel %vm659_vm2, %v6129_v60, 0 }
 0xd81   :  { %v6177_v49 = vpop.permute.xlu1 %6176  ;;  %12708 = vmatpush3.bf16.xpose.msra.mxu1 %v6134_v13 }
 0xd82   :  { %v6182_v27 = vsel %vm659_vm2, %v6177_v49, 0  ;;  %12719 = vmatprep.subr.bf16.mxu1 %v17622_v12 }
 0xd83   :  { %12714 = vmatpush3.bf16.xpose.msra.mxu0 %v6182_v27  ;;  %v5945_v4 = vpop.permute.xlu0 %5944 }
 0xd84   :  { %12725 = vmatprep.subr.bf16.mxu0 %v17622_v12 }
 0xd85   :  { %v5947_v40 = vpop.permute.xlu1 %5946 }
 0xd87   :  { %v6225_v3 = vpop.permute.xlu0 %6224 }
 0xd88   :  { %v6230_v23 = vsel %vm659_vm2, %v6225_v3, 0  ;;  %12710 = vmatmul.mubr.msk.bf16.vlgmr.msra.gmra.mrb[120].mxu1 %vm659_vm2, %v5945_v4 }
 0xd89   :  { %v6273_v18 = vpop.permute.xlu1 %6272  ;;  %12720 = vmatpush3.bf16.xpose.msra.mxu1 %v6230_v23  ;;  %12721 = vmatprep.mubr.msk.bf16.mxu1 %vm13747_vm0, %v17622_v12 }
 0xd8a   :  { %v6278_v37 = vsel %vm659_vm2, %v6273_v18, 0  ;;  %12716 = vmatmul.mubr.msk.bf16.vlgmr.msra.gmra.mrb[124].mxu0 %vm659_vm2, %v5947_v40  ;;  %12731 = vmatprep.subr.bf16.mxu1 %v17622_v12 }
 0xd8b   :  { %12726 = vmatpush3.bf16.xpose.msra.mxu0 %v6278_v37  ;;  %v5949_v20 = vpop.permute.xlu0 %5948  ;;  %12727 = vmatprep.mubr.msk.bf16.mxu0 %vm13747_vm0, %v17622_v12 }
 0xd8c   :  { %12737 = vmatprep.subr.bf16.mxu0 %v17622_v12 }
 0xd8d   :  { %v5951_v61 = vpop.permute.xlu1 %5950 }
 0xd8f   :  { %v6321_v38 = vpop.permute.xlu0 %6320 }
 0xd90   :  { %v6326_v53 = vsel %vm659_vm2, %v6321_v38, 0  ;;  %12722 = vmatmul.mubr.msk.bf16.vlgmr.msra.gmra.mrb[124].mxu1 %vm659_vm2, %v5949_v20 }
 0xd91   :  { %v6369_v47 = vpop.permute.xlu1 %6368  ;;  %12732 = vmatpush3.bf16.xpose.msra.mxu1 %v6326_v53  ;;  %12733 = vmatprep.mubr.msk.bf16.mxu1 %vm13747_vm0, %v17622_v12 }
 0xd92   :  { %v6374_v48 = vsel %vm659_vm2, %v6369_v47, 0  ;;  %12728 = vmatmul.mubr.msk.bf16.vlgmr.msra.gmra.mrb[128].mxu0 %vm659_vm2, %v5951_v61  ;;  %12743 = vmatprep.subr.bf16.mxu1 %v17622_v12 }
 0xd93   :  { %12738 = vmatpush3.bf16.xpose.msra.mxu0 %v6374_v48  ;;  %v5953_v63 = vpop.permute.xlu0 %5952  ;;  %12739 = vmatprep.mubr.msk.bf16.mxu0 %vm13747_vm0, %v17622_v12 }
 0xd94   :  { %12749 = vmatprep.subr.bf16.mxu0 %v17622_v12 }
 0xd95   :  { %v5955_v9 = vpop.permute.xlu1 %5954 }
 0xd97   :  { %v6417_v58 = vpop.permute.xlu0 %6416 }
 0xd98   :  { %v6422_v22 = vsel %vm659_vm2, %v6417_v58, 0  ;;  %12734 = vmatmul.mubr.msk.bf16.vlgmr.msra.gmra.mrb[128].mxu1 %vm659_vm2, %v5953_v63 }
 0xd99   :  { %v6465_v29 = vpop.permute.xlu1 %6464  ;;  %12744 = vmatpush3.bf16.xpose.msra.mxu1 %v6422_v22  ;;  %12745 = vmatprep.mubr.msk.bf16.mxu1 %vm13747_vm0, %v17622_v12 }
 0xd9a   :  { %v6470_v7 = vsel %vm659_vm2, %v6465_v29, 0  ;;  %12740 = vmatmul.mubr.msk.bf16.vlgmr.msra.gmra.mrb[132].mxu0 %vm659_vm2, %v5955_v9  ;;  %12755 = vmatprep.subr.bf16.mxu1 %v17622_v12 }
 0xd9b   :  { %12750 = vmatpush3.bf16.xpose.msra.mxu0 %v6470_v7  ;;  %v5957_v25 = vpop.permute.xlu0 %5956  ;;  %12751 = vmatprep.mubr.msk.bf16.mxu0 %vm13747_vm0, %v17622_v12 }
 0xd9c   :  { %12761 = vmatprep.subr.bf16.mxu0 %v17622_v12 }
 0xd9d   :  { %v5959_v15 = vpop.permute.xlu1 %5958 }
 0xd9f   :  { %v6513_v32 = vpop.permute.xlu0 %6512 }
 0xda0   :  { %v6518_v52 = vsel %vm659_vm2, %v6513_v32, 0  ;;  %12746 = vmatmul.mubr.msk.bf16.vlgmr.msra.gmra.mrb[132].mxu1 %vm659_vm2, %v5957_v25 }
 0xda1   :  { %v6561_v8 = vpop.permute.xlu1 %6560  ;;  %12756 = vmatpush3.bf16.xpose.msra.mxu1 %v6518_v52  ;;  %12757 = vmatprep.mubr.msk.bf16.mxu1 %vm13747_vm0, %v17622_v12 }
 0xda2   :  { %v6566_v56 = vsel %vm659_vm2, %v6561_v8, 0  ;;  %12752 = vmatmul.mubr.msk.bf16.vlgmr.msra.gmra.mrb[136].mxu0 %vm659_vm2, %v5959_v15  ;;  %12767 = vmatprep.subr.bf16.mxu1 %v17622_v12 }
 0xda3   :  { %12762 = vmatpush3.bf16.xpose.msra.mxu0 %v6566_v56  ;;  %v5961_v10 = vpop.permute.xlu0 %5960  ;;  %12763 = vmatprep.mubr.msk.bf16.mxu0 %vm13747_vm0, %v17622_v12 }
 0xda4   :  { %12773 = vmatprep.subr.bf16.mxu0 %v17622_v12 }
 0xda5   :  { %v5963_v41 = vpop.permute.xlu1 %5962 }
 0xda7   :  { %v6609_v2 = vpop.permute.xlu0 %6608 }
 0xda8   :  { %v6614_v21 = vsel %vm659_vm2, %v6609_v2, 0  ;;  %12758 = vmatmul.mubr.msk.bf16.vlgmr.msra.gmra.mrb[136].mxu1 %vm659_vm2, %v5961_v10 }
 0xda9   :  { %v6657_v31 = vpop.permute.xlu1 %6656  ;;  %12768 = vmatpush3.bf16.xpose.msra.mxu1 %v6614_v21  ;;  %12769 = vmatprep.mubr.msk.bf16.mxu1 %vm13747_vm0, %v17622_v12 }
 0xdaa   :  { %v6662_v5 = vsel %vm659_vm2, %v6657_v31, 0  ;;  %12764 = vmatmul.mubr.msk.bf16.vlgmr.msra.gmra.mrb[140].mxu0 %vm659_vm2, %v5963_v41  ;;  %12779 = vmatprep.subr.bf16.mxu1 %v17622_v12 }
 0xdab   :  { %12774 = vmatpush3.bf16.xpose.msra.mxu0 %v6662_v5  ;;  %v5965_v62 = vpop.permute.xlu0 %5964  ;;  %12775 = vmatprep.mubr.msk.bf16.mxu0 %vm13747_vm0, %v17622_v12 }
 0xdac   :  { %12785 = vmatprep.subr.bf16.mxu0 %v17622_v12 }
 0xdad   :  { %v5967_v26 = vpop.permute.xlu1 %5966 }
 0xdaf   :  { %v6705_v54 = vpop.permute.xlu0 %6704 }
 0xdb0   :  { %v6710_v17 = vsel %vm659_vm2, %v6705_v54, 0  ;;  %12770 = vmatmul.mubr.msk.bf16.vlgmr.msra.gmra.mrb[140].mxu1 %vm659_vm2, %v5965_v62 }
 0xdb1   :  { %v6753_v24 = vpop.permute.xlu1 %6752  ;;  %12780 = vmatpush3.bf16.xpose.msra.mxu1 %v6710_v17  ;;  %12781 = vmatprep.mubr.msk.bf16.mxu1 %vm13747_vm0, %v17622_v12 }
 0xdb2   :  { %v6758_v35 = vsel %vm659_vm2, %v6753_v24, 0  ;;  %12776 = vmatmul.mubr.msk.bf16.vlgmr.msra.gmra.mrb[144].mxu0 %vm659_vm2, %v5967_v26  ;;  %12791 = vmatprep.subr.bf16.mxu1 %v17622_v12 }
 0xdb3   :  { %12786 = vmatpush3.bf16.xpose.msra.mxu0 %v6758_v35  ;;  %v5969_v34 = vpop.permute.xlu0 %5968  ;;  %12787 = vmatprep.mubr.msk.bf16.mxu0 %vm13747_vm0, %v17622_v12 }
 0xdb4   :  { %12797 = vmatprep.subr.bf16.mxu0 %v17622_v12 }
 0xdb5   :  { %v5971_v6 = vpop.permute.xlu1 %5970 }
 0xdb7   :  { %v5936_v19 = vpop.permute.xlu0 %5935 }
 0xdb8   :  { %v5938_v30 = vadd.f32 %v5936_v19, %v15717_v57  ;;  %v5939_v39 = vadd.f32 %v5936_v19, %v15720_v42  ;;  %12782 = vmatmul.mubr.msk.bf16.vlgmr.msra.gmra.mrb[144].mxu1 %vm659_vm2, %v5969_v34 }
 0xdb9   :  { %12793 = vmatprep.mubr.msk.bf16.mxu1 %vm13747_vm0, %v17622_v12 }
 0xdba   :  { %v5940_v59 = vpack.c.bf16 %v5938_v30, %v5938_v30  ;;  %v5941_v51 = vpack.c.bf16 %v5939_v39, %v5939_v39  ;;  %12788 = vmatmul.mubr.msk.bf16.vlgmr.msra.gmra.mrb[148].mxu0 %vm659_vm2, %v5971_v6 }
 0xdbb   :  { %12799 = vmatprep.mubr.msk.bf16.mxu0 %vm13747_vm0, %v17622_v12 }
 0xdbc   :  { %6006 = vrot.lane.b32.xlu0 %v5941_v51, %s13749_s12  ;;  %6004 = vrot.lane.b32.xlu1 %v5940_v59, %s13749_s12 }
 0xdc0   :  { %6012 = vrot.lane.b32.xlu0 %v5940_v59, %s13751_s14  ;;  %6008 = vrot.lane.b32.xlu1 %v5940_v59, %s13750_s13 }
 0xdc4   :  { %6016 = vrot.lane.b32.xlu0 %v5940_v59, %s13752_s15  ;;  %6010 = vrot.lane.b32.xlu1 %v5941_v51, %s13750_s13  ;;  %s17631_s13 = smov 20  }
 0xdc8   :  { %6020 = vrot.lane.b32.xlu0 %v5940_v59, %s13753_s16  ;;  %6014 = vrot.lane.b32.xlu1 %v5941_v51, %s13751_s14  ;;  %s17632_s14 = smov 24  }
 0xdcc   :  { %6024 = vrot.lane.b32.xlu0 %v5940_v59, %s13754_s17  ;;  %6018 = vrot.lane.b32.xlu1 %v5941_v51, %s13752_s15 }
 0xdd0   :  { %6028 = vrot.lane.b32.xlu0 %v5940_v59, %s13755_s18  ;;  %6022 = vrot.lane.b32.xlu1 %v5941_v51, %s13753_s16 }
 0xdd4   :  { %6992 = vrot.lane.b32.xlu0 %v5940_v59, %s13757_s22  ;;  %6026 = vrot.lane.b32.xlu1 %v5941_v51, %s13754_s17  ;;  %s17633_s17 = smov 28  }
 0xdd8   :  { %6030 = vrot.lane.b32.xlu1 %v5941_v51, %s13755_s18 }
 0xddc   :  { %7040 = vrot.lane.b32.xlu1 %v5941_v51, %s13757_s22 }
 0xe00   :  { %v15872_v57 = vpop.f32.mrb[116].mxu1 }
 0xe01   :  { %v12699_v42 = vpop.f32.mrb[117].mxu1  ;;  %v6800_v9 = vsel %vm1426_vm4, %v15872_v57, -inf }
 0xe02   :  { %v6077_v45 = vpop.f32.mrb[118].mxu1 }
 0xe03   :  { %v12700_v14 = vpop.f32.mrb[119].mxu1 }
 0xe0a   :  { %v15874_v11 = vpop.f32.mrb[120].mxu0 }
 0xe0b   :  { %v12705_v46 = vpop.f32.mrb[121].mxu0  ;;  %v6803_v8 = vsel %vm1426_vm4, %v15874_v11, -inf }
 0xe0c   :  { %v6125_v43 = vpop.f32.mrb[122].mxu0 }
 0xe0d   :  { %v12706_v33 = vpop.f32.mrb[123].mxu0 }
 0xe2e   :  { %v6007_v44 = vpop.permute.xlu0 %6006  ;;  %v6005_v60 = vpop.permute.xlu1 %6004 }
 0xe2f   :  { %7136 = vrot.lane.b32.xlu1 %v6007_v44, %s13757_s22  ;;  %7088 = vrot.lane.b32.xlu0 %v6005_v60, %s13757_s22 }
 0xe32   :  { %v6013_v13 = vpop.permute.xlu0 %6012  ;;  %v6009_v49 = vpop.permute.xlu1 %6008 }
 0xe33   :  { %7184 = vrot.lane.b32.xlu0 %v6009_v49, %s13757_s22 }
 0xe36   :  { %v6017_v27 = vpop.permute.xlu0 %6016  ;;  %v6011_v4 = vpop.permute.xlu1 %6010 }
 0xe37   :  { %7280 = vrot.lane.b32.xlu0 %v6013_v13, %s13757_s22  ;;  %7232 = vrot.lane.b32.xlu1 %v6011_v4, %s13757_s22 }
 0xe3a   :  { %v15881_v40 = vpop.permute.xlu0 %6020  ;;  %v6015_v3 = vpop.permute.xlu1 %6014 }
 0xe3b   :  { %7376 = vrot.lane.b32.xlu0 %v6017_v27, %s13757_s22  ;;  %7328 = vrot.lane.b32.xlu1 %v6015_v3, %s13757_s22 }
 0xe3e   :  { %v15885_v23 = vpop.permute.xlu0 %6024  ;;  %v6019_v18 = vpop.permute.xlu1 %6018 }
 0xe3f   :  { %7424 = vrot.lane.b32.xlu1 %v6019_v18, %s13757_s22 }
 0xe42   :  { %v15888_v37 = vpop.permute.xlu0 %6028  ;;  %v15890_v20 = vpop.permute.xlu1 %6022 }
 0xe46   :  { %v6993_v61 = vpop.permute.xlu0 %6992  ;;  %v15892_v38 = vpop.permute.xlu1 %6026 }
 0xe47   :  { %v6998_v53 = vsel %vm1624_vm3, %v6993_v61, 0 }
 0xe48   :  { %12792 = vmatpush3.bf16.msra.mxu1 %v6998_v53 }
 0xe49   :  { %12803 = vmatprep.subr.bf16.mxu1 %v17622_v12 }
 0xe4a   :  { %v15896_v47 = vpop.permute.xlu1 %6030 }
 0xe4e   :  { %v7041_v48 = vpop.permute.xlu1 %7040 }
 0xe4f   :  { %v7046_v63 = vsel %vm1624_vm3, %v7041_v48, 0 }
 0xe50   :  { %12798 = vmatpush3.bf16.msra.mxu0 %v7046_v63 }
 0xe51   :  { %12809 = vmatprep.subr.bf16.mxu0 %v17622_v12 }
 0xe5a   :  { %6801 = vmax.xlane.f32.xlu0 %v6800_v9 }
 0xe5b   :  { %v15902_v58 = vpop.f32.mrb[120].mxu1 }
 0xe5c   :  { %v12711_v22 = vpop.f32.mrb[121].mxu1  ;;  %v6806_v5 = vsel %vm1426_vm4, %v15902_v58, -inf }
 0xe5d   :  { %v6173_v29 = vpop.f32.mrb[122].mxu1  ;;  %v15904_v7 = vpop.f32.mrb[124].mxu0 }
 0xe5e   :  { %v12712_v25 = vpop.f32.mrb[123].mxu1  ;;  %v12717_v15 = vpop.f32.mrb[125].mxu0  ;;  %v6809_v54 = vsel %vm1426_vm4, %v15904_v7, -inf }
 0xe5f   :  { %v6221_v32 = vpop.f32.mrb[126].mxu0 }
 0xe60   :  { %v12718_v52 = vpop.f32.mrb[127].mxu0 }
 0xe63   :  { %v15908_v56 = vpop.f32.mrb[124].mxu1  ;;  %6804 = vmax.xlane.f32.xlu1 %v6803_v8 }
 0xe64   :  { %v12723_v10 = vpop.f32.mrb[125].mxu1  ;;  %v6812_v6 = vsel %vm1426_vm4, %v15908_v56, -inf }
 0xe65   :  { %v6269_v41 = vpop.f32.mrb[126].mxu1  ;;  %v15910_v2 = vpop.f32.mrb[128].mxu0 }
 0xe66   :  { %v12724_v21 = vpop.f32.mrb[127].mxu1  ;;  %v12729_v31 = vpop.f32.mrb[129].mxu0  ;;  %v6815_v42 = vsel %vm1426_vm4, %v15910_v2, -inf }
 0xe67   :  { %v6317_v62 = vpop.f32.mrb[130].mxu0  ;;  %6807 = vmax.xlane.f32.xlu1 %v6806_v5 }
 0xe68   :  { %v12730_v26 = vpop.f32.mrb[131].mxu0 }
 0xe6b   :  { %v15916_v17 = vpop.f32.mrb[128].mxu1  ;;  %6810 = vmax.xlane.f32.xlu1 %v6809_v54 }
 0xe6c   :  { %v12735_v24 = vpop.f32.mrb[129].mxu1  ;;  %v6818_v35 = vsel %vm1426_vm4, %v15916_v17, -inf }
 0xe6d   :  { %v6365_v34 = vpop.f32.mrb[130].mxu1  ;;  %v15920_v19 = vpop.f32.mrb[132].mxu0  ;;  %6819 = vmax.xlane.f32.xlu0 %v6818_v35 }
 0xe6e   :  { %v12736_v30 = vpop.f32.mrb[131].mxu1  ;;  %v12741_v39 = vpop.f32.mrb[133].mxu0  ;;  %v6821_v60 = vsel %vm1426_vm4, %v15920_v19, -inf }
 0xe6f   :  { %v6413_v59 = vpop.f32.mrb[134].mxu0  ;;  %6813 = vmax.xlane.f32.xlu1 %v6812_v6 }
 0xe70   :  { %v12742_v51 = vpop.f32.mrb[135].mxu0 }
 0xe73   :  { %v15926_v45 = vpop.f32.mrb[132].mxu1  ;;  %6816 = vmax.xlane.f32.xlu1 %v6815_v42 }
 0xe74   :  { %v12747_v14 = vpop.f32.mrb[133].mxu1  ;;  %v6824_v27 = vsel %vm1426_vm4, %v15926_v45, -inf }
 0xe75   :  { %v6461_v46 = vpop.f32.mrb[134].mxu1  ;;  %v15928_v43 = vpop.f32.mrb[136].mxu0 }
 0xe76   :  { %v12748_v33 = vpop.f32.mrb[135].mxu1  ;;  %v12753_v44 = vpop.f32.mrb[137].mxu0  ;;  %v6827_v63 = vsel %vm1426_vm4, %v15928_v43, -inf }
 0xe77   :  { %v6509_v13 = vpop.f32.mrb[138].mxu0  ;;  %6822 = vmax.xlane.f32.xlu1 %v6821_v60 }
 0xe78   :  { %v12754_v49 = vpop.f32.mrb[139].mxu0 }
 0xe7b   :  { %v15934_v4 = vpop.f32.mrb[136].mxu1  ;;  %6825 = vmax.xlane.f32.xlu1 %v6824_v27 }
 0xe7c   :  { %v12759_v3 = vpop.f32.mrb[137].mxu1  ;;  %v6830_v29 = vsel %vm1426_vm4, %v15934_v4, -inf }
 0xe7d   :  { %v6557_v18 = vpop.f32.mrb[138].mxu1  ;;  %v15936_v61 = vpop.f32.mrb[140].mxu0 }
 0xe7e   :  { %v12760_v53 = vpop.f32.mrb[139].mxu1  ;;  %v12765_v48 = vpop.f32.mrb[141].mxu0  ;;  %v6833_v41 = vsel %vm1426_vm4, %v15936_v61, -inf }
 0xe7f   :  { %v6605_v9 = vpop.f32.mrb[142].mxu0  ;;  %6828 = vmax.xlane.f32.xlu1 %v6827_v63 }
 0xe80   :  { %v12766_v22 = vpop.f32.mrb[143].mxu0 }
 0xe83   :  { %v15942_v25 = vpop.f32.mrb[140].mxu1  ;;  %6831 = vmax.xlane.f32.xlu1 %v6830_v29 }
 0xe84   :  { %v12771_v15 = vpop.f32.mrb[141].mxu1  ;;  %v6836_v5 = vsel %vm1426_vm4, %v15942_v25, -inf }
 0xe85   :  { %v6653_v32 = vpop.f32.mrb[142].mxu1  ;;  %v15944_v52 = vpop.f32.mrb[144].mxu0 }
 0xe86   :  { %v12772_v8 = vpop.f32.mrb[143].mxu1  ;;  %v12777_v10 = vpop.f32.mrb[145].mxu0  ;;  %v6839_v30 = vsel %vm1426_vm4, %v15944_v52, -inf }
 0xe87   :  { %v6701_v21 = vpop.f32.mrb[146].mxu0  ;;  %6834 = vmax.xlane.f32.xlu1 %v6833_v41 }
 0xe88   :  { %v12778_v31 = vpop.f32.mrb[147].mxu0 }
 0xe8b   :  { %v15950_v62 = vpop.f32.mrb[144].mxu1  ;;  %6837 = vmax.xlane.f32.xlu1 %v6836_v5 }
 0xe8c   :  { %v12783_v26 = vpop.f32.mrb[145].mxu1  ;;  %v6842_v15 = vsel %vm1426_vm4, %v15950_v62, -inf }
 0xe8d   :  { %v6749_v54 = vpop.f32.mrb[146].mxu1  ;;  %v15952_v24 = vpop.f32.mrb[148].mxu0 }
 0xe8e   :  { %v12784_v35 = vpop.f32.mrb[147].mxu1  ;;  %v12789_v34 = vpop.f32.mrb[149].mxu0  ;;  %v6845_v9 = vsel %vm1426_vm4, %v15952_v24, -inf }
 0xe8f   :  { %v6797_v39 = vpop.f32.mrb[150].mxu0  ;;  %6840 = vmax.xlane.f32.xlu1 %v6839_v30 }
 0xe90   :  { %v12790_v6 = vpop.f32.mrb[151].mxu0 }
 0xea1   :  { %v15956_v59 = vpop.permute.xlu0 %7088  ;;  %v15960_v42 = vpop.permute.xlu1 %7136 }
 0xea5   :  { %v15958_v51 = vpop.permute.xlu0 %7184 }
 0xea9   :  { %v15962_v14 = vpop.permute.xlu0 %7280  ;;  %v15964_v46 = vpop.permute.xlu1 %7232 }
 0xead   :  { %v15966_v33 = vpop.permute.xlu0 %7376  ;;  %v15968_v44 = vpop.permute.xlu1 %7328 }
 0xeb1   :  { %v15971_v27 = vpop.permute.xlu1 %7424 }
 0xee7   :  { %v6802_v60 = vpop.xlane.xlu0 %6801 }
 0xee8   :  { %v6848_v13 = vsub.f32 %v15872_v57, %v6802_v60 }
 0xeea   :  { %v6864_v49 = vmul.f32 1.442695, %v6848_v13 }
 0xeec   :  { %13547 = vpow2.f32 %v6864_v49 }
 0xef0   :  { %v6805_v3 = vpop.xlane.xlu1 %6804 }
 0xef1   :  { %v6849_v18 = vsub.f32 %v15874_v11, %v6805_v3 }
 0xef3   :  { %v6866_v53 = vmul.f32 1.442695, %v6849_v18 }
 0xef4   :  { %v6808_v57 = vpop.xlane.xlu1 %6807 }
 0xef5   :  { %13549 = vpow2.f32 %v6866_v53  ;;  %v6850_v41 = vsub.f32 %v15902_v58, %v6808_v57 }
 0xef6   :  { %v15974_v48 = vpop.eup %13547 }
 0xef7   :  { %v6896_v63 = vsel %vm1426_vm4, %v15974_v48, 0.0  ;;  %v6868_v31 = vmul.f32 1.442695, %v6850_v41 }
 0xef8   :  { %6897 = vadd.xlane.f32.xlu0 %v6896_v63  ;;  %v6811_v11 = vpop.xlane.xlu1 %6810 }
 0xef9   :  { %13551 = vpow2.f32 %v6868_v31  ;;  %v6851_v30 = vsub.f32 %v15904_v7, %v6811_v11 }
 0xefa   :  { %v6820_v26 = vpop.xlane.xlu0 %6819 }
 0xefb   :  { %v6854_v35 = vsub.f32 %v15916_v17, %v6820_v26  ;;  %v6870_v6 = vmul.f32 1.442695, %v6851_v30 }
 0xefc   :  { %6846 = vmax.xlane.f32.xlu0 %v6845_v9  ;;  %v6814_v32 = vpop.xlane.xlu1 %6813 }
 0xefd   :  { %v6852_v5 = vsub.f32 %v15908_v56, %v6814_v32  ;;  %v6876_v39 = vmul.f32 1.442695, %v6854_v35 }
 0xeff   :  { %v15980_v22 = vpop.eup %13549  ;;  %v6872_v34 = vmul.f32 1.442695, %v6852_v5 }
 0xf00   :  { %v6899_v29 = vsel %vm1426_vm4, %v15980_v22, 0.0  ;;  %v6817_v8 = vpop.xlane.xlu1 %6816 }
 0xf01   :  { %6900 = vadd.xlane.f32.xlu1 %v6899_v29  ;;  %13553 = vpow2.f32 %v6872_v34 }
 0xf02   :  { %13555 = vpow2.f32 %v6876_v39 }
 0xf03   :  { %13557 = vpow2.f32 %v6870_v6  ;;  %v15998_v17 = vpop.eup %13551 }
 0xf04   :  { %v6823_v10 = vpop.xlane.xlu1 %6822 }
 0xf05   :  { %6843 = vmax.xlane.f32.xlu1 %v6842_v15  ;;  %v6855_v49 = vsub.f32 %v15920_v19, %v6823_v10 }
 0xf07   :  { %v6878_v3 = vmul.f32 1.442695, %v6855_v49 }
 0xf08   :  { %v6826_v21 = vpop.xlane.xlu1 %6825 }
 0xf0b   :  { %v16003_v18 = vpop.eup %13553 }
 0xf0c   :  { %v6829_v54 = vpop.xlane.xlu1 %6828  ;;  %v6908_v19 = vsel %vm1426_vm4, %v16003_v18, 0.0  ;;  %v16007_v53 = vpop.eup %13555 }
 0xf0d   :  { %v16009_v63 = vpop.eup %13557 }
 0xf0e   :  { %v6905_v57 = vsel %vm1426_vm4, %v16009_v63, 0.0 }
 0xf10   :  { %v6832_v58 = vpop.xlane.xlu1 %6831 }
 0xf11   :  { %v6858_v56 = vsub.f32 %v15934_v4, %v6832_v58 }
 0xf12   :  { %7472 = vrot.lane.b32.xlu0 %v15881_v40, %s13757_s22  ;;  %v6856_v40 = vsub.f32 %v15926_v45, %v6826_v21  ;;  %v6857_v45 = vsub.f32 %v15928_v43, %v6829_v54  ;;  %v6914_v43 = vsel %vm1426_vm4, %v16007_v53, 0.0 }
 0xf13   :  { %v6884_v7 = vmul.f32 1.442695, %v6858_v56 }
 0xf14   :  { %v6880_v60 = vmul.f32 1.442695, %v6856_v40  ;;  %v6882_v4 = vmul.f32 1.442695, %v6857_v45  ;;  %v6835_v5 = vpop.xlane.xlu1 %6834 }
 0xf15   :  { %v6859_v34 = vsub.f32 %v15936_v61, %v6835_v5 }
 0xf16   :  { %7520 = vrot.lane.b32.xlu1 %v15890_v20, %s13757_s22  ;;  %v6853_v20 = vsub.f32 %v15910_v2, %v6817_v8  ;;  %13559 = vpow2.f32 %v6880_v60  ;;  %v6902_v2 = vsel %vm1426_vm4, %v15998_v17, 0.0 }
 0xf17   :  { %v6886_v39 = vmul.f32 1.442695, %v6859_v34 }
 0xf18   :  { %v6874_v13 = vmul.f32 1.442695, %v6853_v20  ;;  %v6838_v26 = vpop.xlane.xlu1 %6837 }
 0xf19   :  { %v6860_v54 = vsub.f32 %v15942_v25, %v6838_v26 }
 0xf1a   :  { %13561 = vpow2.f32 %v6874_v13 }
 0xf1b   :  { %13563 = vpow2.f32 %v6884_v7  ;;  %v6888_v35 = vmul.f32 1.442695, %v6860_v54 }
 0xf1c   :  { %13565 = vpow2.f32 %v6878_v3  ;;  %v6841_v30 = vpop.xlane.xlu1 %6840 }
 0xf1d   :  { %13567 = vpow2.f32 %v6882_v4  ;;  %v6861_v40 = vsub.f32 %v15944_v52, %v6841_v30 }
 0xf1e   :  { %13569 = vpow2.f32 %v6888_v35 }
 0xf1f   :  { %13571 = vpow2.f32 %v6886_v39  ;;  %v6890_v6 = vmul.f32 1.442695, %v6861_v40 }
 0xf20   :  { %v16013_v9 = vpop.eup %13559 }
 0xf21   :  { %v6920_v11 = vsel %vm1426_vm4, %v16013_v9, 0.0  ;;  %13573 = vpow2.f32 %v6890_v6 }
 0xf24   :  { %v16017_v29 = vpop.eup %13561 }
 0xf25   :  { %v16021_v15 = vpop.eup %13563  ;;  %v6911_v32 = vsel %vm1426_vm4, %v16017_v29, 0.0 }
 0xf26   :  { %v16025_v8 = vpop.eup %13565  ;;  %v6926_v10 = vsel %vm1426_vm4, %v16021_v15, 0.0 }
 0xf27   :  { %v6917_v41 = vsel %vm1426_vm4, %v16025_v8, 0.0  ;;  %v16031_v21 = vpop.eup %13567 }
 0xf28   :  { %v6923_v31 = vsel %vm1426_vm4, %v16031_v21, 0.0  ;;  %v16042_v20 = vpop.eup %13569 }
 0xf31   :  { %6903 = vadd.xlane.f32.xlu0 %v6902_v2 }
 0xf35   :  { %6909 = vadd.xlane.f32.xlu0 %v6908_v19  ;;  %v7094_v19 = vsel %vm1624_vm3, %v15956_v59, 0 }
 0xf39   :  { %6915 = vadd.xlane.f32.xlu0 %v6914_v43 }
 0xf3a   :  { %6906 = vadd.xlane.f32.xlu1 %v6905_v57 }
 0xf3d   :  { %6921 = vadd.xlane.f32.xlu0 %v6920_v11  ;;  %v7142_v11 = vsel %vm1624_vm3, %v15960_v42, 0 }
 0xf3e   :  { %6912 = vadd.xlane.f32.xlu1 %v6911_v32 }
 0xf41   :  { %6927 = vadd.xlane.f32.xlu0 %v6926_v10 }
 0xf42   :  { %6918 = vadd.xlane.f32.xlu1 %v6917_v41 }
 0xf46   :  { %6924 = vadd.xlane.f32.xlu1 %v6923_v31 }
 0xf57   :  { %7616 = vrot.lane.b32.xlu1 %v15892_v38, %s13757_s22  ;;  %7568 = vrot.lane.b32.xlu0 %v15885_v23, %s13757_s22  ;;  %v6932_v38 = vsel %vm1426_vm4, %v16042_v20, 0.0  ;;  %v16046_v23 = vpop.eup %13571 }
 0xf58   :  { %v6929_v25 = vsel %vm1426_vm4, %v16046_v23, 0.0  ;;  %v16050_v61 = vpop.eup %13573 }
 0xf59   :  { %v6935_v52 = vsel %vm1426_vm4, %v16050_v61, 0.0 }
 0xf76   :  { %6933 = vadd.xlane.f32.xlu0 %v6932_v38 }
 0xf7b   :  { %6930 = vadd.xlane.f32.xlu1 %v6929_v25 }
 0xf7f   :  { %6936 = vadd.xlane.f32.xlu1 %v6935_v52 }
 0xf85   :  { %v6898_v58 = vpop.xlane.xlu0 %6897 }
 0xf86   :  { %13575 = vrcp.f32 %v6898_v58 }
 0xf89   :  { %v6847_v60 = vpop.xlane.xlu0 %6846 }
 0xf8a   :  { %v6863_v56 = vsub.f32 %v15952_v24, %v6847_v60  ;;  %v7286_v60 = vsel %vm1624_vm3, %v15962_v14, 0 }
 0xf8c   :  { %v6894_v13 = vmul.f32 1.442695, %v6863_v56 }
 0xf8d   :  { %v16082_v42 = vpop.permute.xlu0 %7472 }
 0xf8e   :  { %13577 = vpow2.f32 %v6894_v13  ;;  %v6901_v49 = vpop.xlane.xlu1 %6900 }
 0xf8f   :  { %13579 = vrcp.f32 %v6901_v49 }
 0xf90   :  { %v13576_v7 = vpop.eup %13575 }
 0xf91   :  { %v6960_v3 = vmul.f32 %v13576_v7, %v15974_v48 }
 0xf92   :  { %v6844_v45 = vpop.xlane.xlu1 %6843 }
 0xf93   :  { %v6862_v2 = vsub.f32 %v15950_v62, %v6844_v45  ;;  %v6976_v4 = vpack.c.bf16 %v6960_v3, %v6960_v3  ;;  %v7382_v3 = vsel %vm1624_vm3, %v15966_v33, 0 }
 0xf95   :  { %v6892_v43 = vmul.f32 1.442695, %v6862_v2  ;;  %12794 = vmatmul.mubr.msk.bf16.vlgmr.msra.gmra.mrb[148].mxu1 %vm1426_vm4, %v6976_v4 }
 0xf96   :  { %12804 = vmatpush3.bf16.msra.mxu1 %v7094_v19  ;;  %12805 = vmatprep.mubr.msk.bf16.mxu1 %vm13747_vm0, %v17622_v12  ;;  %v16084_v31 = vpop.permute.xlu1 %7520 }
 0xf97   :  { %13581 = vpow2.f32 %v6892_v43  ;;  %12815 = vmatprep.subr.bf16.mxu1 %v17622_v12  ;;  %v7430_v43 = vsel %vm1624_vm3, %v15971_v27, 0 }
 0xf98   :  { %v16063_v24 = vpop.eup %13577 }
 0xf99   :  { %v13580_v48 = vpop.eup %13579  ;;  %v6941_v62 = vsel %vm1426_vm4, %v16063_v24, 0.0 }
 0xf9a   :  { %v6961_v57 = vmul.f32 %v13580_v48, %v15980_v22  ;;  %6942 = vadd.xlane.f32.xlu1 %v6941_v62 }
 0xf9c   :  { %v6977_v59 = vpack.c.bf16 %v6961_v57, %v6961_v57 }
 0xf9e   :  { %12800 = vmatmul.mubr.msk.bf16.vlgmr.msra.gmra.mrb[152].mxu0 %vm1426_vm4, %v6977_v59 }
 0xf9f   :  { %12810 = vmatpush3.bf16.msra.mxu0 %v7142_v11  ;;  %12811 = vmatprep.mubr.msk.bf16.mxu0 %vm13747_vm0, %v17622_v12 }
 0xfa0   :  { %12821 = vmatprep.subr.bf16.mxu0 %v17622_v12 }
 0xfa1   :  { %v16074_v32 = vpop.eup %13581 }
 0xfa2   :  { %v6938_v10 = vsel %vm1426_vm4, %v16074_v32, 0.0 }
 0xfa3   :  { %6939 = vadd.xlane.f32.xlu0 %v6938_v10 }
 0xfab   :  { %7712 = vrot.lane.b32.xlu1 %v15896_v47, %s13757_s22 }
 0xfb9   :  { %7664 = vrot.lane.b32.xlu0 %v15888_v37, %s13757_s22  ;;  %v7190_v37 = vsel %vm1624_vm3, %v15958_v51, 0 }
 0xfbe   :  { %v6904_v22 = vpop.xlane.xlu0 %6903 }
 0xfbf   :  { %13583 = vrcp.f32 %v6904_v22 }
 0xfc2   :  { %v6910_v41 = vpop.xlane.xlu0 %6909 }
 0xfc3   :  { %13585 = vrcp.f32 %v6910_v41 }
 0xfc6   :  { %v6916_v26 = vpop.xlane.xlu0 %6915 }
 0xfc7   :  { %v6907_v5 = vpop.xlane.xlu1 %6906 }
 0xfc8   :  { %13587 = vrcp.f32 %v6907_v5 }
 0xfc9   :  { %v13584_v54 = vpop.eup %13583  ;;  %13589 = vrcp.f32 %v6916_v26 }
 0xfca   :  { %v6962_v35 = vmul.f32 %v13584_v54, %v15998_v17  ;;  %v6922_v40 = vpop.xlane.xlu0 %6921 }
 0xfcb   :  { %v6913_v34 = vpop.xlane.xlu1 %6912 }
 0xfcc   :  { %13591 = vrcp.f32 %v6913_v34  ;;  %v6978_v47 = vpack.c.bf16 %v6962_v35, %v6962_v35 }
 0xfcd   :  { %v13586_v30 = vpop.eup %13585  ;;  %13593 = vrcp.f32 %v6922_v40 }
 0xfce   :  { %12806 = vmatmul.mubr.msk.bf16.vlgmr.msra.gmra.mrb[152].mxu1 %vm1426_vm4, %v6978_v47  ;;  %v6964_v39 = vmul.f32 %v13586_v30, %v16003_v18  ;;  %v7238_v18 = vsel %vm1624_vm3, %v15964_v46, 0 }
 0xfcf   :  { %12816 = vmatpush3.bf16.msra.mxu1 %v7190_v37  ;;  %12817 = vmatprep.mubr.msk.bf16.mxu1 %vm13747_vm0, %v17622_v12  ;;  %v6919_v17 = vpop.xlane.xlu1 %6918 }
 0xfd0   :  { %12827 = vmatprep.subr.bf16.mxu1 %v17622_v12  ;;  %13595 = vrcp.f32 %v6919_v17  ;;  %v6980_v25 = vpack.c.bf16 %v6964_v39, %v6964_v39 }
 0xfd2   :  { %v13588_v6 = vpop.eup %13587 }
 0xfd3   :  { %v6963_v38 = vmul.f32 %v13588_v6, %v16009_v63  ;;  %v13590_v52 = vpop.eup %13589  ;;  %v6928_v63 = vpop.xlane.xlu0 %6927 }
 0xfd4   :  { %v6966_v56 = vmul.f32 %v13590_v52, %v16007_v53  ;;  %v6925_v49 = vpop.xlane.xlu1 %6924  ;;  %13597 = vrcp.f32 %v6928_v63 }
 0xfd5   :  { %v6979_v51 = vpack.c.bf16 %v6963_v38, %v6963_v38  ;;  %13599 = vrcp.f32 %v6925_v49 }
 0xfd6   :  { %v13592_v58 = vpop.eup %13591  ;;  %12818 = vmatmul.mubr.msk.bf16.vlgmr.msra.gmra.mrb[156].mxu1 %vm1426_vm4, %v6980_v25  ;;  %v6982_v14 = vpack.c.bf16 %v6966_v56, %v6966_v56  ;;  %v17630_v25 = vmov 0  }
 0xfd7   :  { %12828 = vmatpush3.bf16.msra.mxu1 %v7286_v60  ;;  %12812 = vmatmul.mubr.msk.bf16.vlgmr.msra.gmra.mrb[156].mxu0 %vm1426_vm4, %v6979_v51  ;;  %v6965_v13 = vmul.f32 %v13592_v58, %v16017_v29  ;;  %v13594_v46 = vpop.eup %13593  ;;  %v7334_v29 = vsel %vm1624_vm3, %v15968_v44, 0  ;;  %v7569_v62 = vpop.permute.xlu0 %7568 }
 0xfd8   :  { %12822 = vmatpush3.bf16.msra.mxu0 %v7238_v18  ;;  %12829 = vmatprep.mubr.msk.bf16.mxu1 %vm13747_vm0, %v17622_v12  ;;  %v6968_v45 = vmul.f32 %v13594_v46, %v16013_v9  ;;  %v7478_v9 = vsel %vm1624_vm3, %v16082_v42, 0  ;;  %v7574_v59 = vsel %vm1624_vm3, %v7569_v62, 0  ;;  %v7617_v11 = vpop.permute.xlu1 %7616 }
 0xfd9   :  { %12839 = vmatprep.subr.bf16.mxu1 %v17622_v12  ;;  %12823 = vmatprep.mubr.msk.bf16.mxu0 %vm13747_vm0, %v17622_v12  ;;  %v6981_v53 = vpack.c.bf16 %v6965_v13, %v6965_v13  ;;  %v7622_v34 = vsel %vm1624_vm3, %v7617_v11, 0 }
 0xfda   :  { %12833 = vmatprep.subr.bf16.mxu0 %v17622_v12  ;;  %v13596_v7 = vpop.eup %13595  ;;  %v6984_v33 = vpack.c.bf16 %v6968_v45, %v6968_v45 }
 0xfdb   :  { %v6967_v2 = vmul.f32 %v13596_v7, %v16025_v8 }
 0xfdd   :  { %v6983_v4 = vpack.c.bf16 %v6967_v2, %v6967_v2 }
 0xfde   :  { %12830 = vmatmul.mubr.msk.bf16.vlgmr.msra.gmra.mrb[160].mxu1 %vm1426_vm4, %v6982_v14  ;;  %v13598_v44 = vpop.eup %13597 }
 0xfdf   :  { %12840 = vmatpush3.bf16.msra.mxu1 %v7382_v3  ;;  %12824 = vmatmul.mubr.msk.bf16.vlgmr.msra.gmra.mrb[160].mxu0 %vm1426_vm4, %v6981_v53  ;;  %v13600_v19 = vpop.eup %13599  ;;  %v6970_v8 = vmul.f32 %v13598_v44, %v16021_v15  ;;  %v7526_v15 = vsel %vm1624_vm3, %v16084_v31, 0 }
 0xfe0   :  { %12834 = vmatpush3.bf16.msra.mxu0 %v7334_v29  ;;  %12841 = vmatprep.mubr.msk.bf16.mxu1 %vm13747_vm0, %v17622_v12  ;;  %v6969_v48 = vmul.f32 %v13600_v19, %v16031_v21 }
 0xfe1   :  { %12851 = vmatprep.subr.bf16.mxu1 %v17622_v12  ;;  %12835 = vmatprep.mubr.msk.bf16.mxu0 %vm13747_vm0, %v17622_v12  ;;  %v6986_v27 = vpack.c.bf16 %v6970_v8, %v6970_v8 }
 0xfe2   :  { %12845 = vmatprep.subr.bf16.mxu0 %v17622_v12  ;;  %v6985_v57 = vpack.c.bf16 %v6969_v48, %v6969_v48 }
 0xfe6   :  { %12842 = vmatmul.mubr.msk.bf16.vlgmr.msra.gmra.mrb[164].mxu1 %vm1426_vm4, %v6984_v33 }
 0xfe7   :  { %12852 = vmatpush3.bf16.msra.mxu1 %v7478_v9  ;;  %12836 = vmatmul.mubr.msk.bf16.vlgmr.msra.gmra.mrb[164].mxu0 %vm1426_vm4, %v6983_v4 }
 0xfe8   :  { %12846 = vmatpush3.bf16.msra.mxu0 %v7430_v43  ;;  %12853 = vmatprep.mubr.msk.bf16.mxu1 %vm13747_vm0, %v17622_v12 }
 0xfe9   :  { %12863 = vmatprep.subr.bf16.mxu1 %v17622_v12  ;;  %12847 = vmatprep.mubr.msk.bf16.mxu0 %vm13747_vm0, %v17622_v12 }
 0xfea   :  { %12857 = vmatprep.subr.bf16.mxu0 %v17622_v12 }
 0xfee   :  { %12854 = vmatmul.mubr.msk.bf16.vlgmr.msra.gmra.mrb[168].mxu1 %vm1426_vm4, %v6986_v27 }
 0xfef   :  { %12864 = vmatpush3.bf16.msra.mxu1 %v7574_v59  ;;  %12848 = vmatmul.mubr.msk.bf16.vlgmr.msra.gmra.mrb[168].mxu0 %vm1426_vm4, %v6985_v57 }
 0xff0   :  { %12858 = vmatpush3.bf16.msra.mxu0 %v7526_v15  ;;  %12865 = vmatprep.mubr.msk.bf16.mxu1 %vm13747_vm0, %v17622_v12 }
 0xff1   :  { %12859 = vmatprep.mubr.msk.bf16.mxu0 %vm13747_vm0, %v17622_v12  ;;  %12869 = vmatprep.subr.bf16.mxu0 %v17622_v12 }
 0xff2   :  { %12875 = vmatprep.subr.bf16.mxu1 %v17622_v12 }
0x1003   :  { %v6934_v21 = vpop.xlane.xlu0 %6933 }
0x1004   :  { %13601 = vrcp.f32 %v6934_v21 }
0x1008   :  { %v6931_v10 = vpop.xlane.xlu1 %6930 }
0x1009   :  { %13603 = vrcp.f32 %v6931_v10 }
0x100c   :  { %v6937_v42 = vpop.xlane.xlu1 %6936 }
0x100d   :  { %13605 = vrcp.f32 %v6937_v42 }
0x100e   :  { %v13602_v22 = vpop.eup %13601 }
0x100f   :  { %v6972_v41 = vmul.f32 %v13602_v22, %v16042_v20 }
0x1011   :  { %v6988_v31 = vpack.c.bf16 %v6972_v41, %v6972_v41 }
0x1013   :  { %v13604_v5 = vpop.eup %13603  ;;  %12866 = vmatmul.mubr.msk.bf16.vlgmr.msra.gmra.mrb[172].mxu1 %vm1426_vm4, %v6988_v31 }
0x1014   :  { %v6971_v26 = vmul.f32 %v13604_v5, %v16046_v23  ;;  %12877 = vmatprep.mubr.msk.bf16.mxu1 %vm13747_vm0, %v17622_v12 }
0x1016   :  { %v6987_v54 = vpack.c.bf16 %v6971_v26, %v6971_v26 }
0x1017   :  { %v13606_v35 = vpop.eup %13605 }
0x1018   :  { %12860 = vmatmul.mubr.msk.bf16.vlgmr.msra.gmra.mrb[172].mxu0 %vm1426_vm4, %v6987_v54  ;;  %v6973_v20 = vmul.f32 %v13606_v35, %v16050_v61 }
0x1019   :  { %12870 = vmatpush3.bf16.msra.mxu0 %v7622_v34  ;;  %12871 = vmatprep.mubr.msk.bf16.mxu0 %vm13747_vm0, %v17622_v12 }
0x101a   :  { %12881 = vmatprep.subr.bf16.mxu0 %v17622_v12  ;;  %v6989_v47 = vpack.c.bf16 %v6973_v20, %v6973_v20 }
0x1020   :  { %12872 = vmatmul.mubr.msk.bf16.vlgmr.msra.gmra.mrb[176].mxu0 %vm1426_vm4, %v6989_v47 }
0x1021   :  { %12883 = vmatprep.mubr.msk.bf16.mxu0 %vm13747_vm0, %v17622_v12 }
0x1027   :  { %v6943_v23 = vpop.xlane.xlu1 %6942 }
0x1028   :  { %13607 = vrcp.f32 %v6943_v23 }
0x102b   :  { %v7713_v30 = vpop.permute.xlu1 %7712 }
0x102c   :  { %v7718_v37 = vsel %vm1624_vm3, %v7713_v30, 0 }
0x102d   :  { %12882 = vmatpush3.bf16.msra.mxu0 %v7718_v37 }
0x1030   :  { %v6940_v39 = vpop.xlane.xlu0 %6939 }
0x1031   :  { %13609 = vrcp.f32 %v6940_v39 }
0x1032   :  { %v13608_v40 = vpop.eup %13607 }
0x1033   :  { %v6975_v17 = vmul.f32 %v13608_v40, %v16063_v24 }
0x1034   :  { %v7665_v61 = vpop.permute.xlu0 %7664 }
0x1035   :  { %v7670_v6 = vsel %vm1624_vm3, %v7665_v61, 0  ;;  %v6991_v38 = vpack.c.bf16 %v6975_v17, %v6975_v17 }
0x1036   :  { %12876 = vmatpush3.bf16.msra.mxu1 %v7670_v6 }
0x1037   :  { %12884 = vmatmul.mubr.msk.bf16.vlgmr.msra.gmra.mrb[180].mxu0 %vm1426_vm4, %v6991_v38  ;;  %12887 = vmatprep.subr.bf16.mxu1 %v17622_v12 }
0x1038   :  { %8330 = vmatprep.mubr.bf16.mxu0 %v17630_v25 }
0x103b   :  { %v13610_v52 = vpop.eup %13609 }
0x103c   :  { %v6974_v51 = vmul.f32 %v13610_v52, %v16074_v32 }
0x103e   :  { %v6990_v58 = vpack.c.bf16 %v6974_v51, %v6974_v51  ;;  %v13185_v51 = vld [vmem:[%s17549_s2 + $0x10] sm:$0xff]  }
0x1040   :  { %12878 = vmatmul.mubr.msk.bf16.vlgmr.msra.gmra.mrb[176].mxu1 %vm1426_vm4, %v6990_v58 }
0x1041   :  { %12891 = vmatprep.mubr.msk.bf16.mxu1 %vm13747_vm0, %v17622_v12  ;;  %12888 = vmatpush3.bf16.msra.mxu1 %v13185_v51  ;;  %v16211_v51 = vld [vmem:[%s17552_s5 + $0x10] sm:$0xff] }
0x1042   :  { %12889 = vmatprep.subr.bf16.mxu1 %v17622_v12 }
0x1068   :  { %v16172_v24 = vpop.f32.mrb[148].mxu1 }
0x1069   :  { %v12795_v60 = vpop.f32.mrb[149].mxu1 }
0x106a   :  { %v7037_v18 = vpop.f32.mrb[150].mxu1 }
0x106b   :  { %v12796_v56 = vpop.f32.mrb[151].mxu1 }
0x1071   :  { %v16174_v63 = vpop.f32.mrb[152].mxu0 }
0x1072   :  { %v12801_v13 = vpop.f32.mrb[153].mxu0 }
0x1073   :  { %v7085_v49 = vpop.f32.mrb[154].mxu0 }
0x1074   :  { %v12802_v14 = vpop.f32.mrb[155].mxu0 }
0x10a1   :  { %v7130_v46 = vpop.f32.mrb[152].mxu1 }
0x10a2   :  { %v12807_v53 = vpop.f32.mrb[153].mxu1 }
0x10a3   :  { %v7133_v7 = vpop.f32.mrb[154].mxu1 }
0x10a4   :  { %v12808_v32 = vpop.f32.mrb[155].mxu1 }
0x10a9   :  { %v7226_v3 = vpop.f32.mrb[156].mxu1 }
0x10aa   :  { %v7178_v29 = vpop.f32.mrb[156].mxu0  ;;  %v12819_v45 = vpop.f32.mrb[157].mxu1 }
0x10ab   :  { %v12952_v2 = vpack.i.bf16 %v7178_v29, %v7130_v46  ;;  %v12813_v33 = vpop.f32.mrb[157].mxu0  ;;  %v7229_v44 = vpop.f32.mrb[158].mxu1  ;;  %v13186_v29 = vld [vmem:[%s17549_s2 + $0x18] sm:$0xff]  }
0x10ac   :  { %v7181_v4 = vpop.f32.mrb[158].mxu0  ;;  %v12820_v19 = vpop.f32.mrb[159].mxu1  ;;  %12890 = vmatpush3.bf16.msra.mxu1 %v13186_v29 }
0x10ad   :  { %12953 = vrot.lane.b32.xlu0 %v12952_v2, %s13758_s23  ;;  %v12814_v9 = vpop.f32.mrb[159].mxu0 }
0x10b1   :  { %v7322_v43 = vpop.f32.mrb[160].mxu1 }
0x10b2   :  { %v7274_v8 = vpop.f32.mrb[160].mxu0  ;;  %v12831_v48 = vpop.f32.mrb[161].mxu1 }
0x10b3   :  { %v12957_v62 = vpack.i.bf16 %v7274_v8, %v7226_v3  ;;  %v12825_v27 = vpop.f32.mrb[161].mxu0  ;;  %v7325_v57 = vpop.f32.mrb[162].mxu1 }
0x10b4   :  { %v7277_v59 = vpop.f32.mrb[162].mxu0  ;;  %v12832_v15 = vpop.f32.mrb[163].mxu1 }
0x10b5   :  { %12958 = vrot.lane.b32.xlu1 %v12957_v62, %s13759_s24  ;;  %v12826_v21 = vpop.f32.mrb[163].mxu0 }
0x10b9   :  { %v7418_v11 = vpop.f32.mrb[164].mxu1 }
0x10ba   :  { %v7370_v10 = vpop.f32.mrb[164].mxu0  ;;  %v12843_v42 = vpop.f32.mrb[165].mxu1 }
0x10bb   :  { %v12962_v22 = vpack.i.bf16 %v7370_v10, %v7322_v43  ;;  %v12837_v41 = vpop.f32.mrb[165].mxu0  ;;  %v7421_v31 = vpop.f32.mrb[166].mxu1 }
0x10bc   :  { %v7373_v5 = vpop.f32.mrb[166].mxu0  ;;  %v12844_v26 = vpop.f32.mrb[167].mxu1 }
0x10bd   :  { %12963 = vrot.lane.b32.xlu0 %v12962_v22, %s13760_s25  ;;  %v12838_v54 = vpop.f32.mrb[167].mxu0 }
0x10c1   :  { %v7514_v35 = vpop.f32.mrb[168].mxu1 }
0x10c2   :  { %v7466_v34 = vpop.f32.mrb[168].mxu0  ;;  %v12855_v20 = vpop.f32.mrb[169].mxu1 }
0x10c3   :  { %v12967_v47 = vpack.i.bf16 %v7466_v34, %v7418_v11  ;;  %v12849_v23 = vpop.f32.mrb[169].mxu0  ;;  %v7517_v30 = vpop.f32.mrb[170].mxu1 }
0x10c4   :  { %v7469_v37 = vpop.f32.mrb[170].mxu0  ;;  %v12856_v39 = vpop.f32.mrb[171].mxu1 }
0x10c5   :  { %12968 = vrot.lane.b32.xlu1 %v12967_v47, %s13761_s26  ;;  %v12850_v40 = vpop.f32.mrb[171].mxu0 }
0x10e6   :  { %v7610_v17 = vpop.f32.mrb[172].mxu1 }
0x10e7   :  { %v12867_v61 = vpop.f32.mrb[173].mxu1 }
0x10e8   :  { %v7613_v6 = vpop.f32.mrb[174].mxu1 }
0x10e9   :  { %v12868_v38 = vpop.f32.mrb[175].mxu1 }
0x10eb   :  { %v7562_v52 = vpop.f32.mrb[172].mxu0 }
0x10ec   :  { %v12972_v58 = vpack.i.bf16 %v7562_v52, %v7514_v35  ;;  %v12861_v60 = vpop.f32.mrb[173].mxu0 }
0x10ed   :  { %v7565_v18 = vpop.f32.mrb[174].mxu0 }
0x10ee   :  { %12973 = vrot.lane.b32.xlu0 %v12972_v58, %s17631_s13  ;;  %v12862_v56 = vpop.f32.mrb[175].mxu0  ;;  %v17634_v58 = vld [vmem:[#allocation8_spill] sm:$0xff] }
0x10ef   :  { %v7834_v60 = vrot.slane %v16211_v51, %v17634_v58 }
0x10f3   :  { %v7658_v13 = vpop.f32.mrb[176].mxu0 }
0x10f4   :  { %v12977_v49 = vpack.i.bf16 %v7658_v13, %v7610_v17  ;;  %v12873_v14 = vpop.f32.mrb[177].mxu0 }
0x10f5   :  { %v7661_v46 = vpop.f32.mrb[178].mxu0 }
0x10f6   :  { %12978 = vrot.lane.b32.xlu1 %v12977_v49, %s17632_s14  ;;  %v12874_v53 = vpop.f32.mrb[179].mxu0 }
0x110a   :  { %v7754_v7 = vpop.f32.mrb[180].mxu0 }
0x110b   :  { %v12885_v32 = vpop.f32.mrb[181].mxu0 }
0x110c   :  { %v7757_v3 = vpop.f32.mrb[182].mxu0 }
0x110d   :  { %v12886_v45 = vpop.f32.mrb[183].mxu0 }
0x1113   :  { %v7706_v2 = vpop.f32.mrb[176].mxu1 }
0x1114   :  { %v12982_v33 = vpack.i.bf16 %v7754_v7, %v7706_v2  ;;  %v12879_v44 = vpop.f32.mrb[177].mxu1 }
0x1115   :  { %v7709_v12 = vpop.f32.mrb[178].mxu1 }
0x1116   :  { %v12880_v4 = vpop.f32.mrb[179].mxu1  ;;  %12983 = vrot.lane.b32.xlu0 %v12982_v33, %s17633_s17 }
0x111f   :  { %v12954_v19 = vpop.permute.xlu0 %12953 }
0x1120   :  { %v12956_v48 = vunpack.i.h.bf16 %v12954_v19  ;;  %v12955_v62 = vunpack.i.l.bf16 %v12954_v19 }
0x1122   :  { %v7817_v22 = vsel %vm659_vm2, %v16174_v63, %v12956_v48  ;;  %v7816_v41 = vsel %vm659_vm2, %v16172_v24, %v12955_v62 }
0x1127   :  { %v12959_v9 = vpop.permute.xlu1 %12958 }
0x1128   :  { %v12961_v27 = vunpack.i.h.bf16 %v12959_v9  ;;  %v12960_v57 = vunpack.i.l.bf16 %v12959_v9 }
0x112a   :  { %v7819_v26 = vsel %vm1426_vm4, %v7817_v22, %v12961_v27  ;;  %v7818_v54 = vsel %vm1426_vm4, %v7816_v41, %v12960_v57  ;;  %v11096_v27 = vld [vmem:[%s17550_s3 + $0x1e8] sm:$0xff]  ;;  %v11107_v57 = vld [vmem:[%s17550_s3 + $0x240] sm:$0xff]  ;;  %v11085_v22 = vld [vmem:[%s17550_s3 + $0x190] sm:$0xff] }
0x112f   :  { %v12964_v43 = vpop.permute.xlu0 %12963 }
0x1130   :  { %v12966_v15 = vunpack.i.h.bf16 %v12964_v43  ;;  %v12965_v21 = vunpack.i.l.bf16 %v12964_v43  ;;  %v11095_v43 = vld [vmem:[%s17550_s3 + $0x1e0] sm:$0xff] }
0x1132   :  { %v7820_v20 = vsel %vm2448_vm5, %v7818_v54, %v12965_v21  ;;  %v7821_v47 = vsel %vm2448_vm5, %v7819_v26, %v12966_v15  ;;  %v11098_v26 = vld [vmem:[%s17550_s3 + $0x1f8] sm:$0xff] }
0x1137   :  { %v12969_v8 = vpop.permute.xlu1 %12968 }
0x1138   :  { %v12971_v10 = vunpack.i.h.bf16 %v12969_v8  ;;  %v12970_v42 = vunpack.i.l.bf16 %v12969_v8  ;;  %v11084_v8 = vld [vmem:[%s17550_s3 + $0x188] sm:$0xff] }
0x1139   :  { %v11560_v15 = vcombine.low %v11084_v8, %v11096_v27  ;;  %v11561_v21 = vcombine.high %v11084_v8, %v11096_v27  ;;  %v11112_v8 = vld [vmem:[%s17550_s3 + $0x268] sm:$0xff] }
0x113a   :  { %v7822_v23 = vsel %vm2451_vm6, %v7820_v20, %v12970_v42  ;;  %v7823_v30 = vsel %vm2451_vm6, %v7821_v47, %v12971_v10  ;;  %v11108_v10 = vld [vmem:[%s17550_s3 + $0x248] sm:$0xff] }
0x113b   :  { %v11120_v42 = vld [vmem:[%s17550_s3 + $0x2a8] sm:$0xff]  ;;  %8341 = vmatprep.subr.bf16.mxu1 %v11561_v21  ;;  %v11101_v21 = vld [vmem:[%s17550_s3 + $0x210] sm:$0xff] }
0x113c   :  { %v11585_v41 = vcombine.high %v11108_v10, %v11120_v42  ;;  %v11584_v20 = vcombine.low %v11108_v10, %v11120_v42  ;;  %v11102_v10 = vld [vmem:[%s17550_s3 + $0x218] sm:$0xff] }
0x1160   :  { %v12974_v59 = vpop.permute.xlu0 %12973 }
0x1161   :  { %v12976_v31 = vunpack.i.h.bf16 %v12974_v59  ;;  %v12975_v5 = vunpack.i.l.bf16 %v12974_v59  ;;  %v11119_v59 = vld [vmem:[%s17550_s3 + $0x2a0] sm:$0xff] }
0x1162   :  { %v11582_v54 = vcombine.low %v11107_v57, %v11119_v59 }
0x1163   :  { %v7824_v37 = vsel %vm2454_vm7, %v7822_v23, %v12975_v5  ;;  %v7825_v24 = vsel %vm2454_vm7, %v7823_v30, %v12976_v31  ;;  %v11097_v31 = vld [vmem:[%s17550_s3 + $0x1f0] sm:$0xff]  ;;  %v11086_v5 = vld [vmem:[%s17550_s3 + $0x198] sm:$0xff] }
0x1164   :  { %v11563_v47 = vcombine.high %v11085_v22, %v11097_v31  ;;  %v11565_v23 = vcombine.high %v11086_v5, %v11098_v26 }
0x1168   :  { %v12979_v11 = vpop.permute.xlu1 %12978 }
0x1169   :  { %v12981_v35 = vunpack.i.h.bf16 %v12979_v11  ;;  %v12980_v34 = vunpack.i.l.bf16 %v12979_v11  ;;  %v11583_v11 = vcombine.high %v11107_v57, %v11119_v59 }
0x116b   :  { %v7826_v17 = vsel %vm2457_vm8, %v7824_v37, %v12980_v34  ;;  %v7827_v61 = vsel %vm2457_vm8, %v7825_v24, %v12981_v35  ;;  %v11562_v35 = vcombine.low %v11085_v22, %v11097_v31  ;;  %v11564_v34 = vcombine.low %v11086_v5, %v11098_v26  ;;  %v11113_v5 = vld [vmem:[%s17550_s3 + $0x270] sm:$0xff] }
0x116c   :  { %v11125_v26 = vld [vmem:[%s17550_s3 + $0x2d0] sm:$0xff] }
0x1188   :  { %v12984_v63 = vpop.permute.xlu0 %12983 }
0x1189   :  { %v12986_v39 = vunpack.i.h.bf16 %v12984_v63  ;;  %v12985_v40 = vunpack.i.l.bf16 %v12984_v63 }
0x118b   :  { %v7828_v6 = vsel %vm2460_vm9, %v7826_v17, %v12985_v40  ;;  %v7829_v38 = vsel %vm2460_vm9, %v7827_v61, %v12986_v39  ;;  %v17635_v17 = vld [vmem:[#allocation9_spill] sm:$0xff] }
0x118c   :  { %v7830_v52 = vpack.c.bf16 %v7829_v38, %v7828_v6  ;;  %v7922_v61 = vrot.slane %v16211_v51, %v17635_v17 }
0x118e   :  { %12892 = vmatmul.mubr.msk.bf16.vlgmr.msra.gmra.mrb[180].mxu1 %vm488_vm1, %v7830_v52 }
0x118f   :  { %8373 = vmatprep.mubr.bf16.mxu1 %v17630_v25  ;;  %8342 = vmatpush1.bf16.msra.mxu1 %v11560_v15  ;;  %v11089_v15 = vld [vmem:[%s17550_s3 + $0x1b0] sm:$0xff] }
0x1190   :  { %8343 = vmatprep.subr.bf16.mxu1 %v11585_v41  ;;  %v11571_v41 = vcombine.high %v11089_v15, %v11101_v21 }
0x1193   :  { %8344 = vmatpush1.bf16.msra.mxu1 %v11584_v20 }
0x1194   :  { %8427 = vmatprep.subr.bf16.mxu1 %v11565_v23 }
0x1261   :  { %v7884_v18 = vpop.f32.mrb[180].mxu1 }
0x1262   :  { %v7885_v56 = vadd.f32 %v7884_v18, %v7834_v60  ;;  %v12893_v13 = vpop.f32.mrb[181].mxu1 }
0x1263   :  { %v7887_v49 = vpop.f32.mrb[182].mxu1 }
0x1264   :  { %v7891_v14 = vadd.f32 %v7885_v56, %v15708_v55  ;;  %v7888_v46 = vadd.f32 %v7887_v49, %v7834_v60  ;;  %v12894_v53 = vpop.f32.mrb[183].mxu1  ;;  %v17636_v60 = vld [vmem:[#allocation10_spill] sm:$0xff] }
0x1265   :  { %v7928_v18 = vrot.slane %v16211_v51, %v17636_v60  ;;  %v11110_v53 = vld [vmem:[%s17550_s3 + $0x258] sm:$0xff] }
0x1266   :  { %v7892_v7 = vadd.f32 %v7888_v46, %v15710_v16  ;;  %v7893_v32 = vsel %vm488_vm1, %v7891_v14, 0.0  ;;  %v11083_v16 = vld [vmem:[%s17550_s3 + $0x180] sm:$0xff]  ;;  %v11121_v46 = vld [vmem:[%s17550_s3 + $0x2b0] sm:$0xff] }
0x1267   :  { %7894 = vadd.xlane.f32.xlu1 %v7893_v32  ;;  %v11558_v48 = vcombine.low %v11083_v16, %v11095_v43  ;;  %v11559_v62 = vcombine.high %v11083_v16, %v11095_v43  ;;  %v11111_v16 = vld [vmem:[%s17550_s3 + $0x260] sm:$0xff] }
0x1268   :  { %v7896_v3 = vsel %vm488_vm1, %v7892_v7, 0.0  ;;  %v11123_v43 = vld [vmem:[%s17550_s3 + $0x2c0] sm:$0xff] }
0x1269   :  { %7897 = vadd.xlane.f32.xlu0 %v7896_v3  ;;  %8298 = vmatprep.subr.bf16.mxu0 %v11559_v62  ;;  %v11591_v57 = vcombine.high %v11111_v16, %v11123_v43  ;;  %v11590_v42 = vcombine.low %v11111_v16, %v11123_v43 }
0x126a   :  { %8299 = vmatpush1.bf16.msra.mxu0 %v11558_v48  ;;  %v11124_v48 = vld [vmem:[%s17550_s3 + $0x2c8] sm:$0xff] }
0x126b   :  { %8300 = vmatprep.subr.bf16.mxu0 %v11583_v11  ;;  %v11593_v59 = vcombine.high %v11112_v8, %v11124_v48  ;;  %v11090_v11 = vld [vmem:[%s17550_s3 + $0x1b8] sm:$0xff]  ;;  %v11592_v22 = vcombine.low %v11112_v8, %v11124_v48 }
0x126c   :  { %v11573_v31 = vcombine.high %v11090_v11, %v11102_v10  ;;  %v11572_v20 = vcombine.low %v11090_v11, %v11102_v10  ;;  %v13191_v11 = vld [vmem:[%s17551_s4 + $0x648] sm:$0xff]  }
0x126d   :  { %v13193_v10 = vld [vmem:[%s17551_s4 + $0x608] sm:$0xff]  }
0x126e   :  { %8301 = vmatpush1.bf16.msra.mxu0 %v11582_v54  ;;  %v11114_v54 = vld [vmem:[%s17550_s3 + $0x278] sm:$0xff] }
0x126f   :  { %8384 = vmatprep.subr.bf16.mxu0 %v11563_v47  ;;  %v11595_v47 = vcombine.high %v11113_v5, %v11125_v26 }
0x12f4   :  { %v7895_v29 = vpop.xlane.xlu1 %7894 }
0x12f5   :  { %v7899_v45 = vmul.f32 0.03125, %v7895_v29 }
0x12f6   :  { %v7898_v2 = vpop.xlane.xlu0 %7897 }
0x12f7   :  { %v7901_v33 = vsub.f32 %v7891_v14, %v7899_v45  ;;  %v7900_v44 = vmul.f32 0.03125, %v7898_v2  ;;  %v11109_v14 = vld [vmem:[%s17550_s3 + $0x250] sm:$0xff]  ;;  %v11087_v2 = vld [vmem:[%s17550_s3 + $0x1a0] sm:$0xff] }
0x12f8   :  { %v11587_v29 = vcombine.high %v11109_v14, %v11121_v46 }
0x12f9   :  { %v7902_v12 = vsub.f32 %v7892_v7, %v7900_v44  ;;  %v7903_v4 = vmul.f32 %v7901_v33, %v7901_v33  ;;  %v11122_v7 = vld [vmem:[%s17550_s3 + $0x2b8] sm:$0xff]  ;;  %v11088_v44 = vld [vmem:[%s17550_s3 + $0x1a8] sm:$0xff] }
0x12fa   :  { %v11589_v45 = vcombine.high %v11110_v53, %v11122_v7 }
0x12fb   :  { %v7905_v19 = vsel %vm488_vm1, %v7903_v4, 0.0  ;;  %v7904_v55 = vmul.f32 %v7902_v12, %v7902_v12  ;;  %v11586_v4 = vcombine.low %v11109_v14, %v11121_v46 }
0x12fc   :  { %7906 = vadd.xlane.f32.xlu0 %v7905_v19  ;;  %v11588_v19 = vcombine.low %v11110_v53, %v11122_v7  ;;  %v11093_v53 = vld [vmem:[%s17550_s3 + $0x1d0] sm:$0xff] }
0x12fd   :  { %v7908_v9 = vsel %vm488_vm1, %v7904_v55, 0.0  ;;  %v11105_v7 = vld [vmem:[%s17550_s3 + $0x230] sm:$0xff] }
0x12fe   :  { %7909 = vadd.xlane.f32.xlu1 %v7908_v9  ;;  %v11578_v16 = vcombine.low %v11093_v53, %v11105_v7 }
0x1389   :  { %v7907_v30 = vpop.xlane.xlu0 %7906 }
0x138a   :  { %v7911_v63 = vmul.f32 0.03125, %v7907_v30  ;;  %v11091_v30 = vld [vmem:[%s17550_s3 + $0x1c0] sm:$0xff] }
0x138b   :  { %v7910_v37 = vpop.xlane.xlu1 %7909 }
0x138c   :  { %v7913_v24 = vadd.f32 1e-12, %v7911_v63  ;;  %v7912_v39 = vmul.f32 0.03125, %v7910_v37  ;;  %v11103_v63 = vld [vmem:[%s17550_s3 + $0x220] sm:$0xff]  ;;  %v11092_v37 = vld [vmem:[%s17550_s3 + $0x1c8] sm:$0xff] }
0x138e   :  { %13611 = vrsqrt.f32 %v7913_v24  ;;  %v7914_v40 = vadd.f32 1e-12, %v7912_v39  ;;  %v11104_v24 = vld [vmem:[%s17550_s3 + $0x228] sm:$0xff]  ;;  %v11594_v39 = vcombine.low %v11113_v5, %v11125_v26  ;;  %v13199_v5 = vld [vmem:[%s17551_s4 + $0x658] sm:$0xff]  }
0x138f   :  { %v13200_v26 = vld [vmem:[%s17551_s4 + $0x6d8] sm:$0xff]  }
0x1390   :  { %13613 = vrsqrt.f32 %v7914_v40 }
0x1398   :  { %v13612_v6 = vpop.eup %13611 }
0x1399   :  { %v7917_v38 = vmul.f32 %v13612_v6, %v7901_v33  ;;  %v11099_v33 = vld [vmem:[%s17550_s3 + $0x200] sm:$0xff]  ;;  %v11577_v6 = vcombine.high %v11092_v37, %v11104_v24 }
0x139a   :  { %v13614_v52 = vpop.eup %13613  ;;  %v11567_v55 = vcombine.high %v11087_v2, %v11099_v33  ;;  %v11566_v62 = vcombine.low %v11087_v2, %v11099_v33 }
0x139b   :  { %v7923_v56 = vmul.f32 %v7922_v61, %v7917_v38  ;;  %v7918_v13 = vmul.f32 %v13614_v52, %v7902_v12  ;;  %v11100_v12 = vld [vmem:[%s17550_s3 + $0x208] sm:$0xff]  ;;  %v11115_v38 = vld [vmem:[%s17550_s3 + $0x280] sm:$0xff] }
0x139c   :  { %v11569_v9 = vcombine.high %v11088_v44, %v11100_v12  ;;  %v11568_v27 = vcombine.low %v11088_v44, %v11100_v12  ;;  %v11127_v52 = vld [vmem:[%s17550_s3 + $0x2e0] sm:$0xff]  ;;  %v11579_v44 = vcombine.high %v11093_v53, %v11105_v7 }
0x139d   :  { %v7924_v49 = vmul.f32 %v7922_v61, %v7918_v13  ;;  %v16273_v51 = vadd.f32 %v7928_v18, %v7923_v56  ;;  %v11575_v61 = vcombine.high %v11091_v30, %v11103_v63  ;;  %v11128_v56 = vld [vmem:[%s17550_s3 + $0x2e8] sm:$0xff]  ;;  %v11574_v13 = vcombine.low %v11091_v30, %v11103_v63 }
0x139e   :  { %v11599_v14 = vcombine.high %v11115_v38, %v11127_v52  ;;  %v11598_v2 = vcombine.low %v11115_v38, %v11127_v52  ;;  %v13207_v30 = vld [vmem:[%s17551_s4 + $0x668] sm:$0xff]   ;;  %v13215_v38 = vld [vmem:[%s17551_s4 + $0x678] sm:$0xff]  }
0x139f   :  { %17637 = vst [vmem:[#allocation15_spill] sm:$0xff] %v16273_v51  ;;  %v16275_v32 = vadd.f32 %v7928_v18, %v7924_v49  ;;  %v11116_v18 = vld [vmem:[%s17550_s3 + $0x288] sm:$0xff]  ;;  %v11576_v49 = vcombine.low %v11092_v37, %v11104_v24  ;;  %v13216_v52 = vld [vmem:[%s17551_s4 + $0x6f8] sm:$0xff]  }
0x13a0   :  { %v11601_v46 = vcombine.high %v11116_v18, %v11128_v56  ;;  %v11600_v33 = vcombine.low %v11116_v18, %v11128_v56  ;;  %v13208_v63 = vld [vmem:[%s17551_s4 + $0x6e8] sm:$0xff]   ;;  %v13217_v18 = vld [vmem:[%s17551_s4 + $0x638] sm:$0xff]  }
0x13a1   :  { %17638 = vst [vmem:[#allocation16_spill] sm:$0xff] %v16275_v32  ;;  %v16279_v3 = vpack.c.bf16 %v16275_v32, %v16273_v51  ;;  %v13209_v37 = vld [vmem:[%s17551_s4 + $0x628] sm:$0xff]   ;;  %v13218_v56 = vld [vmem:[%s17551_s4 + $0x6b8] sm:$0xff]  }
0x13a2   :  { %v13210_v24 = vld [vmem:[%s17551_s4 + $0x6a8] sm:$0xff]  }
0x13a3   :  { %11606 = vmatmul.mubr.msk.bf16.vlgmr.msra.gmra.mrb[184].mxu0 %vm488_vm1, %v16279_v3  ;;  %11607 = vmatmul.mubr.msk.bf16.vlgmr.msra.gmra.mrb[184].mxu1 %vm488_vm1, %v16279_v3 }
0x13a4   :  { %8385 = vmatpush1.bf16.msra.mxu0 %v11562_v35  ;;  %8428 = vmatpush1.bf16.msra.mxu1 %v11564_v34  ;;  %v11126_v35 = vld [vmem:[%s17550_s3 + $0x2d8] sm:$0xff]  ;;  %v11570_v34 = vcombine.low %v11089_v15, %v11101_v21  ;;  %v13189_v15 = vld [vmem:[%s17551_s4 + $0x600] sm:$0xff]  }
0x13a5   :  { %8386 = vmatprep.subr.bf16.mxu0 %v11587_v29  ;;  %8429 = vmatprep.subr.bf16.mxu1 %v11589_v45  ;;  %v11597_v23 = vcombine.high %v11114_v54, %v11126_v35  ;;  %v11596_v40 = vcombine.low %v11114_v54, %v11126_v35  ;;  %v11094_v29 = vld [vmem:[%s17550_s3 + $0x1d8] sm:$0xff]  ;;  %v13190_v21 = vld [vmem:[%s17551_s4 + $0x680] sm:$0xff]  }
0x13a6   :  { %8416 = vmatprep.mubr.bf16.mxu0 %v17630_v25  ;;  %8459 = vmatprep.mubr.bf16.mxu1 %v17630_v25  ;;  %v11106_v45 = vld [vmem:[%s17550_s3 + $0x238] sm:$0xff] }
0x13a7   :  { %v11581_v12 = vcombine.high %v11094_v29, %v11106_v45  ;;  %v11580_v43 = vcombine.low %v11094_v29, %v11106_v45  ;;  %v13201_v54 = vld [vmem:[%s17551_s4 + $0x618] sm:$0xff]   ;;  %v11518_v45 = vld [vmem:[%s17553_s6 + $0x20] sm:$0xff] }
0x13a8   :  { %8387 = vmatpush1.bf16.msra.mxu0 %v11586_v4  ;;  %8430 = vmatpush1.bf16.msra.mxu1 %v11588_v19  ;;  %v11117_v4 = vld [vmem:[%s17550_s3 + $0x290] sm:$0xff]  ;;  %v13202_v35 = vld [vmem:[%s17551_s4 + $0x698] sm:$0xff]  }
0x13a9   :  { %8470 = vmatprep.subr.bf16.mxu0 %v11567_v55  ;;  %8513 = vmatprep.subr.bf16.mxu1 %v11569_v9  ;;  %v11129_v19 = vld [vmem:[%s17550_s3 + $0x2f0] sm:$0xff]  ;;  %v11118_v55 = vld [vmem:[%s17550_s3 + $0x298] sm:$0xff] }
0x13aa   :  { %v11130_v9 = vld [vmem:[%s17550_s3 + $0x2f8] sm:$0xff]  ;;  %v11603_v8 = vcombine.high %v11117_v4, %v11129_v19 }
0x13ab   :  { %11608 = vmatmul.mubr.msk.bf16.vlgmr.msra.gmra.mrb[188].mxu0 %vm488_vm1, %v16279_v3  ;;  %11609 = vmatmul.mubr.msk.bf16.vlgmr.msra.gmra.mrb[188].mxu1 %vm488_vm1, %v16279_v3  ;;  %v11605_v48 = vcombine.high %v11118_v55, %v11130_v9 }
0x13ac   :  { %8471 = vmatpush1.bf16.msra.mxu0 %v11566_v62  ;;  %8514 = vmatpush1.bf16.msra.mxu1 %v11568_v27  ;;  %v11602_v62 = vcombine.low %v11117_v4, %v11129_v19  ;;  %v11604_v27 = vcombine.low %v11118_v55, %v11130_v9 }
0x13ad   :  { %8472 = vmatprep.subr.bf16.mxu0 %v11591_v57  ;;  %8515 = vmatprep.subr.bf16.mxu1 %v11593_v59  ;;  %v13187_v57 = vld [vmem:[%s17551_s4 + $0x640] sm:$0xff]  }
0x13ae   :  { %8502 = vmatprep.mubr.bf16.mxu0 %v17630_v25  ;;  %8545 = vmatprep.mubr.bf16.mxu1 %v17630_v25  ;;  %v13188_v59 = vld [vmem:[%s17551_s4 + $0x6c0] sm:$0xff]  }
0x13b0   :  { %8473 = vmatpush1.bf16.msra.mxu0 %v11590_v42  ;;  %8516 = vmatpush1.bf16.msra.mxu1 %v11592_v22  ;;  %v13194_v42 = vld [vmem:[%s17551_s4 + $0x688] sm:$0xff]   ;;  %v13195_v22 = vld [vmem:[%s17551_s4 + $0x650] sm:$0xff]  }
0x13b1   :  { %8556 = vmatprep.subr.bf16.mxu0 %v11571_v41  ;;  %8599 = vmatprep.subr.bf16.mxu1 %v11573_v31  ;;  %v13197_v41 = vld [vmem:[%s17551_s4 + $0x610] sm:$0xff]  }
0x13b2   :  { %v13198_v31 = vld [vmem:[%s17551_s4 + $0x690] sm:$0xff]  }
0x13b3   :  { %11610 = vmatmul.mubr.msk.bf16.vlgmr.msra.gmra.mrb[192].mxu0 %vm488_vm1, %v16279_v3  ;;  %11611 = vmatmul.mubr.msk.bf16.vlgmr.msra.gmra.mrb[192].mxu1 %vm488_vm1, %v16279_v3 }
0x13b4   :  { %8557 = vmatpush1.bf16.msra.mxu0 %v11570_v34  ;;  %8600 = vmatpush1.bf16.msra.mxu1 %v11572_v20  ;;  %v13203_v34 = vld [vmem:[%s17551_s4 + $0x660] sm:$0xff]  }
0x13b5   :  { %8558 = vmatprep.subr.bf16.mxu0 %v11595_v47  ;;  %8601 = vmatprep.subr.bf16.mxu1 %v11597_v23  ;;  %v13204_v20 = vld [vmem:[%s17551_s4 + $0x6e0] sm:$0xff]  }
0x13b6   :  { %8588 = vmatprep.mubr.bf16.mxu0 %v17630_v25  ;;  %8631 = vmatprep.mubr.bf16.mxu1 %v17630_v25  ;;  %v13205_v47 = vld [vmem:[%s17551_s4 + $0x620] sm:$0xff]  }
0x13b7   :  { %v13206_v23 = vld [vmem:[%s17551_s4 + $0x6a0] sm:$0xff]  }
0x13b8   :  { %8559 = vmatpush1.bf16.msra.mxu0 %v11594_v39  ;;  %8602 = vmatpush1.bf16.msra.mxu1 %v11596_v40  ;;  %v13211_v39 = vld [vmem:[%s17551_s4 + $0x670] sm:$0xff]  }
0x13b9   :  { %8642 = vmatprep.subr.bf16.mxu0 %v11575_v61  ;;  %8685 = vmatprep.subr.bf16.mxu1 %v11577_v6  ;;  %v13212_v40 = vld [vmem:[%s17551_s4 + $0x6f0] sm:$0xff]  }
0x13ba   :  { %v13213_v61 = vld [vmem:[%s17551_s4 + $0x630] sm:$0xff]  }
0x13bb   :  { %11612 = vmatmul.mubr.msk.bf16.vlgmr.msra.gmra.mrb[196].mxu0 %vm488_vm1, %v16279_v3  ;;  %11613 = vmatmul.mubr.msk.bf16.vlgmr.msra.gmra.mrb[196].mxu1 %vm488_vm1, %v16279_v3  ;;  %v13214_v6 = vld [vmem:[%s17551_s4 + $0x6b0] sm:$0xff]  }
0x13bc   :  { %8643 = vmatpush1.bf16.msra.mxu0 %v11574_v13  ;;  %8686 = vmatpush1.bf16.msra.mxu1 %v11576_v49  ;;  %v13219_v13 = vld [vmem:[%s17551_s4 + $0x740] sm:$0xff]  }
0x13bd   :  { %8644 = vmatprep.subr.bf16.mxu0 %v11599_v14  ;;  %8687 = vmatprep.subr.bf16.mxu1 %v11601_v46  ;;  %v13220_v49 = vld [vmem:[%s17551_s4 + $0x7c0] sm:$0xff]   ;;  %v11517_v14 = vld [vmem:[%s17553_s6 + $0x18] sm:$0xff] }
0x13be   :  { %8674 = vmatprep.mubr.bf16.mxu0 %v17630_v25  ;;  %8717 = vmatprep.mubr.bf16.mxu1 %v17630_v25  ;;  %v7938_v46 = vrot.slane %v11517_v14, %v17628_v28  ;;  %v7946_v53 = vrot.slane %v11517_v14, %v17629_v0  ;;  %v7942_v7 = vrot.slane %v11517_v14, %v17626_v36 }
0x13bf   :  { %v7950_v29 = vrot.slane %v11517_v14, %v17634_v58 }
0x13c0   :  { %8645 = vmatpush1.bf16.msra.mxu0 %v11598_v2  ;;  %8688 = vmatpush1.bf16.msra.mxu1 %v11600_v33 }
0x13c1   :  { %8728 = vmatprep.subr.bf16.mxu0 %v11579_v44  ;;  %8771 = vmatprep.subr.bf16.mxu1 %v11581_v12  ;;  %v16524_v44 = vrot.slane %v11517_v14, %v17635_v17  ;;  %v16527_v12 = vrot.slane %v11517_v14, %v17623_v50 }
0x13c3   :  { %11614 = vmatmul.mubr.msk.bf16.vlgmr.msra.gmra.mrb[200].mxu0 %vm488_vm1, %v16279_v3  ;;  %11615 = vmatmul.mubr.msk.bf16.vlgmr.msra.gmra.mrb[200].mxu1 %vm488_vm1, %v16279_v3 }
0x13c4   :  { %8729 = vmatpush1.bf16.msra.mxu0 %v11578_v16  ;;  %8772 = vmatpush1.bf16.msra.mxu1 %v11580_v43  ;;  %v16532_v16 = vrot.slane %v11517_v14, %v17636_v60  ;;  %v16535_v43 = vrot.slane %v11517_v14, %v17627_v1 }
0x13c5   :  { %8730 = vmatprep.subr.bf16.mxu0 %v11603_v8  ;;  %8773 = vmatprep.subr.bf16.mxu1 %v11605_v48 }
0x13c6   :  { %8760 = vmatprep.mubr.bf16.mxu0 %v17630_v25  ;;  %8803 = vmatprep.mubr.bf16.mxu1 %v17630_v25  ;;  %v13192_v25 = vld [vmem:[%s17551_s4 + $0x6c8] sm:$0xff]  }
0x13c8   :  { %8731 = vmatpush1.bf16.msra.mxu0 %v11602_v62  ;;  %8774 = vmatpush1.bf16.msra.mxu1 %v11604_v27 }
0x13c9   :  { %12215 = vmatprep.subr.bf16.mxu0 %v13187_v57  ;;  %12237 = vmatprep.subr.bf16.mxu1 %v13188_v59  ;;  %v16540_v57 = vrot.slane %v11518_v45, %v17628_v28  ;;  %v16543_v59 = vrot.slane %v11518_v45, %v17629_v0 }
0x13cb   :  { %11616 = vmatmul.mubr.msk.bf16.vlgmr.msra.gmra.mrb[204].mxu0 %vm488_vm1, %v16279_v3  ;;  %11617 = vmatmul.mubr.msk.bf16.vlgmr.msra.gmra.mrb[204].mxu1 %vm488_vm1, %v16279_v3  ;;  %v13196_v3 = vld [vmem:[%s17551_s4 + $0x6d0] sm:$0xff]  }
0x13cc   :  { %12216 = vmatpush3.bf16.msra.mxu0 %v13189_v15  ;;  %12238 = vmatpush3.bf16.msra.mxu1 %v13190_v21 }
0x13cd   :  { %12217 = vmatprep.subr.bf16.mxu0 %v13191_v11  ;;  %12239 = vmatprep.subr.bf16.mxu1 %v13192_v25  ;;  %v16547_v11 = vrot.slane %v11518_v45, %v17626_v36  ;;  %v16550_v25 = vrot.slane %v11518_v45, %v17634_v58 }
0x13d0   :  { %12218 = vmatpush3.bf16.msra.mxu0 %v13193_v10  ;;  %12240 = vmatpush3.bf16.msra.mxu1 %v13194_v42 }
0x13d1   :  { %12219 = vmatprep.subr.bf16.mxu0 %v13195_v22  ;;  %12241 = vmatprep.subr.bf16.mxu1 %v13196_v3  ;;  %v16554_v22 = vrot.slane %v11518_v45, %v17635_v17  ;;  %v16557_v3 = vrot.slane %v11518_v45, %v17623_v50 }
0x13d4   :  { %12220 = vmatpush3.bf16.msra.mxu0 %v13197_v41  ;;  %12242 = vmatpush3.bf16.msra.mxu1 %v13198_v31  ;;  %v11519_v41 = vld [vmem:[%s17553_s6 + $0x28] sm:$0xff] }
0x13d5   :  { %12221 = vmatprep.subr.bf16.mxu0 %v13199_v5  ;;  %12243 = vmatprep.subr.bf16.mxu1 %v13200_v26 }
0x13d8   :  { %12222 = vmatpush3.bf16.msra.mxu0 %v13201_v54  ;;  %12244 = vmatpush3.bf16.msra.mxu1 %v13202_v35  ;;  %v16563_v35 = vrot.slane %v11518_v45, %v17636_v60 }
0x13d9   :  { %12223 = vmatprep.subr.bf16.mxu0 %v13203_v34  ;;  %12245 = vmatprep.subr.bf16.mxu1 %v13204_v20 }
0x13dc   :  { %12224 = vmatpush3.bf16.msra.mxu0 %v13205_v47  ;;  %12246 = vmatpush3.bf16.msra.mxu1 %v13206_v23  ;;  %v16566_v47 = vrot.slane %v11518_v45, %v17627_v1  ;;  %v16591_v45 = vrot.slane %v11519_v41, %v17636_v60 }
0x13dd   :  { %12225 = vmatprep.subr.bf16.mxu0 %v13207_v30  ;;  %12247 = vmatprep.subr.bf16.mxu1 %v13208_v63  ;;  %v16569_v30 = vrot.slane %v11519_v41, %v17628_v28  ;;  %v16572_v63 = vrot.slane %v11519_v41, %v17629_v0 }
0x13de   :  { %17641 = vst [vmem:[#allocation20_spill] sm:$0xff] %v16591_v45 }
0x13e0   :  { %12226 = vmatpush3.bf16.msra.mxu0 %v13209_v37  ;;  %12248 = vmatpush3.bf16.msra.mxu1 %v13210_v24 }
0x13e1   :  { %12227 = vmatprep.subr.bf16.mxu0 %v13211_v39  ;;  %12249 = vmatprep.subr.bf16.mxu1 %v13212_v40  ;;  %v16575_v40 = vrot.slane %v11519_v41, %v17626_v36 }
0x13e4   :  { %12228 = vmatpush3.bf16.msra.mxu0 %v13213_v61  ;;  %12250 = vmatpush3.bf16.msra.mxu1 %v13214_v6 }
0x13e5   :  { %12229 = vmatprep.subr.bf16.mxu0 %v13215_v38  ;;  %12251 = vmatprep.subr.bf16.mxu1 %v13216_v52 }
0x13e8   :  { %12230 = vmatpush3.bf16.msra.mxu0 %v13217_v18  ;;  %12252 = vmatpush3.bf16.msra.mxu1 %v13218_v56  ;;  %v16579_v18 = vrot.slane %v11519_v41, %v17634_v58 }
0x13e9   :  { %12259 = vmatprep.subr.bf16.mxu0 %v13219_v13  ;;  %12281 = vmatprep.subr.bf16.mxu1 %v13220_v49  ;;  %v16584_v49 = vrot.slane %v11519_v41, %v17635_v17 }
0x13eb   :  { %17639 = vst [vmem:[#allocation17_spill] sm:$0xff] %v16584_v49 }
0x1476   :  { %v8332_v2 = vpop.f32.mrb[184].mxu0  ;;  %v8375_v33 = vpop.f32.mrb[184].mxu1 }
0x1477   :  { %v16529_v4 = vadd.f32 %v8332_v2, %v7938_v46  ;;  %v8376_v19 = vadd.f32 %v8375_v33, %v7946_v53  ;;  %v8334_v55 = vpop.f32.mrb[185].mxu0  ;;  %v8377_v9 = vpop.f32.mrb[185].mxu1  ;;  %v16594_v2 = vrot.slane %v11519_v41, %v17627_v1 }
0x1478   :  { %v8335_v8 = vadd.f32 %v8334_v55, %v7942_v7  ;;  %v16537_v48 = vadd.f32 %v8377_v9, %v7950_v29  ;;  %v8336_v62 = vpop.f32.mrb[186].mxu0  ;;  %v8379_v27 = vpop.f32.mrb[186].mxu1 }
0x1479   :  { %v8862_v15 = vmul.f32 0.70710677, %v16529_v4  ;;  %v8864_v21 = vmul.f32 0.70710677, %v8376_v19  ;;  %v8337_v31 = vadd.f32 %v8336_v62, %v7938_v46  ;;  %v8380_v5 = vadd.f32 %v8379_v27, %v7946_v53  ;;  %v8338_v26 = vpop.f32.mrb[187].mxu0  ;;  %v8381_v54 = vpop.f32.mrb[187].mxu1 }
0x147a   :  { %v8863_v10 = vmul.f32 0.70710677, %v8335_v8  ;;  %v8865_v42 = vmul.f32 0.70710677, %v16537_v48  ;;  %v8339_v34 = vadd.f32 %v8338_v26, %v7942_v7  ;;  %v8382_v20 = vadd.f32 %v8381_v54, %v7950_v29  ;;  %17642 = vst [vmem:[#allocation19_spill] sm:$0xff] %v16594_v2 }
0x147b   :  { %13615 = verf.f32 %v8862_v15  ;;  %v8886_v23 = vmul.f32 0.70710677, %v8337_v31  ;;  %v8888_v37 = vmul.f32 0.70710677, %v8380_v5  ;;  %v16588_v7 = vrot.slane %v11519_v41, %v17623_v50 }
0x147c   :  { %13617 = verf.f32 %v8864_v21  ;;  %v8887_v24 = vmul.f32 0.70710677, %v8339_v34  ;;  %v8889_v61 = vmul.f32 0.70710677, %v8382_v20  ;;  %v8814_v17 = vmul.f32 0.5, %v16529_v4 }
0x147d   :  { %13619 = verf.f32 %v8863_v10  ;;  %17640 = vst [vmem:[#allocation18_spill] sm:$0xff] %v16588_v7  ;;  %v8816_v33 = vmul.f32 0.5, %v8376_v19  ;;  %v16597_v9 = vmul.f32 0.5, %v8335_v8  ;;  %v16605_v60 = vmul.f32 0.5, %v16537_v48 }
0x147e   :  { %13621 = verf.f32 %v8865_v42  ;;  %v8418_v39 = vpop.f32.mrb[188].mxu0  ;;  %v8461_v38 = vpop.f32.mrb[188].mxu1  ;;  %v8838_v10 = vmul.f32 0.5, %v8337_v31  ;;  %v8840_v41 = vmul.f32 0.5, %v8380_v5 }
0x147f   :  { %13623 = verf.f32 %v8886_v23  ;;  %v8419_v6 = vadd.f32 %v8418_v39, %v16524_v44  ;;  %v8420_v52 = vpop.f32.mrb[189].mxu0  ;;  %v8462_v28 = vadd.f32 %v8461_v38, %v16527_v12  ;;  %v8463_v56 = vpop.f32.mrb[189].mxu1  ;;  %v16610_v39 = vmul.f32 0.5, %v8382_v20 }
0x1480   :  { %13625 = verf.f32 %v8888_v37  ;;  %v8421_v0 = vadd.f32 %v8420_v52, %v16532_v16  ;;  %v8422_v13 = vpop.f32.mrb[190].mxu0  ;;  %v8464_v14 = vadd.f32 %v8463_v56, %v16535_v43  ;;  %v8465_v46 = vpop.f32.mrb[190].mxu1  ;;  %v16608_v37 = vmul.f32 0.5, %v8339_v34 }
0x1481   :  { %13627 = verf.f32 %v8887_v24  ;;  %v8866_v36 = vmul.f32 0.70710677, %v8419_v6  ;;  %v8424_v53 = vpop.f32.mrb[191].mxu0  ;;  %v8868_v58 = vmul.f32 0.70710677, %v8462_v28  ;;  %v8467_v29 = vpop.f32.mrb[191].mxu1  ;;  %v8423_v62 = vadd.f32 %v8422_v13, %v16524_v44 }
0x1482   :  { %13629 = verf.f32 %v8889_v61  ;;  %v8867_v55 = vmul.f32 0.70710677, %v8421_v0  ;;  %v8466_v27 = vadd.f32 %v8465_v46, %v16527_v12  ;;  %v16602_v15 = vadd.f32 %v8424_v53, %v16532_v16 }
0x1483   :  { %13631 = verf.f32 %v8866_v36  ;;  %v8869_v42 = vmul.f32 0.70710677, %v8464_v14  ;;  %v8890_v26 = vmul.f32 0.70710677, %v8423_v62  ;;  %v8468_v8 = vadd.f32 %v8467_v29, %v16535_v43 }
0x1484   :  { %13633 = verf.f32 %v8868_v58  ;;  %v8892_v16 = vmul.f32 0.70710677, %v8466_v27  ;;  %v16612_v31 = vmul.f32 0.5, %v8419_v6  ;;  %v8891_v5 = vmul.f32 0.70710677, %v16602_v15 }
0x1485   :  { %v13616_v21 = vpop.eup %13615  ;;  %13635 = verf.f32 %v8867_v55  ;;  %v16615_v52 = vmul.f32 0.5, %v8462_v28  ;;  %v16617_v56 = vmul.f32 0.5, %v8421_v0  ;;  %v16619_v34 = vmul.f32 0.5, %v8464_v14 }
0x1486   :  { %v13618_v4 = vpop.eup %13617  ;;  %v8958_v19 = vadd.f32 1.0, %v13616_v21  ;;  %v8504_v54 = vpop.f32.mrb[192].mxu0  ;;  %13637 = verf.f32 %v8890_v26  ;;  %v8893_v53 = vmul.f32 0.70710677, %v8468_v8 }
0x1487   :  { %v8547_v44 = vpop.f32.mrb[192].mxu1  ;;  %v13620_v23 = vpop.eup %13619  ;;  %v8960_v12 = vadd.f32 1.0, %v13618_v4  ;;  %13639 = verf.f32 %v8892_v16  ;;  %v8505_v14 = vadd.f32 %v8504_v54, %v16540_v57  ;;  %v8844_v54 = vmul.f32 0.5, %v8466_v27 }
0x1488   :  { %v8506_v24 = vpop.f32.mrb[193].mxu0  ;;  %v13622_v48 = vpop.eup %13621  ;;  %v16623_v46 = vmul.f32 %v8958_v19, %v8814_v17  ;;  %13641 = verf.f32 %v8869_v42  ;;  %v8959_v28 = vadd.f32 1.0, %v13620_v23  ;;  %v8548_v17 = vadd.f32 %v8547_v44, %v16543_v59 }
0x1489   :  { %v8549_v61 = vpop.f32.mrb[193].mxu1  ;;  %v8508_v38 = vpop.f32.mrb[194].mxu0  ;;  %v16627_v55 = vmul.f32 %v8960_v12, %v8816_v33  ;;  %v8961_v4 = vadd.f32 1.0, %v13622_v48  ;;  %13643 = verf.f32 %v8891_v5  ;;  %v8870_v42 = vmul.f32 0.70710677, %v8505_v14 }
0x148a   :  { %v13624_v43 = vpop.eup %13623  ;;  %v8551_v13 = vpop.f32.mrb[194].mxu1  ;;  %13645 = verf.f32 %v8893_v53  ;;  %v8842_v12 = vmul.f32 0.5, %v8423_v62  ;;  %v16649_v53 = vmul.f32 %v8959_v28, %v16597_v9  ;;  %v16652_v62 = vmul.f32 0.5, %v16602_v15 }
0x148b   :  { %v16621_v36 = vpop.f32.mrb[195].mxu0  ;;  %v13626_v20 = vpop.eup %13625  ;;  %v8982_v6 = vadd.f32 1.0, %v13624_v43  ;;  %v8507_v43 = vadd.f32 %v8506_v24, %v16547_v11  ;;  %13647 = verf.f32 %v8870_v42  ;;  %v16654_v27 = vmul.f32 0.5, %v8468_v8 }
0x148c   :  { %v16625_v58 = vpop.f32.mrb[195].mxu1  ;;  %v13628_v29 = vpop.eup %13627  ;;  %v8984_v0 = vadd.f32 1.0, %v13626_v20  ;;  %v16663_v42 = vmul.f32 0.5, %v8505_v14  ;;  %v8550_v9 = vadd.f32 %v8549_v61, %v16550_v25  ;;  %v8509_v51 = vadd.f32 %v8508_v38, %v16540_v57 }
0x148d   :  { %v13630_v21 = vpop.eup %13629  ;;  %v16630_v26 = vmul.f32 %v8982_v6, %v8838_v10  ;;  %v8983_v23 = vadd.f32 1.0, %v13628_v29  ;;  %v8872_v29 = vmul.f32 0.70710677, %v8548_v17  ;;  %v8871_v44 = vmul.f32 0.70710677, %v8507_v43 }
0x148e   :  { %v13632_v19 = vpop.eup %13631  ;;  %v16633_v16 = vmul.f32 %v8984_v0, %v8840_v41  ;;  %v16638_v20 = vpop.f32.mrb[196].mxu0  ;;  %v8985_v41 = vadd.f32 1.0, %v13630_v21  ;;  %v8552_v50 = vadd.f32 %v8551_v13, %v16543_v59  ;;  %v16681_v2 = vmul.f32 0.5, %v8548_v17 }
0x148f   :  { %v16640_v10 = vpop.f32.mrb[196].mxu1  ;;  %v13634_v48 = vpop.eup %13633  ;;  %v8962_v5 = vadd.f32 1.0, %v13632_v19  ;;  %v16661_v19 = vmul.f32 %v8961_v4, %v16605_v60  ;;  %v16671_v1 = vmul.f32 %v8983_v23, %v16608_v37  ;;  %13649 = verf.f32 %v8872_v29 }
0x1490   :  { %v16644_v6 = vpop.f32.mrb[197].mxu0  ;;  %v16646_v24 = vpop.f32.mrb[197].mxu1  ;;  %v8964_v32 = vadd.f32 1.0, %v13634_v48  ;;  %v16676_v14 = vmul.f32 %v8985_v41, %v16610_v39  ;;  %v8894_v37 = vmul.f32 0.70710677, %v8509_v51  ;;  %13651 = verf.f32 %v8871_v44 }
0x1491   :  { %v16656_v0 = vpop.f32.mrb[198].mxu0  ;;  %v16658_v33 = vpop.f32.mrb[198].mxu1  ;;  %v16679_v4 = vmul.f32 %v8962_v5, %v16612_v31  ;;  %v8873_v57 = vmul.f32 0.70710677, %v8550_v9  ;;  %v8896_v59 = vmul.f32 0.70710677, %v8552_v50  ;;  %v8511_v31 = vadd.f32 %v16621_v36, %v16547_v11 }
0x1492   :  { %v13636_v21 = vpop.eup %13635  ;;  %v16666_v28 = vpop.f32.mrb[199].mxu0  ;;  %v16686_v39 = vmul.f32 %v8964_v32, %v16615_v52  ;;  %v8554_v17 = vadd.f32 %v16625_v58, %v16550_v25  ;;  %v16700_v29 = vmul.f32 0.5, %v8507_v43  ;;  %13653 = verf.f32 %v8894_v37 }
0x1493   :  { %v16668_v15 = vpop.f32.mrb[199].mxu1  ;;  %v13638_v8 = vpop.eup %13637  ;;  %v8963_v7 = vadd.f32 1.0, %v13636_v21  ;;  %13655 = verf.f32 %v8896_v59  ;;  %v8895_v52 = vmul.f32 0.70710677, %v8511_v31  ;;  %v8591_v21 = vadd.f32 %v16638_v20, %v16554_v22 }
0x1494   :  { %v13640_v60 = vpop.eup %13639  ;;  %v8986_v61 = vadd.f32 1.0, %v13638_v8  ;;  %17643 = vst [vmem:[#allocation11_spill] sm:$0xff] %v16686_v39  ;;  %13657 = verf.f32 %v8873_v57  ;;  %v16730_v57 = vmul.f32 0.5, %v8550_v9  ;;  %v8636_v20 = vadd.f32 %v16646_v24, %v16566_v47 }
0x1495   :  { %v13642_v45 = vpop.eup %13641  ;;  %v8988_v49 = vadd.f32 1.0, %v13640_v60  ;;  %v16707_v11 = vmul.f32 %v8963_v7, %v16617_v56  ;;  %13659 = verf.f32 %v8895_v52  ;;  %v8634_v60 = vadd.f32 %v16640_v10, %v16557_v3 }
0x1496   :  { %v16683_v23 = vmul.f32 %v8986_v61, %v8842_v12  ;;  %v13644_v38 = vpop.eup %13643  ;;  %v16694_v48 = vpop.f32.mrb[200].mxu0  ;;  %v8965_v44 = vadd.f32 1.0, %v13642_v45  ;;  %v16725_v61 = vadd.f32 %v16644_v6, %v16563_v35  ;;  %v8874_v59 = vmul.f32 0.70710677, %v8591_v21 }
0x1497   :  { %v16688_v13 = vmul.f32 %v8988_v49, %v8844_v54  ;;  %v16696_v41 = vpop.f32.mrb[200].mxu1  ;;  %v13646_v12 = vpop.eup %13645  ;;  %v8987_v43 = vadd.f32 1.0, %v13644_v38  ;;  %v8897_v54 = vmul.f32 0.70710677, %v8554_v17  ;;  %v8846_v25 = vmul.f32 0.5, %v8509_v51  ;;  %v13221_v51 = vld [vmem:[%s17551_s4 + $0x700] sm:$0xff]  }
0x1498   :  { %v16702_v32 = vpop.f32.mrb[201].mxu0  ;;  %v16704_v49 = vpop.f32.mrb[201].mxu1  ;;  %v8989_v56 = vadd.f32 1.0, %v13646_v12  ;;  %v16728_v37 = vmul.f32 %v8965_v44, %v16619_v34  ;;  %v8876_v12 = vmul.f32 0.70710677, %v8634_v60  ;;  %v8848_v10 = vmul.f32 0.5, %v8552_v50 }
0x1499   :  { %17644 = vst [vmem:[#allocation12_spill] sm:$0xff] %v16688_v13  ;;  %v16711_v36 = vpop.f32.mrb[202].mxu0  ;;  %v16713_v45 = vpop.f32.mrb[202].mxu1  ;;  %13661 = verf.f32 %v8897_v54  ;;  %v16735_v52 = vmul.f32 %v8987_v43, %v16652_v62  ;;  %v16737_v5 = vmul.f32 0.5, %v8511_v31  ;;  %v8875_v6 = vmul.f32 0.70710677, %v16725_v61 }
0x149a   :  { %v13648_v58 = vpop.eup %13647  ;;  %v16717_v8 = vpop.f32.mrb[203].mxu0  ;;  %v16741_v9 = vmul.f32 %v8989_v56, %v16654_v27  ;;  %13663 = verf.f32 %v8874_v59  ;;  %v8877_v44 = vmul.f32 0.70710677, %v8636_v20  ;;  %v9055_v24 = vpack.c.bf16 %v16671_v1, %v16649_v53  ;;  %v13222_v1 = vld [vmem:[%s17551_s4 + $0x780] sm:$0xff]   ;;  %v13223_v53 = vld [vmem:[%s17551_s4 + $0x748] sm:$0xff]  }
0x149b   :  { %v16719_v7 = vpop.f32.mrb[203].mxu1  ;;  %v8966_v38 = vadd.f32 1.0, %v13648_v58  ;;  %v13650_v34 = vpop.eup %13649  ;;  %v16752_v58 = vmul.f32 0.5, %v8554_v17  ;;  %13665 = verf.f32 %v8876_v12  ;;  %v9057_v27 = vpack.c.bf16 %v16676_v14, %v16661_v19  ;;  %v13224_v14 = vld [vmem:[%s17551_s4 + $0x7c8] sm:$0xff]  }
0x149c   :  { %v13652_v31 = vpop.eup %13651  ;;  %v16758_v43 = vadd.f32 %v16656_v0, %v16554_v22  ;;  %v16773_v19 = vmul.f32 0.5, %v8591_v21  ;;  %10266 = vmatprep.mubr.bf16.mxu0 %v9055_v24  ;;  %v8638_v22 = vadd.f32 %v16658_v33, %v16557_v3  ;;  %v8597_v0 = vadd.f32 %v16666_v28, %v16563_v35 }
0x149d   :  { %v16771_v56 = vmul.f32 %v8966_v38, %v16663_v42  ;;  %v13654_v39 = vpop.eup %13653  ;;  %v8968_v42 = vadd.f32 1.0, %v13650_v34  ;;  %13667 = verf.f32 %v8875_v6  ;;  %10307 = vmatprep.mubr.bf16.mxu1 %v9057_v27  ;;  %v17645_v3 = vpack.c.bf16 %v16630_v26, %v16623_v46  ;;  %v13225_v46 = vld [vmem:[%s17551_s4 + $0x708] sm:$0xff]  }
0x149e   :  { %v16748_v62 = vpop.f32.mrb[204].mxu0  ;;  %v16750_v50 = vpop.f32.mrb[204].mxu1  ;;  %v8898_v21 = vmul.f32 0.70710677, %v16758_v43  ;;  %v8640_v35 = vadd.f32 %v16668_v15, %v16566_v47  ;;  %v8967_v24 = vadd.f32 1.0, %v13652_v31  ;;  %v8990_v13 = vadd.f32 1.0, %v13654_v39 }
0x149f   :  { %v16766_v54 = vpop.f32.mrb[205].mxu0  ;;  %v16768_v17 = vpop.f32.mrb[205].mxu1  ;;  %10267 = vmatmul.mubr.bf16.vlgmr.msra.gmra.mrb[208].mxu0 %v17645_v3  ;;  %13669 = verf.f32 %v8877_v44  ;;  %v8900_v34 = vmul.f32 0.70710677, %v8638_v22  ;;  %v17646_v6 = vpack.c.bf16 %v16633_v16, %v16627_v55  ;;  %v16802_v15 = vmul.f32 0.5, %v8634_v60  ;;  %v13226_v39 = vld [vmem:[%s17551_s4 + $0x788] sm:$0xff]  }
0x14a0   :  { %v16782_v59 = vpop.f32.mrb[206].mxu0  ;;  %v16784_v12 = vpop.f32.mrb[206].mxu1  ;;  %12260 = vmatpush3.bf16.msra.mxu0 %v13221_v51  ;;  %13671 = verf.f32 %v8898_v21  ;;  %v8899_v27 = vmul.f32 0.70710677, %v8597_v0  ;;  %v13227_v55 = vld [vmem:[%s17551_s4 + $0x750] sm:$0xff]   ;;  %v16810_v44 = vmul.f32 %v8990_v13, %v8846_v25  ;;  %v16813_v51 = vmul.f32 0.5, %v16725_v61 }
0x14a1   :  { %v16792_v33 = vpop.f32.mrb[207].mxu0  ;;  %v16794_v28 = vpop.f32.mrb[207].mxu1  ;;  %10308 = vmatmul.mubr.bf16.vlgmr.msra.gmra.mrb[208].mxu1 %v17646_v6  ;;  %12261 = vmatprep.subr.bf16.mxu0 %v13223_v53  ;;  %v16815_v60 = vmul.f32 0.5, %v8636_v20  ;;  %13673 = verf.f32 %v8900_v34  ;;  %v13228_v31 = vld [vmem:[%s17551_s4 + $0x7d0] sm:$0xff]   ;;  %v8901_v21 = vmul.f32 0.70710677, %v8640_v35  ;;  %v8677_v13 = vadd.f32 %v16694_v48, %v16569_v30 }
0x14a2   :  { %v13656_v38 = vpop.eup %13655  ;;  %12282 = vmatpush3.bf16.msra.mxu1 %v13222_v1  ;;  %v16821_v1 = vmul.f32 %v8968_v42, %v16681_v2  ;;  %v16828_v61 = vmul.f32 %v8967_v24, %v16700_v29  ;;  %v8720_v3 = vadd.f32 %v16696_v41, %v16572_v63  ;;  %v13229_v2 = vld [vmem:[%s17551_s4 + $0x710] sm:$0xff]   ;;  %13675 = verf.f32 %v8899_v27  ;;  %v13231_v41 = vld [vmem:[%s17551_s4 + $0x758] sm:$0xff]  }
0x14a3   :  { %v13658_v26 = vpop.eup %13657  ;;  %v8992_v47 = vadd.f32 1.0, %v13656_v38  ;;  %12283 = vmatprep.subr.bf16.mxu1 %v13224_v14  ;;  %v9062_v14 = vpack.c.bf16 %v16810_v44, %v16771_v56  ;;  %v8878_v29 = vmul.f32 0.70710677, %v8677_v13  ;;  %v13230_v42 = vld [vmem:[%s17551_s4 + $0x790] sm:$0xff]   ;;  %v8850_v24 = vmul.f32 0.5, %v16758_v43  ;;  %v13290_v56 = vld [vmem:[%s17551_s4 + $0x988] sm:$0xff]  }
0x14a4   :  { %v13660_v16 = vpop.eup %13659  ;;  %v8969_v20 = vadd.f32 1.0, %v13658_v26  ;;  %12262 = vmatpush3.bf16.msra.mxu0 %v13225_v46  ;;  %v8852_v34 = vmul.f32 0.5, %v8638_v22  ;;  %v16846_v6 = vmul.f32 0.5, %v8597_v0  ;;  %v8880_v46 = vmul.f32 0.70710677, %v8720_v3  ;;  %v13232_v26 = vld [vmem:[%s17551_s4 + $0x7d8] sm:$0xff]  }
0x14a5   :  { %v16823_v53 = vmul.f32 %v8992_v47, %v8848_v10  ;;  %v13662_v25 = vpop.eup %13661  ;;  %v8991_v48 = vadd.f32 1.0, %v13660_v16  ;;  %12263 = vmatprep.subr.bf16.mxu0 %v13227_v55  ;;  %13677 = verf.f32 %v8901_v21  ;;  %v16855_v55 = vadd.f32 %v16704_v49, %v16579_v18  ;;  %v13233_v16 = vld [vmem:[%s17551_s4 + $0x718] sm:$0xff]   ;;  %v13291_v44 = vld [vmem:[%s17551_s4 + $0x950] sm:$0xff]  }
0x14a6   :  { %12284 = vmatpush3.bf16.msra.mxu1 %v13226_v39  ;;  %v13664_v38 = vpop.eup %13663  ;;  %v8993_v27 = vadd.f32 1.0, %v13662_v25  ;;  %v8679_v39 = vadd.f32 %v16702_v32, %v16575_v40  ;;  %v16858_v43 = vmul.f32 %v8969_v20, %v16730_v57  ;;  %v16860_v22 = vmul.f32 0.5, %v8640_v35  ;;  %v13234_v57 = vld [vmem:[%s17551_s4 + $0x798] sm:$0xff]  }
0x14a7   :  { %v9064_v10 = vpack.c.bf16 %v16823_v53, %v16821_v1  ;;  %12285 = vmatprep.subr.bf16.mxu1 %v13228_v31  ;;  %v13666_v47 = vpop.eup %13665  ;;  %13679 = verf.f32 %v8878_v29  ;;  %v9059_v0 = vpack.c.bf16 %v16735_v52, %v16707_v11  ;;  %v16868_v32 = vmul.f32 %v8991_v48, %v16737_v5  ;;  %v13235_v11 = vld [vmem:[%s17551_s4 + $0x760] sm:$0xff]   ;;  %v13292_v1 = vld [vmem:[%s17551_s4 + $0x9d0] sm:$0xff]  }
0x14a8   :  { %12264 = vmatpush3.bf16.msra.mxu0 %v13229_v2  ;;  %v13668_v31 = vpop.eup %13667  ;;  %v8970_v49 = vadd.f32 1.0, %v13664_v38  ;;  %13681 = verf.f32 %v8880_v46  ;;  %v8879_v21 = vmul.f32 0.70710677, %v8679_v39  ;;  %v8972_v35 = vadd.f32 1.0, %v13666_v47  ;;  %v13236_v2 = vld [vmem:[%s17551_s4 + $0x7e0] sm:$0xff]   ;;  %v13293_v53 = vld [vmem:[%s17551_s4 + $0x910] sm:$0xff]  }
0x14a9   :  { %12265 = vmatprep.subr.bf16.mxu0 %v13231_v41  ;;  %v13670_v52 = vpop.eup %13669  ;;  %v16876_v25 = vmul.f32 0.5, %v8677_v13  ;;  %v8881_v5 = vmul.f32 0.70710677, %v16855_v55  ;;  %10348 = vmatprep.mubr.bf16.mxu0 %v9059_v0  ;;  %v9061_v20 = vpack.c.bf16 %v16741_v9, %v16728_v37  ;;  %v16885_v29 = vmul.f32 %v8993_v27, %v16752_v58  ;;  %v13237_v58 = vld [vmem:[%s17551_s4 + $0x720] sm:$0xff]  }
0x14aa   :  { %12286 = vmatpush3.bf16.msra.mxu1 %v13230_v42  ;;  %v13672_v48 = vpop.eup %13671  ;;  %13683 = verf.f32 %v8879_v21  ;;  %v8681_v13 = vadd.f32 %v16711_v36, %v16569_v30  ;;  %v8724_v42 = vadd.f32 %v16713_v45, %v16572_v63  ;;  %v8971_v38 = vadd.f32 1.0, %v13668_v31  ;;  %v13239_v45 = vld [vmem:[%s17551_s4 + $0x768] sm:$0xff]  }
0x14ab   :  { %12287 = vmatprep.subr.bf16.mxu1 %v13232_v26  ;;  %v13674_v41 = vpop.eup %13673  ;;  %v8994_v46 = vadd.f32 1.0, %v13672_v48  ;;  %v16891_v37 = vmul.f32 0.5, %v8720_v3  ;;  %10389 = vmatprep.mubr.bf16.mxu1 %v9061_v20  ;;  %v8683_v9 = vadd.f32 %v16717_v8, %v16575_v40  ;;  %v16899_v26 = vmul.f32 %v8970_v49, %v16773_v19  ;;  %v13238_v40 = vld [vmem:[%s17551_s4 + $0x7a0] sm:$0xff]   ;;  %v13241_v31 = vld [vmem:[%s17551_s4 + $0x728] sm:$0xff]  }
0x14ac   :  { %12266 = vmatpush3.bf16.msra.mxu0 %v13233_v16  ;;  %v8996_v30 = vadd.f32 1.0, %v13674_v41  ;;  %v8902_v36 = vmul.f32 0.70710677, %v8681_v13  ;;  %v16903_v63 = vadd.f32 %v16719_v7, %v16579_v18  ;;  %v16912_v8 = vmul.f32 %v8972_v35, %v16802_v15  ;;  %v13240_v18 = vld [vmem:[%s17551_s4 + $0x7e8] sm:$0xff]   ;;  %v13676_v7 = vpop.eup %13675  ;;  %v17647_v35 = vld [vmem:[#allocation17_spill] sm:$0xff] }
0x14ad   :  { %12267 = vmatprep.subr.bf16.mxu0 %v13235_v11  ;;  %v16914_v19 = vmul.f32 %v8994_v46, %v8850_v24  ;;  %13685 = verf.f32 %v8881_v5  ;;  %v8904_v3 = vmul.f32 0.70710677, %v8724_v42  ;;  %v8973_v47 = vadd.f32 1.0, %v13670_v52  ;;  %v13244_v41 = vld [vmem:[%s17551_s4 + $0x7f0] sm:$0xff]  }
0x14ae   :  { %12288 = vmatpush3.bf16.msra.mxu1 %v13234_v57  ;;  %v16919_v27 = vmul.f32 %v8996_v30, %v8852_v34  ;;  %13687 = verf.f32 %v8902_v36  ;;  %v8903_v0 = vmul.f32 0.70710677, %v8683_v9  ;;  %v16922_v16 = vmul.f32 %v8971_v38, %v16813_v51  ;;  %v13243_v57 = vld [vmem:[%s17551_s4 + $0x770] sm:$0xff]  }
0x14af   :  { %12289 = vmatprep.subr.bf16.mxu1 %v13236_v2  ;;  %v9066_v15 = vpack.c.bf16 %v16914_v19, %v16899_v26  ;;  %v16926_v24 = vmul.f32 0.5, %v8679_v39  ;;  %13689 = verf.f32 %v8904_v3  ;;  %v13678_v49 = vpop.eup %13677  ;;  %v16934_v21 = vmul.f32 0.5, %v16855_v55  ;;  %v13242_v39 = vld [vmem:[%s17551_s4 + $0x7a8] sm:$0xff]   ;;  %v17648_v55 = vld [vmem:[#allocation18_spill] sm:$0xff]  ;;  %v13246_v30 = vld [vmem:[%s17551_s4 + $0x7b0] sm:$0xff]  }
0x14b0   :  { %12268 = vmatpush3.bf16.msra.mxu0 %v13237_v58  ;;  %v9068_v34 = vpack.c.bf16 %v16919_v27, %v16912_v8  ;;  %13691 = verf.f32 %v8903_v0  ;;  %v8905_v51 = vmul.f32 0.70710677, %v16903_v63  ;;  %v8995_v52 = vadd.f32 1.0, %v13676_v7  ;;  %v17649_v2 = vld [vmem:[#allocation20_spill] sm:$0xff]  ;;  %v13323_v19 = vld [vmem:[%s17551_s4 + $0xa50] sm:$0xff]  }
0x14b1   :  { %12269 = vmatprep.subr.bf16.mxu0 %v13239_v45  ;;  %v13680_v11 = vpop.eup %13679  ;;  %v16945_v5 = vadd.f32 %v16748_v62, %v17647_v35  ;;  %v16949_v20 = vadd.f32 %v16750_v50, %v17648_v55  ;;  %v16953_v48 = vadd.f32 %v16766_v54, %v17649_v2  ;;  %v16959_v46 = vmul.f32 %v8973_v47, %v16815_v60  ;;  %v17650_v62 = vld [vmem:[#allocation19_spill] sm:$0xff]  ;;  %v13245_v54 = vld [vmem:[%s17551_s4 + $0x730] sm:$0xff]   ;;  %v13322_v26 = vld [vmem:[%s17551_s4 + $0xa88] sm:$0xff]  }
0x14b2   :  { %12290 = vmatpush3.bf16.msra.mxu1 %v13238_v40  ;;  %v13682_v38 = vpop.eup %13681  ;;  %13693 = verf.f32 %v8905_v51  ;;  %v16963_v58 = vadd.f32 %v16768_v17, %v17650_v62  ;;  %v16967_v50 = vadd.f32 %v16782_v59, %v17647_v35  ;;  %v8997_v36 = vadd.f32 1.0, %v13678_v49  ;;  %v13247_v17 = vld [vmem:[%s17551_s4 + $0x778] sm:$0xff]   ;;  %v13324_v8 = vld [vmem:[%s17551_s4 + $0xad0] sm:$0xff]  }
0x14b3   :  { %12291 = vmatprep.subr.bf16.mxu1 %v13240_v18  ;;  %v8854_v60 = vmul.f32 0.5, %v8681_v13  ;;  %v8856_v40 = vmul.f32 0.5, %v8724_v42  ;;  %v8882_v45 = vmul.f32 0.70710677, %v16945_v5  ;;  %v8974_v3 = vadd.f32 1.0, %v13680_v11  ;;  %v13325_v27 = vld [vmem:[%s17551_s4 + $0xa10] sm:$0xff]  }
0x14b4   :  { %12270 = vmatpush3.bf16.msra.mxu0 %v13241_v31  ;;  %v13684_v59 = vpop.eup %13683  ;;  %v8855_v18 = vmul.f32 0.5, %v8683_v9  ;;  %v8884_v7 = vmul.f32 0.70710677, %v16949_v20  ;;  %v8883_v47 = vmul.f32 0.70710677, %v16953_v48  ;;  %v16982_v0 = vmul.f32 %v8995_v52, %v16846_v6  ;;  %v13248_v31 = vld [vmem:[%s17551_s4 + $0x7f8] sm:$0xff]  }
0x14b5   :  { %12271 = vmatprep.subr.bf16.mxu0 %v13243_v57  ;;  %v8976_v13 = vadd.f32 1.0, %v13682_v38  ;;  %13695 = verf.f32 %v8882_v45  ;;  %v8885_v42 = vmul.f32 0.70710677, %v16963_v58  ;;  %v8975_v49 = vadd.f32 1.0, %v13684_v59  ;;  %v13252_v38 = vld [vmem:[%s17551_s4 + $0x8c0] sm:$0xff]  }
0x14b6   :  { %12292 = vmatpush3.bf16.msra.mxu1 %v13242_v39  ;;  %v8857_v9 = vmul.f32 0.5, %v16903_v63  ;;  %13697 = verf.f32 %v8884_v7  ;;  %v8906_v51 = vmul.f32 0.70710677, %v16967_v50  ;;  %v16991_v57 = vmul.f32 %v8997_v36, %v16860_v22  ;;  %v13249_v63 = vld [vmem:[%s17551_s4 + $0x738] sm:$0xff]  }
0x14b7   :  { %12293 = vmatprep.subr.bf16.mxu1 %v13244_v41  ;;  %v13686_v39 = vpop.eup %13685  ;;  %13699 = verf.f32 %v8883_v47  ;;  %v16995_v6 = vadd.f32 %v16784_v12, %v17648_v55  ;;  %v16999_v11 = vadd.f32 %v16792_v33, %v17649_v2  ;;  %v17005_v35 = vmul.f32 %v8974_v3, %v16876_v25  ;;  %v13250_v12 = vld [vmem:[%s17551_s4 + $0x7b8] sm:$0xff]   ;;  %v13251_v33 = vld [vmem:[%s17551_s4 + $0x840] sm:$0xff]  }
0x14b8   :  { %12272 = vmatpush3.bf16.msra.mxu0 %v13245_v54  ;;  %v13688_v52 = vpop.eup %13687  ;;  %13701 = verf.f32 %v8885_v42  ;;  %v17009_v22 = vadd.f32 %v16794_v28, %v17650_v62  ;;  %v9063_v55 = vpack.c.bf16 %v16868_v32, %v16828_v61  ;;  %v17020_v2 = vmul.f32 %v8976_v13, %v16891_v37  ;;  %v13255_v42 = vld [vmem:[%s17551_s4 + $0x848] sm:$0xff]  }
0x14b9   :  { %12273 = vmatprep.subr.bf16.mxu0 %v13247_v17  ;;  %v13690_v25 = vpop.eup %13689  ;;  %v8998_v41 = vadd.f32 1.0, %v13688_v52  ;;  %13703 = verf.f32 %v8906_v51  ;;  %v8908_v28 = vmul.f32 0.70710677, %v16995_v6  ;;  %v17027_v54 = vmul.f32 %v8975_v49, %v16926_v24  ;;  %v13253_v17 = vld [vmem:[%s17551_s4 + $0x800] sm:$0xff]  }
0x14ba   :  { %12294 = vmatpush3.bf16.msra.mxu1 %v13246_v30  ;;  %v13692_v62 = vpop.eup %13691  ;;  %v8977_v30 = vadd.f32 1.0, %v13686_v39  ;;  %v9000_v36 = vadd.f32 1.0, %v13690_v25  ;;  %v8907_v61 = vmul.f32 0.70710677, %v16999_v11  ;;  %v8909_v45 = vmul.f32 0.70710677, %v17009_v22 }
0x14bb   :  { %12295 = vmatprep.subr.bf16.mxu1 %v13248_v31  ;;  %v17030_v32 = vmul.f32 %v8998_v41, %v8854_v60  ;;  %v8999_v37 = vadd.f32 1.0, %v13692_v62  ;;  %13705 = verf.f32 %v8908_v28  ;;  %v13254_v24 = vld [vmem:[%s17551_s4 + $0x880] sm:$0xff]   ;;  %v9065_v60 = vpack.c.bf16 %v16885_v29, %v16858_v43  ;;  %v13256_v29 = vld [vmem:[%s17551_s4 + $0x8c8] sm:$0xff]   ;;  %v13260_v41 = vld [vmem:[%s17551_s4 + $0x8d0] sm:$0xff]  }
0x14bc   :  { %12274 = vmatpush3.bf16.msra.mxu0 %v13249_v63  ;;  %v13694_v59 = vpop.eup %13693  ;;  %v17036_v3 = vmul.f32 %v9000_v36, %v8856_v40  ;;  %13707 = verf.f32 %v8907_v61  ;;  %v9067_v7 = vpack.c.bf16 %v16982_v0, %v16922_v16  ;;  %v17651_v43 = vpack.c.bf16 %v16683_v23, %v16679_v4  ;;  %v17652_v63 = vld [vmem:[#allocation12_spill] sm:$0xff]  ;;  %v17653_v52 = vld [vmem:[#allocation11_spill] sm:$0xff]  ;;  %v13296_v16 = vld [vmem:[%s17551_s4 + $0x9d8] sm:$0xff]  }
0x14bd   :  { %12303 = vmatprep.subr.bf16.mxu0 %v13251_v33  ;;  %v9070_v47 = vpack.c.bf16 %v17030_v32, %v17005_v35  ;;  %v17047_v13 = vmul.f32 %v8999_v37, %v8855_v18  ;;  %v9001_v40 = vadd.f32 1.0, %v13694_v59  ;;  %13709 = verf.f32 %v8909_v45  ;;  %v13257_v4 = vld [vmem:[%s17551_s4 + $0x808] sm:$0xff]   ;;  %v13263_v59 = vld [vmem:[%s17551_s4 + $0x858] sm:$0xff]   ;;  %v13355_v32 = vld [vmem:[%s17551_s4 + $0xb50] sm:$0xff]  }
0x14be   :  { %12296 = vmatpush3.bf16.msra.mxu1 %v13250_v12  ;;  %v9072_v31 = vpack.c.bf16 %v17036_v3, %v17020_v2  ;;  %v9069_v18 = vpack.c.bf16 %v16991_v57, %v16959_v46  ;;  %v17063_v51 = vmul.f32 %v8977_v30, %v16934_v21  ;;  %v17654_v12 = vpack.c.bf16 %v17652_v63, %v17653_v52  ;;  %v13258_v21 = vld [vmem:[%s17551_s4 + $0x888] sm:$0xff]   ;;  %v13261_v30 = vld [vmem:[%s17551_s4 + $0x810] sm:$0xff]   ;;  %v13297_v46 = vld [vmem:[%s17551_s4 + $0x918] sm:$0xff]  }
0x14bf   :  { %12325 = vmatprep.subr.bf16.mxu1 %v13252_v38  ;;  %10349 = vmatmul.mubr.bf16.vlgmr.msra.gmra.mrb[212].mxu0 %v17651_v43  ;;  %v13696_v49 = vpop.eup %13695  ;;  %v17065_v39 = vmul.f32 %v9001_v40, %v8857_v9  ;;  %v9071_v23 = vpack.c.bf16 %v17047_v13, %v17027_v54  ;;  %v13259_v9 = vld [vmem:[%s17551_s4 + $0x850] sm:$0xff]   ;;  %v8834_v36 = vmul.f32 0.5, %v16945_v5  ;;  %v8858_v37 = vmul.f32 0.5, %v16967_v50  ;;  %v13264_v50 = vld [vmem:[%s17551_s4 + $0x8d8] sm:$0xff]   ;;  %v13299_v57 = vld [vmem:[%s17551_s4 + $0x960] sm:$0xff]  }
0x14c0   :  { %12304 = vmatpush3.bf16.msra.mxu0 %v13253_v17  ;;  %v13698_v33 = vpop.eup %13697  ;;  %10430 = vmatprep.mubr.bf16.mxu0 %v9063_v55  ;;  %v8978_v38 = vadd.f32 1.0, %v13696_v49  ;;  %v13262_v17 = vld [vmem:[%s17551_s4 + $0x890] sm:$0xff]   ;;  %v8835_v40 = vmul.f32 0.5, %v16953_v48  ;;  %v8859_v48 = vmul.f32 0.5, %v16999_v11  ;;  %v13267_v11 = vld [vmem:[%s17551_s4 + $0x860] sm:$0xff]   ;;  %v13298_v0 = vld [vmem:[%s17551_s4 + $0x998] sm:$0xff]  }
0x14c1   :  { %10390 = vmatmul.mubr.bf16.vlgmr.msra.gmra.mrb[212].mxu1 %v17654_v12  ;;  %v13700_v25 = vpop.eup %13699  ;;  %12305 = vmatprep.subr.bf16.mxu0 %v13255_v42  ;;  %v9073_v28 = vpack.c.bf16 %v17065_v39, %v17063_v51  ;;  %v8980_v61 = vadd.f32 1.0, %v13698_v33  ;;  %v8860_v42 = vmul.f32 0.5, %v16995_v6  ;;  %v8861_v6 = vmul.f32 0.5, %v17009_v22  ;;  %v13265_v33 = vld [vmem:[%s17551_s4 + $0x818] sm:$0xff]   ;;  %v13331_v39 = vld [vmem:[%s17551_s4 + $0xa60] sm:$0xff]   ;;  %v13354_v35 = vld [vmem:[%s17551_s4 + $0xb88] sm:$0xff]  }
0x14c2   :  { %12326 = vmatpush3.bf16.msra.mxu1 %v13254_v24  ;;  %10471 = vmatprep.mubr.bf16.mxu1 %v9065_v60  ;;  %v13702_v55 = vpop.eup %13701  ;;  %v8836_v60 = vmul.f32 0.5, %v16949_v20  ;;  %v8979_v5 = vadd.f32 1.0, %v13700_v25  ;;  %v8837_v20 = vmul.f32 0.5, %v16963_v58  ;;  %v13266_v58 = vld [vmem:[%s17551_s4 + $0x898] sm:$0xff]   ;;  %v13356_v2 = vld [vmem:[%s17551_s4 + $0xbd0] sm:$0xff]  }
0x14c3   :  { %12327 = vmatprep.subr.bf16.mxu1 %v13256_v29  ;;  %v13704_v62 = vpop.eup %13703  ;;  %v17103_v29 = vmul.f32 %v8978_v38, %v8834_v36  ;;  %v8981_v49 = vadd.f32 1.0, %v13702_v55  ;;  %v13268_v38 = vld [vmem:[%s17551_s4 + $0x8e0] sm:$0xff]   ;;  %v13328_v54 = vld [vmem:[%s17551_s4 + $0xad8] sm:$0xff]   ;;  %v13357_v3 = vld [vmem:[%s17551_s4 + $0xb10] sm:$0xff]  }
0x14c4   :  { %12306 = vmatpush3.bf16.msra.mxu0 %v13257_v4  ;;  %v9002_v45 = vadd.f32 1.0, %v13704_v62  ;;  %v17125_v22 = vmul.f32 %v8979_v5, %v8835_v40  ;;  %v13274_v40 = vld [vmem:[%s17551_s4 + $0x8a8] sm:$0xff]   ;;  %v13275_v5 = vld [vmem:[%s17551_s4 + $0x870] sm:$0xff]   ;;  %v13329_v13 = vld [vmem:[%s17551_s4 + $0xa18] sm:$0xff]  }
0x14c5   :  { %12307 = vmatprep.subr.bf16.mxu0 %v13259_v9  ;;  %v13706_v24 = vpop.eup %13705  ;;  %v17132_v62 = vmul.f32 %v8981_v49, %v8837_v20  ;;  %v13279_v49 = vld [vmem:[%s17551_s4 + $0x878] sm:$0xff]  }
0x14c6   :  { %12328 = vmatpush3.bf16.msra.mxu1 %v13258_v21  ;;  %v13708_v43 = vpop.eup %13707  ;;  %v17105_v63 = vmul.f32 %v9002_v45, %v8858_v37  ;;  %v9004_v52 = vadd.f32 1.0, %v13706_v24  ;;  %v17113_v21 = vmul.f32 %v8980_v61, %v8836_v60  ;;  %v13269_v61 = vld [vmem:[%s17551_s4 + $0x820] sm:$0xff]   ;;  %v13272_v24 = vld [vmem:[%s17551_s4 + $0x8e8] sm:$0xff]   ;;  %v13282_v20 = vld [vmem:[%s17551_s4 + $0x8b8] sm:$0xff]  }
0x14c7   :  { %12329 = vmatprep.subr.bf16.mxu1 %v13260_v41  ;;  %v13710_v12 = vpop.eup %13709  ;;  %v9003_v4 = vadd.f32 1.0, %v13708_v43  ;;  %v13270_v45 = vld [vmem:[%s17551_s4 + $0x8a0] sm:$0xff]   ;;  %v13273_v60 = vld [vmem:[%s17551_s4 + $0x828] sm:$0xff]   ;;  %v13278_v43 = vld [vmem:[%s17551_s4 + $0x8b0] sm:$0xff]  }
0x14c8   :  { %12308 = vmatpush3.bf16.msra.mxu0 %v13261_v30  ;;  %v9074_v9 = vpack.c.bf16 %v17105_v63, %v17103_v29  ;;  %v17117_v25 = vmul.f32 %v9004_v52, %v8860_v42  ;;  %v9005_v41 = vadd.f32 1.0, %v13710_v12  ;;  %v13276_v42 = vld [vmem:[%s17551_s4 + $0x8f0] sm:$0xff]   ;;  %v13280_v52 = vld [vmem:[%s17551_s4 + $0x8f8] sm:$0xff]  }
0x14c9   :  { %12309 = vmatprep.subr.bf16.mxu0 %v13263_v59  ;;  %v17127_v55 = vmul.f32 %v9003_v4, %v8859_v48  ;;  %v13281_v12 = vld [vmem:[%s17551_s4 + $0x838] sm:$0xff]   ;;  %v13283_v48 = vld [vmem:[%s17551_s4 + $0x940] sm:$0xff]  }
0x14ca   :  { %12330 = vmatpush3.bf16.msra.mxu1 %v13262_v17  ;;  %v9076_v30 = vpack.c.bf16 %v17117_v25, %v17113_v21  ;;  %v17136_v36 = vmul.f32 %v9005_v41, %v8861_v6  ;;  %v13271_v17 = vld [vmem:[%s17551_s4 + $0x868] sm:$0xff]   ;;  %v13284_v4 = vld [vmem:[%s17551_s4 + $0x9c0] sm:$0xff]   ;;  %v13330_v51 = vld [vmem:[%s17551_s4 + $0xa98] sm:$0xff]  }
0x14cb   :  { %12331 = vmatprep.subr.bf16.mxu1 %v13264_v50  ;;  %v9075_v37 = vpack.c.bf16 %v17127_v55, %v17125_v22  ;;  %v13277_v50 = vld [vmem:[%s17551_s4 + $0x830] sm:$0xff]   ;;  %v13285_v6 = vld [vmem:[%s17551_s4 + $0x900] sm:$0xff]   ;;  %v13287_v41 = vld [vmem:[%s17551_s4 + $0x948] sm:$0xff]  }
0x14cc   :  { %12310 = vmatpush3.bf16.msra.mxu0 %v13265_v33  ;;  %v9077_v59 = vpack.c.bf16 %v17136_v36, %v17132_v62  ;;  %v13286_v33 = vld [vmem:[%s17551_s4 + $0x980] sm:$0xff]   ;;  %v13360_v22 = vld [vmem:[%s17551_s4 + $0xbd8] sm:$0xff]  }
0x14cd   :  { %12311 = vmatprep.subr.bf16.mxu0 %v13267_v11  ;;  %v13289_v11 = vld [vmem:[%s17551_s4 + $0x908] sm:$0xff]   ;;  %v13361_v55 = vld [vmem:[%s17551_s4 + $0xb18] sm:$0xff]   ;;  %v13363_v36 = vld [vmem:[%s17551_s4 + $0xb60] sm:$0xff]  }
0x14ce   :  { %12332 = vmatpush3.bf16.msra.mxu1 %v13266_v58  ;;  %v13288_v58 = vld [vmem:[%s17551_s4 + $0x9c8] sm:$0xff]   ;;  %v13362_v62 = vld [vmem:[%s17551_s4 + $0xb98] sm:$0xff]  }
0x14cf   :  { %12333 = vmatprep.subr.bf16.mxu1 %v13268_v38  ;;  %v13302_v38 = vld [vmem:[%s17551_s4 + $0x9a0] sm:$0xff]  }
0x14d0   :  { %12312 = vmatpush3.bf16.msra.mxu0 %v13269_v61  ;;  %v13303_v61 = vld [vmem:[%s17551_s4 + $0x968] sm:$0xff]  }
0x14d1   :  { %12313 = vmatprep.subr.bf16.mxu0 %v13271_v17  ;;  %v13305_v17 = vld [vmem:[%s17551_s4 + $0x928] sm:$0xff]  }
0x14d2   :  { %12334 = vmatpush3.bf16.msra.mxu1 %v13270_v45  ;;  %v13304_v45 = vld [vmem:[%s17551_s4 + $0x9e8] sm:$0xff]  }
0x14d3   :  { %12335 = vmatprep.subr.bf16.mxu1 %v13272_v24  ;;  %v13306_v24 = vld [vmem:[%s17551_s4 + $0x9a8] sm:$0xff]  }
0x14d4   :  { %12314 = vmatpush3.bf16.msra.mxu0 %v13273_v60  ;;  %v13307_v60 = vld [vmem:[%s17551_s4 + $0x970] sm:$0xff]  }
0x14d5   :  { %12315 = vmatprep.subr.bf16.mxu0 %v13275_v5  ;;  %v13309_v5 = vld [vmem:[%s17551_s4 + $0x930] sm:$0xff]  }
0x14d6   :  { %12336 = vmatpush3.bf16.msra.mxu1 %v13274_v40  ;;  %v13308_v40 = vld [vmem:[%s17551_s4 + $0x9f0] sm:$0xff]  }
0x14d7   :  { %12337 = vmatprep.subr.bf16.mxu1 %v13276_v42  ;;  %v13310_v42 = vld [vmem:[%s17551_s4 + $0x9b0] sm:$0xff]  }
0x14d8   :  { %12316 = vmatpush3.bf16.msra.mxu0 %v13277_v50  ;;  %v13311_v50 = vld [vmem:[%s17551_s4 + $0x978] sm:$0xff]  }
0x14d9   :  { %12317 = vmatprep.subr.bf16.mxu0 %v13279_v49  ;;  %v13313_v49 = vld [vmem:[%s17551_s4 + $0x938] sm:$0xff]  }
0x14da   :  { %12338 = vmatpush3.bf16.msra.mxu1 %v13278_v43  ;;  %v13312_v43 = vld [vmem:[%s17551_s4 + $0x9f8] sm:$0xff]  }
0x14db   :  { %12339 = vmatprep.subr.bf16.mxu1 %v13280_v52  ;;  %v13314_v52 = vld [vmem:[%s17551_s4 + $0x9b8] sm:$0xff]  }
0x14dc   :  { %12318 = vmatpush3.bf16.msra.mxu0 %v13281_v12  ;;  %v13315_v12 = vld [vmem:[%s17551_s4 + $0xa40] sm:$0xff]  }
0x14dd   :  { %12347 = vmatprep.subr.bf16.mxu0 %v13283_v48  ;;  %v13317_v48 = vld [vmem:[%s17551_s4 + $0xa00] sm:$0xff]  }
0x14de   :  { %12340 = vmatpush3.bf16.msra.mxu1 %v13282_v20  ;;  %v13316_v20 = vld [vmem:[%s17551_s4 + $0xac0] sm:$0xff]  }
0x14df   :  { %12369 = vmatprep.subr.bf16.mxu1 %v13284_v4  ;;  %10431 = vmatmul.mubr.bf16.vlgmr.msra.gmra.mrb[216].mxu0 %v9062_v14  ;;  %v13294_v14 = vld [vmem:[%s17551_s4 + $0x990] sm:$0xff]   ;;  %v13318_v4 = vld [vmem:[%s17551_s4 + $0xa80] sm:$0xff]  }
0x14e0   :  { %12348 = vmatpush3.bf16.msra.mxu0 %v13285_v6  ;;  %10512 = vmatprep.mubr.bf16.mxu0 %v9067_v7  ;;  %v13300_v7 = vld [vmem:[%s17551_s4 + $0x9e0] sm:$0xff]   ;;  %v13319_v6 = vld [vmem:[%s17551_s4 + $0xa48] sm:$0xff]  }
0x14e1   :  { %10472 = vmatmul.mubr.bf16.vlgmr.msra.gmra.mrb[216].mxu1 %v9064_v10  ;;  %12349 = vmatprep.subr.bf16.mxu0 %v13287_v41  ;;  %v13295_v10 = vld [vmem:[%s17551_s4 + $0x958] sm:$0xff]   ;;  %v13321_v41 = vld [vmem:[%s17551_s4 + $0xa08] sm:$0xff]  }
0x14e2   :  { %12370 = vmatpush3.bf16.msra.mxu1 %v13286_v33  ;;  %10553 = vmatprep.mubr.bf16.mxu1 %v9069_v18  ;;  %v13301_v18 = vld [vmem:[%s17551_s4 + $0x920] sm:$0xff]   ;;  %v13320_v33 = vld [vmem:[%s17551_s4 + $0xac8] sm:$0xff]  }
0x14e3   :  { %12371 = vmatprep.subr.bf16.mxu1 %v13288_v58  ;;  %v13334_v58 = vld [vmem:[%s17551_s4 + $0xaa0] sm:$0xff]  }
0x14e4   :  { %12350 = vmatpush3.bf16.msra.mxu0 %v13289_v11  ;;  %v13335_v11 = vld [vmem:[%s17551_s4 + $0xa68] sm:$0xff]  }
0x14e5   :  { %12351 = vmatprep.subr.bf16.mxu0 %v13291_v44  ;;  %v13337_v44 = vld [vmem:[%s17551_s4 + $0xa28] sm:$0xff]  }
0x14e6   :  { %12372 = vmatpush3.bf16.msra.mxu1 %v13290_v56  ;;  %v13336_v56 = vld [vmem:[%s17551_s4 + $0xae8] sm:$0xff]  }
0x14e7   :  { %12373 = vmatprep.subr.bf16.mxu1 %v13292_v1  ;;  %v13338_v1 = vld [vmem:[%s17551_s4 + $0xaa8] sm:$0xff]  }
0x14e8   :  { %12352 = vmatpush3.bf16.msra.mxu0 %v13293_v53  ;;  %v13339_v53 = vld [vmem:[%s17551_s4 + $0xa70] sm:$0xff]  }
0x14e9   :  { %12353 = vmatprep.subr.bf16.mxu0 %v13295_v10  ;;  %v13341_v10 = vld [vmem:[%s17551_s4 + $0xa30] sm:$0xff]  }
0x14ea   :  { %12374 = vmatpush3.bf16.msra.mxu1 %v13294_v14  ;;  %v13340_v14 = vld [vmem:[%s17551_s4 + $0xaf0] sm:$0xff]  }
0x14eb   :  { %12375 = vmatprep.subr.bf16.mxu1 %v13296_v16  ;;  %v13342_v16 = vld [vmem:[%s17551_s4 + $0xab0] sm:$0xff]  }
0x14ec   :  { %12354 = vmatpush3.bf16.msra.mxu0 %v13297_v46  ;;  %v13343_v46 = vld [vmem:[%s17551_s4 + $0xa78] sm:$0xff]  }
0x14ed   :  { %12355 = vmatprep.subr.bf16.mxu0 %v13299_v57  ;;  %v13345_v57 = vld [vmem:[%s17551_s4 + $0xa38] sm:$0xff]  }
0x14ee   :  { %12376 = vmatpush3.bf16.msra.mxu1 %v13298_v0  ;;  %v13344_v0 = vld [vmem:[%s17551_s4 + $0xaf8] sm:$0xff]  }
0x14ef   :  { %12377 = vmatprep.subr.bf16.mxu1 %v13300_v7  ;;  %v13346_v7 = vld [vmem:[%s17551_s4 + $0xab8] sm:$0xff]  }
0x14f0   :  { %12356 = vmatpush3.bf16.msra.mxu0 %v13301_v18  ;;  %v13347_v18 = vld [vmem:[%s17551_s4 + $0xb40] sm:$0xff]  }
0x14f1   :  { %12357 = vmatprep.subr.bf16.mxu0 %v13303_v61  ;;  %v13349_v61 = vld [vmem:[%s17551_s4 + $0xb00] sm:$0xff]  }
0x14f2   :  { %12378 = vmatpush3.bf16.msra.mxu1 %v13302_v38  ;;  %v13348_v38 = vld [vmem:[%s17551_s4 + $0xbc0] sm:$0xff]  }
0x14f3   :  { %12379 = vmatprep.subr.bf16.mxu1 %v13304_v45  ;;  %v13350_v45 = vld [vmem:[%s17551_s4 + $0xb80] sm:$0xff]  }
0x14f4   :  { %12358 = vmatpush3.bf16.msra.mxu0 %v13305_v17  ;;  %v13351_v17 = vld [vmem:[%s17551_s4 + $0xb48] sm:$0xff]  }
0x14f5   :  { %12359 = vmatprep.subr.bf16.mxu0 %v13307_v60  ;;  %v13353_v60 = vld [vmem:[%s17551_s4 + $0xb08] sm:$0xff]  }
0x14f6   :  { %12380 = vmatpush3.bf16.msra.mxu1 %v13306_v24  ;;  %v13352_v24 = vld [vmem:[%s17551_s4 + $0xbc8] sm:$0xff]  }
0x14f7   :  { %12381 = vmatprep.subr.bf16.mxu1 %v13308_v40  ;;  %v13366_v40 = vld [vmem:[%s17551_s4 + $0xba0] sm:$0xff]  }
0x14f8   :  { %12360 = vmatpush3.bf16.msra.mxu0 %v13309_v5  ;;  %v13367_v5 = vld [vmem:[%s17551_s4 + $0xb68] sm:$0xff]  }
0x14f9   :  { %12361 = vmatprep.subr.bf16.mxu0 %v13311_v50  ;;  %v13369_v50 = vld [vmem:[%s17551_s4 + $0xb28] sm:$0xff]  }
0x14fa   :  { %12382 = vmatpush3.bf16.msra.mxu1 %v13310_v42  ;;  %v13368_v42 = vld [vmem:[%s17551_s4 + $0xbe8] sm:$0xff]  }
0x14fb   :  { %12383 = vmatprep.subr.bf16.mxu1 %v13312_v43  ;;  %v13370_v43 = vld [vmem:[%s17551_s4 + $0xba8] sm:$0xff]  }
0x14fc   :  { %12362 = vmatpush3.bf16.msra.mxu0 %v13313_v49  ;;  %v13371_v49 = vld [vmem:[%s17551_s4 + $0xb70] sm:$0xff]  }
0x14fd   :  { %12391 = vmatprep.subr.bf16.mxu0 %v13315_v12  ;;  %v13373_v12 = vld [vmem:[%s17551_s4 + $0xb30] sm:$0xff]  }
0x14fe   :  { %12384 = vmatpush3.bf16.msra.mxu1 %v13314_v52  ;;  %v13372_v52 = vld [vmem:[%s17551_s4 + $0xbf0] sm:$0xff]  }
0x14ff   :  { %12413 = vmatprep.subr.bf16.mxu1 %v13316_v20  ;;  %10513 = vmatmul.mubr.bf16.vlgmr.msra.gmra.mrb[220].mxu0 %v9066_v15  ;;  %v13326_v15 = vld [vmem:[%s17551_s4 + $0xa90] sm:$0xff]  }
0x1500   :  { %12392 = vmatpush3.bf16.msra.mxu0 %v13317_v48  ;;  %10594 = vmatprep.mubr.bf16.mxu0 %v9071_v23  ;;  %v13332_v23 = vld [vmem:[%s17551_s4 + $0xae0] sm:$0xff]   ;;  %v13374_v20 = vld [vmem:[%s17551_s4 + $0xbb0] sm:$0xff]   ;;  %v13375_v48 = vld [vmem:[%s17551_s4 + $0xb78] sm:$0xff]  }
0x1501   :  { %10554 = vmatmul.mubr.bf16.vlgmr.msra.gmra.mrb[220].mxu1 %v9068_v34  ;;  %12393 = vmatprep.subr.bf16.mxu0 %v13319_v6  ;;  %v13327_v34 = vld [vmem:[%s17551_s4 + $0xa58] sm:$0xff]  }
0x1502   :  { %12414 = vmatpush3.bf16.msra.mxu1 %v13318_v4  ;;  %10635 = vmatprep.mubr.bf16.mxu1 %v9073_v28  ;;  %v13333_v28 = vld [vmem:[%s17551_s4 + $0xa20] sm:$0xff]   ;;  %v13376_v4 = vld [vmem:[%s17551_s4 + $0xbf8] sm:$0xff]  }
0x1503   :  { %12415 = vmatprep.subr.bf16.mxu1 %v13320_v33  ;;  %v13377_v6 = vld [vmem:[%s17551_s4 + $0xb38] sm:$0xff]  }
0x1504   :  { %12394 = vmatpush3.bf16.msra.mxu0 %v13321_v41  ;;  %v13378_v33 = vld [vmem:[%s17551_s4 + $0xbb8] sm:$0xff]  }
0x1505   :  { %12395 = vmatprep.subr.bf16.mxu0 %v13323_v19  ;;  %v17655_v19 = vld [vmem:[#allocation13_spill] sm:$0xff] }
0x1506   :  { %12416 = vmatpush3.bf16.msra.mxu1 %v13322_v26  ;;  %v17517_v26 = vld [vmem:[%s17552_s5 + $0x10] sm:$0xff] }
0x1507   :  { %12417 = vmatprep.subr.bf16.mxu1 %v13324_v8  ;;  %v9081_v8 = vrot.slane %v17517_v26, %v17655_v19 }
0x1508   :  { %12396 = vmatpush3.bf16.msra.mxu0 %v13325_v27 }
0x1509   :  { %12397 = vmatprep.subr.bf16.mxu0 %v13327_v34 }
0x150a   :  { %12418 = vmatpush3.bf16.msra.mxu1 %v13326_v15 }
0x150b   :  { %12419 = vmatprep.subr.bf16.mxu1 %v13328_v54 }
0x150c   :  { %12398 = vmatpush3.bf16.msra.mxu0 %v13329_v13 }
0x150d   :  { %12399 = vmatprep.subr.bf16.mxu0 %v13331_v39 }
0x150e   :  { %12420 = vmatpush3.bf16.msra.mxu1 %v13330_v51 }
0x150f   :  { %12421 = vmatprep.subr.bf16.mxu1 %v13332_v23 }
0x1510   :  { %12400 = vmatpush3.bf16.msra.mxu0 %v13333_v28 }
0x1511   :  { %12401 = vmatprep.subr.bf16.mxu0 %v13335_v11 }
0x1512   :  { %12422 = vmatpush3.bf16.msra.mxu1 %v13334_v58 }
0x1513   :  { %12423 = vmatprep.subr.bf16.mxu1 %v13336_v56 }
0x1514   :  { %12402 = vmatpush3.bf16.msra.mxu0 %v13337_v44 }
0x1515   :  { %12403 = vmatprep.subr.bf16.mxu0 %v13339_v53 }
0x1516   :  { %12424 = vmatpush3.bf16.msra.mxu1 %v13338_v1 }
0x1517   :  { %12425 = vmatprep.subr.bf16.mxu1 %v13340_v14 }
0x1518   :  { %12404 = vmatpush3.bf16.msra.mxu0 %v13341_v10 }
0x1519   :  { %12405 = vmatprep.subr.bf16.mxu0 %v13343_v46 }
0x151a   :  { %12426 = vmatpush3.bf16.msra.mxu1 %v13342_v16 }
0x151b   :  { %12427 = vmatprep.subr.bf16.mxu1 %v13344_v0 }
0x151c   :  { %12406 = vmatpush3.bf16.msra.mxu0 %v13345_v57 }
0x151d   :  { %12435 = vmatprep.subr.bf16.mxu0 %v13347_v18 }
0x151e   :  { %12428 = vmatpush3.bf16.msra.mxu1 %v13346_v7 }
0x151f   :  { %12457 = vmatprep.subr.bf16.mxu1 %v13348_v38  ;;  %10595 = vmatmul.mubr.bf16.vlgmr.msra.gmra.mrb[224].mxu0 %v9070_v47  ;;  %v13358_v47 = vld [vmem:[%s17551_s4 + $0xb90] sm:$0xff]  }
0x1520   :  { %12436 = vmatpush3.bf16.msra.mxu0 %v13349_v61  ;;  %10676 = vmatprep.mubr.bf16.mxu0 %v9075_v37  ;;  %v13364_v37 = vld [vmem:[%s17551_s4 + $0xbe0] sm:$0xff]  }
0x1521   :  { %10636 = vmatmul.mubr.bf16.vlgmr.msra.gmra.mrb[224].mxu1 %v9072_v31  ;;  %12437 = vmatprep.subr.bf16.mxu0 %v13351_v17  ;;  %v13359_v31 = vld [vmem:[%s17551_s4 + $0xb58] sm:$0xff]  }
0x1522   :  { %12458 = vmatpush3.bf16.msra.mxu1 %v13350_v45  ;;  %10717 = vmatprep.mubr.bf16.mxu1 %v9077_v59  ;;  %v13365_v59 = vld [vmem:[%s17551_s4 + $0xb20] sm:$0xff]  }
0x1523   :  { %12459 = vmatprep.subr.bf16.mxu1 %v13352_v24 }
0x1524   :  { %12438 = vmatpush3.bf16.msra.mxu0 %v13353_v60 }
0x1525   :  { %12439 = vmatprep.subr.bf16.mxu0 %v13355_v32 }
0x1526   :  { %12460 = vmatpush3.bf16.msra.mxu1 %v13354_v35 }
0x1527   :  { %12461 = vmatprep.subr.bf16.mxu1 %v13356_v2 }
0x1528   :  { %12440 = vmatpush3.bf16.msra.mxu0 %v13357_v3 }
0x1529   :  { %12441 = vmatprep.subr.bf16.mxu0 %v13359_v31 }
0x152a   :  { %12462 = vmatpush3.bf16.msra.mxu1 %v13358_v47 }
0x152b   :  { %12463 = vmatprep.subr.bf16.mxu1 %v13360_v22 }
0x152c   :  { %12442 = vmatpush3.bf16.msra.mxu0 %v13361_v55 }
0x152d   :  { %12443 = vmatprep.subr.bf16.mxu0 %v13363_v36 }
0x152e   :  { %12464 = vmatpush3.bf16.msra.mxu1 %v13362_v62 }
0x152f   :  { %12465 = vmatprep.subr.bf16.mxu1 %v13364_v37 }
0x1530   :  { %12444 = vmatpush3.bf16.msra.mxu0 %v13365_v59 }
0x1531   :  { %12445 = vmatprep.subr.bf16.mxu0 %v13367_v5 }
0x1532   :  { %12466 = vmatpush3.bf16.msra.mxu1 %v13366_v40 }
0x1533   :  { %12467 = vmatprep.subr.bf16.mxu1 %v13368_v42 }
0x1534   :  { %12446 = vmatpush3.bf16.msra.mxu0 %v13369_v50 }
0x1535   :  { %12447 = vmatprep.subr.bf16.mxu0 %v13371_v49 }
0x1536   :  { %12468 = vmatpush3.bf16.msra.mxu1 %v13370_v43 }
0x1537   :  { %12469 = vmatprep.subr.bf16.mxu1 %v13372_v52 }
0x1538   :  { %12448 = vmatpush3.bf16.msra.mxu0 %v13373_v12 }
0x1539   :  { %12449 = vmatprep.subr.bf16.mxu0 %v13375_v48 }
0x153a   :  { %12470 = vmatpush3.bf16.msra.mxu1 %v13374_v20 }
0x153b   :  { %12471 = vmatprep.subr.bf16.mxu1 %v13376_v4 }
0x153c   :  { %12450 = vmatpush3.bf16.msra.mxu0 %v13377_v6 }
0x153e   :  { %12472 = vmatpush3.bf16.msra.mxu1 %v13378_v33 }
0x153f   :  { %10677 = vmatmul.mubr.bf16.vlgmr.msra.gmra.mrb[228].mxu0 %v9074_v9 }
0x1541   :  { %10718 = vmatmul.mubr.bf16.vlgmr.msra.gmra.mrb[228].mxu1 %v9076_v30 }
0x1572   :  { %v12231_v41 = vpop.f32.mrb[208].mxu0 }
0x1573   :  { %v12232_v15 = vpop.f32.mrb[209].mxu0 }
0x1574   :  { %v12253_v27 = vpop.f32.mrb[208].mxu1  ;;  %v12233_v34 = vadd.f32 %v12232_v15, %v12231_v41  ;;  %v12234_v13 = vpop.f32.mrb[210].mxu0 }
0x1575   :  { %v12254_v54 = vpop.f32.mrb[209].mxu1  ;;  %v12235_v9 = vpop.f32.mrb[211].mxu0 }
0x1576   :  { %v12255_v29 = vadd.f32 %v12254_v54, %v12253_v27  ;;  %v12256_v63 = vpop.f32.mrb[210].mxu1  ;;  %v10269_v51 = vadd.f32 %v12233_v34, %v9081_v8  ;;  %v12236_v21 = vadd.f32 %v12235_v9, %v12234_v13 }
0x1577   :  { %v12257_v25 = vpop.f32.mrb[211].mxu1 }
0x1578   :  { %v12258_v30 = vadd.f32 %v12257_v25, %v12256_v63  ;;  %v10310_v39 = vadd.f32 %v12255_v29, %v10269_v51  ;;  %v10272_v23 = vadd.f32 %v12236_v21, %v9081_v8 }
0x157a   :  { %v10313_v28 = vadd.f32 %v12258_v30, %v10272_v23 }
0x1592   :  { %v12275_v58 = vpop.f32.mrb[212].mxu0 }
0x1593   :  { %v12276_v56 = vpop.f32.mrb[213].mxu0 }
0x1594   :  { %v12297_v11 = vpop.f32.mrb[212].mxu1  ;;  %v12277_v44 = vadd.f32 %v12276_v56, %v12275_v58  ;;  %v12278_v53 = vpop.f32.mrb[214].mxu0 }
0x1595   :  { %v12298_v1 = vpop.f32.mrb[213].mxu1  ;;  %v12279_v16 = vpop.f32.mrb[215].mxu0 }
0x1596   :  { %v12299_v14 = vadd.f32 %v12298_v1, %v12297_v11  ;;  %v12300_v10 = vpop.f32.mrb[214].mxu1  ;;  %v10351_v46 = vadd.f32 %v12277_v44, %v10310_v39  ;;  %v12280_v0 = vadd.f32 %v12279_v16, %v12278_v53 }
0x1597   :  { %v12301_v57 = vpop.f32.mrb[215].mxu1 }
0x1598   :  { %v12302_v7 = vadd.f32 %v12301_v57, %v12300_v10  ;;  %v10392_v18 = vadd.f32 %v12299_v14, %v10351_v46  ;;  %v10354_v38 = vadd.f32 %v12280_v0, %v10313_v28 }
0x159a   :  { %v10395_v61 = vadd.f32 %v12302_v7, %v10354_v38 }
0x15b2   :  { %v12319_v45 = vpop.f32.mrb[216].mxu0 }
0x15b3   :  { %v12320_v24 = vpop.f32.mrb[217].mxu0 }
0x15b4   :  { %v12341_v17 = vpop.f32.mrb[216].mxu1  ;;  %v12321_v60 = vadd.f32 %v12320_v24, %v12319_v45  ;;  %v12322_v32 = vpop.f32.mrb[218].mxu0 }
0x15b5   :  { %v12342_v35 = vpop.f32.mrb[217].mxu1  ;;  %v12323_v47 = vpop.f32.mrb[219].mxu0 }
0x15b6   :  { %v12343_v2 = vadd.f32 %v12342_v35, %v12341_v17  ;;  %v12344_v3 = vpop.f32.mrb[218].mxu1  ;;  %v10433_v31 = vadd.f32 %v12321_v60, %v10392_v18  ;;  %v12324_v22 = vadd.f32 %v12323_v47, %v12322_v32  ;;  %v17656_v17 = vld [vmem:[#allocation15_spill] sm:$0xff]  ;;  %v17657_v35 = vld [vmem:[#allocation16_spill] sm:$0xff] }
0x15b7   :  { %v12345_v55 = vpop.f32.mrb[219].mxu1 }
0x15b8   :  { %v12346_v62 = vadd.f32 %v12345_v55, %v12344_v3  ;;  %v10474_v36 = vadd.f32 %v12343_v2, %v10433_v31  ;;  %v10436_v37 = vadd.f32 %v12324_v22, %v10395_v61 }
0x15ba   :  { %v10477_v59 = vadd.f32 %v12346_v62, %v10436_v37 }
0x15d2   :  { %v12363_v40 = vpop.f32.mrb[220].mxu0 }
0x15d3   :  { %v12364_v42 = vpop.f32.mrb[221].mxu0 }
0x15d4   :  { %v12385_v5 = vpop.f32.mrb[220].mxu1  ;;  %v12365_v50 = vadd.f32 %v12364_v42, %v12363_v40  ;;  %v12366_v49 = vpop.f32.mrb[222].mxu0 }
0x15d5   :  { %v12386_v43 = vpop.f32.mrb[221].mxu1  ;;  %v12367_v20 = vpop.f32.mrb[223].mxu0 }
0x15d6   :  { %v12387_v52 = vadd.f32 %v12386_v43, %v12385_v5  ;;  %v12388_v12 = vpop.f32.mrb[222].mxu1  ;;  %v10515_v48 = vadd.f32 %v12365_v50, %v10474_v36  ;;  %v12368_v4 = vadd.f32 %v12367_v20, %v12366_v49 }
0x15d7   :  { %v12389_v6 = vpop.f32.mrb[223].mxu1 }
0x15d8   :  { %v12390_v33 = vadd.f32 %v12389_v6, %v12388_v12  ;;  %v10556_v41 = vadd.f32 %v12387_v52, %v10515_v48  ;;  %v10518_v19 = vadd.f32 %v12368_v4, %v10477_v59  ;;  %v17658_v12 = vld [vmem:[#allocation14_spill] sm:$0xff] }
0x15d9   :  { %v10757_v20 = vrot.slane %v17517_v26, %v17658_v12 }
0x15da   :  { %v10559_v8 = vadd.f32 %v12390_v33, %v10518_v19  ;;  %v11810_v33 = vld [vmem:[%s17552_s5 + $0x18] ss:$0 sm:$0xff] }
0x15f2   :  { %v12407_v27 = vpop.f32.mrb[224].mxu0 }
0x15f3   :  { %v12408_v34 = vpop.f32.mrb[225].mxu0 }
0x15f4   :  { %v12429_v15 = vpop.f32.mrb[224].mxu1  ;;  %v12409_v54 = vadd.f32 %v12408_v34, %v12407_v27  ;;  %v12410_v29 = vpop.f32.mrb[226].mxu0 }
0x15f5   :  { %v12430_v13 = vpop.f32.mrb[225].mxu1  ;;  %v12411_v51 = vpop.f32.mrb[227].mxu0 }
0x15f6   :  { %v12431_v63 = vadd.f32 %v12430_v13, %v12429_v15  ;;  %v12432_v9 = vpop.f32.mrb[226].mxu1  ;;  %v10597_v21 = vadd.f32 %v12409_v54, %v10556_v41  ;;  %v12412_v25 = vadd.f32 %v12411_v51, %v12410_v29 }
0x15f7   :  { %v12433_v30 = vpop.f32.mrb[227].mxu1 }
0x15f8   :  { %v12434_v39 = vadd.f32 %v12433_v30, %v12432_v9  ;;  %v10638_v23 = vadd.f32 %v12431_v63, %v10597_v21  ;;  %v10600_v28 = vadd.f32 %v12412_v25, %v10559_v8 }
0x15fa   :  { %v10641_v58 = vadd.f32 %v12434_v39, %v10600_v28 }
0x1612   :  { %v12451_v11 = vpop.f32.mrb[228].mxu0 }
0x1613   :  { %v12452_v44 = vpop.f32.mrb[229].mxu0 }
0x1614   :  { %v12473_v56 = vpop.f32.mrb[228].mxu1  ;;  %v12453_v1 = vadd.f32 %v12452_v44, %v12451_v11  ;;  %v12454_v14 = vpop.f32.mrb[230].mxu0 }
0x1615   :  { %v12474_v53 = vpop.f32.mrb[229].mxu1  ;;  %v12455_v46 = vpop.f32.mrb[231].mxu0 }
0x1616   :  { %v12475_v10 = vadd.f32 %v12474_v53, %v12473_v56  ;;  %v12476_v16 = vpop.f32.mrb[230].mxu1  ;;  %v10679_v0 = vadd.f32 %v12453_v1, %v10638_v23  ;;  %v12456_v57 = vadd.f32 %v12455_v46, %v12454_v14 }
0x1617   :  { %v12477_v7 = vpop.f32.mrb[231].mxu1 }
0x1618   :  { %v12478_v18 = vadd.f32 %v12477_v7, %v12476_v16  ;;  %v10720_v38 = vadd.f32 %v12475_v10, %v10679_v0  ;;  %v10682_v61 = vadd.f32 %v12456_v57, %v10641_v58 }
0x161a   :  { %v10723_v45 = vadd.f32 %v12478_v18, %v10682_v61  ;;  %v10726_v24 = vadd.f32 %v10720_v38, %v17656_v17 }
0x161c   :  { %v10728_v60 = vsel %vm488_vm1, %v10726_v24, 0.0  ;;  %v10727_v32 = vadd.f32 %v10723_v45, %v17657_v35 }
0x161d   :  { %10729 = vadd.xlane.f32.xlu0 %v10728_v60 }
0x161e   :  { %v10731_v2 = vsel %vm488_vm1, %v10727_v32, 0.0 }
0x161f   :  { %10732 = vadd.xlane.f32.xlu1 %v10731_v2 }
0x16aa   :  { %v10730_v3 = vpop.xlane.xlu0 %10729 }
0x16ab   :  { %v10734_v47 = vmul.f32 0.03125, %v10730_v3 }
0x16ac   :  { %v10733_v31 = vpop.xlane.xlu1 %10732 }
0x16ad   :  { %v10736_v22 = vsub.f32 %v10726_v24, %v10734_v47  ;;  %v10735_v55 = vmul.f32 0.03125, %v10733_v31 }
0x16af   :  { %v10737_v62 = vsub.f32 %v10727_v32, %v10735_v55  ;;  %v10738_v36 = vmul.f32 %v10736_v22, %v10736_v22 }
0x16b1   :  { %v10740_v37 = vsel %vm488_vm1, %v10738_v36, 0.0  ;;  %v10739_v59 = vmul.f32 %v10737_v62, %v10737_v62 }
0x16b2   :  { %10741 = vadd.xlane.f32.xlu0 %v10740_v37 }
0x16b3   :  { %v10743_v40 = vsel %vm488_vm1, %v10739_v59, 0.0 }
0x16b4   :  { %10744 = vadd.xlane.f32.xlu1 %v10743_v40 }
0x173f   :  { %v10742_v5 = vpop.xlane.xlu0 %10741 }
0x1740   :  { %v10746_v42 = vmul.f32 0.03125, %v10742_v5 }
0x1741   :  { %v10745_v50 = vpop.xlane.xlu1 %10744 }
0x1742   :  { %v10748_v43 = vadd.f32 1e-12, %v10746_v42  ;;  %v10747_v49 = vmul.f32 0.03125, %v10745_v50 }
0x1744   :  { %13711 = vrsqrt.f32 %v10748_v43  ;;  %v10749_v52 = vadd.f32 1e-12, %v10747_v49 }
0x1746   :  { %13713 = vrsqrt.f32 %v10749_v52 }
0x174e   :  { %v13712_v48 = vpop.eup %13711 }
0x174f   :  { %v10752_v4 = vmul.f32 %v13712_v48, %v10736_v22 }
0x1750   :  { %v13714_v6 = vpop.eup %13713 }
0x1751   :  { %v10753_v41 = vmul.f32 %v13714_v6, %v10737_v62  ;;  %v10758_v19 = vmul.f32 %v10757_v20, %v10752_v4 }
0x1753   :  { %v10759_v8 = vmul.f32 %v10757_v20, %v10753_v41  ;;  %v10764_v27 = vadd.f32 %v11810_v33, %v10758_v19 }
0x1755   :  { %v10765_v15 = vadd.f32 %v11810_v33, %v10759_v8  ;;  %10766 = vst.msk [vmem:[#allocation2] sm:$0xff] %vm488_vm1, %v10764_v27 }
0x1757   :  { %10767 = vst.msk [vmem:[#allocation2 + $0x8] sm:$0xff] %vm488_vm1, %v10765_v15 }
0x1758   :  { %13733 = shalt.err (!%p13730_p4)
}
0x1759   :  { %s13734_s11 = scalar_lea.hbm %s17554_s7, 256 }
0x175a   :  { %p13735_p5 = scmp.ne.s32.totalorder %s17554_s7, %s13734_s11  ;;  %p13738_p6 = scmp.lt.u32.totalorder %s13734_s11, %s17554_s7 }
0x175c   :  { %p13740_p7 = pnand %p13738_p6, %p13735_p5 }
0x175e   :  { %13743 = shalt.err (!%p13740_p7)
}
0x175f   :  { %s13767_s15 = smov 128  }
0x1760   :  { %10779 = dma.vmem_to_hbm [thread:$0]  %s10774_s20, 256, %s17554_s7, [#allocation3], %s13767_s15, %s13767_s15, %s13759_s24  }
0x1761   :  { %13744 = dma.done.wait [#allocation3], 256  }
0x1762   :  { %13745 = vsyncadd [#allocation3], 4294967040 }
0x1763   :  { %10783 = vsyncpa [#allocation3], 1 }

</bundles_post_ra>
